<compile_context>
chip_gen: v6e
topology: v6e:2x2x1
jax: 0.10.0
libtpu: 0.0.40
codegen_flags: <defaults>
</compile_context>

<pallas_src>
import jax
import jax.numpy as jnp
from jax.experimental import pallas as pl
from jax.experimental.pallas import tpu as pltpu

BN_EPS = 1e-5


def _round_up(x, m):
    return (x + m - 1) // m * m


# ---------------------------------------------------------------------------
# Fused conv pass: (optional BN+ReLU of previous layer on the input) ->
#                  3x3 conv + bias (9 shifted MXU matmuls, fused im2col) ->
#                  raw conv output + per-image channel sum / sum-of-squares.
# ---------------------------------------------------------------------------

def _make_conv_kernel(H, W, Cin, Cpad, apply_input_bn_relu):
    def kernel(*refs):
        if apply_input_bn_relu:
            x_ref, sc_ref, w_ref, b_ref, y_ref, st_ref, pad_scr = refs
        else:
            x_ref, w_ref, b_ref, y_ref, st_ref, pad_scr = refs

        x = x_ref[0].astype(jnp.float32)                       # (H, W, Cin)
        if apply_input_bn_relu:
            sc = sc_ref[...]                                   # (2, Cin) f32
            scale = sc[0].reshape(1, 1, Cin)
            shift = sc[1].reshape(1, 1, Cin)
            x = jnp.maximum(x * scale + shift, 0.0)            # fused BN + ReLU

        # Zero-padded activation tile in VMEM: the fused "im2col" halo.
        pad_scr[...] = jnp.zeros_like(pad_scr)
        pad_scr[1:H + 1, 1:W + 1, :] = x.astype(jnp.bfloat16)

        # 3x3 conv = 9 shifted (H*W, Cin) @ (Cin, Cpad) matmuls, f32 accumulate.
        acc = jnp.zeros((H * W, Cpad), jnp.float32)
        for t in range(9):
            kh, kw = divmod(t, 3)
            patch = pad_scr[kh:kh + H, kw:kw + W, :].reshape(H * W, Cin)
            acc = acc + jnp.dot(patch, w_ref[t],
                                preferred_element_type=jnp.float32)
        acc = acc + b_ref[...]                                 # (1, Cpad) bias

        y_ref[0] = acc.reshape(H, W, Cpad).astype(y_ref.dtype)

        # Per-image statistics for training-mode BatchNorm (two-pass).
        # TODO(synk): E[y^2]-E[y]^2 in f32 can cancel at production batch
        # sizes; switch to a shifted / compensated sum if needed.
        st_ref[0, 0:1, :] = jnp.sum(acc, axis=0, keepdims=True)
        st_ref[0, 1:2, :] = jnp.sum(acc * acc, axis=0, keepdims=True)
    return kernel


def _conv_pass(x_nhwc, scale_shift, w_packed, bias_row, *, out_dtype):
    """One conv layer: per-image grid, fused im2col, bf16 MXU, f32 statistics."""
    N, H, W, Cin = x_nhwc.shape
    Cpad = w_packed.shape[-1]
    apply_bn_relu = scale_shift is not None

    kernel = _make_conv_kernel(H, W, Cin, Cpad, apply_bn_relu)

    in_specs = [pl.BlockSpec((1, H, W, Cin), lambda n: (n, 0, 0, 0))]
    args = [x_nhwc]
    if apply_bn_relu:
        in_specs.append(pl.BlockSpec((2, Cpad), lambda n: (0, 0)))   # resident
        args.append(scale_shift)
    in_specs += [pl.BlockSpec((9, Cin, Cpad), lambda n: (0, 0, 0)),  # resident weights
                 pl.BlockSpec((1, Cpad), lambda n: (0, 0))]          # resident bias
    args += [w_packed, bias_row]

    out_shape = (jax.ShapeDtypeStruct((N, H, W, Cpad), out_dtype),
                 jax.ShapeDtypeStruct((N, 2, Cpad), jnp.float32))
    out_specs = (pl.BlockSpec((1, H, W, Cpad), lambda n: (n, 0, 0, 0)),
                 pl.BlockSpec((1, 2, Cpad), lambda n: (n, 0, 0)))

    # VMEM budget from the actual tile footprint (double-buffered blocks +
    # resident weights + pad scratch + f32 accumulator), clamped for 64 MiB v7x.
    out_isz = 2 if out_dtype == jnp.bfloat16 else 4
    in_isz = x_nhwc.dtype.itemsize
    foot = (2 * (H * W * Cin * in_isz + H * W * Cpad * out_isz + 5 * Cpad * 4)
            + 2 * 9 * Cin * Cpad * 2
            + (H + 2) * (W + 2) * Cin * 2
            + 2 * H * W * Cpad * 4)
    vmem_limit = max(32 << 20, min(int(1.5 * foot) + (4 << 20), 64 << 20))

    flops = 2 * N * H * W * 9 * Cin * Cpad
    bytes_accessed = (x_nhwc.size * in_isz + w_packed.size * 2
                      + N * H * W * Cpad * out_isz + N * 2 * Cpad * 4)

    return pl.pallas_call(
        kernel,
        out_shape=out_shape,
        grid=(N,),
        in_specs=in_specs,
        out_specs=out_specs,
        scratch_shapes=[pltpu.VMEM((H + 2, W + 2, Cin), jnp.bfloat16)],
        compiler_params=pltpu.CompilerParams(
            dimension_semantics=("parallel",),      # per-image partial stats
            vmem_limit_bytes=vmem_limit),
        cost_estimate=pl.CostEstimate(flops=flops, transcendentals=0,
                                      bytes_accessed=bytes_accessed),
    )(*args)


# ---------------------------------------------------------------------------
# Final elementwise pass: BN2 apply + residual add + ReLU.
# ---------------------------------------------------------------------------

def _bn_residual_relu_kernel(y_ref, sc_ref, r_ref, o_ref):
    sc = sc_ref[...]                                          # (2, Cpad)
    y = y_ref[...] * sc[0:1, :] + sc[1:2, :] + r_ref[...]
    o_ref[...] = jnp.maximum(y, 0.0)


def _bn_residual_relu(y_flat, scale_shift, res_flat):
    M, Cpad = y_flat.shape
    tm = M if M <= 512 else 512        # cdiv grid; elementwise so the masked
    grid = (pl.cdiv(M, tm),)           # remainder block is safe.
    tile = pl.BlockSpec((tm, Cpad), lambda i: (i, 0))
    small = pl.BlockSpec((2, Cpad), lambda i: (0, 0))
    return pl.pallas_call(
        _bn_residual_relu_kernel,
        out_shape=jax.ShapeDtypeStruct((M, Cpad), jnp.float32),
        grid=grid,
        in_specs=[tile, small, tile],
        out_specs=tile,
        compiler_params=pltpu.CompilerParams(
            dimension_semantics=("parallel",)),
    )(y_flat, scale_shift, res_flat)


# ---------------------------------------------------------------------------
# Host-side glue (weight packing, tiny BN scale/shift reduction).
# ---------------------------------------------------------------------------

def _pack_weight(w_oihw, cin_pad, cout_pad):
    Cout, Cin, KH, KW = w_oihw.shape
    w = jnp.transpose(w_oihw, (2, 3, 1, 0)).reshape(KH * KW, Cin, Cout)
    w = jnp.pad(w, ((0, 0), (0, cin_pad - Cin), (0, cout_pad - Cout)))
    return w.astype(jnp.bfloat16)


def _pad_row(v, n):
    return jnp.pad(v.astype(jnp.float32), (0, n - v.shape[0])).reshape(1, n)


def _bn_scale_shift(stats, gamma, beta, count, Cpad):
    st = jnp.sum(stats, axis=0)                               # (2, Cpad)
    mean = st[0] / count
    var = jnp.maximum(st[1] / count - mean * mean, 0.0)
    g = jnp.pad(gamma.astype(jnp.float32), (0, Cpad - gamma.shape[0]))
    b = jnp.pad(beta.astype(jnp.float32), (0, Cpad - beta.shape[0]))
    scale = g * jax.lax.rsqrt(var + BN_EPS)
    shift = b - mean * scale
    return jnp.stack([scale, shift], axis=0)                  # (2, Cpad)


def residual_block(x_nchw, w1, b1, g1, be1, w2, b2, g2, be2):
    """ResidualBlock forward (stride=1, in_channels == out_channels),
    BatchNorm2d in training mode (batch statistics, biased variance)."""
    N, Cin, H, W = x_nchw.shape
    Cout = w1.shape[0]
    assert Cout == Cin, "residual add requires in_channels == out_channels"

    M = N * H * W
    Cpad = _round_up(Cout, 128)        # lane-dense channel dim
    Cin1 = _round_up(Cin, 16)          # bf16 sublane-aligned contraction dim

    x_nhwc = jnp.transpose(x_nchw, (0, 2, 3, 1)).astype(jnp.float32)
    x_in = jnp.pad(x_nhwc, ((0, 0), (0, 0), (0, 0), (0, Cin1 - Cin)))

    w1p = _pack_weight(w1, Cin1, Cpad)     # (9, Cin1, Cpad) bf16
    w2p = _pack_weight(w2, Cpad, Cpad)     # (9, Cpad, Cpad) bf16 (input = y1)
    b1r = _pad_row(b1, Cpad)
    b2r = _pad_row(b2, Cpad)

    # layer 1: fused-im2col conv1 + bias, per-image stats; raw output kept bf16.
    y1, st1 = _conv_pass(x_in, None, w1p, b1r, out_dtype=jnp.bfloat16)
    sc1 = _bn_scale_shift(st1, g1, be1, M, Cpad)

    # layer 2: BN1 + ReLU fused onto conv2's input (a1 never hits HBM).
    y2, st2 = _conv_pass(y1, sc1, w2p, b2r, out_dtype=jnp.float32)
    sc2 = _bn_scale_shift(st2, g2, be2, M, Cpad)

    # final: BN2 apply + residual add + ReLU.
    res = jnp.pad(x_nhwc.reshape(M, Cin), ((0, 0), (0, Cpad - Cin)))
    out = _bn_residual_relu(y2.reshape(M, Cpad), sc2, res)

    return out[:, :Cout].reshape(N, H, W, Cout).transpose(0, 3, 1, 2)


# --------- pure-JAX reference (mirrors the PyTorch forward, training-mode BN) ----------

def reference_jax(x, w1, b1, g1, be1, w2, b2, g2, be2):
    def conv_bn(h, w, b, g, be):
        y = jax.lax.conv_general_dilated(
            h, w, window_strides=(1, 1), padding=((1, 1), (1, 1)),
            dimension_numbers=("NCHW", "OIHW", "NCHW"),
            precision=jax.lax.Precision.HIGHEST)
        y = y + b[None, :, None, None]
        m = jnp.mean(y, axis=(0, 2, 3), keepdims=True)
        v = jnp.mean((y - m) ** 2, axis=(0, 2, 3), keepdims=True)
        return (g[None, :, None, None] * (y - m) * jax.lax.rsqrt(v + BN_EPS)
                + be[None, :, None, None])

    h = jax.nn.relu(conv_bn(x, w1, b1, g1, be1))
    h = conv_bn(h, w2, b2, g2, be2)
    return jax.nn.relu(h + x)


if __name__ == "__main__":
    N, C, H, W = 2, 4, 16, 16

    key = jax.random.PRNGKey(0)
    kx, kw1, kb1, kw2, kb2, kg1, kbe1, kg2, kbe2 = jax.random.split(key, 9)

    x = jax.random.normal(kx, (N, C, H, W), dtype=jnp.float32)

    # nn.Conv2d default init bounds
    fan_in = C * 3 * 3
    bound = 1.0 / (fan_in ** 0.5)
    w1 = jax.random.uniform(kw1, (C, C, 3, 3), jnp.float32, -bound, bound)
    b1 = jax.random.uniform(kb1, (C,), jnp.float32, -bound, bound)
    w2 = jax.random.uniform(kw2, (C, C, 3, 3), jnp.float32, -bound, bound)
    b2 = jax.random.uniform(kb2, (C,), jnp.float32, -bound, bound)
    # BatchNorm2d affine params (defaults gamma=1, beta=0; perturbed to exercise the path)
    g1 = 1.0 + 0.1 * jax.random.normal(kg1, (C,), jnp.float32)
    be1 = 0.1 * jax.random.normal(kbe1, (C,), jnp.float32)
    g2 = 1.0 + 0.1 * jax.random.normal(kg2, (C,), jnp.float32)
    be2 = 0.1 * jax.random.normal(kbe2, (C,), jnp.float32)

    fwd = jax.jit(residual_block)
    out = jax.block_until_ready(fwd(x, w1, b1, g1, be1, w2, b2, g2, be2))
    ref = jax.block_until_ready(reference_jax(x, w1, b1, g1, be1, w2, b2, g2, be2))

    assert out.shape == (N, C, H, W), out.shape
    max_err = float(jnp.max(jnp.abs(out - ref)))
    # bf16 MXU inputs (f32 accumulation + f32 BN stats) vs a HIGHEST-precision
    # f32 reference -> tolerance loosened per the review.
    assert jnp.allclose(out, ref, rtol=5e-2, atol=5e-2), max_err

    print("KERNEL_OK")
</pallas_src>

<mosaic_0001>
module attributes {stable_mosaic.version = 11 : i64} {
  func.func @kernel(%arg0: i32, %arg1: memref<1x16x16x16xf32, #tpu.memory_space<vmem>>, %arg2: memref<9x16x128xbf16, #tpu.memory_space<vmem>>, %arg3: memref<1x128xf32, #tpu.memory_space<vmem>>, %arg4: memref<1x16x16x128xbf16, #tpu.memory_space<vmem>>, %arg5: memref<1x2x128xf32, #tpu.memory_space<vmem>>, %arg6: memref<18x18x16xbf16, #tpu.memory_space<vmem>>) attributes {dimension_semantics = [#tpu.dimension_semantics<parallel>], iteration_bounds = array<i64: 2>, scalar_prefetch = 0 : i64, scratch_operands = 1 : i64, tpu.core_type = #tpu.core_type<tc>, window_params = [{transform_indices = @transform_0, window_bounds = array<i64: 1, 16, 16, 16>}, {pipeline_mode = #tpu.pipeline_mode<synchronous>, transform_indices = @transform_1, window_bounds = array<i64: 9, 16, 128>}, {pipeline_mode = #tpu.pipeline_mode<synchronous>, transform_indices = @transform_2, window_bounds = array<i64: 1, 128>}, {transform_indices = @transform_3, window_bounds = array<i64: 1, 16, 16, 128>}, {transform_indices = @transform_4, window_bounds = array<i64: 1, 2, 128>}]} {
    %c0 = arith.constant 0 : index
    %c0_0 = arith.constant 0 : index
    %c0_1 = arith.constant 0 : index
    %c0_2 = arith.constant 0 : index
    %0 = vector.load %arg1[%c0, %c0_0, %c0_1, %c0_2] : memref<1x16x16x16xf32, #tpu.memory_space<vmem>>, vector<1x16x16x16xf32>
    %1 = vector.shape_cast %0 : vector<1x16x16x16xf32> to vector<16x16x16xf32>
    %cst = arith.constant 0.000000e+00 : bf16
    %2 = vector.broadcast %cst : bf16 to vector<18x18x16xbf16>
    %c0_3 = arith.constant 0 : index
    %c0_4 = arith.constant 0 : index
    %c0_5 = arith.constant 0 : index
    %3 = vector.load %arg6[%c0_3, %c0_4, %c0_5] : memref<18x18x16xbf16, #tpu.memory_space<vmem>>, vector<18x18x16xbf16>
    tpu.vector_store %arg6[%c0_3, %c0_4, %c0_5], %2 {strides = array<i32>} : memref<18x18x16xbf16, #tpu.memory_space<vmem>>, vector<18x18x16xbf16>,
    %4 = arith.truncf %1 : vector<16x16x16xf32> to vector<16x16x16xbf16>
    %c1 = arith.constant 1 : index
    %c1_6 = arith.constant 1 : index
    %c0_7 = arith.constant 0 : index
    %5 = vector.load %arg6[%c1, %c1_6, %c0_7] : memref<18x18x16xbf16, #tpu.memory_space<vmem>>, vector<16x16x16xbf16>
    tpu.vector_store %arg6[%c1, %c1_6, %c0_7], %4 {strides = array<i32>} : memref<18x18x16xbf16, #tpu.memory_space<vmem>>, vector<16x16x16xbf16>,
    %cst_8 = arith.constant 0.000000e+00 : f32
    %6 = vector.broadcast %cst_8 : f32 to vector<256x128xf32>
    %c0_9 = arith.constant 0 : index
    %c0_10 = arith.constant 0 : index
    %c0_11 = arith.constant 0 : index
    %7 = vector.load %arg6[%c0_9, %c0_10, %c0_11] : memref<18x18x16xbf16, #tpu.memory_space<vmem>>, vector<16x16x16xbf16>
    %8 = vector.shape_cast %7 : vector<16x16x16xbf16> to vector<256x16xbf16>
    %c0_12 = arith.constant 0 : index
    %c0_13 = arith.constant 0 : index
    %c0_14 = arith.constant 0 : index
    %9 = vector.load %arg2[%c0_12, %c0_13, %c0_14] : memref<9x16x128xbf16, #tpu.memory_space<vmem>>, vector<1x16x128xbf16>
    %10 = vector.shape_cast %9 : vector<1x16x128xbf16> to vector<16x128xbf16>
    %cst_15 = arith.constant dense<0.000000e+00> : vector<256x128xf32>
    %11 = tpu.matmul %8, %10, %cst_15 {dimension_numbers = #tpu.dot_dimension_numbers<[1], [0], [0], [1], [0, 0, 1, 1], [], []>} : vector<256x16xbf16>, vector<16x128xbf16>, vector<256x128xf32> -> vector<256x128xf32>
    %12 = arith.addf %6, %11 : vector<256x128xf32>
    %c0_16 = arith.constant 0 : index
    %c1_17 = arith.constant 1 : index
    %c0_18 = arith.constant 0 : index
    %13 = vector.load %arg6[%c0_16, %c1_17, %c0_18] : memref<18x18x16xbf16, #tpu.memory_space<vmem>>, vector<16x16x16xbf16>
    %14 = vector.shape_cast %13 : vector<16x16x16xbf16> to vector<256x16xbf16>
    %c1_19 = arith.constant 1 : index
    %c0_20 = arith.constant 0 : index
    %c0_21 = arith.constant 0 : index
    %15 = vector.load %arg2[%c1_19, %c0_20, %c0_21] : memref<9x16x128xbf16, #tpu.memory_space<vmem>>, vector<1x16x128xbf16>
    %16 = vector.shape_cast %15 : vector<1x16x128xbf16> to vector<16x128xbf16>
    %cst_22 = arith.constant dense<0.000000e+00> : vector<256x128xf32>
    %17 = tpu.matmul %14, %16, %cst_22 {dimension_numbers = #tpu.dot_dimension_numbers<[1], [0], [0], [1], [0, 0, 1, 1], [], []>} : vector<256x16xbf16>, vector<16x128xbf16>, vector<256x128xf32> -> vector<256x128xf32>
    %18 = arith.addf %12, %17 : vector<256x128xf32>
    %c0_23 = arith.constant 0 : index
    %c2 = arith.constant 2 : index
    %c0_24 = arith.constant 0 : index
    %19 = vector.load %arg6[%c0_23, %c2, %c0_24] : memref<18x18x16xbf16, #tpu.memory_space<vmem>>, vector<16x16x16xbf16>
    %20 = vector.shape_cast %19 : vector<16x16x16xbf16> to vector<256x16xbf16>
    %c2_25 = arith.constant 2 : index
    %c0_26 = arith.constant 0 : index
    %c0_27 = arith.constant 0 : index
    %21 = vector.load %arg2[%c2_25, %c0_26, %c0_27] : memref<9x16x128xbf16, #tpu.memory_space<vmem>>, vector<1x16x128xbf16>
    %22 = vector.shape_cast %21 : vector<1x16x128xbf16> to vector<16x128xbf16>
    %cst_28 = arith.constant dense<0.000000e+00> : vector<256x128xf32>
    %23 = tpu.matmul %20, %22, %cst_28 {dimension_numbers = #tpu.dot_dimension_numbers<[1], [0], [0], [1], [0, 0, 1, 1], [], []>} : vector<256x16xbf16>, vector<16x128xbf16>, vector<256x128xf32> -> vector<256x128xf32>
    %24 = arith.addf %18, %23 : vector<256x128xf32>
    %c1_29 = arith.constant 1 : index
    %c0_30 = arith.constant 0 : index
    %c0_31 = arith.constant 0 : index
    %25 = vector.load %arg6[%c1_29, %c0_30, %c0_31] : memref<18x18x16xbf16, #tpu.memory_space<vmem>>, vector<16x16x16xbf16>
    %26 = vector.shape_cast %25 : vector<16x16x16xbf16> to vector<256x16xbf16>
    %c3 = arith.constant 3 : index
    %c0_32 = arith.constant 0 : index
    %c0_33 = arith.constant 0 : index
    %27 = vector.load %arg2[%c3, %c0_32, %c0_33] : memref<9x16x128xbf16, #tpu.memory_space<vmem>>, vector<1x16x128xbf16>
    %28 = vector.shape_cast %27 : vector<1x16x128xbf16> to vector<16x128xbf16>
    %cst_34 = arith.constant dense<0.000000e+00> : vector<256x128xf32>
    %29 = tpu.matmul %26, %28, %cst_34 {dimension_numbers = #tpu.dot_dimension_numbers<[1], [0], [0], [1], [0, 0, 1, 1], [], []>} : vector<256x16xbf16>, vector<16x128xbf16>, vector<256x128xf32> -> vector<256x128xf32>
    %30 = arith.addf %24, %29 : vector<256x128xf32>
    %c1_35 = arith.constant 1 : index
    %c1_36 = arith.constant 1 : index
    %c0_37 = arith.constant 0 : index
    %31 = vector.load %arg6[%c1_35, %c1_36, %c0_37] : memref<18x18x16xbf16, #tpu.memory_space<vmem>>, vector<16x16x16xbf16>
    %32 = vector.shape_cast %31 : vector<16x16x16xbf16> to vector<256x16xbf16>
    %c4 = arith.constant 4 : index
    %c0_38 = arith.constant 0 : index
    %c0_39 = arith.constant 0 : index
    %33 = vector.load %arg2[%c4, %c0_38, %c0_39] : memref<9x16x128xbf16, #tpu.memory_space<vmem>>, vector<1x16x128xbf16>
    %34 = vector.shape_cast %33 : vector<1x16x128xbf16> to vector<16x128xbf16>
    %cst_40 = arith.constant dense<0.000000e+00> : vector<256x128xf32>
    %35 = tpu.matmul %32, %34, %cst_40 {dimension_numbers = #tpu.dot_dimension_numbers<[1], [0], [0], [1], [0, 0, 1, 1], [], []>} : vector<256x16xbf16>, vector<16x128xbf16>, vector<256x128xf32> -> vector<256x128xf32>
    %36 = arith.addf %30, %35 : vector<256x128xf32>
    %c1_41 = arith.constant 1 : index
    %c2_42 = arith.constant 2 : index
    %c0_43 = arith.constant 0 : index
    %37 = vector.load %arg6[%c1_41, %c2_42, %c0_43] : memref<18x18x16xbf16, #tpu.memory_space<vmem>>, vector<16x16x16xbf16>
    %38 = vector.shape_cast %37 : vector<16x16x16xbf16> to vector<256x16xbf16>
    %c5 = arith.constant 5 : index
    %c0_44 = arith.constant 0 : index
    %c0_45 = arith.constant 0 : index
    %39 = vector.load %arg2[%c5, %c0_44, %c0_45] : memref<9x16x128xbf16, #tpu.memory_space<vmem>>, vector<1x16x128xbf16>
    %40 = vector.shape_cast %39 : vector<1x16x128xbf16> to vector<16x128xbf16>
    %cst_46 = arith.constant dense<0.000000e+00> : vector<256x128xf32>
    %41 = tpu.matmul %38, %40, %cst_46 {dimension_numbers = #tpu.dot_dimension_numbers<[1], [0], [0], [1], [0, 0, 1, 1], [], []>} : vector<256x16xbf16>, vector<16x128xbf16>, vector<256x128xf32> -> vector<256x128xf32>
    %42 = arith.addf %36, %41 : vector<256x128xf32>
    %c2_47 = arith.constant 2 : index
    %c0_48 = arith.constant 0 : index
    %c0_49 = arith.constant 0 : index
    %43 = vector.load %arg6[%c2_47, %c0_48, %c0_49] : memref<18x18x16xbf16, #tpu.memory_space<vmem>>, vector<16x16x16xbf16>
    %44 = vector.shape_cast %43 : vector<16x16x16xbf16> to vector<256x16xbf16>
    %c6 = arith.constant 6 : index
    %c0_50 = arith.constant 0 : index
    %c0_51 = arith.constant 0 : index
    %45 = vector.load %arg2[%c6, %c0_50, %c0_51] : memref<9x16x128xbf16, #tpu.memory_space<vmem>>, vector<1x16x128xbf16>
    %46 = vector.shape_cast %45 : vector<1x16x128xbf16> to vector<16x128xbf16>
    %cst_52 = arith.constant dense<0.000000e+00> : vector<256x128xf32>
    %47 = tpu.matmul %44, %46, %cst_52 {dimension_numbers = #tpu.dot_dimension_numbers<[1], [0], [0], [1], [0, 0, 1, 1], [], []>} : vector<256x16xbf16>, vector<16x128xbf16>, vector<256x128xf32> -> vector<256x128xf32>
    %48 = arith.addf %42, %47 : vector<256x128xf32>
    %c2_53 = arith.constant 2 : index
    %c1_54 = arith.constant 1 : index
    %c0_55 = arith.constant 0 : index
    %49 = vector.load %arg6[%c2_53, %c1_54, %c0_55] : memref<18x18x16xbf16, #tpu.memory_space<vmem>>, vector<16x16x16xbf16>
    %50 = vector.shape_cast %49 : vector<16x16x16xbf16> to vector<256x16xbf16>
    %c7 = arith.constant 7 : index
    %c0_56 = arith.constant 0 : index
    %c0_57 = arith.constant 0 : index
    %51 = vector.load %arg2[%c7, %c0_56, %c0_57] : memref<9x16x128xbf16, #tpu.memory_space<vmem>>, vector<1x16x128xbf16>
    %52 = vector.shape_cast %51 : vector<1x16x128xbf16> to vector<16x128xbf16>
    %cst_58 = arith.constant dense<0.000000e+00> : vector<256x128xf32>
    %53 = tpu.matmul %50, %52, %cst_58 {dimension_numbers = #tpu.dot_dimension_numbers<[1], [0], [0], [1], [0, 0, 1, 1], [], []>} : vector<256x16xbf16>, vector<16x128xbf16>, vector<256x128xf32> -> vector<256x128xf32>
    %54 = arith.addf %48, %53 : vector<256x128xf32>
    %c2_59 = arith.constant 2 : index
    %c2_60 = arith.constant 2 : index
    %c0_61 = arith.constant 0 : index
    %55 = vector.load %arg6[%c2_59, %c2_60, %c0_61] : memref<18x18x16xbf16, #tpu.memory_space<vmem>>, vector<16x16x16xbf16>
    %56 = vector.shape_cast %55 : vector<16x16x16xbf16> to vector<256x16xbf16>
    %c8 = arith.constant 8 : index
    %c0_62 = arith.constant 0 : index
    %c0_63 = arith.constant 0 : index
    %57 = vector.load %arg2[%c8, %c0_62, %c0_63] : memref<9x16x128xbf16, #tpu.memory_space<vmem>>, vector<1x16x128xbf16>
    %58 = vector.shape_cast %57 : vector<1x16x128xbf16> to vector<16x128xbf16>
    %cst_64 = arith.constant dense<0.000000e+00> : vector<256x128xf32>
    %59 = tpu.matmul %56, %58, %cst_64 {dimension_numbers = #tpu.dot_dimension_numbers<[1], [0], [0], [1], [0, 0, 1, 1], [], []>} : vector<256x16xbf16>, vector<16x128xbf16>, vector<256x128xf32> -> vector<256x128xf32>
    %60 = arith.addf %54, %59 : vector<256x128xf32>
    %c0_65 = arith.constant 0 : index
    %c0_66 = arith.constant 0 : index
    %61 = vector.load %arg3[%c0_65, %c0_66] : memref<1x128xf32, #tpu.memory_space<vmem>>, vector<1x128xf32>
    %62 = vector.broadcast %61 : vector<1x128xf32> to vector<256x128xf32>
    %63 = arith.addf %60, %62 : vector<256x128xf32>
    %64 = vector.shape_cast %63 : vector<256x128xf32> to vector<16x16x128xf32>
    %65 = arith.truncf %64 : vector<16x16x128xf32> to vector<16x16x128xbf16>
    %c0_67 = arith.constant 0 : index
    %c0_68 = arith.constant 0 : index
    %c0_69 = arith.constant 0 : index
    %c0_70 = arith.constant 0 : index
    %66 = vector.load %arg4[%c0_67, %c0_68, %c0_69, %c0_70] : memref<1x16x16x128xbf16, #tpu.memory_space<vmem>>, vector<1x16x16x128xbf16>
    %67 = vector.shape_cast %66 : vector<1x16x16x128xbf16> to vector<16x16x128xbf16>
    %68 = vector.shape_cast %65 : vector<16x16x128xbf16> to vector<1x16x16x128xbf16>
    tpu.vector_store %arg4[%c0_67, %c0_68, %c0_69, %c0_70], %68 {strides = array<i32>} : memref<1x16x16x128xbf16, #tpu.memory_space<vmem>>, vector<1x16x16x128xbf16>,
    %cst_71 = arith.constant dense<0.000000e+00> : vector<128xf32>
    %69 = vector.multi_reduction <add>, %63, %cst_71 [0] : vector<256x128xf32> to vector<128xf32>
    %70 = vector.shape_cast %69 : vector<128xf32> to vector<1x128xf32>
    %c0_72 = arith.constant 0 : index
    %c0_73 = arith.constant 0 : index
    %c0_74 = arith.constant 0 : index
    %71 = vector.load %arg5[%c0_72, %c0_73, %c0_74] : memref<1x2x128xf32, #tpu.memory_space<vmem>>, vector<1x1x128xf32>
    %72 = vector.shape_cast %71 : vector<1x1x128xf32> to vector<1x128xf32>
    %73 = vector.shape_cast %70 : vector<1x128xf32> to vector<1x1x128xf32>
    tpu.vector_store %arg5[%c0_72, %c0_73, %c0_74], %73 {strides = array<i32>} : memref<1x2x128xf32, #tpu.memory_space<vmem>>, vector<1x1x128xf32>,
    %74 = arith.mulf %63, %63 : vector<256x128xf32>
    %cst_75 = arith.constant dense<0.000000e+00> : vector<128xf32>
    %75 = vector.multi_reduction <add>, %74, %cst_75 [0] : vector<256x128xf32> to vector<128xf32>
    %76 = vector.shape_cast %75 : vector<128xf32> to vector<1x128xf32>
    %c0_76 = arith.constant 0 : index
    %c1_77 = arith.constant 1 : index
    %c0_78 = arith.constant 0 : index
    %77 = vector.load %arg5[%c0_76, %c1_77, %c0_78] : memref<1x2x128xf32, #tpu.memory_space<vmem>>, vector<1x1x128xf32>
    %78 = vector.shape_cast %77 : vector<1x1x128xf32> to vector<1x128xf32>
    %79 = vector.shape_cast %76 : vector<1x128xf32> to vector<1x1x128xf32>
    tpu.vector_store %arg5[%c0_76, %c1_77, %c0_78], %79 {strides = array<i32>} : memref<1x2x128xf32, #tpu.memory_space<vmem>>, vector<1x1x128xf32>,
    return
  }
  func.func @transform_0(%arg0: i32) -> (i32, i32, i32, i32) {
    %c0_i32 = arith.constant 0 : i32
    %c0_i32_0 = arith.constant 0 : i32
    %c0_i32_1 = arith.constant 0 : i32
    %c0_i32_2 = arith.constant 0 : i32
    return %arg0, %c0_i32, %c0_i32_0, %c0_i32_1 : i32, i32, i32, i32
  }
  func.func @transform_1(%arg0: i32) -> (i32, i32, i32) {
    %c0_i32 = arith.constant 0 : i32
    %c0_i32_0 = arith.constant 0 : i32
    %c0_i32_1 = arith.constant 0 : i32
    %c0_i32_2 = arith.constant 0 : i32
    return %c0_i32, %c0_i32_0, %c0_i32_1 : i32, i32, i32
  }
  func.func @transform_2(%arg0: i32) -> (i32, i32) {
    %c0_i32 = arith.constant 0 : i32
    %c0_i32_0 = arith.constant 0 : i32
    %c0_i32_1 = arith.constant 0 : i32
    return %c0_i32, %c0_i32_0 : i32, i32
  }
  func.func @transform_3(%arg0: i32) -> (i32, i32, i32, i32) {
    %c0_i32 = arith.constant 0 : i32
    %c0_i32_0 = arith.constant 0 : i32
    %c0_i32_1 = arith.constant 0 : i32
    %c0_i32_2 = arith.constant 0 : i32
    return %arg0, %c0_i32, %c0_i32_0, %c0_i32_1 : i32, i32, i32, i32
  }
  func.func @transform_4(%arg0: i32) -> (i32, i32, i32) {
    %c0_i32 = arith.constant 0 : i32
    %c0_i32_0 = arith.constant 0 : i32
    %c0_i32_1 = arith.constant 0 : i32
    return %arg0, %c0_i32, %c0_i32_0 : i32, i32, i32
  }
}

module attributes {stable_mosaic.version = 11 : i64} {
  func.func @_bn_residual_relu_kernel(%arg0: i32, %arg1: memref<512x128xf32, #tpu.memory_space<vmem>>, %arg2: memref<2x128xf32, #tpu.memory_space<vmem>>, %arg3: memref<512x128xf32, #tpu.memory_space<vmem>>, %arg4: memref<512x128xf32, #tpu.memory_space<vmem>>) attributes {dimension_semantics = [#tpu.dimension_semantics<parallel>], iteration_bounds = array<i64: 1>, scalar_prefetch = 0 : i64, scratch_operands = 0 : i64, tpu.core_type = #tpu.core_type<tc>, window_params = [{transform_indices = @transform_0, window_bounds = array<i64: 512, 128>}, {pipeline_mode = #tpu.pipeline_mode<synchronous>, transform_indices = @transform_1, window_bounds = array<i64: 2, 128>}, {transform_indices = @transform_2, window_bounds = array<i64: 512, 128>}, {transform_indices = @transform_3, window_bounds = array<i64: 512, 128>}]} {
    %c0 = arith.constant 0 : index
    %c0_0 = arith.constant 0 : index
    %0 = vector.load %arg2[%c0, %c0_0] : memref<2x128xf32, #tpu.memory_space<vmem>>, vector<2x128xf32>
    %c0_1 = arith.constant 0 : index
    %c0_2 = arith.constant 0 : index
    %1 = vector.load %arg1[%c0_1, %c0_2] : memref<512x128xf32, #tpu.memory_space<vmem>>, vector<512x128xf32>
    %2 = vector.extract_strided_slice %0 {offsets = [0, 0], sizes = [1, 128], strides = [1, 1]} : vector<2x128xf32> to vector<1x128xf32>
    %3 = vector.broadcast %2 : vector<1x128xf32> to vector<512x128xf32>
    %4 = arith.mulf %1, %3 : vector<512x128xf32>
    %5 = vector.extract_strided_slice %0 {offsets = [1, 0], sizes = [1, 128], strides = [1, 1]} : vector<2x128xf32> to vector<1x128xf32>
    %6 = vector.broadcast %5 : vector<1x128xf32> to vector<512x128xf32>
    %7 = arith.addf %4, %6 : vector<512x128xf32>
    %c0_3 = arith.constant 0 : index
    %c0_4 = arith.constant 0 : index
    %8 = vector.load %arg3[%c0_3, %c0_4] : memref<512x128xf32, #tpu.memory_space<vmem>>, vector<512x128xf32>
    %9 = arith.addf %7, %8 : vector<512x128xf32>
    %cst = arith.constant 0.000000e+00 : f32
    %10 = vector.broadcast %cst : f32 to vector<512x128xf32>
    %11 = arith.maximumf %9, %10 : vector<512x128xf32>
    %c0_5 = arith.constant 0 : index
    %c0_6 = arith.constant 0 : index
    %12 = vector.load %arg4[%c0_5, %c0_6] : memref<512x128xf32, #tpu.memory_space<vmem>>, vector<512x128xf32>
    tpu.vector_store %arg4[%c0_5, %c0_6], %11 {strides = array<i32>} : memref<512x128xf32, #tpu.memory_space<vmem>>, vector<512x128xf32>,
    return
  }
  func.func @transform_0(%arg0: i32) -> (i32, i32) {
    %c0_i32 = arith.constant 0 : i32
    %c0_i32_0 = arith.constant 0 : i32
    return %arg0, %c0_i32 : i32, i32
  }
  func.func @transform_1(%arg0: i32) -> (i32, i32) {
    %c0_i32 = arith.constant 0 : i32
    %c0_i32_0 = arith.constant 0 : i32
    %c0_i32_1 = arith.constant 0 : i32
    return %c0_i32, %c0_i32_0 : i32, i32
  }
  func.func @transform_2(%arg0: i32) -> (i32, i32) {
    %c0_i32 = arith.constant 0 : i32
    %c0_i32_0 = arith.constant 0 : i32
    return %arg0, %c0_i32 : i32, i32
  }
  func.func @transform_3(%arg0: i32) -> (i32, i32) {
    %c0_i32 = arith.constant 0 : i32
    %c0_i32_0 = arith.constant 0 : i32
    return %arg0, %c0_i32 : i32, i32
  }
}

module attributes {stable_mosaic.version = 11 : i64} {
  func.func @kernel(%arg0: i32, %arg1: memref<1x16x16x128xbf16, #tpu.memory_space<vmem>>, %arg2: memref<2x128xf32, #tpu.memory_space<vmem>>, %arg3: memref<9x128x128xbf16, #tpu.memory_space<vmem>>, %arg4: memref<1x128xf32, #tpu.memory_space<vmem>>, %arg5: memref<1x16x16x128xf32, #tpu.memory_space<vmem>>, %arg6: memref<1x2x128xf32, #tpu.memory_space<vmem>>, %arg7: memref<18x18x128xbf16, #tpu.memory_space<vmem>>) attributes {dimension_semantics = [#tpu.dimension_semantics<parallel>], iteration_bounds = array<i64: 2>, scalar_prefetch = 0 : i64, scratch_operands = 1 : i64, tpu.core_type = #tpu.core_type<tc>, window_params = [{transform_indices = @transform_0, window_bounds = array<i64: 1, 16, 16, 128>}, {pipeline_mode = #tpu.pipeline_mode<synchronous>, transform_indices = @transform_1, window_bounds = array<i64: 2, 128>}, {pipeline_mode = #tpu.pipeline_mode<synchronous>, transform_indices = @transform_2, window_bounds = array<i64: 9, 128, 128>}, {pipeline_mode = #tpu.pipeline_mode<synchronous>, transform_indices = @transform_3, window_bounds = array<i64: 1, 128>}, {transform_indices = @transform_4, window_bounds = array<i64: 1, 16, 16, 128>}, {transform_indices = @transform_5, window_bounds = array<i64: 1, 2, 128>}]} {
    %c0 = arith.constant 0 : index
    %c0_0 = arith.constant 0 : index
    %c0_1 = arith.constant 0 : index
    %c0_2 = arith.constant 0 : index
    %0 = vector.load %arg1[%c0, %c0_0, %c0_1, %c0_2] : memref<1x16x16x128xbf16, #tpu.memory_space<vmem>>, vector<1x16x16x128xbf16>
    %1 = vector.shape_cast %0 : vector<1x16x16x128xbf16> to vector<16x16x128xbf16>
    %2 = arith.extf %1 : vector<16x16x128xbf16> to vector<16x16x128xf32>
    %c0_3 = arith.constant 0 : index
    %c0_4 = arith.constant 0 : index
    %3 = vector.load %arg2[%c0_3, %c0_4] : memref<2x128xf32, #tpu.memory_space<vmem>>, vector<2x128xf32>
    %4 = vector.extract_strided_slice %3 {offsets = [0, 0], sizes = [1, 128], strides = [1, 1]} : vector<2x128xf32> to vector<1x128xf32>
    %5 = vector.shape_cast %4 : vector<1x128xf32> to vector<128xf32>
    %6 = vector.shape_cast %5 : vector<128xf32> to vector<1x1x128xf32>
    %7 = vector.extract_strided_slice %3 {offsets = [1, 0], sizes = [1, 128], strides = [1, 1]} : vector<2x128xf32> to vector<1x128xf32>
    %8 = vector.shape_cast %7 : vector<1x128xf32> to vector<128xf32>
    %9 = vector.shape_cast %8 : vector<128xf32> to vector<1x1x128xf32>
    %10 = vector.broadcast %6 : vector<1x1x128xf32> to vector<16x16x128xf32>
    %11 = arith.mulf %2, %10 : vector<16x16x128xf32>
    %12 = vector.broadcast %9 : vector<1x1x128xf32> to vector<16x16x128xf32>
    %13 = arith.addf %11, %12 : vector<16x16x128xf32>
    %cst = arith.constant 0.000000e+00 : f32
    %14 = vector.broadcast %cst : f32 to vector<16x16x128xf32>
    %15 = arith.maximumf %13, %14 : vector<16x16x128xf32>
    %cst_5 = arith.constant 0.000000e+00 : bf16
    %16 = vector.broadcast %cst_5 : bf16 to vector<18x18x128xbf16>
    %c0_6 = arith.constant 0 : index
    %c0_7 = arith.constant 0 : index
    %c0_8 = arith.constant 0 : index
    %17 = vector.load %arg7[%c0_6, %c0_7, %c0_8] : memref<18x18x128xbf16, #tpu.memory_space<vmem>>, vector<18x18x128xbf16>
    tpu.vector_store %arg7[%c0_6, %c0_7, %c0_8], %16 {strides = array<i32>} : memref<18x18x128xbf16, #tpu.memory_space<vmem>>, vector<18x18x128xbf16>,
    %18 = arith.truncf %15 : vector<16x16x128xf32> to vector<16x16x128xbf16>
    %c1 = arith.constant 1 : index
    %c1_9 = arith.constant 1 : index
    %c0_10 = arith.constant 0 : index
    %19 = vector.load %arg7[%c1, %c1_9, %c0_10] : memref<18x18x128xbf16, #tpu.memory_space<vmem>>, vector<16x16x128xbf16>
    tpu.vector_store %arg7[%c1, %c1_9, %c0_10], %18 {strides = array<i32>} : memref<18x18x128xbf16, #tpu.memory_space<vmem>>, vector<16x16x128xbf16>,
    %cst_11 = arith.constant 0.000000e+00 : f32
    %20 = vector.broadcast %cst_11 : f32 to vector<256x128xf32>
    %c0_12 = arith.constant 0 : index
    %c0_13 = arith.constant 0 : index
    %c0_14 = arith.constant 0 : index
    %21 = vector.load %arg7[%c0_12, %c0_13, %c0_14] : memref<18x18x128xbf16, #tpu.memory_space<vmem>>, vector<16x16x128xbf16>
    %22 = vector.shape_cast %21 : vector<16x16x128xbf16> to vector<256x128xbf16>
    %c0_15 = arith.constant 0 : index
    %c0_16 = arith.constant 0 : index
    %c0_17 = arith.constant 0 : index
    %23 = vector.load %arg3[%c0_15, %c0_16, %c0_17] : memref<9x128x128xbf16, #tpu.memory_space<vmem>>, vector<1x128x128xbf16>
    %24 = vector.shape_cast %23 : vector<1x128x128xbf16> to vector<128x128xbf16>
    %cst_18 = arith.constant dense<0.000000e+00> : vector<256x128xf32>
    %25 = tpu.matmul %22, %24, %cst_18 {dimension_numbers = #tpu.dot_dimension_numbers<[1], [0], [0], [1], [0, 0, 1, 1], [], []>} : vector<256x128xbf16>, vector<128x128xbf16>, vector<256x128xf32> -> vector<256x128xf32>
    %26 = arith.addf %20, %25 : vector<256x128xf32>
    %c0_19 = arith.constant 0 : index
    %c1_20 = arith.constant 1 : index
    %c0_21 = arith.constant 0 : index
    %27 = vector.load %arg7[%c0_19, %c1_20, %c0_21] : memref<18x18x128xbf16, #tpu.memory_space<vmem>>, vector<16x16x128xbf16>
    %28 = vector.shape_cast %27 : vector<16x16x128xbf16> to vector<256x128xbf16>
    %c1_22 = arith.constant 1 : index
    %c0_23 = arith.constant 0 : index
    %c0_24 = arith.constant 0 : index
    %29 = vector.load %arg3[%c1_22, %c0_23, %c0_24] : memref<9x128x128xbf16, #tpu.memory_space<vmem>>, vector<1x128x128xbf16>
    %30 = vector.shape_cast %29 : vector<1x128x128xbf16> to vector<128x128xbf16>
    %cst_25 = arith.constant dense<0.000000e+00> : vector<256x128xf32>
    %31 = tpu.matmul %28, %30, %cst_25 {dimension_numbers = #tpu.dot_dimension_numbers<[1], [0], [0], [1], [0, 0, 1, 1], [], []>} : vector<256x128xbf16>, vector<128x128xbf16>, vector<256x128xf32> -> vector<256x128xf32>
    %32 = arith.addf %26, %31 : vector<256x128xf32>
    %c0_26 = arith.constant 0 : index
    %c2 = arith.constant 2 : index
    %c0_27 = arith.constant 0 : index
    %33 = vector.load %arg7[%c0_26, %c2, %c0_27] : memref<18x18x128xbf16, #tpu.memory_space<vmem>>, vector<16x16x128xbf16>
    %34 = vector.shape_cast %33 : vector<16x16x128xbf16> to vector<256x128xbf16>
    %c2_28 = arith.constant 2 : index
    %c0_29 = arith.constant 0 : index
    %c0_30 = arith.constant 0 : index
    %35 = vector.load %arg3[%c2_28, %c0_29, %c0_30] : memref<9x128x128xbf16, #tpu.memory_space<vmem>>, vector<1x128x128xbf16>
    %36 = vector.shape_cast %35 : vector<1x128x128xbf16> to vector<128x128xbf16>
    %cst_31 = arith.constant dense<0.000000e+00> : vector<256x128xf32>
    %37 = tpu.matmul %34, %36, %cst_31 {dimension_numbers = #tpu.dot_dimension_numbers<[1], [0], [0], [1], [0, 0, 1, 1], [], []>} : vector<256x128xbf16>, vector<128x128xbf16>, vector<256x128xf32> -> vector<256x128xf32>
    %38 = arith.addf %32, %37 : vector<256x128xf32>
    %c1_32 = arith.constant 1 : index
    %c0_33 = arith.constant 0 : index
    %c0_34 = arith.constant 0 : index
    %39 = vector.load %arg7[%c1_32, %c0_33, %c0_34] : memref<18x18x128xbf16, #tpu.memory_space<vmem>>, vector<16x16x128xbf16>
    %40 = vector.shape_cast %39 : vector<16x16x128xbf16> to vector<256x128xbf16>
    %c3 = arith.constant 3 : index
    %c0_35 = arith.constant 0 : index
    %c0_36 = arith.constant 0 : index
    %41 = vector.load %arg3[%c3, %c0_35, %c0_36] : memref<9x128x128xbf16, #tpu.memory_space<vmem>>, vector<1x128x128xbf16>
    %42 = vector.shape_cast %41 : vector<1x128x128xbf16> to vector<128x128xbf16>
    %cst_37 = arith.constant dense<0.000000e+00> : vector<256x128xf32>
    %43 = tpu.matmul %40, %42, %cst_37 {dimension_numbers = #tpu.dot_dimension_numbers<[1], [0], [0], [1], [0, 0, 1, 1], [], []>} : vector<256x128xbf16>, vector<128x128xbf16>, vector<256x128xf32> -> vector<256x128xf32>
    %44 = arith.addf %38, %43 : vector<256x128xf32>
    %c1_38 = arith.constant 1 : index
    %c1_39 = arith.constant 1 : index
    %c0_40 = arith.constant 0 : index
    %45 = vector.load %arg7[%c1_38, %c1_39, %c0_40] : memref<18x18x128xbf16, #tpu.memory_space<vmem>>, vector<16x16x128xbf16>
    %46 = vector.shape_cast %45 : vector<16x16x128xbf16> to vector<256x128xbf16>
    %c4 = arith.constant 4 : index
    %c0_41 = arith.constant 0 : index
    %c0_42 = arith.constant 0 : index
    %47 = vector.load %arg3[%c4, %c0_41, %c0_42] : memref<9x128x128xbf16, #tpu.memory_space<vmem>>, vector<1x128x128xbf16>
    %48 = vector.shape_cast %47 : vector<1x128x128xbf16> to vector<128x128xbf16>
    %cst_43 = arith.constant dense<0.000000e+00> : vector<256x128xf32>
    %49 = tpu.matmul %46, %48, %cst_43 {dimension_numbers = #tpu.dot_dimension_numbers<[1], [0], [0], [1], [0, 0, 1, 1], [], []>} : vector<256x128xbf16>, vector<128x128xbf16>, vector<256x128xf32> -> vector<256x128xf32>
    %50 = arith.addf %44, %49 : vector<256x128xf32>
    %c1_44 = arith.constant 1 : index
    %c2_45 = arith.constant 2 : index
    %c0_46 = arith.constant 0 : index
    %51 = vector.load %arg7[%c1_44, %c2_45, %c0_46] : memref<18x18x128xbf16, #tpu.memory_space<vmem>>, vector<16x16x128xbf16>
    %52 = vector.shape_cast %51 : vector<16x16x128xbf16> to vector<256x128xbf16>
    %c5 = arith.constant 5 : index
    %c0_47 = arith.constant 0 : index
    %c0_48 = arith.constant 0 : index
    %53 = vector.load %arg3[%c5, %c0_47, %c0_48] : memref<9x128x128xbf16, #tpu.memory_space<vmem>>, vector<1x128x128xbf16>
    %54 = vector.shape_cast %53 : vector<1x128x128xbf16> to vector<128x128xbf16>
    %cst_49 = arith.constant dense<0.000000e+00> : vector<256x128xf32>
    %55 = tpu.matmul %52, %54, %cst_49 {dimension_numbers = #tpu.dot_dimension_numbers<[1], [0], [0], [1], [0, 0, 1, 1], [], []>} : vector<256x128xbf16>, vector<128x128xbf16>, vector<256x128xf32> -> vector<256x128xf32>
    %56 = arith.addf %50, %55 : vector<256x128xf32>
    %c2_50 = arith.constant 2 : index
    %c0_51 = arith.constant 0 : index
    %c0_52 = arith.constant 0 : index
    %57 = vector.load %arg7[%c2_50, %c0_51, %c0_52] : memref<18x18x128xbf16, #tpu.memory_space<vmem>>, vector<16x16x128xbf16>
    %58 = vector.shape_cast %57 : vector<16x16x128xbf16> to vector<256x128xbf16>
    %c6 = arith.constant 6 : index
    %c0_53 = arith.constant 0 : index
    %c0_54 = arith.constant 0 : index
    %59 = vector.load %arg3[%c6, %c0_53, %c0_54] : memref<9x128x128xbf16, #tpu.memory_space<vmem>>, vector<1x128x128xbf16>
    %60 = vector.shape_cast %59 : vector<1x128x128xbf16> to vector<128x128xbf16>
    %cst_55 = arith.constant dense<0.000000e+00> : vector<256x128xf32>
    %61 = tpu.matmul %58, %60, %cst_55 {dimension_numbers = #tpu.dot_dimension_numbers<[1], [0], [0], [1], [0, 0, 1, 1], [], []>} : vector<256x128xbf16>, vector<128x128xbf16>, vector<256x128xf32> -> vector<256x128xf32>
    %62 = arith.addf %56, %61 : vector<256x128xf32>
    %c2_56 = arith.constant 2 : index
    %c1_57 = arith.constant 1 : index
    %c0_58 = arith.constant 0 : index
    %63 = vector.load %arg7[%c2_56, %c1_57, %c0_58] : memref<18x18x128xbf16, #tpu.memory_space<vmem>>, vector<16x16x128xbf16>
    %64 = vector.shape_cast %63 : vector<16x16x128xbf16> to vector<256x128xbf16>
    %c7 = arith.constant 7 : index
    %c0_59 = arith.constant 0 : index
    %c0_60 = arith.constant 0 : index
    %65 = vector.load %arg3[%c7, %c0_59, %c0_60] : memref<9x128x128xbf16, #tpu.memory_space<vmem>>, vector<1x128x128xbf16>
    %66 = vector.shape_cast %65 : vector<1x128x128xbf16> to vector<128x128xbf16>
    %cst_61 = arith.constant dense<0.000000e+00> : vector<256x128xf32>
    %67 = tpu.matmul %64, %66, %cst_61 {dimension_numbers = #tpu.dot_dimension_numbers<[1], [0], [0], [1], [0, 0, 1, 1], [], []>} : vector<256x128xbf16>, vector<128x128xbf16>, vector<256x128xf32> -> vector<256x128xf32>
    %68 = arith.addf %62, %67 : vector<256x128xf32>
    %c2_62 = arith.constant 2 : index
    %c2_63 = arith.constant 2 : index
    %c0_64 = arith.constant 0 : index
    %69 = vector.load %arg7[%c2_62, %c2_63, %c0_64] : memref<18x18x128xbf16, #tpu.memory_space<vmem>>, vector<16x16x128xbf16>
    %70 = vector.shape_cast %69 : vector<16x16x128xbf16> to vector<256x128xbf16>
    %c8 = arith.constant 8 : index
    %c0_65 = arith.constant 0 : index
    %c0_66 = arith.constant 0 : index
    %71 = vector.load %arg3[%c8, %c0_65, %c0_66] : memref<9x128x128xbf16, #tpu.memory_space<vmem>>, vector<1x128x128xbf16>
    %72 = vector.shape_cast %71 : vector<1x128x128xbf16> to vector<128x128xbf16>
    %cst_67 = arith.constant dense<0.000000e+00> : vector<256x128xf32>
    %73 = tpu.matmul %70, %72, %cst_67 {dimension_numbers = #tpu.dot_dimension_numbers<[1], [0], [0], [1], [0, 0, 1, 1], [], []>} : vector<256x128xbf16>, vector<128x128xbf16>, vector<256x128xf32> -> vector<256x128xf32>
    %74 = arith.addf %68, %73 : vector<256x128xf32>
    %c0_68 = arith.constant 0 : index
    %c0_69 = arith.constant 0 : index
    %75 = vector.load %arg4[%c0_68, %c0_69] : memref<1x128xf32, #tpu.memory_space<vmem>>, vector<1x128xf32>
    %76 = vector.broadcast %75 : vector<1x128xf32> to vector<256x128xf32>
    %77 = arith.addf %74, %76 : vector<256x128xf32>
    %78 = vector.shape_cast %77 : vector<256x128xf32> to vector<16x16x128xf32>
    %c0_70 = arith.constant 0 : index
    %c0_71 = arith.constant 0 : index
    %c0_72 = arith.constant 0 : index
    %c0_73 = arith.constant 0 : index
    %79 = vector.load %arg5[%c0_70, %c0_71, %c0_72, %c0_73] : memref<1x16x16x128xf32, #tpu.memory_space<vmem>>, vector<1x16x16x128xf32>
    %80 = vector.shape_cast %79 : vector<1x16x16x128xf32> to vector<16x16x128xf32>
    %81 = vector.shape_cast %78 : vector<16x16x128xf32> to vector<1x16x16x128xf32>
    tpu.vector_store %arg5[%c0_70, %c0_71, %c0_72, %c0_73], %81 {strides = array<i32>} : memref<1x16x16x128xf32, #tpu.memory_space<vmem>>, vector<1x16x16x128xf32>,
    %cst_74 = arith.constant dense<0.000000e+00> : vector<128xf32>
    %82 = vector.multi_reduction <add>, %77, %cst_74 [0] : vector<256x128xf32> to vector<128xf32>
    %83 = vector.shape_cast %82 : vector<128xf32> to vector<1x128xf32>
    %c0_75 = arith.constant 0 : index
    %c0_76 = arith.constant 0 : index
    %c0_77 = arith.constant 0 : index
    %84 = vector.load %arg6[%c0_75, %c0_76, %c0_77] : memref<1x2x128xf32, #tpu.memory_space<vmem>>, vector<1x1x128xf32>
    %85 = vector.shape_cast %84 : vector<1x1x128xf32> to vector<1x128xf32>
    %86 = vector.shape_cast %83 : vector<1x128xf32> to vector<1x1x128xf32>
    tpu.vector_store %arg6[%c0_75, %c0_76, %c0_77], %86 {strides = array<i32>} : memref<1x2x128xf32, #tpu.memory_space<vmem>>, vector<1x1x128xf32>,
    %87 = arith.mulf %77, %77 : vector<256x128xf32>
    %cst_78 = arith.constant dense<0.000000e+00> : vector<128xf32>
    %88 = vector.multi_reduction <add>, %87, %cst_78 [0] : vector<256x128xf32> to vector<128xf32>
    %89 = vector.shape_cast %88 : vector<128xf32> to vector<1x128xf32>
    %c0_79 = arith.constant 0 : index
    %c1_80 = arith.constant 1 : index
    %c0_81 = arith.constant 0 : index
    %90 = vector.load %arg6[%c0_79, %c1_80, %c0_81] : memref<1x2x128xf32, #tpu.memory_space<vmem>>, vector<1x1x128xf32>
    %91 = vector.shape_cast %90 : vector<1x1x128xf32> to vector<1x128xf32>
    %92 = vector.shape_cast %89 : vector<1x128xf32> to vector<1x1x128xf32>
    tpu.vector_store %arg6[%c0_79, %c1_80, %c0_81], %92 {strides = array<i32>} : memref<1x2x128xf32, #tpu.memory_space<vmem>>, vector<1x1x128xf32>,
    return
  }
  func.func @transform_0(%arg0: i32) -> (i32, i32, i32, i32) {
    %c0_i32 = arith.constant 0 : i32
    %c0_i32_0 = arith.constant 0 : i32
    %c0_i32_1 = arith.constant 0 : i32
    %c0_i32_2 = arith.constant 0 : i32
    return %arg0, %c0_i32, %c0_i32_0, %c0_i32_1 : i32, i32, i32, i32
  }
  func.func @transform_1(%arg0: i32) -> (i32, i32) {
    %c0_i32 = arith.constant 0 : i32
    %c0_i32_0 = arith.constant 0 : i32
    %c0_i32_1 = arith.constant 0 : i32
    return %c0_i32, %c0_i32_0 : i32, i32
  }
  func.func @transform_2(%arg0: i32) -> (i32, i32, i32) {
    %c0_i32 = arith.constant 0 : i32
    %c0_i32_0 = arith.constant 0 : i32
    %c0_i32_1 = arith.constant 0 : i32
    %c0_i32_2 = arith.constant 0 : i32
    return %c0_i32, %c0_i32_0, %c0_i32_1 : i32, i32, i32
  }
  func.func @transform_3(%arg0: i32) -> (i32, i32) {
    %c0_i32 = arith.constant 0 : i32
    %c0_i32_0 = arith.constant 0 : i32
    %c0_i32_1 = arith.constant 0 : i32
    return %c0_i32, %c0_i32_0 : i32, i32
  }
  func.func @transform_4(%arg0: i32) -> (i32, i32, i32, i32) {
    %c0_i32 = arith.constant 0 : i32
    %c0_i32_0 = arith.constant 0 : i32
    %c0_i32_1 = arith.constant 0 : i32
    %c0_i32_2 = arith.constant 0 : i32
    return %arg0, %c0_i32, %c0_i32_0, %c0_i32_1 : i32, i32, i32, i32
  }
  func.func @transform_5(%arg0: i32) -> (i32, i32, i32) {
    %c0_i32 = arith.constant 0 : i32
    %c0_i32_0 = arith.constant 0 : i32
    %c0_i32_1 = arith.constant 0 : i32
    return %arg0, %c0_i32, %c0_i32_0 : i32, i32, i32
  }
}

</mosaic_0001>

<bundles_post_ra>
// kernel: residual_block.5
= control target key start
LH: loop header
LB: loop body
LE: loop exit
PB: predicated region body
PF: predicated region fallthrough
CT: control target
= control target key end

     0   :  { %v79_v0 = vlaneseq  ;;  %s1206_s1 = inlined_call_operand.vmem [shape: f32[2,128], index: 1, kind: input, shape index: {}]   ;;  %s1207_s0 = inlined_call_operand.vmem [shape: f32[512,128], index: 0, kind: input, shape index: {}]   ;;  %s1208_s2 = inlined_call_operand.vmem [shape: f32[512,128], index: 2, kind: input, shape index: {}]   ;;  %s1209_s3 = inlined_call_operand.vmem [shape: f32[512,128], index: 3, kind: output, shape index: {}]  }
   0x1   :  { %v14_v2 = vld [vmem:[%s1206_s1] sm:$0x3]  ;;  %v16_v6 = vld [vmem:[%s1207_s0 + $0x8] sm:$0xff]  ;;  %v17_v7 = vld [vmem:[%s1207_s0 + $0x10] sm:$0xff] }
   0x2   :  { %v80_v1 = vshrl.u32 %v79_v0, 7  ;;  %v15_v3 = vld [vmem:[%s1207_s0] sm:$0xff]  ;;  %v18_v8 = vld [vmem:[%s1207_s0 + $0x18] sm:$0xff]  ;;  %v20_v12 = vld [vmem:[%s1207_s0 + $0x28] sm:$0xff] }
   0x3   :  { %v19_v9 = vld [vmem:[%s1207_s0 + $0x20] sm:$0xff]  ;;  %v21_v13 = vld [vmem:[%s1207_s0 + $0x30] sm:$0xff]  ;;  %v22_v14 = vld [vmem:[%s1207_s0 + $0x38] sm:$0xff] }
   0x4   :  { %v81_v4 = vsub.s32 0, %v80_v1  ;;  %v149_v5 = vsub.s32 1, %v80_v1  ;;  %v215_v16 = vld [vmem:[%s1208_s2] sm:$0xff]  ;;  %v216_v18 = vld [vmem:[%s1208_s2 + $0x8] sm:$0xff]  ;;  %v217_v21 = vld [vmem:[%s1208_s2 + $0x10] sm:$0xff] }
   0x5   :  { %v218_v22 = vld [vmem:[%s1208_s2 + $0x18] sm:$0xff]  ;;  %v219_v24 = vld [vmem:[%s1208_s2 + $0x20] sm:$0xff]  ;;  %v220_v32 = vld [vmem:[%s1208_s2 + $0x28] sm:$0xff] }
   0x6   :  { %v513_v10 = vrot.slane %v14_v2, %v81_v4  ;;  %v515_v11 = vrot.slane %v14_v2, %v149_v5  ;;  %v221_v33 = vld [vmem:[%s1208_s2 + $0x30] sm:$0xff]  ;;  %v222_v34 = vld [vmem:[%s1208_s2 + $0x38] sm:$0xff]  ;;  %v23_v43 = vld [vmem:[%s1207_s0 + $0x40] sm:$0xff] }
   0x7   :  { %v24_v44 = vld [vmem:[%s1207_s0 + $0x48] sm:$0xff]  ;;  %v25_v45 = vld [vmem:[%s1207_s0 + $0x50] sm:$0xff]  ;;  %v26_v50 = vld [vmem:[%s1207_s0 + $0x58] sm:$0xff] }
   0x8   :  { %v83_v15 = vmul.f32 %v513_v10, %v15_v3  ;;  %v84_v17 = vmul.f32 %v513_v10, %v16_v6  ;;  %v85_v19 = vmul.f32 %v513_v10, %v17_v7  ;;  %v86_v20 = vmul.f32 %v513_v10, %v18_v8  ;;  %v27_v51 = vld [vmem:[%s1207_s0 + $0x60] sm:$0xff]  ;;  %v28_v52 = vld [vmem:[%s1207_s0 + $0x68] sm:$0xff]  ;;  %v29_v57 = vld [vmem:[%s1207_s0 + $0x70] sm:$0xff] }
   0x9   :  { %v87_v23 = vmul.f32 %v513_v10, %v19_v9  ;;  %v88_v25 = vmul.f32 %v513_v10, %v20_v12  ;;  %v89_v26 = vmul.f32 %v513_v10, %v21_v13  ;;  %v90_v27 = vmul.f32 %v513_v10, %v22_v14  ;;  %v30_v58 = vld [vmem:[%s1207_s0 + $0x78] sm:$0xff]  ;;  %v223_v0 = vld [vmem:[%s1208_s2 + $0x40] sm:$0xff]  ;;  %v224_v2 = vld [vmem:[%s1208_s2 + $0x48] sm:$0xff] }
   0xa   :  { %v151_v28 = vadd.f32 %v515_v11, %v83_v15  ;;  %v152_v29 = vadd.f32 %v515_v11, %v84_v17  ;;  %v153_v30 = vadd.f32 %v515_v11, %v85_v19  ;;  %v154_v31 = vadd.f32 %v515_v11, %v86_v20  ;;  %v225_v5 = vld [vmem:[%s1208_s2 + $0x50] sm:$0xff]  ;;  %v226_v6 = vld [vmem:[%s1208_s2 + $0x58] sm:$0xff]  ;;  %v227_v8 = vld [vmem:[%s1208_s2 + $0x60] sm:$0xff] }
   0xb   :  { %v155_v35 = vadd.f32 %v515_v11, %v87_v23  ;;  %v156_v36 = vadd.f32 %v515_v11, %v88_v25  ;;  %v157_v37 = vadd.f32 %v515_v11, %v89_v26  ;;  %v158_v38 = vadd.f32 %v515_v11, %v90_v27  ;;  %v229_v19 = vld [vmem:[%s1208_s2 + $0x70] sm:$0xff]  ;;  %v230_v20 = vld [vmem:[%s1208_s2 + $0x78] sm:$0xff] }
   0xc   :  { %v279_v39 = vadd.f32 %v215_v16, %v151_v28  ;;  %v280_v40 = vadd.f32 %v216_v18, %v152_v29  ;;  %v281_v41 = vadd.f32 %v217_v21, %v153_v30  ;;  %v282_v42 = vadd.f32 %v218_v22, %v154_v31  ;;  %v228_v18 = vld [vmem:[%s1208_s2 + $0x68] sm:$0xff]  ;;  %v31_v29 = vld [vmem:[%s1207_s0 + $0x80] sm:$0xff]  ;;  %v33_v31 = vld [vmem:[%s1207_s0 + $0x90] sm:$0xff] }
   0xd   :  { %v283_v46 = vadd.f32 %v219_v24, %v155_v35  ;;  %v284_v47 = vadd.f32 %v220_v32, %v156_v36  ;;  %v285_v48 = vadd.f32 %v221_v33, %v157_v37  ;;  %v286_v49 = vadd.f32 %v222_v34, %v158_v38  ;;  %v32_v30 = vld [vmem:[%s1207_s0 + $0x88] sm:$0xff]  ;;  %v34_v36 = vld [vmem:[%s1207_s0 + $0x98] sm:$0xff]  ;;  %v35_v37 = vld [vmem:[%s1207_s0 + $0xa0] sm:$0xff] }
   0xe   :  { %v343_v53 = vmax.f32 %v279_v39, 0.0  ;;  %v344_v54 = vmax.f32 %v280_v40, 0.0  ;;  %v345_v55 = vmax.f32 %v281_v41, 0.0  ;;  %v346_v56 = vmax.f32 %v282_v42, 0.0  ;;  %v36_v38 = vld [vmem:[%s1207_s0 + $0xa8] sm:$0xff] }
   0xf   :  { %v347_v59 = vmax.f32 %v283_v46, 0.0  ;;  %v348_v60 = vmax.f32 %v284_v47, 0.0  ;;  %v349_v61 = vmax.f32 %v285_v48, 0.0  ;;  %v350_v62 = vmax.f32 %v286_v49, 0.0 }
  0x10   :  { %407 = vst [vmem:[%s1209_s3] sm:$0xff] %v343_v53  ;;  %408 = vst [vmem:[%s1209_s3 + $0x8] sm:$0xff] %v344_v54  ;;  %v91_v63 = vmul.f32 %v513_v10, %v23_v43  ;;  %v92_v1 = vmul.f32 %v513_v10, %v24_v44  ;;  %v93_v3 = vmul.f32 %v513_v10, %v25_v45  ;;  %v37_v43 = vld [vmem:[%s1207_s0 + $0xb0] sm:$0xff]  ;;  %v38_v44 = vld [vmem:[%s1207_s0 + $0xb8] sm:$0xff] }
  0x11   :  { %409 = vst [vmem:[%s1209_s3 + $0x10] sm:$0xff] %v345_v55  ;;  %410 = vst [vmem:[%s1209_s3 + $0x18] sm:$0xff] %v346_v56  ;;  %v94_v4 = vmul.f32 %v513_v10, %v26_v50  ;;  %v95_v7 = vmul.f32 %v513_v10, %v27_v51  ;;  %v96_v9 = vmul.f32 %v513_v10, %v28_v52  ;;  %v231_v50 = vld [vmem:[%s1208_s2 + $0x80] sm:$0xff]  ;;  %v232_v52 = vld [vmem:[%s1208_s2 + $0x88] sm:$0xff] }
  0x12   :  { %411 = vst [vmem:[%s1209_s3 + $0x20] sm:$0xff] %v347_v59  ;;  %412 = vst [vmem:[%s1209_s3 + $0x28] sm:$0xff] %v348_v60  ;;  %v97_v12 = vmul.f32 %v513_v10, %v29_v57  ;;  %v98_v13 = vmul.f32 %v513_v10, %v30_v58  ;;  %v159_v14 = vadd.f32 %v515_v11, %v91_v63  ;;  %v233_v55 = vld [vmem:[%s1208_s2 + $0x90] sm:$0xff]  ;;  %v234_v56 = vld [vmem:[%s1208_s2 + $0x98] sm:$0xff] }
  0x13   :  { %413 = vst [vmem:[%s1209_s3 + $0x30] sm:$0xff] %v349_v61  ;;  %414 = vst [vmem:[%s1209_s3 + $0x38] sm:$0xff] %v350_v62  ;;  %v160_v15 = vadd.f32 %v515_v11, %v92_v1  ;;  %v161_v16 = vadd.f32 %v515_v11, %v93_v3  ;;  %v162_v17 = vadd.f32 %v515_v11, %v94_v4  ;;  %v235_v58 = vld [vmem:[%s1208_s2 + $0xa0] sm:$0xff]  ;;  %v237_v3 = vld [vmem:[%s1208_s2 + $0xb0] sm:$0xff] }
  0x14   :  { %v163_v21 = vadd.f32 %v515_v11, %v95_v7  ;;  %v164_v22 = vadd.f32 %v515_v11, %v96_v9  ;;  %v165_v23 = vadd.f32 %v515_v11, %v97_v12  ;;  %v166_v24 = vadd.f32 %v515_v11, %v98_v13  ;;  %v238_v4 = vld [vmem:[%s1208_s2 + $0xb8] sm:$0xff] }
  0x15   :  { %v287_v25 = vadd.f32 %v223_v0, %v159_v14  ;;  %v288_v26 = vadd.f32 %v224_v2, %v160_v15  ;;  %v289_v27 = vadd.f32 %v225_v5, %v161_v16  ;;  %v290_v28 = vadd.f32 %v226_v6, %v162_v17  ;;  %v236_v2 = vld [vmem:[%s1208_s2 + $0xa8] sm:$0xff]  ;;  %v39_v15 = vld [vmem:[%s1207_s0 + $0xc0] sm:$0xff]  ;;  %v41_v17 = vld [vmem:[%s1207_s0 + $0xd0] sm:$0xff] }
  0x16   :  { %v291_v32 = vadd.f32 %v227_v8, %v163_v21  ;;  %v292_v33 = vadd.f32 %v228_v18, %v164_v22  ;;  %v293_v34 = vadd.f32 %v229_v19, %v165_v23  ;;  %v294_v35 = vadd.f32 %v230_v20, %v166_v24  ;;  %v40_v16 = vld [vmem:[%s1207_s0 + $0xc8] sm:$0xff]  ;;  %v42_v22 = vld [vmem:[%s1207_s0 + $0xd8] sm:$0xff]  ;;  %v43_v23 = vld [vmem:[%s1207_s0 + $0xe0] sm:$0xff] }
  0x17   :  { %v351_v39 = vmax.f32 %v287_v25, 0.0  ;;  %v352_v40 = vmax.f32 %v288_v26, 0.0  ;;  %v353_v41 = vmax.f32 %v289_v27, 0.0  ;;  %v354_v42 = vmax.f32 %v290_v28, 0.0  ;;  %v44_v24 = vld [vmem:[%s1207_s0 + $0xe8] sm:$0xff] }
  0x18   :  { %v355_v45 = vmax.f32 %v291_v32, 0.0  ;;  %v356_v46 = vmax.f32 %v292_v33, 0.0  ;;  %v357_v47 = vmax.f32 %v293_v34, 0.0  ;;  %v358_v48 = vmax.f32 %v294_v35, 0.0 }
  0x19   :  { %415 = vst [vmem:[%s1209_s3 + $0x40] sm:$0xff] %v351_v39  ;;  %416 = vst [vmem:[%s1209_s3 + $0x48] sm:$0xff] %v352_v40  ;;  %v99_v49 = vmul.f32 %v513_v10, %v31_v29  ;;  %v100_v51 = vmul.f32 %v513_v10, %v32_v30  ;;  %v101_v53 = vmul.f32 %v513_v10, %v33_v31  ;;  %v45_v29 = vld [vmem:[%s1207_s0 + $0xf0] sm:$0xff]  ;;  %v46_v30 = vld [vmem:[%s1207_s0 + $0xf8] sm:$0xff] }
  0x1a   :  { %417 = vst [vmem:[%s1209_s3 + $0x50] sm:$0xff] %v353_v41  ;;  %418 = vst [vmem:[%s1209_s3 + $0x58] sm:$0xff] %v354_v42  ;;  %v102_v54 = vmul.f32 %v513_v10, %v34_v36  ;;  %v103_v57 = vmul.f32 %v513_v10, %v35_v37  ;;  %v104_v59 = vmul.f32 %v513_v10, %v36_v38  ;;  %v239_v36 = vld [vmem:[%s1208_s2 + $0xc0] sm:$0xff]  ;;  %v240_v38 = vld [vmem:[%s1208_s2 + $0xc8] sm:$0xff] }
  0x1b   :  { %419 = vst [vmem:[%s1209_s3 + $0x60] sm:$0xff] %v355_v45  ;;  %420 = vst [vmem:[%s1209_s3 + $0x68] sm:$0xff] %v356_v46  ;;  %v105_v60 = vmul.f32 %v513_v10, %v37_v43  ;;  %v106_v61 = vmul.f32 %v513_v10, %v38_v44  ;;  %v167_v62 = vadd.f32 %v515_v11, %v99_v49  ;;  %v241_v41 = vld [vmem:[%s1208_s2 + $0xd0] sm:$0xff]  ;;  %v242_v42 = vld [vmem:[%s1208_s2 + $0xd8] sm:$0xff] }
  0x1c   :  { %421 = vst [vmem:[%s1209_s3 + $0x70] sm:$0xff] %v357_v47  ;;  %422 = vst [vmem:[%s1209_s3 + $0x78] sm:$0xff] %v358_v48  ;;  %v168_v63 = vadd.f32 %v515_v11, %v100_v51  ;;  %v169_v0 = vadd.f32 %v515_v11, %v101_v53  ;;  %v170_v1 = vadd.f32 %v515_v11, %v102_v54  ;;  %v243_v44 = vld [vmem:[%s1208_s2 + $0xe0] sm:$0xff]  ;;  %v245_v53 = vld [vmem:[%s1208_s2 + $0xf0] sm:$0xff] }
  0x1d   :  { %v171_v5 = vadd.f32 %v515_v11, %v103_v57  ;;  %v172_v6 = vadd.f32 %v515_v11, %v104_v59  ;;  %v173_v7 = vadd.f32 %v515_v11, %v105_v60  ;;  %v174_v8 = vadd.f32 %v515_v11, %v106_v61  ;;  %v246_v54 = vld [vmem:[%s1208_s2 + $0xf8] sm:$0xff] }
  0x1e   :  { %v295_v9 = vadd.f32 %v231_v50, %v167_v62  ;;  %v296_v12 = vadd.f32 %v232_v52, %v168_v63  ;;  %v297_v13 = vadd.f32 %v233_v55, %v169_v0  ;;  %v298_v14 = vadd.f32 %v234_v56, %v170_v1  ;;  %v244_v52 = vld [vmem:[%s1208_s2 + $0xe8] sm:$0xff]  ;;  %v47_v63 = vld [vmem:[%s1207_s0 + $0x100] sm:$0xff]  ;;  %v49_v1 = vld [vmem:[%s1207_s0 + $0x110] sm:$0xff] }
  0x1f   :  { %v299_v18 = vadd.f32 %v235_v58, %v171_v5  ;;  %v300_v19 = vadd.f32 %v236_v2, %v172_v6  ;;  %v301_v20 = vadd.f32 %v237_v3, %v173_v7  ;;  %v302_v21 = vadd.f32 %v238_v4, %v174_v8  ;;  %v48_v0 = vld [vmem:[%s1207_s0 + $0x108] sm:$0xff]  ;;  %v50_v6 = vld [vmem:[%s1207_s0 + $0x118] sm:$0xff]  ;;  %v51_v7 = vld [vmem:[%s1207_s0 + $0x120] sm:$0xff] }
  0x20   :  { %v359_v25 = vmax.f32 %v295_v9, 0.0  ;;  %v360_v26 = vmax.f32 %v296_v12, 0.0  ;;  %v361_v27 = vmax.f32 %v297_v13, 0.0  ;;  %v362_v28 = vmax.f32 %v298_v14, 0.0  ;;  %v52_v8 = vld [vmem:[%s1207_s0 + $0x128] sm:$0xff] }
  0x21   :  { %v363_v31 = vmax.f32 %v299_v18, 0.0  ;;  %v364_v32 = vmax.f32 %v300_v19, 0.0  ;;  %v365_v33 = vmax.f32 %v301_v20, 0.0  ;;  %v366_v34 = vmax.f32 %v302_v21, 0.0 }
  0x22   :  { %423 = vst [vmem:[%s1209_s3 + $0x80] sm:$0xff] %v359_v25  ;;  %424 = vst [vmem:[%s1209_s3 + $0x88] sm:$0xff] %v360_v26  ;;  %v107_v35 = vmul.f32 %v513_v10, %v39_v15  ;;  %v108_v37 = vmul.f32 %v513_v10, %v40_v16  ;;  %v109_v39 = vmul.f32 %v513_v10, %v41_v17  ;;  %v53_v15 = vld [vmem:[%s1207_s0 + $0x130] sm:$0xff]  ;;  %v54_v16 = vld [vmem:[%s1207_s0 + $0x138] sm:$0xff] }
  0x23   :  { %425 = vst [vmem:[%s1209_s3 + $0x90] sm:$0xff] %v361_v27  ;;  %426 = vst [vmem:[%s1209_s3 + $0x98] sm:$0xff] %v362_v28  ;;  %v110_v40 = vmul.f32 %v513_v10, %v42_v22  ;;  %v111_v43 = vmul.f32 %v513_v10, %v43_v23  ;;  %v112_v45 = vmul.f32 %v513_v10, %v44_v24  ;;  %v247_v22 = vld [vmem:[%s1208_s2 + $0x100] sm:$0xff]  ;;  %v248_v24 = vld [vmem:[%s1208_s2 + $0x108] sm:$0xff] }
  0x24   :  { %427 = vst [vmem:[%s1209_s3 + $0xa0] sm:$0xff] %v363_v31  ;;  %428 = vst [vmem:[%s1209_s3 + $0xa8] sm:$0xff] %v364_v32  ;;  %v113_v46 = vmul.f32 %v513_v10, %v45_v29  ;;  %v114_v47 = vmul.f32 %v513_v10, %v46_v30  ;;  %v175_v48 = vadd.f32 %v515_v11, %v107_v35  ;;  %v249_v27 = vld [vmem:[%s1208_s2 + $0x110] sm:$0xff]  ;;  %v250_v28 = vld [vmem:[%s1208_s2 + $0x118] sm:$0xff] }
  0x25   :  { %429 = vst [vmem:[%s1209_s3 + $0xb0] sm:$0xff] %v365_v33  ;;  %430 = vst [vmem:[%s1209_s3 + $0xb8] sm:$0xff] %v366_v34  ;;  %v176_v49 = vadd.f32 %v515_v11, %v108_v37  ;;  %v177_v50 = vadd.f32 %v515_v11, %v109_v39  ;;  %v178_v51 = vadd.f32 %v515_v11, %v110_v40  ;;  %v251_v30 = vld [vmem:[%s1208_s2 + $0x120] sm:$0xff]  ;;  %v253_v39 = vld [vmem:[%s1208_s2 + $0x130] sm:$0xff] }
  0x26   :  { %v179_v55 = vadd.f32 %v515_v11, %v111_v43  ;;  %v180_v56 = vadd.f32 %v515_v11, %v112_v45  ;;  %v181_v57 = vadd.f32 %v515_v11, %v113_v46  ;;  %v182_v58 = vadd.f32 %v515_v11, %v114_v47  ;;  %v254_v40 = vld [vmem:[%s1208_s2 + $0x138] sm:$0xff] }
  0x27   :  { %v303_v59 = vadd.f32 %v239_v36, %v175_v48  ;;  %v304_v60 = vadd.f32 %v240_v38, %v176_v49  ;;  %v305_v61 = vadd.f32 %v241_v41, %v177_v50  ;;  %v306_v62 = vadd.f32 %v242_v42, %v178_v51  ;;  %v252_v38 = vld [vmem:[%s1208_s2 + $0x128] sm:$0xff]  ;;  %v55_v49 = vld [vmem:[%s1207_s0 + $0x140] sm:$0xff]  ;;  %v57_v51 = vld [vmem:[%s1207_s0 + $0x150] sm:$0xff] }
  0x28   :  { %v307_v2 = vadd.f32 %v243_v44, %v179_v55  ;;  %v308_v3 = vadd.f32 %v244_v52, %v180_v56  ;;  %v309_v4 = vadd.f32 %v245_v53, %v181_v57  ;;  %v310_v5 = vadd.f32 %v246_v54, %v182_v58  ;;  %v56_v50 = vld [vmem:[%s1207_s0 + $0x148] sm:$0xff]  ;;  %v58_v56 = vld [vmem:[%s1207_s0 + $0x158] sm:$0xff]  ;;  %v59_v57 = vld [vmem:[%s1207_s0 + $0x160] sm:$0xff] }
  0x29   :  { %v367_v9 = vmax.f32 %v303_v59, 0.0  ;;  %v368_v12 = vmax.f32 %v304_v60, 0.0  ;;  %v369_v13 = vmax.f32 %v305_v61, 0.0  ;;  %v370_v14 = vmax.f32 %v306_v62, 0.0  ;;  %v60_v58 = vld [vmem:[%s1207_s0 + $0x168] sm:$0xff] }
  0x2a   :  { %v371_v17 = vmax.f32 %v307_v2, 0.0  ;;  %v372_v18 = vmax.f32 %v308_v3, 0.0  ;;  %v373_v19 = vmax.f32 %v309_v4, 0.0  ;;  %v374_v20 = vmax.f32 %v310_v5, 0.0 }
  0x2b   :  { %431 = vst [vmem:[%s1209_s3 + $0xc0] sm:$0xff] %v367_v9  ;;  %432 = vst [vmem:[%s1209_s3 + $0xc8] sm:$0xff] %v368_v12  ;;  %v115_v21 = vmul.f32 %v513_v10, %v47_v63  ;;  %v116_v23 = vmul.f32 %v513_v10, %v48_v0  ;;  %v117_v25 = vmul.f32 %v513_v10, %v49_v1  ;;  %v61_v63 = vld [vmem:[%s1207_s0 + $0x170] sm:$0xff]  ;;  %v62_v0 = vld [vmem:[%s1207_s0 + $0x178] sm:$0xff] }
  0x2c   :  { %433 = vst [vmem:[%s1209_s3 + $0xd0] sm:$0xff] %v369_v13  ;;  %434 = vst [vmem:[%s1209_s3 + $0xd8] sm:$0xff] %v370_v14  ;;  %v118_v26 = vmul.f32 %v513_v10, %v50_v6  ;;  %v119_v29 = vmul.f32 %v513_v10, %v51_v7  ;;  %v120_v31 = vmul.f32 %v513_v10, %v52_v8  ;;  %v255_v6 = vld [vmem:[%s1208_s2 + $0x140] sm:$0xff]  ;;  %v256_v8 = vld [vmem:[%s1208_s2 + $0x148] sm:$0xff] }
  0x2d   :  { %435 = vst [vmem:[%s1209_s3 + $0xe0] sm:$0xff] %v371_v17  ;;  %436 = vst [vmem:[%s1209_s3 + $0xe8] sm:$0xff] %v372_v18  ;;  %v121_v32 = vmul.f32 %v513_v10, %v53_v15  ;;  %v122_v33 = vmul.f32 %v513_v10, %v54_v16  ;;  %v183_v34 = vadd.f32 %v515_v11, %v115_v21  ;;  %v257_v13 = vld [vmem:[%s1208_s2 + $0x150] sm:$0xff]  ;;  %v258_v14 = vld [vmem:[%s1208_s2 + $0x158] sm:$0xff] }
  0x2e   :  { %437 = vst [vmem:[%s1209_s3 + $0xf0] sm:$0xff] %v373_v19  ;;  %438 = vst [vmem:[%s1209_s3 + $0xf8] sm:$0xff] %v374_v20  ;;  %v184_v35 = vadd.f32 %v515_v11, %v116_v23  ;;  %v185_v36 = vadd.f32 %v515_v11, %v117_v25  ;;  %v186_v37 = vadd.f32 %v515_v11, %v118_v26  ;;  %v259_v16 = vld [vmem:[%s1208_s2 + $0x160] sm:$0xff]  ;;  %v261_v25 = vld [vmem:[%s1208_s2 + $0x170] sm:$0xff] }
  0x2f   :  { %v187_v41 = vadd.f32 %v515_v11, %v119_v29  ;;  %v188_v42 = vadd.f32 %v515_v11, %v120_v31  ;;  %v189_v43 = vadd.f32 %v515_v11, %v121_v32  ;;  %v190_v44 = vadd.f32 %v515_v11, %v122_v33  ;;  %v262_v26 = vld [vmem:[%s1208_s2 + $0x178] sm:$0xff] }
  0x30   :  { %v311_v45 = vadd.f32 %v247_v22, %v183_v34  ;;  %v312_v46 = vadd.f32 %v248_v24, %v184_v35  ;;  %v313_v47 = vadd.f32 %v249_v27, %v185_v36  ;;  %v314_v48 = vadd.f32 %v250_v28, %v186_v37  ;;  %v260_v24 = vld [vmem:[%s1208_s2 + $0x168] sm:$0xff]  ;;  %v63_v35 = vld [vmem:[%s1207_s0 + $0x180] sm:$0xff]  ;;  %v65_v37 = vld [vmem:[%s1207_s0 + $0x190] sm:$0xff] }
  0x31   :  { %v315_v52 = vadd.f32 %v251_v30, %v187_v41  ;;  %v316_v53 = vadd.f32 %v252_v38, %v188_v42  ;;  %v317_v54 = vadd.f32 %v253_v39, %v189_v43  ;;  %v318_v55 = vadd.f32 %v254_v40, %v190_v44  ;;  %v64_v36 = vld [vmem:[%s1207_s0 + $0x188] sm:$0xff]  ;;  %v66_v42 = vld [vmem:[%s1207_s0 + $0x198] sm:$0xff]  ;;  %v67_v43 = vld [vmem:[%s1207_s0 + $0x1a0] sm:$0xff] }
  0x32   :  { %v375_v59 = vmax.f32 %v311_v45, 0.0  ;;  %v376_v60 = vmax.f32 %v312_v46, 0.0  ;;  %v377_v61 = vmax.f32 %v313_v47, 0.0  ;;  %v378_v62 = vmax.f32 %v314_v48, 0.0  ;;  %v68_v44 = vld [vmem:[%s1207_s0 + $0x1a8] sm:$0xff] }
  0x33   :  { %v379_v1 = vmax.f32 %v315_v52, 0.0  ;;  %v380_v2 = vmax.f32 %v316_v53, 0.0  ;;  %v381_v3 = vmax.f32 %v317_v54, 0.0  ;;  %v382_v4 = vmax.f32 %v318_v55, 0.0 }
  0x34   :  { %439 = vst [vmem:[%s1209_s3 + $0x100] sm:$0xff] %v375_v59  ;;  %440 = vst [vmem:[%s1209_s3 + $0x108] sm:$0xff] %v376_v60  ;;  %v123_v5 = vmul.f32 %v513_v10, %v55_v49  ;;  %v124_v7 = vmul.f32 %v513_v10, %v56_v50  ;;  %v125_v9 = vmul.f32 %v513_v10, %v57_v51  ;;  %v69_v49 = vld [vmem:[%s1207_s0 + $0x1b0] sm:$0xff]  ;;  %v70_v50 = vld [vmem:[%s1207_s0 + $0x1b8] sm:$0xff] }
  0x35   :  { %441 = vst [vmem:[%s1209_s3 + $0x110] sm:$0xff] %v377_v61  ;;  %442 = vst [vmem:[%s1209_s3 + $0x118] sm:$0xff] %v378_v62  ;;  %v126_v12 = vmul.f32 %v513_v10, %v58_v56  ;;  %v127_v15 = vmul.f32 %v513_v10, %v59_v57  ;;  %v128_v17 = vmul.f32 %v513_v10, %v60_v58  ;;  %v263_v56 = vld [vmem:[%s1208_s2 + $0x180] sm:$0xff]  ;;  %v264_v58 = vld [vmem:[%s1208_s2 + $0x188] sm:$0xff] }
  0x36   :  { %443 = vst [vmem:[%s1209_s3 + $0x120] sm:$0xff] %v379_v1  ;;  %444 = vst [vmem:[%s1209_s3 + $0x128] sm:$0xff] %v380_v2  ;;  %v129_v18 = vmul.f32 %v513_v10, %v61_v63  ;;  %v130_v19 = vmul.f32 %v513_v10, %v62_v0  ;;  %v191_v20 = vadd.f32 %v515_v11, %v123_v5  ;;  %v265_v61 = vld [vmem:[%s1208_s2 + $0x190] sm:$0xff]  ;;  %v266_v62 = vld [vmem:[%s1208_s2 + $0x198] sm:$0xff] }
  0x37   :  { %445 = vst [vmem:[%s1209_s3 + $0x130] sm:$0xff] %v381_v3  ;;  %446 = vst [vmem:[%s1209_s3 + $0x138] sm:$0xff] %v382_v4  ;;  %v192_v21 = vadd.f32 %v515_v11, %v124_v7  ;;  %v193_v22 = vadd.f32 %v515_v11, %v125_v9  ;;  %v194_v23 = vadd.f32 %v515_v11, %v126_v12  ;;  %v267_v0 = vld [vmem:[%s1208_s2 + $0x1a0] sm:$0xff]  ;;  %v269_v9 = vld [vmem:[%s1208_s2 + $0x1b0] sm:$0xff] }
  0x38   :  { %v195_v27 = vadd.f32 %v515_v11, %v127_v15  ;;  %v196_v28 = vadd.f32 %v515_v11, %v128_v17  ;;  %v197_v29 = vadd.f32 %v515_v11, %v129_v18  ;;  %v198_v30 = vadd.f32 %v515_v11, %v130_v19  ;;  %v270_v12 = vld [vmem:[%s1208_s2 + $0x1b8] sm:$0xff] }
  0x39   :  { %v319_v31 = vadd.f32 %v255_v6, %v191_v20  ;;  %v320_v32 = vadd.f32 %v256_v8, %v192_v21  ;;  %v321_v33 = vadd.f32 %v257_v13, %v193_v22  ;;  %v322_v34 = vadd.f32 %v258_v14, %v194_v23  ;;  %v268_v8 = vld [vmem:[%s1208_s2 + $0x1a8] sm:$0xff]  ;;  %v71_v21 = vld [vmem:[%s1207_s0 + $0x1c0] sm:$0xff]  ;;  %v73_v23 = vld [vmem:[%s1207_s0 + $0x1d0] sm:$0xff] }
  0x3a   :  { %v323_v38 = vadd.f32 %v259_v16, %v195_v27  ;;  %v324_v39 = vadd.f32 %v260_v24, %v196_v28  ;;  %v325_v40 = vadd.f32 %v261_v25, %v197_v29  ;;  %v326_v41 = vadd.f32 %v262_v26, %v198_v30  ;;  %v72_v22 = vld [vmem:[%s1207_s0 + $0x1c8] sm:$0xff]  ;;  %v74_v28 = vld [vmem:[%s1207_s0 + $0x1d8] sm:$0xff]  ;;  %v75_v29 = vld [vmem:[%s1207_s0 + $0x1e0] sm:$0xff] }
  0x3b   :  { %v383_v45 = vmax.f32 %v319_v31, 0.0  ;;  %v384_v46 = vmax.f32 %v320_v32, 0.0  ;;  %v385_v47 = vmax.f32 %v321_v33, 0.0  ;;  %v386_v48 = vmax.f32 %v322_v34, 0.0  ;;  %v76_v30 = vld [vmem:[%s1207_s0 + $0x1e8] sm:$0xff] }
  0x3c   :  { %v387_v51 = vmax.f32 %v323_v38, 0.0  ;;  %v388_v52 = vmax.f32 %v324_v39, 0.0  ;;  %v389_v53 = vmax.f32 %v325_v40, 0.0  ;;  %v390_v54 = vmax.f32 %v326_v41, 0.0 }
  0x3d   :  { %447 = vst [vmem:[%s1209_s3 + $0x140] sm:$0xff] %v383_v45  ;;  %448 = vst [vmem:[%s1209_s3 + $0x148] sm:$0xff] %v384_v46  ;;  %v131_v55 = vmul.f32 %v513_v10, %v63_v35  ;;  %v132_v57 = vmul.f32 %v513_v10, %v64_v36  ;;  %v133_v59 = vmul.f32 %v513_v10, %v65_v37  ;;  %v77_v35 = vld [vmem:[%s1207_s0 + $0x1f0] sm:$0xff]  ;;  %v78_v36 = vld [vmem:[%s1207_s0 + $0x1f8] sm:$0xff] }
  0x3e   :  { %449 = vst [vmem:[%s1209_s3 + $0x150] sm:$0xff] %v385_v47  ;;  %450 = vst [vmem:[%s1209_s3 + $0x158] sm:$0xff] %v386_v48  ;;  %v134_v60 = vmul.f32 %v513_v10, %v66_v42  ;;  %v135_v63 = vmul.f32 %v513_v10, %v67_v43  ;;  %v136_v1 = vmul.f32 %v513_v10, %v68_v44  ;;  %v271_v42 = vld [vmem:[%s1208_s2 + $0x1c0] sm:$0xff]  ;;  %v272_v44 = vld [vmem:[%s1208_s2 + $0x1c8] sm:$0xff] }
  0x3f   :  { %451 = vst [vmem:[%s1209_s3 + $0x160] sm:$0xff] %v387_v51  ;;  %452 = vst [vmem:[%s1209_s3 + $0x168] sm:$0xff] %v388_v52  ;;  %v137_v2 = vmul.f32 %v513_v10, %v69_v49  ;;  %v138_v3 = vmul.f32 %v513_v10, %v70_v50  ;;  %v199_v4 = vadd.f32 %v515_v11, %v131_v55  ;;  %v273_v47 = vld [vmem:[%s1208_s2 + $0x1d0] sm:$0xff]  ;;  %v274_v48 = vld [vmem:[%s1208_s2 + $0x1d8] sm:$0xff] }
  0x40   :  { %453 = vst [vmem:[%s1209_s3 + $0x170] sm:$0xff] %v389_v53  ;;  %454 = vst [vmem:[%s1209_s3 + $0x178] sm:$0xff] %v390_v54  ;;  %v200_v5 = vadd.f32 %v515_v11, %v132_v57  ;;  %v201_v6 = vadd.f32 %v515_v11, %v133_v59  ;;  %v202_v7 = vadd.f32 %v515_v11, %v134_v60  ;;  %v275_v50 = vld [vmem:[%s1208_s2 + $0x1e0] sm:$0xff]  ;;  %v277_v59 = vld [vmem:[%s1208_s2 + $0x1f0] sm:$0xff] }
  0x41   :  { %v203_v13 = vadd.f32 %v515_v11, %v135_v63  ;;  %v204_v14 = vadd.f32 %v515_v11, %v136_v1  ;;  %v205_v15 = vadd.f32 %v515_v11, %v137_v2  ;;  %v206_v16 = vadd.f32 %v515_v11, %v138_v3 }
  0x42   :  { %v327_v17 = vadd.f32 %v263_v56, %v199_v4  ;;  %v328_v18 = vadd.f32 %v264_v58, %v200_v5  ;;  %v329_v19 = vadd.f32 %v265_v61, %v201_v6  ;;  %v330_v20 = vadd.f32 %v266_v62, %v202_v7  ;;  %v276_v58 = vld [vmem:[%s1208_s2 + $0x1e8] sm:$0xff] }
  0x43   :  { %v331_v24 = vadd.f32 %v267_v0, %v203_v13  ;;  %v332_v25 = vadd.f32 %v268_v8, %v204_v14  ;;  %v333_v26 = vadd.f32 %v269_v9, %v205_v15  ;;  %v334_v27 = vadd.f32 %v270_v12, %v206_v16 }
  0x44   :  { %v391_v31 = vmax.f32 %v327_v17, 0.0  ;;  %v392_v32 = vmax.f32 %v328_v18, 0.0  ;;  %v393_v33 = vmax.f32 %v329_v19, 0.0  ;;  %v394_v34 = vmax.f32 %v330_v20, 0.0 }
  0x45   :  { %v395_v37 = vmax.f32 %v331_v24, 0.0  ;;  %v396_v38 = vmax.f32 %v332_v25, 0.0  ;;  %v397_v39 = vmax.f32 %v333_v26, 0.0  ;;  %v398_v40 = vmax.f32 %v334_v27, 0.0 }
  0x46   :  { %455 = vst [vmem:[%s1209_s3 + $0x180] sm:$0xff] %v391_v31  ;;  %456 = vst [vmem:[%s1209_s3 + $0x188] sm:$0xff] %v392_v32  ;;  %v139_v41 = vmul.f32 %v513_v10, %v71_v21  ;;  %v140_v43 = vmul.f32 %v513_v10, %v72_v22  ;;  %v141_v45 = vmul.f32 %v513_v10, %v73_v23 }
  0x47   :  { %457 = vst [vmem:[%s1209_s3 + $0x190] sm:$0xff] %v393_v33  ;;  %458 = vst [vmem:[%s1209_s3 + $0x198] sm:$0xff] %v394_v34  ;;  %v142_v46 = vmul.f32 %v513_v10, %v74_v28  ;;  %v143_v49 = vmul.f32 %v513_v10, %v75_v29  ;;  %v144_v51 = vmul.f32 %v513_v10, %v76_v30 }
  0x48   :  { %459 = vst [vmem:[%s1209_s3 + $0x1a0] sm:$0xff] %v395_v37  ;;  %460 = vst [vmem:[%s1209_s3 + $0x1a8] sm:$0xff] %v396_v38  ;;  %v145_v52 = vmul.f32 %v513_v10, %v77_v35  ;;  %v146_v53 = vmul.f32 %v513_v10, %v78_v36  ;;  %v207_v54 = vadd.f32 %v515_v11, %v139_v41  ;;  %v278_v10 = vld [vmem:[%s1208_s2 + $0x1f8] sm:$0xff] }
  0x49   :  { %461 = vst [vmem:[%s1209_s3 + $0x1b0] sm:$0xff] %v397_v39  ;;  %462 = vst [vmem:[%s1209_s3 + $0x1b8] sm:$0xff] %v398_v40  ;;  %v208_v55 = vadd.f32 %v515_v11, %v140_v43  ;;  %v209_v56 = vadd.f32 %v515_v11, %v141_v45  ;;  %v210_v57 = vadd.f32 %v515_v11, %v142_v46 }
  0x4a   :  { %v211_v60 = vadd.f32 %v515_v11, %v143_v49  ;;  %v212_v61 = vadd.f32 %v515_v11, %v144_v51  ;;  %v213_v62 = vadd.f32 %v515_v11, %v145_v52  ;;  %v214_v63 = vadd.f32 %v515_v11, %v146_v53 }
  0x4b   :  { %v335_v0 = vadd.f32 %v271_v42, %v207_v54  ;;  %v336_v1 = vadd.f32 %v272_v44, %v208_v55  ;;  %v337_v2 = vadd.f32 %v273_v47, %v209_v56  ;;  %v338_v3 = vadd.f32 %v274_v48, %v210_v57 }
  0x4c   :  { %v339_v4 = vadd.f32 %v275_v50, %v211_v60  ;;  %v340_v5 = vadd.f32 %v276_v58, %v212_v61  ;;  %v341_v6 = vadd.f32 %v277_v59, %v213_v62  ;;  %v342_v7 = vadd.f32 %v278_v10, %v214_v63 }
  0x4d   :  { %v399_v8 = vmax.f32 %v335_v0, 0.0  ;;  %v400_v9 = vmax.f32 %v336_v1, 0.0  ;;  %v401_v12 = vmax.f32 %v337_v2, 0.0  ;;  %v402_v13 = vmax.f32 %v338_v3, 0.0 }
  0x4e   :  { %v403_v14 = vmax.f32 %v339_v4, 0.0  ;;  %v404_v15 = vmax.f32 %v340_v5, 0.0  ;;  %v405_v16 = vmax.f32 %v341_v6, 0.0  ;;  %v406_v17 = vmax.f32 %v342_v7, 0.0 }
  0x4f   :  { %463 = vst [vmem:[%s1209_s3 + $0x1c0] sm:$0xff] %v399_v8  ;;  %464 = vst [vmem:[%s1209_s3 + $0x1c8] sm:$0xff] %v400_v9 }
  0x50   :  { %465 = vst [vmem:[%s1209_s3 + $0x1d0] sm:$0xff] %v401_v12  ;;  %466 = vst [vmem:[%s1209_s3 + $0x1d8] sm:$0xff] %v402_v13 }
  0x51   :  { %467 = vst [vmem:[%s1209_s3 + $0x1e0] sm:$0xff] %v403_v14  ;;  %468 = vst [vmem:[%s1209_s3 + $0x1e8] sm:$0xff] %v404_v15 }
  0x52   :  { %469 = vst [vmem:[%s1209_s3 + $0x1f0] sm:$0xff] %v405_v16  ;;  %470 = vst [vmem:[%s1209_s3 + $0x1f8] sm:$0xff] %v406_v17 }

// kernel: residual_block.3
= control target key start
LH: loop header
LB: loop body
LE: loop exit
PB: predicated region body
PF: predicated region fallthrough
CT: control target
= control target key end

     0   :  { %s6991_s15 = smov 0   ;;  %s9593_s0 = inlined_call_operand.vmem [shape: f32[2,16,16,16], index: 0, kind: input, shape index: {}]   ;;  %s9594_s1 = inlined_call_operand.vmem [shape: bf16[9,16,128], index: 1, kind: input, shape index: {}]   ;;  %s9595_s2 = inlined_call_operand.vmem [shape: f32[1,128], index: 2, kind: input, shape index: {}]   ;;  %s9596_s3 = inlined_call_operand.vmem [shape: bf16[2,16,16,128], index: 3, kind: output, shape index: {0}]   ;;  %s9597_s4 = inlined_call_operand.vmem [shape: f32[2,2,128], index: 4, kind: output, shape index: {1}]  }
   0x1 LB: > { %s5821_s16 = sadd.s32 4294967295, %s6963_s15   ;;  %p5825_p0 = scmp.ge.s32.totalorder %s6963_s15, 1  ;;  %s6963_s15 = sphi %s6991_s15, %s15_s15  }
   0x2   : > { %p165_p1 = scmp.lt.s32.totalorder %s6963_s15, 3 }
   0x4   : > { %p166_p2 = pnand %p5825_p0, %p165_p1 }
   0x6   : > { %169 = sbr.rel (%p166_p2) target bundleno = 652 (0x28c), region = 32 }
   0xb   : > { %v6890_v0 = vld [vmem:[%s9594_s1 + $0x8] sm:$0xff]   ;;  %vm242_vm0 = vcmask 125952   ;;  %vm245_vm1 = vcmask 122880   ;;  %v6965_v1 = vmov 0   ;;  %p195_p3 = scmp.lt.s32.totalorder %s5821_s16, 1  ;;  %v7065_v2 = vld [vmem:[%s9594_s1] sm:$0xff]  }
   0xc   : > { %6573 = vmatprep.subr.bf16.mxu0 %v6890_v0  ;;  %6879 = vmatprep.subr.bf16.mxu1 %v6890_v0  ;;  %243 = vst.msk [vmem:[#allocation2] sm:$0xf] %vm242_vm0, %v6965_v1  ;;  %244 = vst.msk [vmem:[#allocation2 + $0x4] sm:$0xf] %vm242_vm0, %v6965_v1  ;;  %vm885_vm2 = vsmask.f32 3328 }
   0xd   : > { %246 = vst.msk [vmem:[#allocation2 + $0x8] sm:$0x1] %vm245_vm1, %v6965_v1  ;;  %249 = vst.msk [vmem:[#allocation2 + $0x14] sm:$0x1] %vm245_vm1, %v6965_v1  ;;  %6574 = vmatpush3.bf16.msra.mxu0 %v6890_v0  ;;  %6880 = vmatpush3.bf16.msra.mxu1 %v6890_v0  ;;  %vm886_vm3 = vsmask.f32 7440 }
   0xe   : > { %247 = vst.msk [vmem:[#allocation2 + $0xc] sm:$0xf] %vm242_vm0, %v6965_v1  ;;  %248 = vst.msk [vmem:[#allocation2 + $0x10] sm:$0xf] %vm242_vm0, %v6965_v1  ;;  %s9826_s16 = smov (!%p195_p3, %s5821_s16), 1  ;;  %v7070_v3 = vld [vmem:[%s9594_s1 + $0x10] sm:$0xff]   ;;  %6607 = vmatprep.subr.bf16.mxu1 %v7065_v2 }
   0xf   : > { %250 = vst.msk [vmem:[#allocation2 + $0x18] sm:$0xf] %vm242_vm0, %v6965_v1  ;;  %251 = vst.msk [vmem:[#allocation2 + $0x1c] sm:$0xf] %vm242_vm0, %v6965_v1  ;;  %vm394_vm4 = vsmask.f32 256  ;;  %6641 = vmatprep.subr.bf16.mxu0 %v7070_v3 }
  0x10   : > { %252 = vst.msk [vmem:[#allocation2 + $0x20] sm:$0x1] %vm245_vm1, %v6965_v1  ;;  %255 = vst.msk [vmem:[#allocation2 + $0x2c] sm:$0x1] %vm245_vm1, %v6965_v1  ;;  %s6259_s23 = sshll.u32 %s9826_s16, 8  ;;  %vm1329_vm6 = vcmask 130048  }
  0x11   : > { %253 = vst.msk [vmem:[#allocation2 + $0x24] sm:$0xf] %vm242_vm0, %v6965_v1  ;;  %254 = vst.msk [vmem:[#allocation2 + $0x28] sm:$0xf] %vm242_vm0, %v6965_v1  ;;  %s7077_s26 = scalar_lea.vmem %s9593_s0, %s6259_s23  ;;  %vm395_vm5 = vsmask.f32 4368 }
  0x12   : > { %256 = vst.msk [vmem:[#allocation2 + $0x30] sm:$0xf] %vm242_vm0, %v6965_v1  ;;  %257 = vst.msk [vmem:[#allocation2 + $0x34] sm:$0xf] %vm242_vm0, %v6965_v1  ;;  %v210_v4 = vld [vmem:[%s7077_s26] sm:$0xff]  ;;  %v211_v5 = vld [vmem:[%s7077_s26 + $0x8] sm:$0xff] }
  0x13   : > { %258 = vst.msk [vmem:[#allocation2 + $0x38] sm:$0x1] %vm245_vm1, %v6965_v1  ;;  %261 = vst.msk [vmem:[#allocation2 + $0x44] sm:$0x1] %vm245_vm1, %v6965_v1  ;;  %v224_v6 = vld [vmem:[%s7077_s26 + $0x70] sm:$0xff]  ;;  %v6261_v10 = vpack.c.bf16 %v210_v4, %v210_v4  ;;  %v6262_v11 = vpack.c.bf16 %v211_v5, %v211_v5  ;;  %v225_v24 = vld [vmem:[%s7077_s26 + $0x78] sm:$0xff] }
  0x14   : > { %259 = vst.msk [vmem:[#allocation2 + $0x3c] sm:$0xf] %vm242_vm0, %v6965_v1  ;;  %260 = vst.msk [vmem:[#allocation2 + $0x40] sm:$0xf] %vm242_vm0, %v6965_v1  ;;  %v835_v7 = vld [vmem:[#allocation2] sm:$0xf]  ;;  %v6275_v12 = vpack.c.bf16 %v224_v6, %v224_v6  ;;  %v6276_v34 = vpack.c.bf16 %v225_v24, %v225_v24 }
  0x15   : > { %262 = vst.msk [vmem:[#allocation2 + $0x48] sm:$0xf] %vm242_vm0, %v6965_v1  ;;  %263 = vst.msk [vmem:[#allocation2 + $0x4c] sm:$0xf] %vm242_vm0, %v6965_v1  ;;  %v836_v8 = vld [vmem:[#allocation2 + $0x4] sm:$0xf] }
  0x16   : > { %264 = vst.msk [vmem:[#allocation2 + $0x50] sm:$0x1] %vm245_vm1, %v6965_v1  ;;  %267 = vst.msk [vmem:[#allocation2 + $0x5c] sm:$0x1] %vm245_vm1, %v6965_v1  ;;  %v7083_v9 = vld [vmem:[#allocation2 + $0x8] sm:$0x1] }
  0x17   : > { %265 = vst.msk [vmem:[#allocation2 + $0x54] sm:$0xf] %vm242_vm0, %v6965_v1  ;;  %266 = vst.msk [vmem:[#allocation2 + $0x58] sm:$0xf] %vm242_vm0, %v6965_v1  ;;  %v889_v13 = vshrl.u32 %v835_v7, 16  ;;  %v892_v14 = vshll.u32 %v835_v7, 16 }
  0x18   : > { %268 = vst.msk [vmem:[#allocation2 + $0x60] sm:$0xf] %vm242_vm0, %v6965_v1  ;;  %269 = vst.msk [vmem:[#allocation2 + $0x64] sm:$0xf] %vm242_vm0, %v6965_v1  ;;  %v898_v15 = vshll.u32 %v836_v8, 16  ;;  %v902_v16 = vshrl.u32 %v836_v8, 16 }
  0x19   : > { %270 = vst.msk [vmem:[#allocation2 + $0x68] sm:$0x1] %vm245_vm1, %v6965_v1  ;;  %273 = vst.msk [vmem:[#allocation2 + $0x74] sm:$0x1] %vm245_vm1, %v6965_v1  ;;  %v908_v17 = vshll.u32 %v7083_v9, 16  ;;  %v398_v18 = vshrl.u32 %v6261_v10, 16 }
  0x1a   : > { %271 = vst.msk [vmem:[#allocation2 + $0x6c] sm:$0xf] %vm242_vm0, %v6965_v1  ;;  %272 = vst.msk [vmem:[#allocation2 + $0x70] sm:$0xf] %vm242_vm0, %v6965_v1  ;;  %v401_v19 = vshll.u32 %v6261_v10, 16  ;;  %v891_v20 = vrot.slane %v889_v13, 4 }
  0x1b   : > { %274 = vst.msk [vmem:[#allocation2 + $0x78] sm:$0xf] %vm242_vm0, %v6965_v1  ;;  %275 = vst.msk [vmem:[#allocation2 + $0x7c] sm:$0xf] %vm242_vm0, %v6965_v1  ;;  %vm719_vm7 = vsmask.f32 7938 }
  0x1c   : > { %276 = vst.msk [vmem:[#allocation2 + $0x80] sm:$0x1] %vm245_vm1, %v6965_v1  ;;  %279 = vst.msk [vmem:[#allocation2 + $0x8c] sm:$0x1] %vm245_vm1, %v6965_v1  ;;  %v894_v21 = vrot.slane %v892_v14, 5  ;;  %v900_v22 = vrot.slane %v898_v15, 5 }
  0x1d   : > { %277 = vst.msk [vmem:[#allocation2 + $0x84] sm:$0xf] %vm242_vm0, %v6965_v1  ;;  %278 = vst.msk [vmem:[#allocation2 + $0x88] sm:$0xf] %vm242_vm0, %v6965_v1  ;;  %v904_v23 = vrot.slane %v902_v16, 4  ;;  %v910_v26 = vrot.slane %v908_v17, 5 }
  0x1e   : > { %280 = vst.msk [vmem:[#allocation2 + $0x90] sm:$0xf] %vm242_vm0, %v6965_v1  ;;  %281 = vst.msk [vmem:[#allocation2 + $0x94] sm:$0xf] %vm242_vm0, %v6965_v1  ;;  %v400_v27 = vrot.slane %v398_v18, 7  ;;  %v406_v28 = vshrl.u32 %v6262_v11, 16  ;;  %v895_v30 = vor.u32 %v894_v21, %v891_v20 }
  0x1f   : > { %282 = vst.msk [vmem:[#allocation2 + $0x98] sm:$0x1] %vm245_vm1, %v6965_v1  ;;  %285 = vst.msk [vmem:[#allocation2 + $0xa4] sm:$0x1] %vm245_vm1, %v6965_v1  ;;  %v409_v29 = vshll.u32 %v6262_v11, 16  ;;  %v905_v31 = vor.u32 %v904_v23, %v900_v22  ;;  %v517_v35 = vshrl.u32 %v6275_v12, 16 }
  0x20   : > { %283 = vst.msk [vmem:[#allocation2 + $0x9c] sm:$0xf] %vm242_vm0, %v6965_v1  ;;  %284 = vst.msk [vmem:[#allocation2 + $0xa0] sm:$0xf] %vm242_vm0, %v6965_v1  ;;  %v721_v33 = vld [vmem:[#allocation2 + $0xc] sm:$0xf]  ;;  %v403_v37 = vor.u32 %v401_v19, %v400_v27 }
  0x21   : > { %286 = vst.msk [vmem:[#allocation2 + $0xa8] sm:$0xf] %vm242_vm0, %v6965_v1  ;;  %287 = vst.msk [vmem:[#allocation2 + $0xac] sm:$0xf] %vm242_vm0, %v6965_v1  ;;  %v404_v38 = vrot.slane %v400_v27, 4  ;;  %v408_v39 = vrot.slane %v406_v28, 7 }
  0x22   : > { %288 = vst.msk [vmem:[#allocation2 + $0xb0] sm:$0x1] %vm245_vm1, %v6965_v1  ;;  %291 = vst.msk [vmem:[#allocation2 + $0xbc] sm:$0x1] %vm245_vm1, %v6965_v1  ;;  %v727_v40 = vld [vmem:[#allocation2 + $0x14] sm:$0x1] }
  0x23   : > { %289 = vst.msk [vmem:[#allocation2 + $0xb4] sm:$0xf] %vm242_vm0, %v6965_v1  ;;  %290 = vst.msk [vmem:[#allocation2 + $0xb8] sm:$0xf] %vm242_vm0, %v6965_v1  ;;  %v520_v41 = vshll.u32 %v6275_v12, 16  ;;  %v896_v42 = vrot.slane %v895_v30, 4  ;;  %v411_v48 = vor.u32 %v409_v29, %v408_v39 }
  0x24   : > { %292 = vst.msk [vmem:[#allocation2 + $0xc0] sm:$0xf] %vm242_vm0, %v6965_v1  ;;  %293 = vst.msk [vmem:[#allocation2 + $0xc4] sm:$0xf] %vm242_vm0, %v6965_v1  ;;  %v906_v43 = vrot.slane %v905_v31, 4  ;;  %v519_v45 = vrot.slane %v517_v35, 7 }
  0x25   : > { %294 = vst.msk [vmem:[#allocation2 + $0xc8] sm:$0x1] %vm245_vm1, %v6965_v1  ;;  %297 = vst.msk [vmem:[#allocation2 + $0xd4] sm:$0x1] %vm245_vm1, %v6965_v1  ;;  %v525_v46 = vshrl.u32 %v6276_v34, 16  ;;  %v226_v47 = vld [vmem:[%s7077_s26 + $0x80] sm:$0xff] }
  0x26   : > { %295 = vst.msk [vmem:[#allocation2 + $0xcc] sm:$0xf] %vm242_vm0, %v6965_v1  ;;  %296 = vst.msk [vmem:[#allocation2 + $0xd0] sm:$0xf] %vm242_vm0, %v6965_v1  ;;  %v413_v49 = vrot.slane %v408_v39, 4  ;;  %v528_v51 = vshll.u32 %v6276_v34, 16  ;;  %v522_v57 = vor.u32 %v520_v41, %v519_v45  ;;  %v6277_v5 = vpack.c.bf16 %v226_v47, %v226_v47 }
  0x27   : > { %vm7089_vm8 = vmor %vm885_vm2, %vm886_vm3  ;;  %v772_v52 = vld [vmem:[#allocation2 + $0x60] sm:$0xf]  ;;  %v227_v53 = vld [vmem:[%s7077_s26 + $0x88] sm:$0xff]  ;;  %v523_v58 = vrot.slane %v519_v45, 4  ;;  %v527_v63 = vrot.slane %v525_v46, 7  ;;  %v1890_v21 = vrot.slane %v7083_v9, 5 }
  0x28   : > { %vm7094_vm9 = vmand %vm242_vm0, %vm719_vm7  ;;  %v212_v54 = vld [vmem:[%s7077_s26 + $0x10] sm:$0xff]  ;;  %v901_v55 = vsel %vm7089_vm8, %v896_v42, %v900_v22  ;;  %v911_v56 = vsel %vm7089_vm8, %v906_v43, %v910_v26  ;;  %v213_v59 = vld [vmem:[%s7077_s26 + $0x18] sm:$0xff]  ;;  %v6278_v6 = vpack.c.bf16 %v227_v53, %v227_v53  ;;  %v534_v12 = vshrl.u32 %v6277_v5, 16  ;;  %s6260_s21 = sshll.u32 %s9826_s16, 7  ;;  %s5830_s25 = sshll.u32 %s9826_s16, 1 }
  0x29   : > { %vm7100_vm10 = vmor %vm394_vm4, %vm395_vm5  ;;  %v722_v50 = vsel %vm7094_vm9, %v403_v37, %v721_v33  ;;  %v5865_v60 = vcombine.low %v901_v55, %v911_v56  ;;  %v214_v0 = vld [vmem:[%s7077_s26 + $0x20] sm:$0xff]  ;;  %v773_v1 = vsel %vm7094_vm9, %v522_v57, %v772_v52  ;;  %v776_v4 = vld [vmem:[#allocation2 + $0x68] sm:$0x1]  ;;  %v6263_v7 = vpack.c.bf16 %v212_v54, %v212_v54  ;;  %s9428_s24 = scalar_lea.vmem %s9596_s3, %s6260_s21  ;;  %s208_s28 = scalar_lea.vmem %s9597_s4, %s5830_s25 }
  0x2a   : > { %vm7106_vm11 = vmand %vm245_vm1, %vm394_vm4  ;;  %723 = vst [vmem:[#allocation2 + $0xc] sm:$0xf] %v722_v50  ;;  %v412_v61 = vsel %vm7100_vm10, %v404_v38, %v411_v48  ;;  %v530_v8 = vor.u32 %v528_v51, %v527_v63  ;;  %v532_v10 = vrot.slane %v527_v63, 4  ;;  %v7129_v11 = vpack.c.bf16 %v213_v59, %v213_v59  ;;  %v215_v15 = vld [vmem:[%s7077_s26 + $0x28] sm:$0xff] }
  0x2b   : > { %v728_v62 = vsel %vm7106_vm11, %v413_v49, %v727_v40  ;;  %724 = vst.msk [vmem:[#allocation2 + $0x10] sm:$0xf] %vm242_vm0, %v412_v61  ;;  %6575 = vmatprep.mubr.msk.bf16.mxu0 %vm1329_vm6, %v5865_v60  ;;  %774 = vst [vmem:[#allocation2 + $0x60] sm:$0xf] %v773_v1  ;;  %v537_v13 = vshll.u32 %v6277_v5, 16  ;;  %v542_v14 = vshrl.u32 %v6278_v6, 16  ;;  %v7132_v16 = vpack.c.bf16 %v214_v0, %v214_v0 }
  0x2c   : > { %729 = vst [vmem:[#allocation2 + $0x14] sm:$0x1] %v728_v62  ;;  %v531_v17 = vsel %vm7100_vm10, %v523_v58, %v530_v8  ;;  %v777_v18 = vsel %vm7106_vm11, %v532_v10, %v776_v4  ;;  %v545_v19 = vshll.u32 %v6278_v6, 16  ;;  %v415_v20 = vshrl.u32 %v6263_v7, 16  ;;  %v779_v34 = vld [vmem:[#allocation2 + $0x6c] sm:$0xf] }
  0x2d   : > { %775 = vst.msk [vmem:[#allocation2 + $0x64] sm:$0xf] %vm242_vm0, %v531_v17  ;;  %778 = vst [vmem:[#allocation2 + $0x68] sm:$0x1] %v777_v18  ;;  %v536_v22 = vrot.slane %v534_v12, 7  ;;  %v544_v23 = vrot.slane %v542_v14, 7  ;;  %v7144_v30 = vpack.c.bf16 %v215_v15, %v215_v15 }
  0x2e   : > { %v418_v24 = vshll.u32 %v6263_v7, 16  ;;  %v7140_v27 = vrot.slane %v415_v20, 7  ;;  %v423_v28 = vshrl.u32 %v7129_v11, 16  ;;  %v426_v29 = vshll.u32 %v7129_v11, 16  ;;  %v783_v58 = vld [vmem:[#allocation2 + $0x74] sm:$0x1] }
  0x2f   : > { %v432_v35 = vshrl.u32 %v7132_v16, 16  ;;  %v435_v37 = vshll.u32 %v7132_v16, 16  ;;  %v539_v40 = vor.u32 %v537_v13, %v536_v22  ;;  %v540_v41 = vrot.slane %v536_v22, 4  ;;  %v730_v7 = vld [vmem:[#allocation2 + $0x18] sm:$0xf] }
  0x30   : > { %v547_v42 = vor.u32 %v545_v19, %v544_v23  ;;  %v549_v43 = vrot.slane %v544_v23, 4  ;;  %v420_v52 = vor.u32 %v418_v24, %v7140_v27  ;;  %v421_v53 = vrot.slane %v7140_v27, 4  ;;  %v734_v24 = vld [vmem:[#allocation2 + $0x20] sm:$0x1] }
  0x31   : > { %v837_v26 = vld [vmem:[#allocation2 + $0xc] sm:$0xf]  ;;  %v780_v0 = vsel %vm7094_vm9, %v539_v40, %v779_v34  ;;  %v425_v19 = vrot.slane %v423_v28, 7  ;;  %v440_v27 = vshrl.u32 %v7144_v30, 16  ;;  %vm1882_vm12 = vcmask 1042432  }
  0x32   : > { %v913_v31 = vshrl.u32 %v837_v26, 16  ;;  %v916_v33 = vshll.u32 %v837_v26, 16  ;;  %v7148_v38 = vld [vmem:[#allocation2 + $0x10] sm:$0xf]  ;;  %v851_v49 = vld [vmem:[#allocation2 + $0x60] sm:$0xf]  ;;  %v548_v63 = vsel %vm7100_vm10, %v540_v41, %v547_v42  ;;  %v784_v12 = vsel %vm7106_vm11, %v549_v43, %v783_v58 }
  0x33   : > { %v870_v39 = vld [vmem:[#allocation2 + $0x14] sm:$0x1]  ;;  %v922_v47 = vshll.u32 %v7148_v38, 16  ;;  %v926_v48 = vshrl.u32 %v7148_v38, 16  ;;  %v1081_v51 = vshrl.u32 %v851_v49, 16  ;;  %v1084_v57 = vshll.u32 %v851_v49, 16 }
  0x34   : > { %v915_v45 = vrot.slane %v913_v31, 4  ;;  %v918_v46 = vrot.slane %v916_v33, 5  ;;  %v932_v50 = vshll.u32 %v870_v39, 16  ;;  %v852_v60 = vld [vmem:[#allocation2 + $0x64] sm:$0xf]  ;;  %v1894_v8 = vrot.slane %v7148_v38, 5 }
  0x35   : > { %v924_v55 = vrot.slane %v922_v47, 5  ;;  %v928_v56 = vrot.slane %v926_v48, 4  ;;  %v877_v61 = vld [vmem:[#allocation2 + $0x68] sm:$0x1]  ;;  %v1083_v62 = vrot.slane %v1081_v51, 4  ;;  %v1086_v5 = vrot.slane %v1084_v57, 5 }
  0x36   : > { %v919_v54 = vor.u32 %v918_v46, %v915_v45  ;;  %v934_v59 = vrot.slane %v932_v50, 5  ;;  %v1090_v6 = vshll.u32 %v852_v60, 16  ;;  %781 = vst [vmem:[#allocation2 + $0x6c] sm:$0xf] %v780_v0  ;;  %782 = vst.msk [vmem:[#allocation2 + $0x70] sm:$0xf] %vm242_vm0, %v548_v63  ;;  %v731_v20 = vsel %vm7094_vm9, %v420_v52, %v730_v7 }
  0x37   : > { %v929_v4 = vor.u32 %v928_v56, %v924_v55  ;;  %v1094_v10 = vshrl.u32 %v852_v60, 16  ;;  %v1100_v11 = vshll.u32 %v877_v61, 16  ;;  %v1087_v15 = vor.u32 %v1086_v5, %v1083_v62  ;;  %785 = vst [vmem:[#allocation2 + $0x74] sm:$0x1] %v784_v12  ;;  %732 = vst [vmem:[#allocation2 + $0x18] sm:$0xf] %v731_v20 }
  0x38   : > { %v920_v1 = vrot.slane %v919_v54, 4  ;;  %v1092_v16 = vrot.slane %v1090_v6, 5  ;;  %v434_v26 = vrot.slane %v432_v35, 7  ;;  %v428_v34 = vor.u32 %v426_v29, %v425_v19  ;;  %v737_v43 = vld [vmem:[#allocation2 + $0x24] sm:$0xf]  ;;  %v228_v57 = vld [vmem:[%s7077_s26 + $0x90] sm:$0xff] }
  0x39   : > { %v930_v14 = vrot.slane %v929_v4, 4  ;;  %v1096_v17 = vrot.slane %v1094_v10, 4  ;;  %v1102_v18 = vrot.slane %v1100_v11, 5  ;;  %v1088_v23 = vrot.slane %v1087_v15, 4  ;;  %v741_v52 = vld [vmem:[#allocation2 + $0x2c] sm:$0x1] }
  0x3a   : > { %v925_v13 = vsel %vm7089_vm8, %v920_v1, %v924_v55  ;;  %v430_v39 = vrot.slane %v425_v19, 4  ;;  %v437_v28 = vor.u32 %v435_v37, %v434_v26  ;;  %v438_v41 = vrot.slane %v434_v26, 4  ;;  %v230_v62 = vld [vmem:[%s7077_s26 + $0xa0] sm:$0xff] }
  0x3b   : > { %v935_v22 = vsel %vm7089_vm8, %v930_v14, %v934_v59  ;;  %v1097_v33 = vor.u32 %v1096_v17, %v1092_v16  ;;  %v1093_v40 = vsel %vm7089_vm8, %v1088_v23, %v1092_v16  ;;  %v442_v42 = vrot.slane %v440_v27, 7  ;;  %v6894_v63 = vld [vmem:[%s9594_s1 + $0x20] sm:$0xff]   ;;  %v216_v14 = vld [vmem:[%s7077_s26 + $0x30] sm:$0xff] }
  0x3c   : > { %v5866_v31 = vcombine.low %v925_v13, %v935_v22  ;;  %v429_v35 = vsel %vm7100_vm10, %v421_v53, %v428_v34  ;;  %v735_v29 = vsel %vm7106_vm11, %v430_v39, %v734_v24  ;;  %v443_v48 = vshll.u32 %v7144_v30, 16  ;;  %v231_v13 = vld [vmem:[%s7077_s26 + $0xa8] sm:$0xff]  ;;  %v217_v24 = vld [vmem:[%s7077_s26 + $0x38] sm:$0xff] }
  0x3d   : > { %v1098_v45 = vrot.slane %v1097_v33, 4  ;;  %v853_v46 = vld [vmem:[#allocation2 + $0x6c] sm:$0xf]  ;;  %v854_v47 = vld [vmem:[#allocation2 + $0x70] sm:$0xf]  ;;  %v447_v56 = vrot.slane %v442_v42, 4  ;;  %v738_v30 = vsel %vm7094_vm9, %v437_v28, %v737_v43  ;;  %v6279_v12 = vpack.c.bf16 %v228_v57, %v228_v57 }
  0x3e   : > { %6576 = vmatmul.mubr.msk.bf16.vlgmr.msra.gmra.mxu0 %vm1329_vm6, %v5866_v31  ;;  %v1105_v49 = vshrl.u32 %v853_v46, 16  ;;  %v1108_v50 = vshll.u32 %v853_v46, 16  ;;  %v1114_v37 = vshll.u32 %v854_v47, 16  ;;  %v1118_v51 = vshrl.u32 %v854_v47, 16  ;;  %733 = vst.msk [vmem:[#allocation2 + $0x1c] sm:$0xf] %vm242_vm0, %v429_v35 }
  0x3f   : > { %6642 = vmatpush3.bf16.msra.mxu0 %v7070_v3  ;;  %736 = vst [vmem:[#allocation2 + $0x20] sm:$0x1] %v735_v29  ;;  %v1103_v53 = vsel %vm7089_vm8, %v1098_v45, %v1102_v18  ;;  %v878_v54 = vld [vmem:[#allocation2 + $0x74] sm:$0x1]  ;;  %v445_v55 = vor.u32 %v443_v48, %v442_v42  ;;  %739 = vst [vmem:[#allocation2 + $0x24] sm:$0xf] %v738_v30  ;;  %v742_v6 = vsel %vm7106_vm11, %v447_v56, %v741_v52 }
  0x40   : > { %v5873_v58 = vcombine.low %v1093_v40, %v1103_v53  ;;  %v1107_v59 = vrot.slane %v1105_v49, 4  ;;  %v1110_v60 = vrot.slane %v1108_v50, 5  ;;  %v1116_v61 = vrot.slane %v1114_v37, 5  ;;  %v229_v3 = vld [vmem:[%s7077_s26 + $0x98] sm:$0xff]  ;;  %743 = vst [vmem:[#allocation2 + $0x2c] sm:$0x1] %v742_v6  ;;  %6709 = vmatprep.subr.bf16.mxu0 %v6894_v63 }
  0x41   : > { %v1120_v0 = vrot.slane %v1118_v51, 4  ;;  %v1124_v1 = vshll.u32 %v878_v54, 16  ;;  %v839_v4 = vld [vmem:[#allocation2 + $0x18] sm:$0xf]  ;;  %v446_v5 = vsel %vm7100_vm10, %v438_v41, %v445_v55  ;;  %v6280_v17 = vpack.c.bf16 %v229_v3, %v229_v3 }
  0x42   : > { %6591 = vmatprep.mubr.msk.bf16.mxu1 %vm1329_vm6, %v5873_v58  ;;  %v1111_v7 = vor.u32 %v1110_v60, %v1107_v59  ;;  %v937_v10 = vshrl.u32 %v839_v4, 16  ;;  %v940_v11 = vshll.u32 %v839_v4, 16  ;;  %740 = vst.msk [vmem:[#allocation2 + $0x28] sm:$0xf] %vm242_vm0, %v446_v5  ;;  %v7197_v18 = vpack.c.bf16 %v230_v62, %v230_v62  ;;  %v6893_v37 = vld [vmem:[%s9594_s1 + $0x18] sm:$0xff]  }
  0x43   : > { %v1121_v15 = vor.u32 %v1120_v0, %v1116_v61  ;;  %v1126_v16 = vrot.slane %v1124_v1, 5  ;;  %v551_v23 = vshrl.u32 %v6279_v12, 16  ;;  %v554_v33 = vshll.u32 %v6279_v12, 16  ;;  %v786_v60 = vld [vmem:[#allocation2 + $0x78] sm:$0xf] }
  0x44   : > { %v1112_v19 = vrot.slane %v1111_v7, 4  ;;  %v939_v20 = vrot.slane %v937_v10, 4  ;;  %v942_v22 = vrot.slane %v940_v11, 5  ;;  %v7204_v34 = vpack.c.bf16 %v231_v13, %v231_v13  ;;  %v790_v0 = vld [vmem:[#allocation2 + $0x80] sm:$0x1] }
  0x45   : > { %v1122_v26 = vrot.slane %v1121_v15, 4  ;;  %v7200_v27 = vld [vmem:[#allocation2 + $0x1c] sm:$0xf]  ;;  %v7206_v39 = vpack.c.bf16 %v216_v14, %v216_v14  ;;  %v553_v47 = vrot.slane %v551_v23, 7  ;;  %v559_v35 = vshrl.u32 %v6280_v17, 16 }
  0x46   : > { %v7202_v31 = vld [vmem:[#allocation2 + $0x20] sm:$0x1]  ;;  %v1117_v40 = vsel %vm7089_vm8, %v1112_v19, %v1116_v61  ;;  %v943_v28 = vor.u32 %v942_v22, %v939_v20  ;;  %v946_v41 = vshll.u32 %v7200_v27, 16  ;;  %v950_v42 = vshrl.u32 %v7200_v27, 16  ;;  %v841_v46 = vld [vmem:[#allocation2 + $0x24] sm:$0xf] }
  0x47   : > { %v1127_v43 = vsel %vm7089_vm8, %v1122_v26, %v1126_v16  ;;  %v956_v45 = vshll.u32 %v7202_v31, 16  ;;  %v7220_v53 = vld [vmem:[#allocation2 + $0x2c] sm:$0x1]  ;;  %v961_v54 = vshrl.u32 %v841_v46, 16  ;;  %v556_v55 = vor.u32 %v554_v33, %v553_v47  ;;  %v793_v23 = vld [vmem:[#allocation2 + $0x84] sm:$0xf] }
  0x48   : > { %v5874_v29 = vcombine.low %v1117_v40, %v1127_v43  ;;  %v944_v48 = vrot.slane %v943_v28, 4  ;;  %v948_v49 = vrot.slane %v946_v41, 5  ;;  %v952_v50 = vrot.slane %v950_v42, 4  ;;  %v797_v42 = vld [vmem:[#allocation2 + $0x8c] sm:$0x1] }
  0x49   : > { %v958_v51 = vrot.slane %v956_v45, 5  ;;  %v7218_v52 = vld [vmem:[#allocation2 + $0x28] sm:$0xf]  ;;  %v7222_v56 = vpack.c.bf16 %v217_v24, %v217_v24  ;;  %v964_v58 = vshll.u32 %v841_v46, 16  ;;  %v963_v61 = vrot.slane %v961_v54, 4 }
  0x4a   : > { %6592 = vmatmul.mubr.msk.bf16.vlgmr.msra.gmra.mxu1 %vm1329_vm6, %v5874_v29  ;;  %v949_v30 = vsel %vm7089_vm8, %v944_v48, %v948_v49  ;;  %v953_v57 = vor.u32 %v952_v50, %v948_v49  ;;  %v970_v59 = vshll.u32 %v7218_v52, 16  ;;  %v974_v3 = vshrl.u32 %v7218_v52, 16  ;;  %v218_v50 = vld [vmem:[%s7077_s26 + $0x40] sm:$0xff] }
  0x4b   : > { %6608 = vmatpush3.bf16.msra.mxu1 %v7065_v2  ;;  %v980_v62 = vshll.u32 %v7220_v53, 16  ;;  %v557_v63 = vrot.slane %v553_v47, 4  ;;  %v966_v4 = vrot.slane %v964_v58, 5  ;;  %v561_v6 = vrot.slane %v559_v35, 7  ;;  %v744_v35 = vld [vmem:[#allocation2 + $0x30] sm:$0xf] }
  0x4c   : > { %v954_v1 = vrot.slane %v953_v57, 4  ;;  %v972_v5 = vrot.slane %v970_v59, 5  ;;  %6675 = vmatprep.subr.bf16.mxu1 %v6893_v37  ;;  %v976_v7 = vrot.slane %v974_v3, 4  ;;  %v562_v11 = vshll.u32 %v6280_v17, 16  ;;  %v232_v3 = vld [vmem:[%s7077_s26 + $0xb0] sm:$0xff] }
  0x4d   : > { %v982_v10 = vrot.slane %v980_v62, 5  ;;  %v787_v12 = vsel %vm7094_vm9, %v556_v55, %v786_v60  ;;  %v967_v13 = vor.u32 %v966_v4, %v963_v61  ;;  %v566_v14 = vrot.slane %v561_v6, 4 }
  0x4e   : > { %v959_v2 = vsel %vm7089_vm8, %v954_v1, %v958_v51  ;;  %788 = vst [vmem:[#allocation2 + $0x78] sm:$0xf] %v787_v12  ;;  %v568_v15 = vshrl.u32 %v7197_v18, 16  ;;  %v977_v19 = vor.u32 %v976_v7, %v972_v5  ;;  %v564_v20 = vor.u32 %v562_v11, %v561_v6  ;;  %v748_v1 = vld [vmem:[#allocation2 + $0x38] sm:$0x1] }
  0x4f   : > { %v5867_v16 = vcombine.low %v949_v30, %v959_v2  ;;  %v571_v22 = vshll.u32 %v7197_v18, 16  ;;  %v968_v24 = vrot.slane %v967_v13, 4  ;;  %v791_v17 = vsel %vm7106_vm11, %v566_v14, %v790_v0  ;;  %v219_v30 = vld [vmem:[%s7077_s26 + $0x48] sm:$0xff]  ;;  %v233_v7 = vld [vmem:[%s7077_s26 + $0xb8] sm:$0xff] }
  0x50   : > { %v570_v26 = vrot.slane %v568_v15, 7  ;;  %v576_v33 = vshrl.u32 %v7204_v34, 16  ;;  %v978_v40 = vrot.slane %v977_v19, 4  ;;  %v565_v28 = vsel %vm7100_vm10, %v557_v63, %v564_v20  ;;  %792 = vst [vmem:[#allocation2 + $0x80] sm:$0x1] %v791_v17 }
  0x51   : > { %6579 = vmatprep.mubr.msk.bf16.mxu0 %vm1329_vm6, %v5867_v16  ;;  %v579_v41 = vshll.u32 %v7204_v34, 16  ;;  %v449_v18 = vshrl.u32 %v7206_v39, 16  ;;  %v973_v43 = vsel %vm7089_vm8, %v968_v24, %v972_v5  ;;  %789 = vst.msk [vmem:[#allocation2 + $0x7c] sm:$0xf] %vm242_vm0, %v565_v28  ;;  %v452_v34 = vshll.u32 %v7206_v39, 16 }
  0x52   : > { %v573_v45 = vor.u32 %v571_v22, %v570_v26  ;;  %v574_v46 = vrot.slane %v570_v26, 4  ;;  %v578_v47 = vrot.slane %v576_v33, 7  ;;  %v983_v29 = vsel %vm7089_vm8, %v978_v40, %v982_v10 }
  0x53   : > { %v451_v48 = vrot.slane %v449_v18, 7  ;;  %v457_v49 = vshrl.u32 %v7222_v56, 16  ;;  %v5868_v37 = vcombine.low %v973_v43, %v983_v29  ;;  %v460_v61 = vshll.u32 %v7222_v56, 16 }
  0x54   : > { %v581_v51 = vor.u32 %v579_v41, %v578_v47  ;;  %v583_v54 = vrot.slane %v578_v47, 4  ;;  %v794_v55 = vsel %vm7094_vm9, %v573_v45, %v793_v23  ;;  %v6269_v6 = vpack.c.bf16 %v218_v50, %v218_v50 }
  0x55   : > { %v855_v57 = vld [vmem:[#allocation2 + $0x78] sm:$0xf]  ;;  %795 = vst [vmem:[#allocation2 + $0x84] sm:$0xf] %v794_v55  ;;  %v454_v58 = vor.u32 %v452_v34, %v451_v48  ;;  %v455_v59 = vrot.slane %v451_v48, 4  ;;  %v459_v60 = vrot.slane %v457_v49, 7  ;;  %6580 = vmatmul.mubr.msk.bf16.gmra.mxu0 %vm1329_vm6, %v5868_v37  ;;  %v6270_v2 = vpack.c.bf16 %v219_v30, %v219_v30 }
  0x56   : > { %v1129_v39 = vshrl.u32 %v855_v57, 16  ;;  %v1132_v62 = vshll.u32 %v855_v57, 16  ;;  %v582_v63 = vsel %vm7100_vm10, %v574_v46, %v581_v51  ;;  %v798_v0 = vsel %vm7106_vm11, %v583_v54, %v797_v42 }
  0x57   : > { %796 = vst.msk [vmem:[#allocation2 + $0x88] sm:$0xf] %vm242_vm0, %v582_v63  ;;  %799 = vst [vmem:[#allocation2 + $0x8c] sm:$0x1] %v798_v0  ;;  %v462_v4 = vor.u32 %v460_v61, %v459_v60  ;;  %v464_v5 = vrot.slane %v459_v60, 4  ;;  %v745_v56 = vsel %vm7094_vm9, %v454_v58, %v744_v35  ;;  %v7267_v13 = vpack.c.bf16 %v232_v3, %v232_v3 }
  0x58   : > { %v879_v10 = vld [vmem:[#allocation2 + $0x80] sm:$0x1]  ;;  %v1131_v11 = vrot.slane %v1129_v39, 4  ;;  %v1134_v12 = vrot.slane %v1132_v62, 5  ;;  %746 = vst [vmem:[#allocation2 + $0x30] sm:$0xf] %v745_v56  ;;  %v7278_v45 = vpack.c.bf16 %v233_v7, %v233_v7 }
  0x59   : > { %v7269_v14 = vld [vmem:[#allocation2 + $0x7c] sm:$0xf]  ;;  %v1148_v15 = vshll.u32 %v879_v10, 16  ;;  %v463_v16 = vsel %vm7100_vm10, %v455_v59, %v462_v4  ;;  %v749_v19 = vsel %vm7106_vm11, %v464_v5, %v748_v1  ;;  %v466_v20 = vshrl.u32 %v6269_v6, 16 }
  0x5a   : > { %v1135_v22 = vor.u32 %v1134_v12, %v1131_v11  ;;  %v1138_v23 = vshll.u32 %v7269_v14, 16  ;;  %v1142_v24 = vshrl.u32 %v7269_v14, 16  ;;  %747 = vst.msk [vmem:[#allocation2 + $0x34] sm:$0xf] %vm242_vm0, %v463_v16  ;;  %750 = vst [vmem:[#allocation2 + $0x38] sm:$0x1] %v749_v19 }
  0x5b   : > { %v469_v17 = vshll.u32 %v6269_v6, 16  ;;  %v1150_v26 = vrot.slane %v1148_v15, 5  ;;  %v468_v33 = vrot.slane %v466_v20, 7  ;;  %v474_v40 = vshrl.u32 %v6270_v2, 16  ;;  %v751_v15 = vld [vmem:[#allocation2 + $0x3c] sm:$0xf] }
  0x5c   : > { %v477_v28 = vshll.u32 %v6270_v2, 16  ;;  %v1136_v41 = vrot.slane %v1135_v22, 4  ;;  %v1140_v42 = vrot.slane %v1138_v23, 5  ;;  %v1144_v18 = vrot.slane %v1142_v24, 4  ;;  %v857_v43 = vld [vmem:[#allocation2 + $0x84] sm:$0xf] }
  0x5d   : > { %v1153_v46 = vshrl.u32 %v857_v43, 16  ;;  %v1156_v47 = vshll.u32 %v857_v43, 16  ;;  %v471_v35 = vor.u32 %v469_v17, %v468_v33  ;;  %v472_v29 = vrot.slane %v468_v33, 4  ;;  %v755_v23 = vld [vmem:[#allocation2 + $0x44] sm:$0x1] }
  0x5e   : > { %v1141_v48 = vsel %vm7089_vm8, %v1136_v41, %v1140_v42  ;;  %v1145_v34 = vor.u32 %v1144_v18, %v1140_v42  ;;  %v7282_v49 = vld [vmem:[#allocation2 + $0x88] sm:$0xf]  ;;  %v7284_v50 = vld [vmem:[#allocation2 + $0x8c] sm:$0x1]  ;;  %v476_v37 = vrot.slane %v474_v40, 7  ;;  %v585_v51 = vshrl.u32 %v7267_v13, 16 }
  0x5f   : > { %v1155_v54 = vrot.slane %v1153_v46, 4  ;;  %v1158_v55 = vrot.slane %v1156_v47, 5  ;;  %v1162_v30 = vshll.u32 %v7282_v49, 16  ;;  %v1166_v57 = vshrl.u32 %v7282_v49, 16  ;;  %v7289_v58 = vld [vmem:[#allocation2 + $0x30] sm:$0xf] }
  0x60   : > { %v1146_v59 = vrot.slane %v1145_v34, 4  ;;  %v1172_v60 = vshll.u32 %v7284_v50, 16  ;;  %v985_v61 = vshrl.u32 %v7289_v58, 16  ;;  %v988_v3 = vshll.u32 %v7289_v58, 16  ;;  %v800_v18 = vld [vmem:[#allocation2 + $0x90] sm:$0xf] }
  0x61   : > { %v1159_v39 = vor.u32 %v1158_v55, %v1155_v54  ;;  %v1164_v62 = vrot.slane %v1162_v30, 5  ;;  %v1168_v63 = vrot.slane %v1166_v57, 4  ;;  %v7294_v0 = vld [vmem:[#allocation2 + $0x34] sm:$0xf]  ;;  %v7296_v1 = vld [vmem:[#allocation2 + $0x38] sm:$0x1]  ;;  %v479_v4 = vor.u32 %v477_v28, %v476_v37 }
  0x62   : > { %v1151_v5 = vsel %vm7089_vm8, %v1146_v59, %v1150_v26  ;;  %v1174_v56 = vrot.slane %v1172_v60, 5  ;;  %v987_v6 = vrot.slane %v985_v61, 4  ;;  %v990_v7 = vrot.slane %v988_v3, 5  ;;  %v234_v43 = vld [vmem:[%s7077_s26 + $0xc0] sm:$0xff]  ;;  %v235_v34 = vld [vmem:[%s7077_s26 + $0xc8] sm:$0xff]  ;;  %v221_v57 = vld [vmem:[%s7077_s26 + $0x58] sm:$0xff] }
  0x63   : > { %v5875_v10 = vcombine.low %v1141_v48, %v1151_v5  ;;  %v1160_v11 = vrot.slane %v1159_v39, 4  ;;  %v1169_v12 = vor.u32 %v1168_v63, %v1164_v62  ;;  %v994_v2 = vshll.u32 %v7294_v0, 16 }
  0x64   : > { %v991_v16 = vor.u32 %v990_v7, %v987_v6  ;;  %v998_v19 = vshrl.u32 %v7294_v0, 16  ;;  %v1004_v20 = vshll.u32 %v7296_v1, 16  ;;  %v480_v22 = vsel %vm7100_vm10, %v472_v29, %v479_v4  ;;  %v804_v4 = vld [vmem:[#allocation2 + $0x98] sm:$0x1] }
  0x65   : > { %6595 = vmatprep.mubr.msk.bf16.mxu1 %vm1329_vm6, %v5875_v10  ;;  %v1165_v24 = vsel %vm7089_vm8, %v1160_v11, %v1164_v62  ;;  %v1170_v17 = vrot.slane %v1169_v12, 4  ;;  %v996_v26 = vrot.slane %v994_v2, 5  ;;  %v481_v33 = vrot.slane %v476_v37, 4  ;;  %754 = vst.msk [vmem:[#allocation2 + $0x40] sm:$0xf] %vm242_vm0, %v480_v22  ;;  %v220_v37 = vld [vmem:[%s7077_s26 + $0x50] sm:$0xff] }
  0x66   : > { %v992_v40 = vrot.slane %v991_v16, 4  ;;  %v1000_v28 = vrot.slane %v998_v19, 4  ;;  %v1006_v41 = vrot.slane %v1004_v20, 5  ;;  %v752_v42 = vsel %vm7094_vm9, %v471_v35, %v751_v15 }
  0x67   : > { %v1175_v46 = vsel %vm7089_vm8, %v1170_v17, %v1174_v56  ;;  %753 = vst [vmem:[#allocation2 + $0x3c] sm:$0xf] %v752_v42  ;;  %v756_v47 = vsel %vm7106_vm11, %v481_v33, %v755_v23  ;;  %v587_v29 = vrot.slane %v585_v51, 7  ;;  %v588_v48 = vshll.u32 %v7267_v13, 16 }
  0x68   : > { %v5876_v54 = vcombine.low %v1165_v24, %v1175_v46  ;;  %v997_v55 = vsel %vm7089_vm8, %v992_v40, %v996_v26  ;;  %v1001_v30 = vor.u32 %v1000_v28, %v996_v26  ;;  %757 = vst [vmem:[#allocation2 + $0x44] sm:$0x1] %v756_v47  ;;  %v593_v35 = vshrl.u32 %v7278_v45, 16  ;;  %v807_v26 = vld [vmem:[#allocation2 + $0x9c] sm:$0xf] }
  0x69   : > { %v590_v59 = vor.u32 %v588_v48, %v587_v29  ;;  %v591_v60 = vrot.slane %v587_v29, 4  ;;  %v596_v61 = vshll.u32 %v7278_v45, 16  ;;  %v6285_v3 = vpack.c.bf16 %v234_v43, %v234_v43  ;;  %v811_v29 = vld [vmem:[#allocation2 + $0xa4] sm:$0x1] }
  0x6a   : > { %6596 = vmatmul.mubr.msk.bf16.gmra.mxu1 %vm1329_vm6, %v5876_v54  ;;  %v1002_v51 = vrot.slane %v1001_v30, 4  ;;  %v595_v13 = vrot.slane %v593_v35, 7  ;;  %v6286_v39 = vpack.c.bf16 %v235_v34, %v235_v34  ;;  %v7325_v62 = vpack.c.bf16 %v220_v37, %v220_v37 }
  0x6b   : > { %v801_v63 = vsel %vm7094_vm9, %v590_v59, %v800_v18  ;;  %v602_v5 = vshrl.u32 %v6285_v3, 16  ;;  %v605_v56 = vshll.u32 %v6285_v3, 16  ;;  %v7329_v6 = vpack.c.bf16 %v221_v57, %v221_v57  ;;  %v222_v59 = vld [vmem:[%s7077_s26 + $0x60] sm:$0xff] }
  0x6c   : > { %v1007_v7 = vsel %vm7089_vm8, %v1002_v51, %v1006_v41  ;;  %v7333_v45 = vld [vmem:[#allocation2 + $0x40] sm:$0xf]  ;;  %v598_v10 = vor.u32 %v596_v61, %v595_v13  ;;  %v600_v11 = vrot.slane %v595_v13, 4  ;;  %802 = vst [vmem:[#allocation2 + $0x90] sm:$0xf] %v801_v63  ;;  %v610_v12 = vshrl.u32 %v6286_v39, 16 }
  0x6d   : > { %v5869_v2 = vcombine.low %v997_v55, %v1007_v7  ;;  %v1018_v15 = vshll.u32 %v7333_v45, 16  ;;  %v1022_v16 = vshrl.u32 %v7333_v45, 16  ;;  %v604_v19 = vrot.slane %v602_v5, 7  ;;  %v758_v7 = vld [vmem:[#allocation2 + $0x48] sm:$0xf] }
  0x6e   : > { %v7337_v20 = vld [vmem:[#allocation2 + $0x3c] sm:$0xf]  ;;  %v599_v22 = vsel %vm7100_vm10, %v591_v60, %v598_v10  ;;  %v805_v23 = vsel %vm7106_vm11, %v600_v11, %v804_v4  ;;  %v612_v24 = vrot.slane %v610_v12, 7  ;;  %v613_v17 = vshll.u32 %v6286_v39, 16  ;;  %v223_v39 = vld [vmem:[%s7077_s26 + $0x68] sm:$0xff] }
  0x6f   : > { %6583 = vmatprep.mubr.msk.bf16.mxu0 %vm1329_vm6, %v5869_v2  ;;  %v7344_v33 = vld [vmem:[#allocation2 + $0x44] sm:$0x1]  ;;  %v1009_v40 = vshrl.u32 %v7337_v20, 16  ;;  %v1012_v28 = vshll.u32 %v7337_v20, 16  ;;  %v1020_v41 = vrot.slane %v1018_v15, 5  ;;  %v1024_v42 = vrot.slane %v1022_v16, 4 }
  0x70   : > { %803 = vst.msk [vmem:[#allocation2 + $0x94] sm:$0xf] %vm242_vm0, %v599_v22  ;;  %806 = vst [vmem:[#allocation2 + $0x98] sm:$0x1] %v805_v23  ;;  %v1028_v18 = vshll.u32 %v7344_v33, 16  ;;  %v607_v43 = vor.u32 %v605_v56, %v604_v19  ;;  %v608_v46 = vrot.slane %v604_v19, 4  ;;  %v615_v47 = vor.u32 %v613_v17, %v612_v24 }
  0x71   : > { %v1011_v48 = vrot.slane %v1009_v40, 4  ;;  %v1014_v34 = vrot.slane %v1012_v28, 5  ;;  %v1025_v37 = vor.u32 %v1024_v42, %v1020_v41  ;;  %v617_v54 = vrot.slane %v612_v24, 4  ;;  %v236_v40 = vld [vmem:[%s7077_s26 + $0xd0] sm:$0xff] }
  0x72   : > { %v1030_v55 = vrot.slane %v1028_v18, 5  ;;  %v616_v30 = vsel %vm7100_vm10, %v608_v46, %v615_v47  ;;  %v808_v35 = vsel %vm7094_vm9, %v607_v43, %v807_v26  ;;  %v483_v57 = vshrl.u32 %v7325_v62, 16 }
  0x73   : > { %v1015_v60 = vor.u32 %v1014_v34, %v1011_v48  ;;  %v1026_v61 = vrot.slane %v1025_v37, 4  ;;  %v7356_v3 = vld [vmem:[#allocation2 + $0x90] sm:$0xf]  ;;  %809 = vst [vmem:[#allocation2 + $0x9c] sm:$0xf] %v808_v35  ;;  %v812_v51 = vsel %vm7106_vm11, %v617_v54, %v811_v29  ;;  %v486_v13 = vshll.u32 %v7325_v62, 16 }
  0x74   : > { %810 = vst.msk [vmem:[#allocation2 + $0xa0] sm:$0xf] %vm242_vm0, %v616_v30  ;;  %v1177_v63 = vshrl.u32 %v7356_v3, 16  ;;  %v1180_v4 = vshll.u32 %v7356_v3, 16  ;;  %813 = vst [vmem:[#allocation2 + $0xa4] sm:$0x1] %v812_v51  ;;  %v7369_v2 = vpack.c.bf16 %v222_v59, %v222_v59  ;;  %v7375_v23 = vpack.c.bf16 %v223_v39, %v223_v39 }
  0x75   : > { %v485_v5 = vrot.slane %v483_v57, 7  ;;  %v491_v56 = vshrl.u32 %v7329_v6, 16  ;;  %v1016_v10 = vrot.slane %v1015_v60, 4  ;;  %v1031_v11 = vsel %vm7089_vm8, %v1026_v61, %v1030_v55  ;;  %v762_v34 = vld [vmem:[#allocation2 + $0x50] sm:$0x1] }
  0x76   : > { %v494_v12 = vshll.u32 %v7329_v6, 16  ;;  %v1179_v16 = vrot.slane %v1177_v63, 4  ;;  %v1182_v19 = vrot.slane %v1180_v4, 5  ;;  %v7390_v35 = vpack.c.bf16 %v236_v40, %v236_v40  ;;  %v765_v40 = vld [vmem:[#allocation2 + $0x54] sm:$0xf] }
  0x77   : > { %v7371_v62 = vld [vmem:[#allocation2 + $0x94] sm:$0xf]  ;;  %v7373_v15 = vld [vmem:[#allocation2 + $0x98] sm:$0x1]  ;;  %v488_v22 = vor.u32 %v486_v13, %v485_v5  ;;  %v1021_v24 = vsel %vm7089_vm8, %v1016_v10, %v1020_v41  ;;  %v489_v18 = vrot.slane %v485_v5, 4  ;;  %v493_v43 = vrot.slane %v491_v56, 7 }
  0x78   : > { %v1186_v17 = vshll.u32 %v7371_v62, 16  ;;  %v1190_v26 = vshrl.u32 %v7371_v62, 16  ;;  %v1196_v6 = vshll.u32 %v7373_v15, 16  ;;  %v5870_v28 = vcombine.low %v1021_v24, %v1031_v11 }
  0x79   : > { %v1183_v42 = vor.u32 %v1182_v19, %v1179_v16  ;;  %v759_v48 = vsel %vm7094_vm9, %v488_v22, %v758_v7  ;;  %v496_v55 = vor.u32 %v494_v12, %v493_v43  ;;  %v498_v30 = vrot.slane %v493_v43, 4  ;;  %v237_v22 = vld [vmem:[%s7077_s26 + $0xd8] sm:$0xff] }
  0x7a   : > { %v1188_v46 = vrot.slane %v1186_v17, 5  ;;  %v1192_v47 = vrot.slane %v1190_v26, 4  ;;  %v1198_v29 = vrot.slane %v1196_v6, 5  ;;  %6584 = vmatmul.mubr.msk.bf16.gmra.mxu0 %vm1329_vm6, %v5870_v28  ;;  %v7386_v37 = vld [vmem:[#allocation2 + $0x9c] sm:$0xf]  ;;  %v500_v19 = vshrl.u32 %v7369_v2, 16 }
  0x7b   : > { %v1184_v41 = vrot.slane %v1183_v42, 4  ;;  %v7388_v54 = vld [vmem:[#allocation2 + $0xa0] sm:$0xf]  ;;  %760 = vst [vmem:[#allocation2 + $0x48] sm:$0xf] %v759_v48  ;;  %v1201_v60 = vshrl.u32 %v7386_v37, 16  ;;  %v497_v4 = vsel %vm7100_vm10, %v489_v18, %v496_v55  ;;  %v763_v16 = vsel %vm7106_vm11, %v498_v30, %v762_v34 }
  0x7c   : > { %v1193_v57 = vor.u32 %v1192_v47, %v1188_v46  ;;  %v7392_v59 = vld [vmem:[#allocation2 + $0xa4] sm:$0x1]  ;;  %v1204_v61 = vshll.u32 %v7386_v37, 16  ;;  %v1210_v51 = vshll.u32 %v7388_v54, 16  ;;  %v1214_v39 = vshrl.u32 %v7388_v54, 16 }
  0x7d   : > { %v1189_v13 = vsel %vm7089_vm8, %v1184_v41, %v1188_v46  ;;  %v1220_v63 = vshll.u32 %v7392_v59, 16  ;;  %v1203_v56 = vrot.slane %v1201_v60, 4  ;;  %761 = vst.msk [vmem:[#allocation2 + $0x4c] sm:$0xf] %vm242_vm0, %v497_v4  ;;  %764 = vst [vmem:[#allocation2 + $0x50] sm:$0x1] %v763_v16  ;;  %v6288_v34 = vpack.c.bf16 %v237_v22, %v237_v22 }
  0x7e   : > { %v1194_v5 = vrot.slane %v1193_v57, 4  ;;  %v1206_v7 = vrot.slane %v1204_v61, 5  ;;  %v1212_v10 = vrot.slane %v1210_v51, 5  ;;  %v1216_v11 = vrot.slane %v1214_v39, 4  ;;  %v769_v51 = vld [vmem:[#allocation2 + $0x5c] sm:$0x1] }
  0x7f   : > { %v1222_v12 = vrot.slane %v1220_v63, 5  ;;  %v503_v26 = vshll.u32 %v7369_v2, 16  ;;  %v508_v6 = vshrl.u32 %v7375_v23, 16  ;;  %v502_v18 = vrot.slane %v500_v19, 7  ;;  %v814_v16 = vld [vmem:[#allocation2 + $0xa8] sm:$0xf] }
  0x80   : > { %v1199_v24 = vsel %vm7089_vm8, %v1194_v5, %v1198_v29  ;;  %v1207_v17 = vor.u32 %v1206_v7, %v1203_v56  ;;  %v1217_v42 = vor.u32 %v1216_v11, %v1212_v10  ;;  %v511_v43 = vshll.u32 %v7375_v23, 16 }
  0x81   : > { %v5877_v28 = vcombine.low %v1189_v13, %v1199_v24  ;;  %v510_v48 = vrot.slane %v508_v6, 7  ;;  %v619_v41 = vshrl.u32 %v7390_v35, 16  ;;  %v505_v30 = vor.u32 %v503_v26, %v502_v18  ;;  %v238_v26 = vld [vmem:[%s7077_s26 + $0xe0] sm:$0xff] }
  0x82   : > { %v1208_v46 = vrot.slane %v1207_v17, 4  ;;  %v7413_v47 = vld [vmem:[#allocation2 + $0x48] sm:$0xf]  ;;  %v1218_v29 = vrot.slane %v1217_v42, 4  ;;  %v506_v60 = vrot.slane %v502_v18, 4  ;;  %v622_v17 = vshll.u32 %v7390_v35, 16 }
  0x83   : > { %6599 = vmatprep.mubr.msk.bf16.mxu1 %vm1329_vm6, %v5877_v28  ;;  %v1033_v2 = vshrl.u32 %v7413_v47, 16  ;;  %v1036_v55 = vshll.u32 %v7413_v47, 16  ;;  %v513_v23 = vor.u32 %v511_v43, %v510_v48  ;;  %v515_v61 = vrot.slane %v510_v48, 4  ;;  %v239_v18 = vld [vmem:[%s7077_s26 + $0xe8] sm:$0xff] }
  0x84   : > { %v1213_v57 = vsel %vm7089_vm8, %v1208_v46, %v1212_v10  ;;  %v1223_v13 = vsel %vm7089_vm8, %v1218_v29, %v1222_v12  ;;  %v7423_v39 = vld [vmem:[#allocation2 + $0x4c] sm:$0xf]  ;;  %v766_v5 = vsel %vm7094_vm9, %v505_v30, %v765_v40  ;;  %v7431_v12 = vld [vmem:[#allocation2 + $0x50] sm:$0x1]  ;;  %v621_v24 = vrot.slane %v619_v41, 7 }
  0x85   : > { %v1035_v63 = vrot.slane %v1033_v2, 4  ;;  %v1038_v4 = vrot.slane %v1036_v55, 5  ;;  %v5878_v56 = vcombine.low %v1213_v57, %v1223_v13  ;;  %v1042_v7 = vshll.u32 %v7423_v39, 16  ;;  %767 = vst [vmem:[#allocation2 + $0x54] sm:$0xf] %v766_v5 }
  0x86   : > { %v1046_v10 = vshrl.u32 %v7423_v39, 16  ;;  %v514_v11 = vsel %vm7100_vm10, %v506_v60, %v513_v23  ;;  %v770_v22 = vsel %vm7106_vm11, %v515_v61, %v769_v51  ;;  %v1052_v28 = vshll.u32 %v7431_v12, 16  ;;  %v818_v13 = vld [vmem:[#allocation2 + $0xb0] sm:$0x1] }
  0x87   : > { %v1039_v19 = vor.u32 %v1038_v4, %v1035_v63  ;;  %768 = vst.msk [vmem:[#allocation2 + $0x58] sm:$0xf] %vm242_vm0, %v514_v11  ;;  %6600 = vmatmul.mubr.msk.bf16.gmra.mxu1 %vm1329_vm6, %v5878_v56  ;;  %v1044_v6 = vrot.slane %v1042_v7, 5  ;;  %771 = vst [vmem:[#allocation2 + $0x5c] sm:$0x1] %v770_v22  ;;  %v627_v42 = vshrl.u32 %v6288_v34, 16  ;;  %v624_v46 = vor.u32 %v622_v17, %v621_v24 }
  0x88   : > { %v1048_v40 = vrot.slane %v1046_v10, 4  ;;  %v625_v48 = vrot.slane %v621_v24, 4  ;;  %v630_v29 = vshll.u32 %v6288_v34, 16  ;;  %v1054_v55 = vrot.slane %v1052_v28, 5  ;;  %v1834_v22 = vld [vmem:[#allocation2] sm:$0xe] }
  0x89   : > { %v1040_v43 = vrot.slane %v1039_v19, 4  ;;  %v629_v30 = vrot.slane %v627_v42, 7  ;;  %v6289_v41 = vpack.c.bf16 %v238_v26, %v238_v26  ;;  %v815_v57 = vsel %vm7094_vm9, %v624_v46, %v814_v16  ;;  %v821_v46 = vld [vmem:[#allocation2 + $0xb4] sm:$0xf] }
  0x8a   : > { %v1049_v2 = vor.u32 %v1048_v40, %v1044_v6  ;;  %v6290_v60 = vpack.c.bf16 %v239_v18, %v239_v18  ;;  %816 = vst [vmem:[#allocation2 + $0xa8] sm:$0xf] %v815_v57  ;;  %vm1883_vm13 = vcmask 1046532  }
  0x8b   : > { %v1045_v35 = vsel %vm7089_vm8, %v1040_v43, %v1044_v6  ;;  %v632_v61 = vor.u32 %v630_v29, %v629_v30  ;;  %v634_v51 = vrot.slane %v629_v30, 4  ;;  %v636_v63 = vshrl.u32 %v6289_v41, 16  ;;  %vm7466_vm14 = vmor %vm1882_vm12, %vm1883_vm13 }
  0x8c   : > { %v1050_v23 = vrot.slane %v1049_v2, 4  ;;  %v7445_v4 = vld [vmem:[#allocation2 + $0x54] sm:$0xf]  ;;  %v639_v34 = vshll.u32 %v6289_v41, 16  ;;  %v644_v5 = vshrl.u32 %v6290_v60, 16  ;;  %v647_v56 = vshll.u32 %v6290_v60, 16 }
  0x8d   : > { %v1057_v11 = vshrl.u32 %v7445_v4, 16  ;;  %v1060_v16 = vshll.u32 %v7445_v4, 16  ;;  %v633_v19 = vsel %vm7100_vm10, %v625_v48, %v632_v61  ;;  %v819_v40 = vsel %vm7106_vm11, %v634_v51, %v818_v13 }
  0x8e   : > { %v1055_v7 = vsel %vm7089_vm8, %v1050_v23, %v1054_v55  ;;  %v7449_v10 = vld [vmem:[#allocation2 + $0x58] sm:$0xf]  ;;  %v7455_v17 = vld [vmem:[#allocation2 + $0x5c] sm:$0x1]  ;;  %817 = vst.msk [vmem:[#allocation2 + $0xac] sm:$0xf] %vm242_vm0, %v633_v19 }
  0x8f   : > { %v5871_v24 = vcombine.low %v1045_v35, %v1055_v7  ;;  %v1066_v26 = vshll.u32 %v7449_v10, 16  ;;  %v1070_v6 = vshrl.u32 %v7449_v10, 16  ;;  %v1059_v28 = vrot.slane %v1057_v11, 4  ;;  %820 = vst [vmem:[#allocation2 + $0xb0] sm:$0x1] %v819_v40 }
  0x90   : > { %v1062_v42 = vrot.slane %v1060_v16, 5  ;;  %v1076_v18 = vshll.u32 %v7455_v17, 16  ;;  %v638_v43 = vrot.slane %v636_v63, 7  ;;  %v646_v2 = vrot.slane %v644_v5, 7  ;;  %v825_v55 = vld [vmem:[#allocation2 + $0xbc] sm:$0x1] }
  0x91   : > { %6587 = vmatprep.mubr.msk.bf16.mxu0 %vm1329_vm6, %v5871_v24  ;;  %v1068_v48 = vrot.slane %v1066_v26, 5  ;;  %v1072_v29 = vrot.slane %v1070_v6, 4  ;;  %v5931_v30 = vrot.slane %v1834_v22, 9  ;;  %v9622_v23 = vmov 0  ;;  %v7470_v51 = vld [vmem:[#allocation2 + $0xa8] sm:$0xf] }
  0x92   : > { %v1063_v41 = vor.u32 %v1062_v42, %v1059_v28  ;;  %v1078_v35 = vrot.slane %v1076_v18, 5  ;;  %v641_v57 = vor.u32 %v639_v34, %v638_v43  ;;  %v642_v60 = vrot.slane %v638_v43, 4  ;;  %v7472_v7 = vld [vmem:[#allocation2 + $0x4] sm:$0xf]  ;;  %v1835_v6 = vld [vmem:[#allocation2 + $0xc] sm:$0xe] }
  0x93   : > { %v9623_v23 = vsel %vm7466_vm14, 4294967295, %v9622_v23  ;;  %v1073_v61 = vor.u32 %v1072_v29, %v1068_v48  ;;  %v649_v13 = vor.u32 %v647_v56, %v646_v2  ;;  %v651_v63 = vrot.slane %v646_v2, 4 }
  0x94   : > { %9624 = vst [vmem:[#allocation3_spill] sm:$0xff] %v9623_v23  ;;  %v1887_v5 = vrot.slane %v7472_v7, 5  ;;  %v1064_v11 = vrot.slane %v1063_v41, 4  ;;  %v1225_v16 = vshrl.u32 %v7470_v51, 16  ;;  %v1228_v34 = vshll.u32 %v7470_v51, 16 }
  0x95   : > { %v822_v19 = vsel %vm7094_vm9, %v641_v57, %v821_v46  ;;  %v1074_v22 = vrot.slane %v1073_v61, 4  ;;  %v650_v24 = vsel %vm7100_vm10, %v642_v60, %v649_v13  ;;  %v826_v56 = vsel %vm7106_vm11, %v651_v63, %v825_v55  ;;  %v7487_v28 = vld [vmem:[#allocation2 + $0xac] sm:$0xf]  ;;  %v6933_v46 = vld [vmem:[#allocation2 + $0x14] sm:$0x1] }
  0x96   : > { %823 = vst [vmem:[#allocation2 + $0xb4] sm:$0xf] %v822_v19  ;;  %v1888_v26 = vsel %vm7466_vm14, %v5931_v30, %v1887_v5  ;;  %v1069_v40 = vsel %vm7089_vm8, %v1064_v11, %v1068_v48  ;;  %v1227_v42 = vrot.slane %v1225_v16, 4  ;;  %v1230_v18 = vrot.slane %v1228_v34, 5  ;;  %824 = vst.msk [vmem:[#allocation2 + $0xb8] sm:$0xf] %vm242_vm0, %v650_v24 }
  0x97   : > { %827 = vst [vmem:[#allocation2 + $0xbc] sm:$0x1] %v826_v56  ;;  %v1889_v43 = vrot.slane %v1887_v5, 4  ;;  %v1897_v29 = vrot.slane %v6933_v46, 5  ;;  %v1079_v2 = vsel %vm7089_vm8, %v1074_v22, %v1078_v35  ;;  %v7492_v55 = vld [vmem:[#allocation2 + $0xb0] sm:$0x1] }
  0x98   : > { %v1234_v30 = vshll.u32 %v7487_v28, 16  ;;  %v1238_v41 = vshrl.u32 %v7487_v28, 16  ;;  %v5872_v48 = vcombine.low %v1069_v40, %v1079_v2  ;;  %v1231_v57 = vor.u32 %v1230_v18, %v1227_v42  ;;  %v1836_v13 = vld [vmem:[#allocation2 + $0x18] sm:$0xe]  ;;  %v1837_v42 = vld [vmem:[#allocation2 + $0x24] sm:$0xe] }
  0x99   : > { %v1244_v60 = vshll.u32 %v7492_v55, 16  ;;  %v1891_v61 = vsel %vm7466_vm14, %v1889_v43, %v1890_v21  ;;  %v5932_v35 = vrot.slane %v1835_v6, 9  ;;  %v1896_v19 = vrot.slane %v1894_v8, 4 }
  0x9a   : > { %v1236_v63 = vrot.slane %v1234_v30, 5  ;;  %v1240_v5 = vrot.slane %v1238_v41, 4  ;;  %v5949_v11 = vcombine.low %v1888_v26, %v1891_v61  ;;  %6588 = vmatmul.mubr.msk.bf16.gmra.mxu0 %vm1329_vm6, %v5872_v48  ;;  %v1232_v16 = vrot.slane %v1231_v57, 4  ;;  %v1838_v41 = vld [vmem:[#allocation2 + $0x30] sm:$0xe] }
  0x9b   : > { %v1246_v34 = vrot.slane %v1244_v60, 5  ;;  %v1895_v9 = vsel %vm7466_vm14, %v5932_v35, %v1894_v8  ;;  %v5933_v21 = vrot.slane %v1836_v13, 9  ;;  %v1901_v24 = vrot.slane %v7200_v27, 5  ;;  %v7533_v35 = vld [vmem:[%s9594_s1 + $0x30] sm:$0xff]  }
  0x9c   : > { %v1241_v22 = vor.u32 %v1240_v5, %v1236_v63  ;;  %6643 = vmatprep.mubr.msk.bf16.mxu0 %vm1329_vm6, %v5949_v11  ;;  %v1237_v56 = vsel %vm7089_vm8, %v1232_v16, %v1236_v63  ;;  %v1898_v6 = vsel %vm7466_vm14, %v1896_v19, %v1897_v29  ;;  %v1904_v40 = vrot.slane %v7202_v31, 5 }
  0x9d   : > { %v7512_v26 = vld [vmem:[#allocation2 + $0xb4] sm:$0xf]  ;;  %v7517_v43 = vld [vmem:[#allocation2 + $0xb8] sm:$0xf]  ;;  %v5950_v46 = vcombine.low %v1895_v9, %v1898_v6  ;;  %v1902_v27 = vsel %vm7466_vm14, %v5933_v21, %v1901_v24  ;;  %v1903_v60 = vrot.slane %v1901_v24, 4  ;;  %v5934_v61 = vrot.slane %v1837_v42, 9 }
  0x9e   : > { %v1242_v18 = vrot.slane %v1241_v22, 4  ;;  %v7519_v38 = vld [vmem:[#allocation2 + $0xbc] sm:$0x1]  ;;  %v1249_v8 = vshrl.u32 %v7512_v26, 16  ;;  %v1252_v2 = vshll.u32 %v7512_v26, 16  ;;  %v1258_v30 = vshll.u32 %v7517_v43, 16 }
  0x9f   : > { %v1262_v29 = vshrl.u32 %v7517_v43, 16  ;;  %v1268_v31 = vshll.u32 %v7519_v38, 16  ;;  %v1905_v19 = vsel %vm7466_vm14, %v1903_v60, %v1904_v40  ;;  %v1908_v22 = vrot.slane %v7218_v52, 5  ;;  %v1839_v6 = vld [vmem:[#allocation2 + $0x3c] sm:$0xe]  ;;  %v6934_v42 = vld [vmem:[%s9594_s1 + $0x20] sm:$0xff]  }
  0xa0   : > { %v1247_v48 = vsel %vm7089_vm8, %v1242_v18, %v1246_v34  ;;  %v1251_v57 = vrot.slane %v1249_v8, 4  ;;  %v1254_v63 = vrot.slane %v1252_v2, 5  ;;  %v1260_v5 = vrot.slane %v1258_v30, 5  ;;  %v6935_v2 = vld [vmem:[#allocation2] sm:$0xf] }
  0xa1   : > { %v5879_v13 = vcombine.low %v1237_v56, %v1247_v48  ;;  %v1264_v11 = vrot.slane %v1262_v29, 4  ;;  %v1270_v16 = vrot.slane %v1268_v31, 5  ;;  %v1911_v34 = vrot.slane %v7220_v53, 5  ;;  %v1841_v48 = vld [vmem:[#allocation2 + $0x54] sm:$0xe] }
  0xa2   : > { %v1255_v9 = vor.u32 %v1254_v63, %v1251_v57  ;;  %6644 = vmatmul.mubr.msk.bf16.vlgmr.msra.gmra.mxu0 %vm1329_vm6, %v5950_v46  ;;  %v5951_v24 = vcombine.low %v1902_v27, %v1905_v19  ;;  %v5935_v56 = vrot.slane %v1838_v41, 9  ;;  %v1909_v40 = vsel %vm7466_vm14, %v5934_v61, %v1908_v22  ;;  %v1840_v27 = vld [vmem:[#allocation2 + $0x48] sm:$0xe] }
  0xa3   : > { %6603 = vmatprep.mubr.msk.bf16.mxu1 %vm1329_vm6, %v5879_v13  ;;  %v1265_v21 = vor.u32 %v1264_v11, %v1260_v5  ;;  %6710 = vmatpush3.bf16.msra.mxu0 %v6934_v42  ;;  %v1910_v52 = vrot.slane %v1908_v22, 4  ;;  %v1915_v53 = vrot.slane %v7294_v0, 5  ;;  %v1918_v46 = vrot.slane %v7296_v1, 5  ;;  %v1842_v42 = vld [vmem:[#allocation2 + $0x60] sm:$0xe] }
  0xa4   : > { %v1256_v18 = vrot.slane %v1255_v9, 4  ;;  %6647 = vmatprep.mubr.msk.bf16.mxu0 %vm1329_vm6, %v5951_v24  ;;  %6777 = vmatprep.subr.bf16.mxu0 %v7533_v35  ;;  %v5898_v30 = vcombine.low %v6935_v2, %v7472_v7  ;;  %v1922_v61 = vrot.slane %v7333_v45, 5  ;;  %v5936_v63 = vrot.slane %v1839_v6, 9  ;;  %v6936_v9 = vld [vmem:[#allocation2 + $0x68] sm:$0x1] }
  0xa5   : > { %v1266_v8 = vrot.slane %v1265_v21, 4  ;;  %v1912_v29 = vsel %vm7466_vm14, %v1910_v52, %v1911_v34  ;;  %v1916_v31 = vsel %vm7466_vm14, %v5935_v56, %v1915_v53  ;;  %v1917_v41 = vrot.slane %v1915_v53, 4  ;;  %v6937_v52 = vld [vmem:[#allocation2 + $0xc] sm:$0xf]  ;;  %v7577_v2 = vld [vmem:[#allocation2 + $0x64] sm:$0xf] }
  0xa6   : > { %v1261_v57 = vsel %vm7089_vm8, %v1256_v18, %v1260_v5  ;;  %v5952_v60 = vcombine.low %v1909_v40, %v1912_v29  ;;  %v5903_v11 = vcombine.low %v7337_v20, %v7333_v45  ;;  %v1924_v22 = vrot.slane %v1922_v61, 4  ;;  %v1843_v40 = vld [vmem:[#allocation2 + $0x6c] sm:$0xe]  ;;  %v7726_v45 = vld [vmem:[#allocation2 + $0x28] sm:$0xf] }
  0xa7   : > { %v1271_v1 = vsel %vm7089_vm8, %v1266_v8, %v1270_v16  ;;  %v1919_v7 = vsel %vm7466_vm14, %v1917_v41, %v1918_v46  ;;  %v1925_v34 = vrot.slane %v7344_v33, 5  ;;  %v1946_v5 = vrot.slane %v6936_v9, 5  ;;  %v6938_v33 = vld [vmem:[#allocation2 + $0x10] sm:$0xf]  ;;  %v6944_v9 = vld [vmem:[#allocation2 + $0x28] sm:$0xf] }
  0xa8   : > { %v5880_v13 = vcombine.low %v1261_v57, %v1271_v1  ;;  %v5953_v19 = vcombine.low %v1916_v31, %v1919_v7  ;;  %v5937_v16 = vrot.slane %v1840_v27, 9  ;;  %v1929_v21 = vrot.slane %v7423_v39, 5  ;;  %v6941_v57 = vld [vmem:[#allocation2 + $0x18] sm:$0xf]  ;;  %v6942_v1 = vld [vmem:[#allocation2 + $0x1c] sm:$0xf] }
  0xa9   : > { %v1932_v24 = vrot.slane %v7431_v12, 5  ;;  %v5938_v56 = vrot.slane %v1841_v48, 9  ;;  %v1936_v6 = vrot.slane %v7449_v10, 5  ;;  %v5899_v53 = vcombine.low %v6937_v52, %v6938_v33  ;;  %v7584_v48 = vld [vmem:[#allocation2 + $0x70] sm:$0xf] }
  0xaa   : > { %6604 = vmatmul.mubr.msk.bf16.gmra.mxu1 %vm1329_vm6, %v5880_v13  ;;  %6648 = vmatmul.mubr.msk.bf16.gmra.mxu0 %vm1329_vm6, %v5952_v60  ;;  %v1931_v18 = vrot.slane %v1929_v21, 4  ;;  %v1939_v8 = vrot.slane %v7455_v17, 5  ;;  %v1923_v12 = vsel %vm7466_vm14, %v5936_v63, %v1922_v61  ;;  %v1926_v46 = vsel %vm7466_vm14, %v1924_v22, %v1925_v34  ;;  %v7598_v22 = vld [vmem:[%s9594_s1 + $0x28] sm:$0xff]   ;;  %v6943_v34 = vld [vmem:[#allocation2 + $0x24] sm:$0xf] }
  0xab   : > { %6609 = vmatprep.mubr.msk.bf16.mxu1 %vm1329_vm6, %v5898_v30  ;;  %6651 = vmatprep.mubr.msk.bf16.mxu0 %vm1329_vm6, %v5953_v19  ;;  %v1938_v27 = vrot.slane %v1936_v6, 4  ;;  %v1943_v30 = vrot.slane %v7577_v2, 5  ;;  %v1930_v29 = vsel %vm7466_vm14, %v5937_v16, %v1929_v21  ;;  %v5939_v41 = vrot.slane %v1842_v42, 9  ;;  %v1844_v42 = vld [vmem:[#allocation2 + $0x78] sm:$0xe] }
  0xac   : > { %v1933_v31 = vsel %vm7466_vm14, %v1931_v18, %v1932_v24  ;;  %v1950_v17 = vrot.slane %v7584_v48, 5  ;;  %v5900_v60 = vcombine.low %v6941_v57, %v6942_v1  ;;  %v5954_v13 = vcombine.low %v1923_v12, %v1926_v46  ;;  %v6945_v18 = vld [vmem:[#allocation2 + $0x74] sm:$0x1]  ;;  %v1845_v1 = vld [vmem:[#allocation2 + $0x84] sm:$0xe] }
  0xad   : > { %v1945_v61 = vrot.slane %v1943_v30, 4  ;;  %v7589_v7 = vsel %vm7466_vm14, %v5938_v56, %v1936_v6  ;;  %v7593_v63 = vsel %vm7466_vm14, %v1938_v27, %v1939_v8  ;;  %v5940_v19 = vrot.slane %v1843_v40, 9  ;;  %v1846_v6 = vld [vmem:[#allocation2 + $0x90] sm:$0xe]  ;;  %v7729_v20 = vld [vmem:[#allocation2 + $0x78] sm:$0xf] }
  0xae   : > { %v5901_v16 = vcombine.low %v6943_v34, %v6944_v9  ;;  %v5902_v21 = vcombine.low %v7289_v58, %v7294_v0  ;;  %v5955_v24 = vcombine.low %v1930_v29, %v1933_v31  ;;  %v1957_v56 = vrot.slane %v7269_v14, 5  ;;  %v6946_v58 = vld [vmem:[%s9594_s1 + $0x18] sm:$0xff]  }
  0xaf   : > { %v7606_v40 = vsel %vm7466_vm14, %v5939_v41, %v1943_v30  ;;  %v1947_v52 = vsel %vm7466_vm14, %v1945_v61, %v1946_v5  ;;  %v1952_v33 = vrot.slane %v1950_v17, 4  ;;  %v1953_v8 = vrot.slane %v6945_v18, 5  ;;  %v1847_v30 = vld [vmem:[#allocation2 + $0x9c] sm:$0xe]  ;;  %v6947_v41 = vld [vmem:[#allocation2 + $0x80] sm:$0x1] }
  0xb0   : > { %v5904_v14 = vcombine.low %v7413_v47, %v7423_v39  ;;  %v5956_v0 = vcombine.low %v7589_v7, %v7593_v63  ;;  %v7623_v5 = vsel %vm7466_vm14, %v5940_v19, %v1950_v17  ;;  %v5941_v12 = vrot.slane %v1844_v42, 9  ;;  %v2662_v7 = vld [vmem:[#allocation2 + $0x20] sm:$0x1] }
  0xb1   : > { %v5943_v46 = vrot.slane %v1846_v6, 9  ;;  %v1971_v27 = vrot.slane %v7371_v62, 5  ;;  %v5957_v29 = vcombine.low %v7606_v40, %v1947_v52  ;;  %v1959_v31 = vrot.slane %v1957_v56, 4  ;;  %v2657_v52 = vld [vmem:[#allocation2 + $0xc] sm:$0xf] }
  0xb2   : > { %6610 = vmatmul.mubr.msk.bf16.vlgmr.msra.gmra.mxu1 %vm1329_vm6, %v5899_v53  ;;  %6652 = vmatmul.mubr.msk.bf16.gmra.mxu0 %vm1329_vm6, %v5954_v13  ;;  %v1960_v57 = vrot.slane %v6947_v41, 5  ;;  %v7632_v17 = vsel %vm7466_vm14, %v1952_v33, %v1953_v8  ;;  %v1964_v63 = vrot.slane %v7282_v49, 5  ;;  %v5944_v19 = vrot.slane %v1847_v30, 9  ;;  %v7664_v33 = vld [vmem:[#allocation2 + $0x60] sm:$0xf] }
  0xb3   : > { %6676 = vmatpush3.bf16.msra.mxu1 %v6946_v58  ;;  %6613 = vmatprep.mubr.msk.bf16.mxu1 %vm1329_vm6, %v5900_v60  ;;  %v1974_v60 = vrot.slane %v7373_v15, 5  ;;  %v7636_v61 = vsel %vm7466_vm14, %v5943_v46, %v1971_v27  ;;  %v1973_v13 = vrot.slane %v1971_v27, 4  ;;  %v1978_v34 = vrot.slane %v7388_v54, 5  ;;  %v7668_v8 = vld [vmem:[#allocation2 + $0x6c] sm:$0xf] }
  0xb4   : > { %6743 = vmatprep.subr.bf16.mxu1 %v7598_v22  ;;  %6655 = vmatprep.mubr.msk.bf16.mxu0 %vm1329_vm6, %v5955_v24  ;;  %v1981_v9 = vrot.slane %v7392_v59, 5  ;;  %v7645_v15 = vsel %vm7466_vm14, %v5941_v12, %v1957_v56  ;;  %v5942_v24 = vrot.slane %v1845_v1, 9  ;;  %v7655_v49 = vsel %vm7466_vm14, %v1959_v31, %v1960_v57  ;;  %v1848_v12 = vld [vmem:[#allocation2 + $0xa8] sm:$0xe]  ;;  %v7675_v30 = vld [vmem:[#allocation2 + $0x10] sm:$0xf] }
  0xb5   : > { %v7649_v42 = vsel %vm7466_vm14, %v1973_v13, %v1974_v60  ;;  %v7661_v59 = vsel %vm7466_vm14, %v5944_v19, %v1978_v34  ;;  %v1980_v56 = vrot.slane %v1978_v34, 4  ;;  %v1985_v46 = vrot.slane %v7487_v28, 5  ;;  %9625 = vst [vmem:[#allocation4_spill] sm:$0xff] %v7675_v30  ;;  %v2660_v34 = vld [vmem:[#allocation2 + $0x18] sm:$0xf] }
  0xb6   : > { %v1966_v31 = vrot.slane %v1964_v63, 4  ;;  %v1967_v41 = vrot.slane %v7284_v50, 5  ;;  %v5959_v1 = vcombine.low %v7645_v15, %v7655_v49  ;;  %v7690_v60 = vsel %vm7466_vm14, %v5942_v24, %v1964_v63  ;;  %v2661_v49 = vld [vmem:[#allocation2 + $0x1c] sm:$0xf] }
  0xb7   : > { %v7683_v57 = vsel %vm7466_vm14, %v1980_v56, %v1981_v9  ;;  %v2706_v13 = vshrl.u32 %v2657_v52, 16  ;;  %v2709_v19 = vshll.u32 %v2657_v52, 16  ;;  %v1987_v9 = vrot.slane %v1985_v46, 4 }
  0xb8   : > { %v1988_v15 = vrot.slane %v7492_v55, 5  ;;  %v1992_v63 = vrot.slane %v7517_v43, 5  ;;  %v2719_v24 = vshrl.u32 %v7675_v30, 16  ;;  %v7703_v56 = vsel %vm7466_vm14, %v1966_v31, %v1967_v41  ;;  %v2663_v31 = vld [vmem:[#allocation2 + $0x24] sm:$0xf] }
  0xb9   : > { %v2711_v27 = vrot.slane %v2709_v19, 5  ;;  %v2733_v58 = vshll.u32 %v2660_v34, 16  ;;  %v1995_v40 = vrot.slane %v7519_v38, 5  ;;  %v2739_v18 = vshll.u32 %v2661_v49, 16 }
  0xba   : > { %6614 = vmatmul.mubr.msk.bf16.gmra.mxu1 %vm1329_vm6, %v5901_v16  ;;  %v5958_v16 = vcombine.low %v7623_v5, %v7632_v17  ;;  %6656 = vmatmul.mubr.msk.bf16.gmra.mxu0 %vm1329_vm6, %v5956_v0  ;;  %v1849_v5 = vld [vmem:[#allocation2 + $0xb4] sm:$0xe]  ;;  %v5945_v17 = vrot.slane %v1848_v12, 9  ;;  %v2715_v0 = vshll.u32 %v7675_v30, 16  ;;  %v2708_v12 = vrot.slane %v2706_v13, 4 }
  0xbb   : > { %6617 = vmatprep.mubr.msk.bf16.mxu1 %vm1329_vm6, %v5902_v21  ;;  %6659 = vmatprep.mubr.msk.bf16.mxu0 %vm1329_vm6, %v5957_v29  ;;  %v5946_v50 = vrot.slane %v1849_v5, 9  ;;  %v2659_v29 = vld [vmem:[#allocation2 + $0x14] sm:$0x1]  ;;  %v2721_v6 = vrot.slane %v2719_v24, 4  ;;  %v2730_v21 = vshrl.u32 %v2660_v34, 16  ;;  %v2743_v53 = vshrl.u32 %v2661_v49, 16 }
  0xbc   : > { %v7705_v52 = vrot.slane %v2715_v0, 5  ;;  %v7709_v55 = vsel %vm7466_vm14, %v5945_v17, %v1985_v46  ;;  %v7718_v41 = vsel %vm7466_vm14, %v1987_v9, %v1988_v15  ;;  %v1994_v5 = vrot.slane %v1992_v63, 4  ;;  %v2666_v9 = vld [vmem:[#allocation2 + $0x30] sm:$0xf]  ;;  %v7753_v15 = vld [vmem:[#allocation2 + $0x34] sm:$0xf] }
  0xbd   : > { %v2732_v13 = vrot.slane %v2730_v21, 4  ;;  %v2735_v19 = vrot.slane %v2733_v58, 5  ;;  %v2712_v38 = vor.u32 %v2711_v27, %v2708_v12  ;;  %v2725_v46 = vshll.u32 %v2659_v29, 16  ;;  %v7741_v27 = vld [vmem:[#allocation2 + $0x88] sm:$0xf] }
  0xbe   : > { %v7724_v17 = vrot.slane %v2739_v18, 5  ;;  %v2745_v0 = vrot.slane %v2743_v53, 4  ;;  %v2722_v47 = vor.u32 %v2721_v6, %v7705_v52  ;;  %v2749_v39 = vshll.u32 %v2662_v7, 16  ;;  %v7739_v18 = vld [vmem:[#allocation2 + $0x84] sm:$0xf] }
  0xbf   : > { %v5960_v53 = vcombine.low %v7690_v60, %v7703_v56  ;;  %v2736_v21 = vor.u32 %v2735_v19, %v2732_v13  ;;  %v2757_v34 = vshll.u32 %v2663_v31, 16  ;;  %v7749_v7 = vsel %vm7466_vm14, %v5946_v50, %v1992_v63  ;;  %v7764_v12 = vld [vmem:[#allocation2 + $0x2c] sm:$0x1]  ;;  %v2675_v30 = vld [vmem:[#allocation2 + $0x54] sm:$0xf] }
  0xc0   : > { %v2767_v60 = vshrl.u32 %v7726_v45, 16  ;;  %v7757_v24 = vsel %vm7466_vm14, %v1994_v5, %v1995_v40  ;;  %v7759_v49 = vrot.slane %v2712_v38, 4  ;;  %v7761_v56 = vrot.slane %v2725_v46, 5  ;;  %v2669_v5 = vld [vmem:[#allocation2 + $0x3c] sm:$0xf] }
  0xc1   : > { %v2746_v29 = vor.u32 %v2745_v0, %v7724_v17  ;;  %v7766_v50 = vrot.slane %v2722_v47, 4  ;;  %v7768_v63 = vrot.slane %v2749_v39, 5  ;;  %v2778_v13 = vshrl.u32 %v2666_v9, 16 }
  0xc2   : > { %6618 = vmatmul.mubr.msk.bf16.gmra.mxu1 %vm1329_vm6, %v5903_v11  ;;  %6660 = vmatmul.mubr.msk.bf16.gmra.mxu0 %vm1329_vm6, %v5958_v16  ;;  %v7731_v11 = vld [vmem:[#allocation2 + $0x7c] sm:$0xf]  ;;  %v2737_v19 = vrot.slane %v2736_v21, 4  ;;  %v2759_v16 = vrot.slane %v2757_v34, 5  ;;  %v2781_v6 = vshll.u32 %v2666_v9, 16  ;;  %v2787_v40 = vshll.u32 %v7753_v15, 16 }
  0xc3   : > { %6621 = vmatprep.mubr.msk.bf16.mxu1 %vm1329_vm6, %v5904_v14  ;;  %v2754_v14 = vshrl.u32 %v2663_v31, 16  ;;  %6663 = vmatprep.mubr.msk.bf16.mxu0 %vm1329_vm6, %v5959_v1  ;;  %v2763_v1 = vshll.u32 %v7726_v45, 16  ;;  %v9626_v38 = vcombine.low %v7445_v4, %v7449_v10  ;;  %v2769_v0 = vrot.slane %v2767_v60, 4  ;;  %v7785_v9 = vld [vmem:[#allocation2 + $0x38] sm:$0x1] }
  0xc4   : > { %v2773_v47 = vshll.u32 %v7764_v12, 16  ;;  %v2791_v39 = vshrl.u32 %v7753_v15, 16  ;;  %v9627_v21 = vcombine.low %v7664_v33, %v7577_v2  ;;  %v2747_v34 = vrot.slane %v2746_v29, 4 }
  0xc5   : > { %v2756_v31 = vrot.slane %v2754_v14, 4  ;;  %v7775_v46 = vrot.slane %v2763_v1, 5  ;;  %v7779_v14 = vld [vmem:[#allocation2 + $0x40] sm:$0xf]  ;;  %v2780_v4 = vrot.slane %v2778_v13, 4  ;;  %v2783_v10 = vrot.slane %v2781_v6, 5 }
  0xc6   : > { %v2793_v60 = vrot.slane %v2791_v39, 4  ;;  %v2802_v58 = vshrl.u32 %v2669_v5, 16  ;;  %v2805_v23 = vshll.u32 %v2669_v5, 16  ;;  %v9628_v2 = vcombine.low %v7636_v61, %v7649_v42  ;;  %v2672_v13 = vld [vmem:[#allocation2 + $0x48] sm:$0xf] }
  0xc7   : > { %v2718_v33 = vsel %vm7089_vm8, %v7759_v49, %v7705_v52  ;;  %v2760_v6 = vor.u32 %v2759_v16, %v2756_v31  ;;  %v2811_v29 = vshll.u32 %v7779_v14, 16  ;;  %v2742_v61 = vsel %vm7089_vm8, %v2737_v19, %v7724_v17  ;;  %v7810_v39 = vld [vmem:[#allocation2 + $0x4c] sm:$0xf] }
  0xc8   : > { %v2770_v42 = vor.u32 %v2769_v0, %v7775_v46  ;;  %v2797_v5 = vshll.u32 %v7785_v9, 16  ;;  %v2752_v52 = vsel %vm7089_vm8, %v2747_v34, %v7768_v63  ;;  %v2784_v49 = vor.u32 %v2783_v10, %v2780_v4 }
  0xc9   : > { %v2804_v31 = vrot.slane %v2802_v58, 4  ;;  %v2807_v17 = vrot.slane %v2805_v23, 5  ;;  %v2826_v19 = vshrl.u32 %v2672_v13, 16  ;;  %v2829_v0 = vshll.u32 %v2672_v13, 16 }
  0xca   : > { %6622 = vmatmul.mubr.msk.bf16.gmra.mxu1 %vm1329_vm6, %v9626_v38  ;;  %v7787_v38 = vrot.slane %v2787_v40, 5  ;;  %6664 = vmatmul.mubr.msk.bf16.gmra.mxu0 %vm1329_vm6, %v5960_v53  ;;  %v2728_v53 = vsel %vm7089_vm8, %v7766_v50, %v7761_v56  ;;  %v2775_v40 = vrot.slane %v2773_v47, 5  ;;  %v2815_v56 = vshrl.u32 %v7779_v14, 16  ;;  %v7817_v50 = vld [vmem:[#allocation2 + $0x44] sm:$0x1] }
  0xcb   : > { %6625 = vmatprep.mubr.msk.bf16.mxu1 %vm1329_vm6, %v9627_v21  ;;  %6667 = vmatprep.mubr.msk.bf16.mxu0 %vm1329_vm6, %v9628_v2  ;;  %v2761_v47 = vrot.slane %v2760_v6, 4  ;;  %v7819_v21 = vrot.slane %v2811_v29, 5  ;;  %v2835_v1 = vshll.u32 %v7810_v39, 16  ;;  %v9629_v63 = vcombine.low %v7668_v8, %v7584_v48 }
  0xcc   : > { %v2794_v16 = vor.u32 %v2793_v60, %v7787_v38  ;;  %v2817_v2 = vrot.slane %v2815_v56, 4  ;;  %v2771_v34 = vrot.slane %v2770_v42, 4  ;;  %v2799_v4 = vrot.slane %v2797_v5, 5  ;;  %v7832_v56 = vld [vmem:[#allocation2 + $0x58] sm:$0xf] }
  0xcd   : > { %v2828_v10 = vrot.slane %v2826_v19, 4  ;;  %v2831_v60 = vrot.slane %v2829_v0, 5  ;;  %v9630_v23 = vcombine.low %v7729_v20, %v7731_v11  ;;  %v2785_v58 = vrot.slane %v2784_v49, 4 }
  0xce   : > { %v2795_v6 = vrot.slane %v2794_v16, 4  ;;  %v2821_v29 = vshll.u32 %v7817_v50, 16  ;;  %v2839_v13 = vshrl.u32 %v7810_v39, 16  ;;  %v9631_v48 = vcombine.low %v7661_v59, %v7683_v57  ;;  %v7845_v16 = vld [vmem:[#allocation2 + $0x50] sm:$0x1] }
  0xcf   : > { %v6019_v8 = vcombine.low %v2718_v33, %v2728_v53  ;;  %v7838_v42 = vcombine.low %v2742_v61, %v2752_v52  ;;  %v2808_v5 = vor.u32 %v2807_v17, %v2804_v31  ;;  %v2850_v20 = vshrl.u32 %v2675_v30, 16  ;;  %v7863_v31 = vld [vmem:[#allocation2 + $0x64] sm:$0xf] }
  0xd0   : > { %v9632_v11 = vcombine.low %v7709_v55, %v7718_v41  ;;  %v2818_v49 = vor.u32 %v2817_v2, %v7819_v21  ;;  %v7847_v19 = vrot.slane %v2835_v1, 5  ;;  %v2841_v0 = vrot.slane %v2839_v13, 4  ;;  %v2678_v55 = vld [vmem:[#allocation2 + $0x60] sm:$0xf] }
  0xd1   : > { %v2853_v59 = vshll.u32 %v2675_v30, 16  ;;  %v2766_v57 = vsel %vm7089_vm8, %v2761_v47, %v7775_v46  ;;  %v2832_v33 = vor.u32 %v2831_v60, %v2828_v10  ;;  %v2859_v53 = vshll.u32 %v7832_v56, 16  ;;  %v7868_v47 = vld [vmem:[#allocation2 + $0x5c] sm:$0x1] }
  0xd2   : > { %6626 = vmatmul.mubr.msk.bf16.gmra.mxu1 %vm1329_vm6, %v9629_v63  ;;  %6668 = vmatmul.mubr.msk.bf16.gmra.mxu0 %vm1329_vm6, %v9631_v48  ;;  %v2863_v61 = vshrl.u32 %v7832_v56, 16  ;;  %v2776_v41 = vsel %vm7089_vm8, %v2771_v34, %v2775_v40  ;;  %v2790_v1 = vsel %vm7089_vm8, %v2785_v58, %v7787_v38  ;;  %v2800_v30 = vsel %vm7089_vm8, %v2795_v6, %v2799_v4 }
  0xd3   : > { %6629 = vmatprep.mubr.msk.bf16.mxu1 %vm1329_vm6, %v9630_v23  ;;  %6671 = vmatprep.mubr.msk.bf16.mxu0 %vm1329_vm6, %v9632_v11  ;;  %v7861_v52 = vrot.slane %v2821_v29, 5  ;;  %v7865_v46 = vrot.slane %v2808_v5, 4  ;;  %v2845_v17 = vshll.u32 %v7845_v16, 16  ;;  %v2852_v2 = vrot.slane %v2850_v20, 4  ;;  %v2681_v29 = vld [vmem:[#allocation2 + $0x6c] sm:$0xf] }
  0xd4   : > { %v2855_v63 = vrot.slane %v2853_v59, 5  ;;  %v7870_v40 = vrot.slane %v2818_v49, 4  ;;  %v2842_v34 = vor.u32 %v2841_v0, %v7847_v19  ;;  %v2874_v38 = vshrl.u32 %v2678_v55, 16  ;;  %v7890_v20 = vld [vmem:[#allocation2 + $0x70] sm:$0xf] }
  0xd5   : > { %v2877_v10 = vshll.u32 %v2678_v55, 16  ;;  %v9633_v4 = vcombine.low %v7739_v18, %v7741_v27  ;;  %v6021_v60 = vcombine.low %v2766_v57, %v2776_v41  ;;  %v7877_v23 = vrot.slane %v2832_v33, 4  ;;  %v2684_v41 = vld [vmem:[#allocation2 + $0x78] sm:$0xf] }
  0xd6   : > { %v7879_v58 = vrot.slane %v2859_v53, 5  ;;  %v2865_v6 = vrot.slane %v2863_v61, 4  ;;  %v9634_v13 = vcombine.low %v7356_v3, %v7371_v62  ;;  %v7885_v48 = vcombine.low %v2790_v1, %v2800_v30  ;;  %v7914_v61 = vld [vmem:[#allocation2 + $0x68] sm:$0x1] }
  0xd7   : > { %v2869_v5 = vshll.u32 %v7868_v47, 16  ;;  %v2883_v18 = vshll.u32 %v7863_v31, 16  ;;  %v2887_v27 = vshrl.u32 %v7863_v31, 16  ;;  %v9635_v11 = vcombine.low %v7749_v7, %v7757_v24 }
  0xd8   : > { %v2814_v3 = vsel %vm7089_vm8, %v7865_v46, %v7819_v21  ;;  %v2856_v62 = vor.u32 %v2855_v63, %v2852_v2  ;;  %v2876_v49 = vrot.slane %v2874_v38, 4  ;;  %v2879_v0 = vrot.slane %v2877_v10, 5  ;;  %v7921_v63 = vld [vmem:[#allocation2 + $0x7c] sm:$0xf]  ;;  %v7923_v10 = vld [vmem:[#allocation2 + $0x74] sm:$0x1] }
  0xd9   : > { %v2824_v59 = vsel %vm7089_vm8, %v7870_v40, %v7861_v52  ;;  %v7905_v57 = vrot.slane %v2842_v34, 4  ;;  %v7907_v7 = vrot.slane %v2845_v17, 5  ;;  %v2898_v24 = vshrl.u32 %v2681_v29, 16 }
  0xda   : > { %6630 = vmatmul.mubr.msk.bf16.gmra.mxu1 %vm1329_vm6, %v9633_v4  ;;  %6672 = vmatmul.mubr.msk.bf16.gmra.mxu0 %vm1329_vm6, %v9635_v11  ;;  %v2838_v33 = vsel %vm7089_vm8, %v7877_v23, %v7847_v19  ;;  %v2866_v53 = vor.u32 %v2865_v6, %v7879_v58  ;;  %v2907_v55 = vshll.u32 %v7890_v20, 16  ;;  %v7917_v1 = vrot.slane %v2869_v5, 5  ;;  %v2687_v5 = vld [vmem:[#allocation2 + $0x84] sm:$0xf] }
  0xdb   : > { %6633 = vmatprep.mubr.msk.bf16.mxu1 %vm1329_vm6, %v9634_v13  ;;  %6711 = vmatprep.mubr.msk.bf16.mxu0 %vm1329_vm6, %v6019_v8  ;;  %v2901_v8 = vshll.u32 %v2681_v29, 16  ;;  %v7919_v30 = vrot.slane %v2883_v18, 5  ;;  %v2889_v17 = vrot.slane %v2887_v27, 4  ;;  %v2900_v2 = vrot.slane %v2898_v24, 4 }
  0xdc   : > { %v2857_v34 = vrot.slane %v2856_v62, 4  ;;  %v2880_v38 = vor.u32 %v2879_v0, %v2876_v49  ;;  %v2911_v4 = vshrl.u32 %v7890_v20, 16  ;;  %v2848_v23 = vsel %vm7089_vm8, %v7905_v57, %v7907_v7  ;;  %v7941_v0 = vld [vmem:[%s9594_s1 + $0x40] sm:$0xff]  }
  0xdd   : > { %v2903_v19 = vrot.slane %v2901_v8, 5  ;;  %v7930_v6 = vrot.slane %v2907_v55, 5  ;;  %v2922_v29 = vshrl.u32 %v2684_v41, 16  ;;  %v2925_v13 = vshll.u32 %v2684_v41, 16  ;;  %9637 = vst [vmem:[#allocation5_spill] sm:$0xff] %v7941_v0 }
  0xde   : > { %v9636_v18 = vcombine.low %v7386_v37, %v7388_v54  ;;  %v2867_v27 = vrot.slane %v2866_v53, 4  ;;  %v2893_v11 = vshll.u32 %v7914_v61, 16  ;;  %v2913_v62 = vrot.slane %v2911_v4, 4  ;;  %v7948_v7 = vld [vmem:[#allocation2 + $0x80] sm:$0x1] }
  0xdf   : > { %v2931_v49 = vshll.u32 %v7921_v63, 16  ;;  %v9638_v57 = vcombine.low %v7470_v51, %v7487_v28  ;;  %v2890_v37 = vor.u32 %v2889_v17, %v7919_v30  ;;  %v2904_v54 = vor.u32 %v2903_v19, %v2900_v2  ;;  %v7962_v2 = vld [vmem:[#allocation2 + $0x88] sm:$0xf] }
  0xe0   : > { %v2924_v24 = vrot.slane %v2922_v29, 4  ;;  %v2927_v53 = vrot.slane %v2925_v13, 5  ;;  %v2862_v8 = vsel %vm7089_vm8, %v2857_v34, %v7879_v58  ;;  %v2881_v55 = vrot.slane %v2880_v38, 4  ;;  %v6896_v38 = vld [vmem:[#allocation2 + $0xc] sm:$0xff]  }
  0xe1   : > { %v7955_v41 = vrot.slane %v2931_v49, 5  ;;  %v2935_v51 = vshrl.u32 %v7921_v63, 16  ;;  %v2914_v28 = vor.u32 %v2913_v62, %v7930_v6  ;;  %v2917_v17 = vshll.u32 %v7923_v10, 16 }
  0xe2   : > { %6634 = vmatmul.mubr.msk.bf16.gmra.mxu1 %vm1329_vm6, %v9636_v18  ;;  %6712 = vmatmul.mubr.msk.bf16.vlgmr.msra.gmra.mxu0 %vm1329_vm6, %v7838_v42  ;;  %v2946_v42 = vshrl.u32 %v2687_v5, 16  ;;  %v2949_v19 = vshll.u32 %v2687_v5, 16  ;;  %v2895_v4 = vrot.slane %v2893_v11, 5  ;;  %v2928_v29 = vor.u32 %v2927_v53, %v2924_v24  ;;  %v2690_v24 = vld [vmem:[#allocation2 + $0x90] sm:$0xf] }
  0xe3   : > { %6637 = vmatprep.mubr.msk.bf16.mxu1 %vm1329_vm6, %v9638_v57  ;;  %6778 = vmatpush3.bf16.msra.mxu0 %v7533_v35  ;;  %v2937_v58 = vrot.slane %v2935_v51, 4  ;;  %v2941_v34 = vshll.u32 %v7948_v7, 16  ;;  %v2891_v13 = vrot.slane %v2890_v37, 4  ;;  %v2905_v35 = vrot.slane %v2904_v54, 4  ;;  %v7984_v54 = vld [vmem:[#allocation2 + $0x8c] sm:$0x1] }
  0xe4   : > { %6715 = vmatprep.mubr.msk.bf16.mxu0 %vm1329_vm6, %v6021_v60  ;;  %6845 = vmatprep.subr.bf16.mxu0 %v7941_v0  ;;  %v2948_v18 = vrot.slane %v2946_v42, 4  ;;  %v2951_v60 = vrot.slane %v2949_v19, 5  ;;  %v2872_v62 = vsel %vm7089_vm8, %v2867_v27, %v7917_v1  ;;  %v2955_v5 = vshll.u32 %v7962_v2, 16  ;;  %v7990_v19 = vld [vmem:[#allocation2 + $0x94] sm:$0xf] }
  0xe5   : > { %v2938_v49 = vor.u32 %v2937_v58, %v7955_v41  ;;  %v2959_v11 = vshrl.u32 %v7962_v2, 16  ;;  %v6023_v57 = vcombine.low %v2814_v3, %v2824_v59  ;;  %v7982_v37 = vcombine.low %v2838_v33, %v2848_v23 }
  0xe6   : > { %v2915_v1 = vrot.slane %v2914_v28, 4  ;;  %v2919_v27 = vrot.slane %v2917_v17, 5  ;;  %v9639_v53 = vcombine.low %v7512_v26, %v7517_v43  ;;  %v2929_v51 = vrot.slane %v2928_v29, 4  ;;  %v2693_v43 = vld [vmem:[#allocation2 + $0x9c] sm:$0xf] }
  0xe7   : > { %v2939_v52 = vrot.slane %v2938_v49, 4  ;;  %v2943_v40 = vrot.slane %v2941_v34, 5  ;;  %v2952_v42 = vor.u32 %v2951_v60, %v2948_v18  ;;  %v6025_v21 = vcombine.low %v2862_v8, %v2872_v62  ;;  %v8005_v28 = vld [vmem:[#allocation2 + $0xa0] sm:$0xf]  ;;  %v2696_v49 = vld [vmem:[#allocation2 + $0xa8] sm:$0xf] }
  0xe8   : > { %v2886_v46 = vsel %vm7089_vm8, %v2881_v55, %v7919_v30  ;;  %v2896_v3 = vsel %vm7089_vm8, %v2891_v13, %v2895_v4  ;;  %v2910_v26 = vsel %vm7089_vm8, %v2905_v35, %v7930_v6  ;;  %v8003_v59 = vrot.slane %v2955_v5, 5  ;;  %9640 = vst [vmem:[#allocation6_spill] sm:$0xff] %v8005_v28  ;;  %v6898_v4 = vld [vmem:[#allocation2 + $0x18] sm:$0xff]  }
  0xe9   : > { %v2961_v33 = vrot.slane %v2959_v11, 4  ;;  %v2970_v23 = vshrl.u32 %v2690_v24, 16  ;;  %v2973_v8 = vshll.u32 %v2690_v24, 16  ;;  %v2920_v30 = vsel %vm7089_vm8, %v2915_v1, %v2919_v27  ;;  %v8022_v35 = vld [vmem:[#allocation2 + $0x98] sm:$0x1] }
  0xea   : > { %6638 = vmatmul.mubr.msk.bf16.gmra.mxu1 %vm1329_vm6, %v9639_v53  ;;  %6716 = vmatmul.mubr.msk.bf16.gmra.mxu0 %vm1329_vm6, %v7885_v48  ;;  %v2965_v55 = vshll.u32 %v7984_v54, 16  ;;  %v2979_v6 = vshll.u32 %v7990_v19, 16  ;;  %v2983_v17 = vshrl.u32 %v7990_v19, 16  ;;  %v2934_v48 = vsel %vm7089_vm8, %v2929_v51, %v7955_v41  ;;  %9641 = vst [vmem:[#allocation7_spill] sm:$0xff] %v8022_v35  ;;  %v8029_v1 = vld [vmem:[#allocation2 + $0xac] sm:$0xf] }
  0xeb   : > { %6677 = vmatprep.mubr.msk.bf16.mxu1 %vm1329_vm6, %v6896_v38  ;;  %6719 = vmatprep.mubr.msk.bf16.mxu0 %vm1329_vm6, %v6023_v57  ;;  %v2944_v29 = vsel %vm7089_vm8, %v2939_v52, %v2943_v40  ;;  %v8018_v58 = vrot.slane %v2952_v42, 4  ;;  %v2994_v34 = vshrl.u32 %v2693_v43, 16  ;;  %v6900_v38 = vld [vmem:[#allocation2 + $0x24] sm:$0xff]   ;;  %v8020_v13 = vcombine.low %v2886_v46, %v2896_v3  ;;  %9642 = vst [vmem:[#allocation8_spill] sm:$0xff] %v8029_v1  ;;  %v8034_v27 = vld [vmem:[%s9594_s1 + $0x38] sm:$0xff]  }
  0xec   : > { %v2997_v18 = vshll.u32 %v2693_v43, 16  ;;  %v3003_v60 = vshll.u32 %v8005_v28, 16  ;;  %v3007_v62 = vshrl.u32 %v8005_v28, 16  ;;  %v8026_v5 = vcombine.low %v2910_v26, %v2920_v30  ;;  %9643 = vst [vmem:[#allocation9_spill] sm:$0xff] %v8034_v27  ;;  %v8042_v40 = vld [vmem:[#allocation2 + $0xa4] sm:$0x1] }
  0xed   : > { %v2962_v41 = vor.u32 %v2961_v33, %v8003_v59  ;;  %v2972_v11 = vrot.slane %v2970_v23, 4  ;;  %v2975_v57 = vrot.slane %v2973_v8, 5  ;;  %v8036_v24 = vcombine.low %v2934_v48, %v2944_v29  ;;  %9644 = vst [vmem:[#allocation10_spill] sm:$0xff] %v8042_v40  ;;  %v8049_v26 = vld [vmem:[#allocation2 + $0xb0] sm:$0x1] }
  0xee   : > { %v8038_v53 = vrot.slane %v2965_v55, 5  ;;  %v8040_v51 = vrot.slane %v2979_v6, 5  ;;  %v2985_v52 = vrot.slane %v2983_v17, 4  ;;  %v2996_v46 = vrot.slane %v2994_v34, 4  ;;  %9645 = vst [vmem:[#allocation11_spill] sm:$0xff] %v8049_v26 }
  0xef   : > { %v2999_v3 = vrot.slane %v2997_v18, 5  ;;  %v3018_v43 = vshrl.u32 %v2696_v49, 16  ;;  %v8053_v33 = vrot.slane %v3003_v60, 5  ;;  %v3009_v23 = vrot.slane %v3007_v62, 4  ;;  %v2699_v55 = vld [vmem:[#allocation2 + $0xb4] sm:$0xf] }
  0xf0   : > { %v3021_v8 = vshll.u32 %v2696_v49, 16  ;;  %v3027_v30 = vshll.u32 %v8029_v1, 16  ;;  %v8058_v6 = vrot.slane %v2962_v41, 4  ;;  %v2976_v17 = vor.u32 %v2975_v57, %v2972_v11  ;;  %v8061_v29 = vld [vmem:[#allocation2 + $0xb8] sm:$0xf]  ;;  %v6901_v18 = vld [vmem:[#allocation2 + $0x30] sm:$0xff]  }
  0xf1   : > { %v3020_v48 = vrot.slane %v3018_v43, 4  ;;  %v3000_v60 = vor.u32 %v2999_v3, %v2996_v46  ;;  %v3013_v62 = vshll.u32 %v8042_v40, 16  ;;  %v3042_v49 = vshrl.u32 %v2699_v55, 16  ;;  %v6902_v11 = vld [vmem:[#allocation2 + $0x3c] sm:$0xff]  }
  0xf2   : > { %6678 = vmatmul.mubr.msk.bf16.vlgmr.msra.gmra.mxu1 %vm1329_vm6, %v6898_v4  ;;  %6720 = vmatmul.mubr.msk.bf16.gmra.mxu0 %vm1329_vm6, %v7982_v37  ;;  %v2989_v4 = vshll.u32 %v8022_v35, 16  ;;  %v3023_v34 = vrot.slane %v3021_v8, 5  ;;  %v3031_v37 = vshrl.u32 %v8029_v1, 16  ;;  %v3045_v41 = vshll.u32 %v2699_v55, 16  ;;  %v240_v8 = vld [vmem:[%s7077_s26 + $0xf0] sm:$0xff] }
  0xf3   : > { %6744 = vmatpush3.bf16.msra.mxu1 %v7598_v22  ;;  %6681 = vmatprep.mubr.msk.bf16.mxu1 %vm1329_vm6, %v6900_v38  ;;  %v2986_v22 = vor.u32 %v2985_v52, %v8040_v51  ;;  %v8066_v38 = vrot.slane %v3027_v30, 5  ;;  %v3010_v57 = vor.u32 %v3009_v23, %v8053_v33  ;;  %v3051_v52 = vshll.u32 %v8061_v29, 16 }
  0xf4   : > { %6811 = vmatprep.subr.bf16.mxu1 %v8034_v27  ;;  %6723 = vmatprep.mubr.msk.bf16.mxu0 %vm1329_vm6, %v6025_v21  ;;  %v3033_v43 = vrot.slane %v3031_v37, 4  ;;  %v3037_v21 = vshll.u32 %v8049_v26, 16  ;;  %v2968_v30 = vsel %vm7089_vm8, %v8058_v6, %v8038_v53  ;;  %v3024_v42 = vor.u32 %v3023_v34, %v3020_v48  ;;  %v241_v27 = vld [vmem:[%s7077_s26 + $0xf8] sm:$0xff] }
  0xf5   : > { %v3044_v46 = vrot.slane %v3042_v49, 4  ;;  %v3047_v3 = vrot.slane %v3045_v41, 5  ;;  %v2977_v0 = vrot.slane %v2976_v17, 4  ;;  %v2987_v55 = vrot.slane %v2986_v22, 4 }
  0xf6   : > { %v2991_v1 = vrot.slane %v2989_v4, 5  ;;  %v3034_v23 = vor.u32 %v3033_v43, %v8066_v38  ;;  %v3001_v37 = vrot.slane %v3000_v60, 4  ;;  %v3015_v26 = vrot.slane %v3013_v62, 5  ;;  %v8087_v4 = vld [vmem:[#allocation2 + $0xbc] sm:$0x1] }
  0xf7   : > { %v3055_v40 = vshrl.u32 %v8061_v29, 16  ;;  %v6291_v28 = vpack.c.bf16 %v240_v8, %v240_v8  ;;  %v3011_v35 = vrot.slane %v3010_v57, 4  ;;  %v3039_v53 = vrot.slane %v3037_v21, 5  ;;  %v6904_v57 = vld [vmem:[#allocation2 + $0x54] sm:$0xff]  }
  0xf8   : > { %v8083_v6 = vrot.slane %v3051_v52, 5  ;;  %v6292_v48 = vpack.c.bf16 %v241_v27, %v241_v27  ;;  %v3025_v17 = vrot.slane %v3024_v42, 4  ;;  %v3048_v22 = vor.u32 %v3047_v3, %v3044_v46  ;;  %v828_v52 = vld [vmem:[#allocation2 + $0xc0] sm:$0xf]  ;;  %v832_v46 = vld [vmem:[#allocation2 + $0xc8] sm:$0x1] }
  0xf9   : > { %v3057_v34 = vrot.slane %v3055_v40, 4  ;;  %v3035_v60 = vrot.slane %v3034_v23, 4  ;;  %v656_v62 = vshll.u32 %v6291_v28, 16  ;;  %v2982_v27 = vsel %vm7089_vm8, %v2977_v0, %v8040_v51  ;;  %v3389_v23 = vld [vmem:[#allocation2 + $0x24] sm:$0xe] }
  0xfa   : > { %6682 = vmatmul.mubr.msk.bf16.gmra.mxu1 %vm1329_vm6, %v6901_v18  ;;  %6724 = vmatmul.mubr.msk.bf16.gmra.mxu0 %vm1329_vm6, %v8020_v13  ;;  %v653_v18 = vshrl.u32 %v6291_v28, 16  ;;  %v661_v49 = vshrl.u32 %v6292_v48, 16  ;;  %v664_v41 = vshll.u32 %v6292_v48, 16  ;;  %v2992_v13 = vsel %vm7089_vm8, %v2987_v55, %v2991_v1 }
  0xfb   : > { %6685 = vmatprep.mubr.msk.bf16.mxu1 %vm1329_vm6, %v6902_v11  ;;  %6727 = vmatprep.mubr.msk.bf16.mxu0 %vm1329_vm6, %v8026_v5  ;;  %v6903_v11 = vld [vmem:[#allocation2 + $0x48] sm:$0xff]   ;;  %v3006_v40 = vsel %vm7089_vm8, %v3001_v37, %v8053_v33  ;;  %v3016_v5 = vsel %vm7089_vm8, %v3011_v35, %v3015_v26  ;;  %v3058_v28 = vor.u32 %v3057_v34, %v8083_v6  ;;  %v3061_v43 = vshll.u32 %v8087_v4, 16 }
  0xfc   : > { %v655_v42 = vrot.slane %v653_v18, 7  ;;  %v663_v21 = vrot.slane %v661_v49, 7  ;;  %v9646_v0 = vsel %vm7089_vm8, %v8018_v58, %v8003_v59  ;;  %v3049_v51 = vrot.slane %v3048_v22, 4  ;;  %v3390_v58 = vld [vmem:[#allocation2 + $0x30] sm:$0xe] }
  0xfd   : > { %v6029_v1 = vcombine.low %v9646_v0, %v2968_v30  ;;  %v3030_v35 = vsel %vm7089_vm8, %v3025_v17, %v8066_v38  ;;  %v3040_v26 = vsel %vm7089_vm8, %v3035_v60, %v3039_v53  ;;  %v6030_v37 = vcombine.low %v2982_v27, %v2992_v13  ;;  %v3391_v17 = vld [vmem:[#allocation2 + $0x3c] sm:$0xe]  ;;  %v3392_v49 = vld [vmem:[#allocation2 + $0x48] sm:$0xe] }
  0xfe   : > { %v658_v8 = vor.u32 %v656_v62, %v655_v42  ;;  %v659_v33 = vrot.slane %v655_v42, 4  ;;  %v666_v3 = vor.u32 %v664_v41, %v663_v21  ;;  %v668_v55 = vrot.slane %v663_v21, 4  ;;  %v6905_v41 = vld [vmem:[#allocation2 + $0x60] sm:$0xff]  }
  0xff   : > { %v6031_v48 = vcombine.low %v3006_v40, %v3016_v5  ;;  %v3059_v30 = vrot.slane %v3058_v28, 4  ;;  %v3063_v22 = vrot.slane %v3061_v43, 5  ;;  %v8123_v34 = vcombine.low %v3030_v35, %v3040_v26  ;;  %v3394_v35 = vld [vmem:[#allocation2 + $0x60] sm:$0xe] }
 0x100   : > { %v829_v59 = vsel %vm7094_vm9, %v658_v8, %v828_v52  ;;  %v667_v38 = vsel %vm7100_vm10, %v659_v33, %v666_v3  ;;  %v833_v53 = vsel %vm7106_vm11, %v668_v55, %v832_v46  ;;  %v3054_v32 = vsel %vm7089_vm8, %v3049_v51, %v8083_v6  ;;  %v3393_v51 = vld [vmem:[#allocation2 + $0x54] sm:$0xe] }
 0x101   : > { %830 = vst [vmem:[#allocation2 + $0xc0] sm:$0xf] %v829_v59  ;;  %831 = vst.msk [vmem:[#allocation2 + $0xc4] sm:$0xf] %vm242_vm0, %v667_v38  ;;  %v6054_v18 = vrot.slane %v3389_v23, 9  ;;  %v3467_v36 = vrot.slane %v7726_v45, 5 }
 0x102   : > { %6686 = vmatmul.mubr.msk.bf16.gmra.mxu1 %vm1329_vm6, %v6903_v11  ;;  %6728 = vmatmul.mubr.msk.bf16.gmra.mxu0 %vm1329_vm6, %v8036_v24  ;;  %834 = vst [vmem:[#allocation2 + $0xc8] sm:$0x1] %v833_v53  ;;  %v3470_v44 = vrot.slane %v7764_v12, 5  ;;  %v6055_v60 = vrot.slane %v3390_v58, 9  ;;  %v3474_v62 = vrot.slane %v7753_v15, 5  ;;  %v3477_v24 = vrot.slane %v7785_v9, 5 }
 0x103   : > { %6689 = vmatprep.mubr.msk.bf16.mxu1 %vm1329_vm6, %v6904_v57  ;;  %6731 = vmatprep.mubr.msk.bf16.mxu0 %vm1329_vm6, %v6029_v1  ;;  %v9647_v11 = vld [vmem:[#allocation4_spill] sm:$0xff]  ;;  %v8137_v13 = vsel %vm7466_vm14, %v6054_v18, %v3467_v36  ;;  %v3469_v40 = vrot.slane %v3467_v36, 4  ;;  %v6056_v42 = vrot.slane %v3391_v17, 9  ;;  %v6906_v45 = vld [vmem:[#allocation2 + $0x6c] sm:$0xff]   ;;  %v3064_v57 = vsel %vm7089_vm8, %v3059_v30, %v3063_v22 }
 0x104   : > { %v3453_v27 = vrot.slane %v9647_v11, 5  ;;  %v8143_v12 = vsel %vm7466_vm14, %v6055_v60, %v3474_v62  ;;  %v3476_v15 = vrot.slane %v3474_v62, 4  ;;  %v3481_v9 = vrot.slane %v7779_v14, 5  ;;  %v3395_v30 = vld [vmem:[#allocation2 + $0x6c] sm:$0xe] }
 0x105   : > { %v8148_v5 = vsel %vm7466_vm14, %v3469_v40, %v3470_v44  ;;  %v3484_v28 = vrot.slane %v7817_v50, 5  ;;  %v6057_v43 = vrot.slane %v3392_v49, 9  ;;  %v3488_v21 = vrot.slane %v7810_v39, 5  ;;  %v6907_v44 = vld [vmem:[#allocation2 + $0x78] sm:$0xff]   ;;  %v6908_v49 = vld [vmem:[#allocation2 + $0x84] sm:$0xff]  }
 0x106   : > { %v6072_v52 = vcombine.low %v8137_v13, %v8148_v5  ;;  %v8156_v0 = vsel %vm7466_vm14, %v3476_v15, %v3477_v24  ;;  %v8160_v1 = vsel %vm7466_vm14, %v6056_v42, %v3481_v9  ;;  %v3483_v14 = vrot.slane %v3481_v9, 4 }
 0x107   : > { %v6033_v8 = vcombine.low %v3054_v32, %v3064_v57  ;;  %v6073_v39 = vcombine.low %v8143_v12, %v8156_v0  ;;  %v3490_v33 = vrot.slane %v3488_v21, 4  ;;  %v3491_v46 = vrot.slane %v7845_v16, 5 }
 0x108   : > { %v2702_v50 = vld [vmem:[#allocation2 + $0xc0] sm:$0xf]  ;;  %v8167_v26 = vld [vmem:[#allocation2 + $0xc4] sm:$0xf]  ;;  %v8173_v59 = vsel %vm7466_vm14, %v3483_v14, %v3484_v28  ;;  %v8177_v58 = vsel %vm7466_vm14, %v6057_v43, %v3488_v21  ;;  %v6058_v36 = vrot.slane %v3393_v51, 9  ;;  %v3495_v40 = vrot.slane %v7832_v56, 5 }
 0x109   : > { %v8169_v3 = vld [vmem:[#allocation2 + $0xc8] sm:$0x1]  ;;  %v3066_v55 = vshrl.u32 %v2702_v50, 16  ;;  %v3069_v23 = vshll.u32 %v2702_v50, 16  ;;  %v3075_v16 = vshll.u32 %v8167_v26, 16  ;;  %v3079_v22 = vshrl.u32 %v8167_v26, 16 }
 0x10a   : > { %6690 = vmatmul.mubr.msk.bf16.gmra.mxu1 %vm1329_vm6, %v6905_v41  ;;  %6732 = vmatmul.mubr.msk.bf16.gmra.mxu0 %vm1329_vm6, %v6030_v37  ;;  %v3085_v38 = vshll.u32 %v8169_v3, 16  ;;  %v6074_v53 = vcombine.low %v8160_v1, %v8173_v59  ;;  %v8188_v18 = vsel %vm7466_vm14, %v3490_v33, %v3491_v46  ;;  %v6059_v42 = vrot.slane %v3394_v35, 9  ;;  %v3396_v51 = vld [vmem:[#allocation2 + $0x78] sm:$0xe]  ;;  %v3397_v35 = vld [vmem:[#allocation2 + $0x84] sm:$0xe] }
 0x10b   : > { %6693 = vmatprep.mubr.msk.bf16.mxu1 %vm1329_vm6, %v6906_v45  ;;  %6735 = vmatprep.mubr.msk.bf16.mxu0 %vm1329_vm6, %v6031_v48  ;;  %v3068_v17 = vrot.slane %v3066_v55, 4  ;;  %v3071_v32 = vrot.slane %v3069_v23, 5  ;;  %v3077_v37 = vrot.slane %v3075_v16, 5  ;;  %v3081_v60 = vrot.slane %v3079_v22, 4  ;;  %v3398_v16 = vld [vmem:[#allocation2 + $0x90] sm:$0xe] }
 0x10c   : > { %v3087_v62 = vrot.slane %v3085_v38, 5  ;;  %v3498_v48 = vrot.slane %v7868_v47, 5  ;;  %v3502_v57 = vrot.slane %v7863_v31, 5  ;;  %v3505_v15 = vrot.slane %v7914_v61, 5  ;;  %v6924_v38 = vld [vmem:[#allocation2 + $0x78] sm:$0xff]  }
 0x10d   : > { %v3072_v41 = vor.u32 %v3071_v32, %v3068_v17  ;;  %v3082_v45 = vor.u32 %v3081_v60, %v3077_v37  ;;  %v6060_v9 = vrot.slane %v3395_v30, 9  ;;  %v8198_v43 = vsel %vm7466_vm14, %v6058_v36, %v3495_v40  ;;  %v6909_v32 = vld [vmem:[#allocation2 + $0x90] sm:$0xff]   ;;  %v4233_v36 = vld [vmem:[#allocation2 + $0x3c] sm:$0xf] }
 0x10e   : > { %v3497_v21 = vrot.slane %v3495_v40, 4  ;;  %v3509_v14 = vrot.slane %v7890_v20, 5  ;;  %v8204_v47 = vsel %vm7466_vm14, %v6059_v42, %v3502_v57  ;;  %v3504_v31 = vrot.slane %v3502_v57, 4 }
 0x10f   : > { %v3073_v28 = vrot.slane %v3072_v41, 4  ;;  %v3083_v56 = vrot.slane %v3082_v45, 4  ;;  %v3512_v61 = vrot.slane %v7923_v10, 5  ;;  %v6061_v30 = vrot.slane %v3396_v51, 9  ;;  %v9649_v45 = vld [vmem:[#allocation7_spill] sm:$0xff] }
 0x110   : > { %v8212_v33 = vsel %vm7466_vm14, %v3497_v21, %v3498_v48  ;;  %v8216_v20 = vsel %vm7466_vm14, %v6060_v9, %v3509_v14  ;;  %v3511_v46 = vrot.slane %v3509_v14, 4  ;;  %v8226_v23 = vsel %vm7466_vm14, %v3504_v31, %v3505_v15  ;;  %v6914_v15 = vld [vmem:[#allocation2 + $0x18] sm:$0xff]   ;;  %v9650_v21 = vld [vmem:[#allocation6_spill] sm:$0xff] }
 0x111   : > { %v3078_v50 = vsel %vm7089_vm8, %v3073_v28, %v3077_v37  ;;  %v3088_v10 = vsel %vm7089_vm8, %v3083_v56, %v3087_v62  ;;  %v3516_v17 = vrot.slane %v7921_v63, 5  ;;  %v6062_v37 = vrot.slane %v3397_v35, 9  ;;  %v6910_v62 = vld [vmem:[#allocation2 + $0x9c] sm:$0xff]   ;;  %v3401_v56 = vld [vmem:[#allocation2 + $0xb4] sm:$0xe] }
 0x112   : > { %6694 = vmatmul.mubr.msk.bf16.gmra.mxu1 %vm1329_vm6, %v6907_v44  ;;  %6736 = vmatmul.mubr.msk.bf16.gmra.mxu0 %vm1329_vm6, %v8123_v34  ;;  %v6034_v22 = vcombine.low %v3078_v50, %v3088_v10  ;;  %v8233_v34 = vsel %vm7466_vm14, %v3511_v46, %v3512_v61  ;;  %v3519_v44 = vrot.slane %v7948_v7, 5  ;;  %v3523_v60 = vrot.slane %v7962_v2, 5  ;;  %v3400_v2 = vld [vmem:[#allocation2 + $0xa8] sm:$0xe]  ;;  %v8377_v31 = vld [vmem:[#allocation2 + $0x34] sm:$0xf] }
 0x113   : > { %6697 = vmatprep.mubr.msk.bf16.mxu1 %vm1329_vm6, %v6908_v49  ;;  %6739 = vmatprep.mubr.msk.bf16.mxu0 %vm1329_vm6, %v6033_v8  ;;  %v3399_v8 = vld [vmem:[#allocation2 + $0x9c] sm:$0xe]  ;;  %v8242_v49 = vsel %vm7466_vm14, %v6061_v30, %v3516_v17  ;;  %v3518_v41 = vrot.slane %v3516_v17, 4  ;;  %v3526_v40 = vrot.slane %v7984_v54, 5  ;;  %v6063_v48 = vrot.slane %v3398_v16, 9  ;;  %v9651_v54 = vld [vmem:[#allocation10_spill] sm:$0xff] }
 0x114   : > { %v8247_v63 = vsel %vm7466_vm14, %v6062_v37, %v3523_v60  ;;  %v3525_v42 = vrot.slane %v3523_v60, 4  ;;  %v3530_v7 = vrot.slane %v7990_v19, 5  ;;  %v3533_v57 = vrot.slane %v9649_v45, 5  ;;  %v3402_v16 = vld [vmem:[#allocation2 + $0xc0] sm:$0xe]  ;;  %v9653_v37 = vld [vmem:[#allocation11_spill] sm:$0xff] }
 0x115   : > { %v8253_v9 = vsel %vm7466_vm14, %v3518_v41, %v3519_v44  ;;  %v6064_v28 = vrot.slane %v3399_v8, 9  ;;  %v3537_v14 = vrot.slane %v9650_v21, 5  ;;  %v3540_v51 = vrot.slane %v9651_v54, 5 }
 0x116   : > { %v8262_v19 = vsel %vm7466_vm14, %v3525_v42, %v3526_v40  ;;  %v8266_v61 = vsel %vm7466_vm14, %v6063_v48, %v3530_v7  ;;  %v3532_v50 = vrot.slane %v3530_v7, 4  ;;  %v6065_v30 = vrot.slane %v3400_v2, 9  ;;  %v6911_v42 = vld [vmem:[#allocation2 + $0xa8] sm:$0xff]  }
 0x117   : > { %v8273_v35 = vsel %vm7466_vm14, %v6064_v28, %v3537_v14  ;;  %v3539_v10 = vrot.slane %v3537_v14, 4  ;;  %v3547_v60 = vrot.slane %v9653_v37, 5  ;;  %v6066_v8 = vrot.slane %v3401_v56, 9  ;;  %v6955_v37 = vld [vmem:[#allocation2 + $0x1c] sm:$0xf] }
 0x118   : > { %v8278_v17 = vsel %vm7466_vm14, %v3532_v50, %v3533_v57  ;;  %v3554_v48 = vrot.slane %v8087_v4, 5  ;;  %v6067_v2 = vrot.slane %v3402_v16, 9  ;;  %v3561_v4 = vrot.slane %v8169_v3, 5  ;;  %v6915_v50 = vld [vmem:[#allocation2 + $0x24] sm:$0xff]  }
 0x119   : > { %v8287_v40 = vsel %vm7466_vm14, %v3539_v10, %v3540_v51  ;;  %v3455_v54 = vrot.slane %v3453_v27, 4  ;;  %v6954_v51 = vld [vmem:[#allocation2 + $0x14] sm:$0x1]  ;;  %v4334_v12 = vshrl.u32 %v8377_v31, 16  ;;  %v4345_v0 = vshrl.u32 %v4233_v36, 16 }
 0x11a   : > { %6698 = vmatmul.mubr.msk.bf16.gmra.mxu1 %vm1329_vm6, %v6909_v32  ;;  %6740 = vmatmul.mubr.msk.bf16.gmra.mxu0 %vm1329_vm6, %v6034_v22  ;;  %v9652_v32 = vld [vmem:[#allocation8_spill] sm:$0xff]  ;;  %v3551_v22 = vrot.slane %v8061_v29, 5  ;;  %v3558_v29 = vrot.slane %v8167_v26, 5  ;;  %v3456_v56 = vrot.slane %v6954_v51, 5 }
 0x11b   : > { %6701 = vmatprep.mubr.msk.bf16.mxu1 %vm1329_vm6, %v6910_v62  ;;  %v3544_v44 = vrot.slane %v9652_v32, 5  ;;  %6779 = vmatprep.mubr.msk.bf16.mxu0 %vm1329_vm6, %v6914_v15  ;;  %v3387_v62 = vld [vmem:[#allocation2 + $0xc] sm:$0xe]  ;;  %v6912_v15 = vld [vmem:[#allocation2 + $0xb4] sm:$0xff]   ;;  %v4347_v24 = vrot.slane %v4345_v0, 4 }
 0x11c   : > { %v8299_v28 = vsel %vm7466_vm14, %v6066_v8, %v3551_v22  ;;  %v3553_v21 = vrot.slane %v3551_v22, 4  ;;  %v6052_v14 = vrot.slane %v3387_v62, 9  ;;  %v8317_v3 = vsel %vm7466_vm14, %v6067_v2, %v3558_v29  ;;  %v6913_v2 = vld [vmem:[#allocation2 + $0xc0] sm:$0xff]  }
 0x11d   : > { %v8295_v45 = vsel %vm7466_vm14, %v6065_v30, %v3544_v44  ;;  %v3546_v57 = vrot.slane %v3544_v44, 4  ;;  %v6918_v30 = vld [vmem:[#allocation2 + $0x30] sm:$0xff]   ;;  %9655 = vst [vmem:[#allocation3_spill] sm:$0xff] %v8317_v3  ;;  %v3560_v32 = vrot.slane %v3558_v29, 4  ;;  %v3457_v22 = vsel %vm7466_vm14, %v3455_v54, %v3456_v56  ;;  %v6956_v29 = vld [vmem:[#allocation2 + $0x20] sm:$0x1]  ;;  %v8344_v56 = vpop.f32.mrf.mxu0 }
 0x11e   : > { %v8313_v26 = vsel %vm7466_vm14, %v3553_v21, %v3554_v48  ;;  %v3454_v62 = vsel %vm7466_vm14, %v6052_v14, %v3453_v27  ;;  %v3388_v48 = vld [vmem:[#allocation2 + $0x18] sm:$0xe]  ;;  %v6919_v27 = vld [vmem:[#allocation2 + $0x3c] sm:$0xff]   ;;  %v6920_v14 = vld [vmem:[#allocation2 + $0x48] sm:$0xff]   ;;  %9658 = vst [vmem:[#allocation6_spill] sm:$0xff] %v8344_v56 }
 0x11f   : > { %v8307_v10 = vsel %vm7466_vm14, %v3546_v57, %v3547_v60  ;;  %9654 = vst [vmem:[#allocation4_spill] sm:$0xff] %v8313_v26  ;;  %v3460_v60 = vrot.slane %v6955_v37, 5  ;;  %v8325_v8 = vsel %vm7466_vm14, %v3560_v32, %v3561_v4  ;;  %v9657_v57 = vld [vmem:[#allocation5_spill] sm:$0xff]  ;;  %v6053_v21 = vrot.slane %v3388_v48, 9  ;;  %v4954_v37 = vld [vmem:[#allocation2 + $0x18] sm:$0xe] }
 0x120   : > { %9656 = vst [vmem:[#allocation7_spill] sm:$0xff] %v8325_v8  ;;  %v3463_v4 = vrot.slane %v6956_v29, 5  ;;  %v8350_v48 = vld [vmem:[#allocation2 + $0x20] sm:$0x1]  ;;  %v9660_v44 = vld [vmem:[#allocation9_spill] sm:$0xff] }
 0x121   : > { %v3462_v11 = vrot.slane %v3460_v60, 4  ;;  %v3461_v54 = vsel %vm7466_vm14, %v6053_v21, %v3460_v60  ;;  %v6921_v60 = vld [vmem:[#allocation2 + $0x54] sm:$0xff]   ;;  %v6922_v29 = vld [vmem:[#allocation2 + $0x60] sm:$0xff]  }
 0x122   : > { %6702 = vmatmul.mubr.msk.bf16.gmra.mxu1 %vm1329_vm6, %v6911_v42  ;;  %6780 = vmatmul.mubr.msk.bf16.vlgmr.msra.gmra.mxu0 %vm1329_vm6, %v6915_v50  ;;  %v4225_v50 = vld [vmem:[#allocation2 + $0x1c] sm:$0xf]  ;;  %v4239_v8 = vld [vmem:[#allocation2 + $0x54] sm:$0xf] }
 0x123   : > { %6705 = vmatprep.mubr.msk.bf16.mxu1 %vm1329_vm6, %v6912_v15  ;;  %6846 = vmatpush3.bf16.msra.mxu0 %v9657_v57  ;;  %v6070_v15 = vcombine.low %v3454_v62, %v3457_v22  ;;  %v3464_v51 = vsel %vm7466_vm14, %v3462_v11, %v3463_v4  ;;  %v5020_v62 = vrot.slane %v4225_v50, 5  ;;  %v8348_v22 = vpop.f32.mrf.mxu0  ;;  %v4227_v57 = vld [vmem:[#allocation2 + $0x24] sm:$0xf]  ;;  %v4282_v21 = vshll.u32 %v4225_v50, 16  ;;  %v6927_v3 = vld [vmem:[#allocation2 + $0x9c] sm:$0xff]  }
 0x124   : > { %6783 = vmatprep.mubr.msk.bf16.mxu0 %vm1329_vm6, %v6918_v30  ;;  %v4224_v30 = vld [vmem:[#allocation2 + $0x18] sm:$0xf]  ;;  %v6071_v32 = vcombine.low %v3461_v54, %v3464_v51  ;;  %9659 = vst [vmem:[#allocation10_spill] sm:$0xff] %v8348_v22  ;;  %v4286_v11 = vshrl.u32 %v4225_v50, 16  ;;  %v6173_v4 = vrot.slane %v4954_v37, 9  ;;  %v4297_v51 = vshrl.u32 %v4227_v57, 16 }
 0x125   : > { %v4228_v54 = vld [vmem:[#allocation2 + $0x28] sm:$0xf]  ;;  %v4300_v42 = vshll.u32 %v4227_v57, 16 }
 0x126   : > { %v4288_v16 = vrot.slane %v4286_v11, 4  ;;  %v8367_v57 = vsel %vm7466_vm14, %v6173_v4, %v5020_v62  ;;  %v4306_v7 = vshll.u32 %v4228_v54, 16  ;;  %v4310_v13 = vshrl.u32 %v4228_v54, 16  ;;  %v4230_v11 = vld [vmem:[#allocation2 + $0x30] sm:$0xf] }
 0x12a   : > { %6706 = vmatmul.mubr.msk.bf16.gmra.mxu1 %vm1329_vm6, %v6913_v2  ;;  %6784 = vmatmul.mubr.msk.bf16.gmra.mxu0 %vm1329_vm6, %v6919_v27  ;;  %v4273_v2 = vshrl.u32 %v4224_v30, 16  ;;  %v5022_v27 = vrot.slane %v5020_v62, 4  ;;  %v4292_v62 = vshll.u32 %v8350_v48, 16 }
 0x12b   : > { %6745 = vmatprep.mubr.msk.bf16.mxu1 %vm1329_vm6, %v6070_v15  ;;  %6787 = vmatprep.mubr.msk.bf16.mxu0 %vm1329_vm6, %v6920_v14  ;;  %v4276_v15 = vshll.u32 %v4224_v30, 16  ;;  %v5023_v14 = vrot.slane %v8350_v48, 5  ;;  %v8359_v30 = vpop.f32.mrf.mxu0 }
 0x12c   : > { %9661 = vst [vmem:[#allocation8_spill] sm:$0xff] %v8359_v30  ;;  %v4275_v50 = vrot.slane %v4273_v2, 4  ;;  %v4299_v2 = vrot.slane %v4297_v51, 4 }
 0x12d   : > { %v4278_v37 = vrot.slane %v4276_v15, 5  ;;  %v8371_v5 = vsel %vm7466_vm14, %v5022_v27, %v5023_v14  ;;  %v4302_v15 = vrot.slane %v4300_v42, 5  ;;  %v8373_v41 = vpop.f32.mrf.mxu0  ;;  %v4312_v42 = vrot.slane %v4310_v13, 4  ;;  %v4956_v27 = vld [vmem:[#allocation2 + $0x30] sm:$0xe] }
 0x12e   : > { %9662 = vst [vmem:[#allocation11_spill] sm:$0xff] %v8373_v41  ;;  %v4330_v13 = vshll.u32 %v8377_v31, 16  ;;  %v6926_v41 = vld [vmem:[#allocation2 + $0x90] sm:$0xff]  }
 0x12f   : > { %v4303_v51 = vor.u32 %v4302_v15, %v4299_v2 }
 0x132   : > { %6746 = vmatmul.mubr.msk.bf16.vlgmr.msra.gmra.mxu1 %vm1329_vm6, %v6071_v32  ;;  %6788 = vmatmul.mubr.msk.bf16.gmra.mxu0 %vm1329_vm6, %v6921_v60  ;;  %v8362_v32 = vrot.slane %v4282_v21, 5  ;;  %v5027_v60 = vrot.slane %v4228_v54, 5  ;;  %v6923_v21 = vld [vmem:[#allocation2 + $0x6c] sm:$0xff]   ;;  %v8381_v54 = vrot.slane %v4306_v7, 5  ;;  %v8395_v7 = vpop.f32.mrf.mxu0 }
 0x133   : > { %6812 = vmatpush3.bf16.msra.mxu1 %v9660_v44  ;;  %6749 = vmatprep.mubr.msk.bf16.mxu1 %vm1329_vm6, %v6072_v52  ;;  %v4955_v44 = vld [vmem:[#allocation2 + $0x24] sm:$0xe]  ;;  %v4229_v52 = vld [vmem:[#allocation2 + $0x2c] sm:$0x1]  ;;  %9664 = vst [vmem:[#allocation9_spill] sm:$0xff] %v8395_v7 }
 0x134   : > { %6791 = vmatprep.mubr.msk.bf16.mxu0 %vm1329_vm6, %v6922_v29  ;;  %v4279_v29 = vor.u32 %v4278_v37, %v4275_v50  ;;  %v4289_v46 = vor.u32 %v4288_v16, %v8362_v32  ;;  %v6174_v4 = vrot.slane %v4955_v44, 9  ;;  %v5030_v14 = vrot.slane %v4229_v52, 5  ;;  %v8387_v16 = vpop.f32.mrf.mxu1  ;;  %v8389_v44 = vld [vmem:[#allocation2 + $0x40] sm:$0xf]  ;;  %v8422_v55 = vpop.f32.mrf.mxu0  ;;  %v6925_v7 = vld [vmem:[#allocation2 + $0x84] sm:$0xff]  }
 0x135   : > { %9663 = vst [vmem:[#allocation5_spill] sm:$0xff] %v8387_v16  ;;  %v5029_v48 = vrot.slane %v5027_v60, 4  ;;  %v4321_v50 = vshrl.u32 %v4230_v11, 16  ;;  %v4324_v37 = vshll.u32 %v4230_v11, 16  ;;  %v8404_v11 = vrot.slane %v4292_v62, 5  ;;  %9668 = vst [vmem:[#allocation15_spill] sm:$0xff] %v8422_v55 }
 0x136   : > { %v8400_v2 = vrot.slane %v4279_v29, 4  ;;  %v8402_v15 = vrot.slane %v4289_v46, 4  ;;  %v8408_v1 = vsel %vm7466_vm14, %v6174_v4, %v5027_v60  ;;  %v4313_v59 = vor.u32 %v4312_v42, %v8381_v54  ;;  %v8414_v29 = vpop.f32.mrf.mxu1  ;;  %v4238_v55 = vld [vmem:[#allocation2 + $0x50] sm:$0x1] }
 0x137   : > { %9665 = vst [vmem:[#allocation12_spill] sm:$0xff] %v8408_v1  ;;  %9666 = vst [vmem:[#allocation13_spill] sm:$0xff] %v8414_v29  ;;  %v8418_v46 = vsel %vm7466_vm14, %v5029_v48, %v5030_v14  ;;  %v8420_v62 = vrot.slane %v4303_v51, 4  ;;  %v4323_v60 = vrot.slane %v4321_v50, 4  ;;  %v4326_v4 = vrot.slane %v4324_v37, 5  ;;  %v6928_v1 = vld [vmem:[#allocation2 + $0xa8] sm:$0xff]  }
 0x138   : > { %9667 = vst [vmem:[#allocation14_spill] sm:$0xff] %v8418_v46  ;;  %v4336_v42 = vrot.slane %v4334_v12, 4  ;;  %v6175_v51 = vrot.slane %v4956_v27, 9  ;;  %v5034_v50 = vrot.slane %v8377_v31, 5  ;;  %v8437_v37 = vrot.slane %v4313_v59, 4  ;;  %v8447_v14 = vpop.f32.mrf.mxu1 }
 0x139   : > { %v9669_v29 = vcombine.low %v8177_v58, %v8188_v18  ;;  %9670 = vst [vmem:[#allocation16_spill] sm:$0xff] %v8447_v14  ;;  %v4327_v59 = vor.u32 %v4326_v4, %v4323_v60  ;;  %v4235_v48 = vld [vmem:[#allocation2 + $0x44] sm:$0x1]  ;;  %v5041_v60 = vrot.slane %v8389_v44, 5 }
 0x13a   : > { %6750 = vmatmul.mubr.msk.bf16.gmra.mxu1 %vm1329_vm6, %v6073_v39  ;;  %v4348_v39 = vshll.u32 %v4233_v36, 16  ;;  %6792 = vmatmul.mubr.msk.bf16.gmra.mxu0 %vm1329_vm6, %v6923_v21  ;;  %v4354_v36 = vshll.u32 %v8389_v44, 16  ;;  %v4358_v21 = vshrl.u32 %v8389_v44, 16 }
 0x13b   : > { %6753 = vmatprep.mubr.msk.bf16.mxu1 %vm1329_vm6, %v6074_v53  ;;  %6795 = vmatprep.mubr.msk.bf16.mxu0 %vm1329_vm6, %v6924_v38  ;;  %v4316_v53 = vshll.u32 %v4229_v52, 16  ;;  %v8424_v38 = vld [vmem:[#allocation2 + $0x38] sm:$0x1]  ;;  %v8426_v52 = vrot.slane %v4330_v13, 5  ;;  %v4328_v58 = vrot.slane %v4327_v59, 4 }
 0x13c   : > { %v4350_v16 = vrot.slane %v4348_v39, 5  ;;  %v8441_v12 = vrot.slane %v4354_v36, 5  ;;  %v4360_v0 = vrot.slane %v4358_v21, 4  ;;  %v4236_v39 = vld [vmem:[#allocation2 + $0x48] sm:$0xf]  ;;  %v5037_v31 = vrot.slane %v8424_v38, 5  ;;  %v8457_v21 = vpop.f32.mrf.mxu0 }
 0x13d   : > { %v8439_v13 = vrot.slane %v4316_v53, 5  ;;  %v4340_v53 = vshll.u32 %v8424_v38, 16  ;;  %v9671_v36 = vcombine.low %v8198_v43, %v8212_v33  ;;  %9672 = vst [vmem:[#allocation17_spill] sm:$0xff] %v8457_v21  ;;  %v4337_v18 = vor.u32 %v4336_v42, %v8426_v52  ;;  %v4237_v38 = vld [vmem:[#allocation2 + $0x4c] sm:$0xf] }
 0x13e   : > { %v4351_v4 = vor.u32 %v4350_v16, %v4347_v24  ;;  %v8468_v43 = vsel %vm7466_vm14, %v6175_v51, %v5034_v50  ;;  %v5036_v33 = vrot.slane %v5034_v50, 4  ;;  %v4369_v27 = vshrl.u32 %v4236_v39, 16  ;;  %v8478_v30 = vpop.f32.mrf.mxu0 }
 0x13f   : > { %v4372_v14 = vshll.u32 %v4236_v39, 16  ;;  %v4319_v42 = vsel %vm7089_vm8, %v8437_v37, %v8439_v13  ;;  %v4361_v24 = vor.u32 %v4360_v0, %v8441_v12  ;;  %v4364_v16 = vshll.u32 %v4235_v48, 16 }
 0x140   : > { %v5048_v44 = vrot.slane %v4237_v38, 5  ;;  %v4342_v51 = vrot.slane %v4340_v53, 5  ;;  %v5044_v50 = vrot.slane %v4235_v48, 5  ;;  %v4338_v39 = vrot.slane %v4337_v18, 4 }
 0x141   : > { %v4352_v22 = vrot.slane %v4351_v4, 4  ;;  %v4371_v37 = vrot.slane %v4369_v27, 4  ;;  %v4374_v13 = vrot.slane %v4372_v14, 5  ;;  %v4378_v0 = vshll.u32 %v4237_v38, 16  ;;  %v4959_v27 = vld [vmem:[#allocation2 + $0x54] sm:$0xe] }
 0x142   : > { %6754 = vmatmul.mubr.msk.bf16.gmra.mxu1 %vm1329_vm6, %v9669_v29  ;;  %v4957_v29 = vld [vmem:[#allocation2 + $0x3c] sm:$0xe]  ;;  %6796 = vmatmul.mubr.msk.bf16.gmra.mxu0 %vm1329_vm6, %v6925_v7  ;;  %v8476_v7 = vpop.f32.mrf.mxu1  ;;  %v4382_v46 = vshrl.u32 %v4237_v38, 16  ;;  %v4362_v26 = vrot.slane %v4361_v24, 4  ;;  %v5050_v59 = vrot.slane %v5048_v44, 4  ;;  %v5051_v53 = vrot.slane %v4238_v55, 5 }
 0x143   : > { %6757 = vmatprep.mubr.msk.bf16.mxu1 %vm1329_vm6, %v9671_v36  ;;  %v4958_v36 = vld [vmem:[#allocation2 + $0x48] sm:$0xe]  ;;  %6799 = vmatprep.mubr.msk.bf16.mxu0 %vm1329_vm6, %v6926_v41  ;;  %9673 = vst [vmem:[#allocation18_spill] sm:$0xff] %v8476_v7  ;;  %v6176_v21 = vrot.slane %v4957_v29, 9  ;;  %v5043_v41 = vrot.slane %v5041_v60, 4  ;;  %v4366_v7 = vrot.slane %v4364_v16, 5  ;;  %v9674_v48 = vcombine.low %v8204_v47, %v8226_v23  ;;  %v8498_v47 = vpop.f32.mrf.mxu0 }
 0x144   : > { %v6177_v56 = vrot.slane %v4958_v36, 9  ;;  %v8484_v18 = vpop.f32.mrf.mxu1  ;;  %v8488_v29 = vsel %vm7466_vm14, %v5036_v33, %v5037_v31  ;;  %v4393_v4 = vshrl.u32 %v4239_v8, 16  ;;  %v4396_v38 = vshll.u32 %v4239_v8, 16 }
 0x145   : > { %9675 = vst [vmem:[#allocation19_spill] sm:$0xff] %v8484_v18  ;;  %v8492_v14 = vsel %vm7466_vm14, %v6176_v21, %v5041_v60  ;;  %v9676_v36 = vcombine.low %v8216_v20, %v8233_v34  ;;  %v4333_v23 = vsel %vm7089_vm8, %v4328_v58, %v8426_v52  ;;  %v4343_v31 = vsel %vm7089_vm8, %v4338_v39, %v4342_v51  ;;  %v4240_v20 = vld [vmem:[#allocation2 + $0x58] sm:$0xf]  ;;  %v8530_v39 = vpop.f32.mrf.mxu0 }
 0x146   : > { %v8507_v21 = vsel %vm7466_vm14, %v5043_v41, %v5044_v50  ;;  %v8511_v8 = vsel %vm7466_vm14, %v6177_v56, %v5048_v44  ;;  %v4357_v34 = vsel %vm7089_vm8, %v4352_v22, %v8441_v12  ;;  %v4375_v60 = vor.u32 %v4374_v13, %v4371_v37  ;;  %v8528_v44 = vld [vmem:[#allocation2 + $0x5c] sm:$0x1]  ;;  %9678 = vst [vmem:[#allocation21_spill] sm:$0xff] %v8530_v39  ;;  %v8840_v39 = vld [vmem:[#allocation2 + $0xb0] sm:$0x1] }
 0x147   : > { %v8517_v52 = vrot.slane %v4378_v0, 5  ;;  %v4384_v58 = vrot.slane %v4382_v46, 4  ;;  %v4367_v33 = vsel %vm7089_vm8, %v4362_v26, %v4366_v7  ;;  %v8524_v56 = vsel %vm7466_vm14, %v5050_v59, %v5051_v53  ;;  %v6929_v46 = vld [vmem:[#allocation2 + $0xb4] sm:$0xff]   ;;  %v8560_v0 = vld [vmem:[#allocation2 + $0x64] sm:$0xf] }
 0x148   : > { %v4388_v24 = vshll.u32 %v4238_v55, 16  ;;  %v6178_v16 = vrot.slane %v4959_v27, 9  ;;  %v4395_v22 = vrot.slane %v4393_v4, 4  ;;  %v4398_v12 = vrot.slane %v4396_v38, 5  ;;  %v4242_v59 = vld [vmem:[#allocation2 + $0x60] sm:$0xf] }
 0x149   : > { %v4402_v51 = vshll.u32 %v4240_v20, 16  ;;  %v4406_v50 = vshrl.u32 %v4240_v20, 16  ;;  %v9679_v26 = vsel %vm7089_vm8, %v8402_v15, %v8404_v11  ;;  %v9680_v55 = vsel %vm7089_vm8, %v8400_v2, %v8362_v32  ;;  %v6930_v53 = vld [vmem:[#allocation2 + $0xc0] sm:$0xff]   ;;  %v6931_v15 = vld [vmem:[#allocation2 + $0xcc] sm:$0xff]  }
 0x14a   : > { %6758 = vmatmul.mubr.msk.bf16.gmra.mxu1 %vm1329_vm6, %v9674_v48  ;;  %6800 = vmatmul.mubr.msk.bf16.gmra.mxu0 %vm1329_vm6, %v6927_v3  ;;  %v8526_v3 = vpop.f32.mrf.mxu1  ;;  %v9681_v7 = vsel %vm7089_vm8, %v8420_v62, %v8381_v54  ;;  %v8553_v13 = vcombine.low %v4333_v23, %v4343_v31  ;;  %v8557_v11 = vrot.slane %v4375_v60, 4  ;;  %v4385_v32 = vor.u32 %v4384_v58, %v8517_v52 }
 0x14b   : > { %6761 = vmatprep.mubr.msk.bf16.mxu1 %vm1329_vm6, %v9676_v36  ;;  %6803 = vmatprep.mubr.msk.bf16.mxu0 %vm1329_vm6, %v6928_v1  ;;  %9677 = vst [vmem:[#allocation20_spill] sm:$0xff] %v8526_v3  ;;  %v8542_v1 = vcombine.low %v9680_v55, %v9679_v26  ;;  %v8549_v41 = vcombine.low %v9681_v7, %v4319_v42  ;;  %v5055_v2 = vrot.slane %v4240_v20, 5  ;;  %v8566_v42 = vrot.slane %v4388_v24, 5  ;;  %v8581_v20 = vld [vmem:[#allocation2 + $0x70] sm:$0xf] }
 0x14c   : > { %v8562_v54 = vcombine.low %v4357_v34, %v4367_v33  ;;  %v5058_v48 = vrot.slane %v8528_v44, 5  ;;  %v9682_v27 = vcombine.low %v8242_v49, %v8253_v9  ;;  %v8573_v4 = vpop.f32.mrf.mxu1  ;;  %v4399_v36 = vor.u32 %v4398_v12, %v4395_v22  ;;  %v4245_v34 = vld [vmem:[#allocation2 + $0x6c] sm:$0xf]  ;;  %v8587_v49 = vpop.f32.mrf.mxu0  ;;  %v4960_v9 = vld [vmem:[#allocation2 + $0x60] sm:$0xe] }
 0x14d   : > { %9683 = vst [vmem:[#allocation22_spill] sm:$0xff] %v8573_v4  ;;  %v8577_v38 = vsel %vm7466_vm14, %v6178_v16, %v5055_v2  ;;  %v8579_v23 = vrot.slane %v4402_v51, 5  ;;  %v4408_v31 = vrot.slane %v4406_v50, 4  ;;  %v9684_v60 = vcombine.low %v8247_v63, %v8262_v19  ;;  %9685 = vst [vmem:[#allocation23_spill] sm:$0xff] %v8587_v49  ;;  %v4244_v51 = vld [vmem:[#allocation2 + $0x68] sm:$0x1] }
 0x14e   : > { %v4417_v58 = vshrl.u32 %v4242_v59, 16  ;;  %v4420_v33 = vshll.u32 %v4242_v59, 16  ;;  %v4426_v24 = vshll.u32 %v8560_v0, 16  ;;  %v4430_v16 = vshrl.u32 %v8560_v0, 16  ;;  %v4961_v4 = vld [vmem:[#allocation2 + $0x6c] sm:$0xe] }
 0x14f   : > { %v8596_v12 = vrot.slane %v4385_v32, 4  ;;  %v5057_v63 = vrot.slane %v5055_v2, 4  ;;  %v5062_v19 = vrot.slane %v8560_v0, 5  ;;  %v4441_v50 = vshrl.u32 %v4245_v34, 16 }
 0x150   : > { %v4444_v26 = vshll.u32 %v4245_v34, 16  ;;  %v4450_v55 = vshll.u32 %v8581_v20, 16  ;;  %v4454_v7 = vshrl.u32 %v8581_v20, 16  ;;  %v8604_v59 = vrot.slane %v4399_v36, 4 }
 0x151   : > { %v4412_v32 = vshll.u32 %v8528_v44, 16  ;;  %v6179_v2 = vrot.slane %v4960_v9, 9  ;;  %v4419_v0 = vrot.slane %v4417_v58, 4  ;;  %v8610_v62 = vrot.slane %v4426_v24, 5 }
 0x152   : > { %6762 = vmatmul.mubr.msk.bf16.gmra.mxu1 %vm1329_vm6, %v9682_v27  ;;  %6804 = vmatmul.mubr.msk.bf16.gmra.mxu0 %vm1329_vm6, %v6929_v46  ;;  %v8602_v46 = vpop.f32.mrf.mxu1  ;;  %v4409_v27 = vor.u32 %v4408_v31, %v8579_v23  ;;  %v4432_v34 = vrot.slane %v4430_v16, 4  ;;  %v8614_v37 = vsel %vm7466_vm14, %v5057_v63, %v5058_v48  ;;  %v5064_v22 = vrot.slane %v5062_v19, 4 }
 0x153   : > { %6765 = vmatprep.mubr.msk.bf16.mxu1 %vm1329_vm6, %v9684_v60  ;;  %6807 = vmatprep.mubr.msk.bf16.mxu0 %vm1329_vm6, %v6930_v53  ;;  %9686 = vst [vmem:[#allocation24_spill] sm:$0xff] %v8602_v46  ;;  %v8608_v60 = vpop.f32.mrf.mxu0  ;;  %v4422_v53 = vrot.slane %v4420_v33, 5  ;;  %v5065_v36 = vrot.slane %v4244_v51, 5  ;;  %v4247_v46 = vld [vmem:[#allocation2 + $0x74] sm:$0x1]  ;;  %v5069_v31 = vrot.slane %v8581_v20, 5  ;;  %v9688_v33 = vcombine.low %v8266_v61, %v8278_v17 }
 0x154   : > { %9687 = vst [vmem:[#allocation25_spill] sm:$0xff] %v8608_v60  ;;  %v4443_v44 = vrot.slane %v4441_v50, 4  ;;  %v4446_v9 = vrot.slane %v4444_v26, 5  ;;  %v8617_v3 = vrot.slane %v4450_v55, 5  ;;  %v4456_v58 = vrot.slane %v4454_v7, 4  ;;  %v8623_v24 = vpop.f32.mrf.mxu1 }
 0x155   : > { %9689 = vst [vmem:[#allocation26_spill] sm:$0xff] %v8623_v24  ;;  %v4391_v48 = vsel %vm7089_vm8, %v8596_v12, %v8566_v42  ;;  %v4410_v16 = vrot.slane %v4409_v27, 4  ;;  %v4414_v20 = vrot.slane %v4412_v32, 5  ;;  %v4436_v63 = vshll.u32 %v4244_v51, 16  ;;  %v4248_v51 = vld [vmem:[#allocation2 + $0x78] sm:$0xf] }
 0x156   : > { %v9690_v50 = vcombine.low %v8273_v35, %v8287_v40  ;;  %v4405_v61 = vsel %vm7089_vm8, %v8604_v59, %v8579_v23  ;;  %v8641_v17 = vsel %vm7466_vm14, %v6179_v2, %v5062_v19  ;;  %v4423_v42 = vor.u32 %v4422_v53, %v4419_v0  ;;  %v4249_v27 = vld [vmem:[#allocation2 + $0x7c] sm:$0xf]  ;;  %v8656_v0 = vpop.f32.mrf.mxu1 }
 0x157   : > { %v4433_v12 = vor.u32 %v4432_v34, %v8610_v62  ;;  %v6180_v35 = vrot.slane %v4961_v4, 9  ;;  %v5071_v40 = vrot.slane %v5069_v31, 4  ;;  %v5072_v55 = vrot.slane %v4247_v46, 5  ;;  %9694 = vst [vmem:[#allocation29_spill] sm:$0xff] %v8656_v0  ;;  %v4250_v34 = vld [vmem:[#allocation2 + $0x80] sm:$0x1] }
 0x158   : > { %v4460_v7 = vshll.u32 %v4247_v46, 16  ;;  %v9693_v23 = vcombine.low %v8367_v57, %v8371_v5  ;;  %v8653_v19 = vsel %vm7466_vm14, %v5064_v22, %v5065_v36  ;;  %v4447_v59 = vor.u32 %v4446_v9, %v4443_v44 }
 0x159   : > { %v4457_v2 = vor.u32 %v4456_v58, %v8617_v3  ;;  %v5076_v4 = vrot.slane %v4249_v27, 5  ;;  %v4415_v46 = vsel %vm7089_vm8, %v4410_v16, %v4414_v20  ;;  %v4438_v53 = vrot.slane %v4436_v63, 5 }
 0x15a   : > { %6766 = vmatmul.mubr.msk.bf16.gmra.mxu1 %vm1329_vm6, %v9688_v33  ;;  %v8633_v26 = vpop.f32.mrf.mxu0  ;;  %6808 = vmatmul.mubr.msk.bf16.gmra.mxu0 %vm1329_vm6, %v6931_v15  ;;  %v4962_v15 = vld [vmem:[#allocation2 + $0x78] sm:$0xe]  ;;  %v4465_v33 = vshrl.u32 %v4248_v51, 16  ;;  %v4468_v57 = vshll.u32 %v4248_v51, 16  ;;  %v4474_v22 = vshll.u32 %v4249_v27, 16  ;;  %v4478_v36 = vshrl.u32 %v4249_v27, 16 }
 0x15b   : > { %6769 = vmatprep.mubr.msk.bf16.mxu1 %vm1329_vm6, %v9690_v50  ;;  %9691 = vst [vmem:[#allocation27_spill] sm:$0xff] %v8633_v26  ;;  %6847 = vmatprep.mubr.msk.bf16.mxu0 %vm1329_vm6, %v9693_v23  ;;  %v4424_v50 = vrot.slane %v4423_v42, 4  ;;  %v4434_v23 = vrot.slane %v4433_v12, 4  ;;  %v8664_v44 = vsel %vm7466_vm14, %v6180_v35, %v5069_v31  ;;  %v8668_v9 = vsel %vm7466_vm14, %v5071_v40, %v5072_v55  ;;  %v8676_v12 = vpop.f32.mrf.mxu1  ;;  %v9700_v27 = vld [vmem:[#allocation4_spill] sm:$0xff] }
 0x15c   : > { %v8645_v32 = vpop.f32.mrf.mxu0  ;;  %v4462_v58 = vrot.slane %v4460_v7, 5  ;;  %v6181_v16 = vrot.slane %v4962_v15, 9  ;;  %v4448_v63 = vrot.slane %v4447_v59, 4  ;;  %v4458_v51 = vrot.slane %v4457_v2, 4  ;;  %9698 = vst [vmem:[#allocation32_spill] sm:$0xff] %v8676_v12  ;;  %v9702_v15 = vld [vmem:[#allocation12_spill] sm:$0xff] }
 0x15d   : > { %9692 = vst [vmem:[#allocation28_spill] sm:$0xff] %v8645_v32  ;;  %v5078_v0 = vrot.slane %v5076_v4, 4  ;;  %v5079_v24 = vrot.slane %v4250_v34, 5  ;;  %v9697_v42 = vcombine.low %v8295_v45, %v8307_v10  ;;  %v9699_v31 = vsel %vm7089_vm8, %v8557_v11, %v8517_v52  ;;  %v4251_v2 = vld [vmem:[#allocation2 + $0x84] sm:$0xf] }
 0x15e   : > { %v8660_v5 = vpop.f32.mrf.mxu0  ;;  %v8683_v35 = vcombine.low %v9699_v31, %v4391_v48  ;;  %v4467_v55 = vrot.slane %v4465_v33, 4  ;;  %v4470_v7 = vrot.slane %v4468_v57, 5  ;;  %v9701_v59 = vcombine.low %v8299_v28, %v9700_v27  ;;  %v9703_v33 = vld [vmem:[#allocation14_spill] sm:$0xff]  ;;  %v4252_v31 = vld [vmem:[#allocation2 + $0x88] sm:$0xf]  ;;  %v8729_v27 = vpop.f32.mrf.mxu1 }
 0x15f   : > { %9695 = vst [vmem:[#allocation30_spill] sm:$0xff] %v8660_v5  ;;  %v4429_v10 = vsel %vm7089_vm8, %v4424_v50, %v8610_v62  ;;  %v4439_v52 = vsel %vm7089_vm8, %v4434_v23, %v4438_v53  ;;  %v8698_v11 = vrot.slane %v4474_v22, 5  ;;  %v4480_v48 = vrot.slane %v4478_v36, 4  ;;  %v4963_v36 = vld [vmem:[#allocation2 + $0x84] sm:$0xe]  ;;  %9706 = vst [vmem:[#allocation4_spill] sm:$0xff] %v8729_v27 }
 0x160   : > { %v8670_v20 = vpop.f32.mrf.mxu0  ;;  %v9704_v57 = vcombine.low %v9702_v15, %v9703_v33  ;;  %v8704_v28 = vcombine.low %v4405_v61, %v4415_v46  ;;  %v4484_v50 = vshll.u32 %v4250_v34, 16  ;;  %v9705_v23 = vcombine.low %v8468_v43, %v8488_v29 }
 0x161   : > { %9696 = vst [vmem:[#allocation31_spill] sm:$0xff] %v8670_v20  ;;  %v4453_v61 = vsel %vm7089_vm8, %v4448_v63, %v8617_v3  ;;  %v4463_v46 = vsel %vm7089_vm8, %v4458_v51, %v4462_v58  ;;  %v8723_v22 = vsel %vm7466_vm14, %v6181_v16, %v5076_v4  ;;  %v8727_v34 = vsel %vm7466_vm14, %v5078_v0, %v5079_v24  ;;  %v8733_v3 = vld [vmem:[#allocation2 + $0x94] sm:$0xf]  ;;  %v4254_v63 = vld [vmem:[#allocation2 + $0x90] sm:$0xf] }
 0x162   : > { %6770 = vmatmul.mubr.msk.bf16.gmra.mxu1 %vm1329_vm6, %v9697_v42  ;;  %v8691_v45 = vpop.f32.mrf.mxu0  ;;  %6848 = vmatmul.mubr.msk.bf16.vlgmr.msra.gmra.mxu0 %vm1329_vm6, %v9704_v57  ;;  %v8731_v43 = vcombine.low %v4429_v10, %v4439_v52  ;;  %v4471_v29 = vor.u32 %v4470_v7, %v4467_v55  ;;  %v4492_v15 = vshll.u32 %v4251_v2, 16  ;;  %v4481_v4 = vor.u32 %v4480_v48, %v8698_v11  ;;  %v8738_v16 = vld [vmem:[#allocation2 + $0x8c] sm:$0x1]  ;;  %v8746_v52 = vld [vmem:[#allocation2 + $0xa0] sm:$0xf] }
 0x163   : > { %6773 = vmatprep.mubr.msk.bf16.mxu1 %vm1329_vm6, %v9701_v59  ;;  %6851 = vmatprep.mubr.msk.bf16.mxu0 %vm1329_vm6, %v9705_v23  ;;  %v4489_v59 = vshrl.u32 %v4251_v2, 16  ;;  %v5083_v51 = vrot.slane %v4252_v31, 5  ;;  %v4498_v24 = vshll.u32 %v4252_v31, 16  ;;  %v4502_v0 = vshrl.u32 %v4252_v31, 16  ;;  %v4257_v42 = vld [vmem:[#allocation2 + $0x9c] sm:$0xf] }
 0x164   : > { %v8710_v53 = vpop.f32.mrf.mxu0  ;;  %v8740_v33 = vcombine.low %v4453_v61, %v4463_v46  ;;  %v8744_v55 = vrot.slane %v4484_v50, 5  ;;  %v6182_v7 = vrot.slane %v4963_v36, 9  ;;  %v4513_v57 = vshrl.u32 %v4254_v63, 16  ;;  %v9709_v61 = vld [vmem:[#allocation3_spill] sm:$0xff] }
 0x165   : > { %v4516_v23 = vshll.u32 %v4254_v63, 16  ;;  %v4522_v48 = vshll.u32 %v8733_v3, 16  ;;  %v4526_v62 = vshrl.u32 %v8733_v3, 16  ;;  %v9710_v46 = vld [vmem:[#allocation7_spill] sm:$0xff]  ;;  %v8758_v50 = vrot.slane %v4471_v29, 4 }
 0x166   : > { %v8735_v58 = vpop.f32.mrf.mxu0  ;;  %9707 = vst [vmem:[#allocation12_spill] sm:$0xff] %v8740_v33  ;;  %v9711_v40 = vcombine.low %v9709_v61, %v9710_v46  ;;  %v5086_v36 = vrot.slane %v8738_v16, 5  ;;  %v4491_v10 = vrot.slane %v4489_v59, 4  ;;  %v4494_v27 = vrot.slane %v4492_v15, 5  ;;  %v8775_v29 = vld [vmem:[#allocation2 + $0x98] sm:$0x1] }
 0x167   : > { %v8765_v12 = vrot.slane %v4481_v4, 4  ;;  %v5085_v18 = vrot.slane %v5083_v51, 4  ;;  %v4504_v20 = vrot.slane %v4502_v0, 4  ;;  %v4537_v59 = vshrl.u32 %v4257_v42, 16  ;;  %v8824_v33 = vld [vmem:[#allocation2 + $0xac] sm:$0xf] }
 0x168   : > { %v8748_v2 = vpop.f32.mrf.mxu0  ;;  %v4540_v15 = vshll.u32 %v4257_v42, 16  ;;  %v4550_v4 = vshrl.u32 %v8746_v52, 16  ;;  %v4515_v0 = vrot.slane %v4513_v57, 4  ;;  %v8795_v5 = vsel %vm7466_vm14, %v6182_v7, %v5083_v51  ;;  %v4259_v51 = vld [vmem:[#allocation2 + $0xa4] sm:$0x1] }
 0x169   : > { %v4495_v32 = vor.u32 %v4494_v27, %v4491_v10  ;;  %v8802_v57 = vsel %vm7466_vm14, %v5085_v18, %v5086_v36  ;;  %v4539_v7 = vrot.slane %v4537_v59, 4  ;;  %v4487_v18 = vsel %vm7089_vm8, %v8765_v12, %v8744_v55  ;;  %v4965_v36 = vld [vmem:[#allocation2 + $0x9c] sm:$0xe] }
 0x16a   : > { %v8752_v31 = vpop.f32.mrf.mxu1  ;;  %6774 = vmatmul.mubr.msk.bf16.gmra.mxu1 %vm1329_vm6, %v9711_v40  ;;  %v8763_v63 = vpop.f32.mrf.mxu0  ;;  %v9713_v40 = vcombine.low %v8492_v14, %v8507_v21  ;;  %v8785_v14 = vrot.slane %v4522_v48, 5  ;;  %v4528_v21 = vrot.slane %v4526_v62, 4  ;;  %v5090_v48 = vrot.slane %v8733_v3, 5 }
 0x16b   : > { %9708 = vst [vmem:[#allocation14_spill] sm:$0xff] %v8752_v31  ;;  %6813 = vmatprep.mubr.msk.bf16.mxu1 %vm1329_vm6, %v8542_v1  ;;  %v8767_v31 = vrot.slane %v4498_v24, 5  ;;  %v4546_v1 = vshll.u32 %v8746_v52, 16  ;;  %v9714_v24 = vcombine.low %v8511_v8, %v8524_v56  ;;  %v4508_v8 = vshll.u32 %v8738_v16, 16 }
 0x16c   : > { %v8769_v61 = vpop.f32.mrf.mxu1  ;;  %6852 = vmatmul.mubr.msk.bf16.gmra.mxu0 %vm1329_vm6, %v9713_v40  ;;  %v8779_v46 = vpop.f32.mrf.mxu0  ;;  %v4542_v27 = vrot.slane %v4540_v15, 5  ;;  %v4552_v16 = vrot.slane %v4550_v4, 4  ;;  %v4529_v3 = vor.u32 %v4528_v21, %v8785_v14  ;;  %v5097_v26 = vrot.slane %v8746_v52, 5  ;;  %v4260_v52 = vld [vmem:[#allocation2 + $0xa8] sm:$0xf] }
 0x16d   : > { %9712 = vst [vmem:[#allocation3_spill] sm:$0xff] %v8769_v61  ;;  %6855 = vmatprep.mubr.msk.bf16.mxu0 %vm1329_vm6, %v9714_v24  ;;  %v4518_v61 = vrot.slane %v4516_v23, 5  ;;  %v4505_v62 = vor.u32 %v4504_v20, %v8767_v31  ;;  %v4964_v23 = vld [vmem:[#allocation2 + $0x90] sm:$0xe]  ;;  %v4532_v24 = vshll.u32 %v8775_v29, 16  ;;  %v8809_v10 = vrot.slane %v4546_v1, 5 }
 0x16e   : > { %v8787_v40 = vpop.f32.mrf.mxu1  ;;  %v8798_v56 = vpop.f32.mrf.mxu0  ;;  %v4496_v59 = vrot.slane %v4495_v32, 4  ;;  %v4510_v15 = vrot.slane %v4508_v8, 5  ;;  %v6183_v1 = vrot.slane %v4964_v23, 9  ;;  %v5093_v4 = vrot.slane %v8775_v29, 5  ;;  %v4966_v23 = vld [vmem:[#allocation2 + $0xa8] sm:$0xe] }
 0x16f   : > { %9715 = vst [vmem:[#allocation7_spill] sm:$0xff] %v8787_v40  ;;  %v4519_v20 = vor.u32 %v4518_v61, %v4515_v0  ;;  %v4506_v12 = vrot.slane %v4505_v62, 4  ;;  %v5092_v55 = vrot.slane %v5090_v48, 4  ;;  %v4534_v61 = vrot.slane %v4532_v24, 5 }
 0x170   : > { %v8807_v42 = vpop.f32.mrf.mxu1  ;;  %v8811_v40 = vpop.f32.mrf.mxu0  ;;  %v4556_v0 = vshll.u32 %v4259_v51, 16  ;;  %v6184_v32 = vrot.slane %v4965_v36, 9  ;;  %v4543_v29 = vor.u32 %v4542_v27, %v4539_v7  ;;  %v4553_v8 = vor.u32 %v4552_v16, %v8809_v10 }
 0x171   : > { %9716 = vst [vmem:[#allocation33_spill] sm:$0xff] %v8807_v42  ;;  %9717 = vst [vmem:[#allocation34_spill] sm:$0xff] %v8811_v40  ;;  %v9720_v62 = vcombine.low %v8641_v17, %v8653_v19  ;;  %v4520_v24 = vrot.slane %v4519_v20, 4  ;;  %v4530_v49 = vrot.slane %v4529_v3, 4  ;;  %v5100_v40 = vrot.slane %v4259_v51, 5 }
 0x172   : > { %v8819_v42 = vpop.f32.mrf.mxu1  ;;  %6814 = vmatmul.mubr.msk.bf16.vlgmr.msra.gmra.mxu1 %vm1329_vm6, %v8549_v41  ;;  %v8828_v60 = vpop.f32.mrf.mxu0  ;;  %v9719_v41 = vcombine.low %v8577_v38, %v8614_v37  ;;  %v4501_v7 = vsel %vm7089_vm8, %v4496_v59, %v8767_v31  ;;  %v8849_v27 = vsel %vm7466_vm14, %v6183_v1, %v5090_v48  ;;  %v4561_v17 = vshrl.u32 %v4260_v52, 16 }
 0x173   : > { %6817 = vmatprep.mubr.msk.bf16.mxu1 %vm1329_vm6, %v8553_v13  ;;  %9718 = vst [vmem:[#allocation35_spill] sm:$0xff] %v8828_v60  ;;  %v5104_v13 = vrot.slane %v8824_v33, 5  ;;  %v5099_v60 = vrot.slane %v5097_v26, 4  ;;  %v4564_v19 = vshll.u32 %v4260_v52, 16  ;;  %v4511_v16 = vsel %vm7089_vm8, %v4506_v12, %v4510_v15 }
 0x174   : > { %v1707_v21 = vpop.f32.mrf.mxu1  ;;  %6856 = vmatmul.mubr.msk.bf16.gmra.mxu0 %vm1329_vm6, %v9719_v41  ;;  %v8842_v38 = vpop.f32.mrf.mxu0  ;;  %v8855_v51 = vsel %vm7466_vm14, %v5092_v55, %v5093_v4  ;;  %v4558_v20 = vrot.slane %v4556_v0, 5  ;;  %v6185_v3 = vrot.slane %v4966_v23, 9  ;;  %v4554_v31 = vrot.slane %v4553_v8, 4 }
 0x175   : > { %6859 = vmatprep.mubr.msk.bf16.mxu0 %vm1329_vm6, %v9720_v62  ;;  %v4544_v62 = vrot.slane %v4543_v29, 4  ;;  %v5106_v59 = vrot.slane %v5104_v13, 4  ;;  %v5107_v48 = vrot.slane %v8840_v39, 5  ;;  %v4525_v1 = vsel %vm7089_vm8, %v4520_v24, %v8785_v14  ;;  %v9725_v24 = vld [vmem:[#allocation10_spill] sm:$0xff] }
 0x176   : > { %v6612_v37 = vpop.f32.mrf.mxu1  ;;  %v8857_v41 = vpop.f32.mrf.mxu0  ;;  %v4535_v15 = vsel %vm7089_vm8, %v4530_v49, %v4534_v61  ;;  %v8867_v4 = vsel %vm7466_vm14, %v6184_v32, %v5097_v26  ;;  %v8871_v12 = vsel %vm7466_vm14, %v5099_v60, %v5100_v40  ;;  %v4563_v52 = vrot.slane %v4561_v17, 4 }
 0x177   : > { %v4566_v29 = vrot.slane %v4564_v19, 5  ;;  %v4570_v14 = vshll.u32 %v8824_v33, 16  ;;  %v4574_v49 = vshrl.u32 %v8824_v33, 16  ;;  %v9721_v60 = vsel %vm7089_vm8, %v8758_v50, %v8698_v11 }
 0x178   : > { %v1710_v36 = vpop.f32.mrf.mxu1  ;;  %v8875_v0 = vpop.f32.mrf.mxu0  ;;  %v8886_v26 = vcombine.low %v9721_v60, %v4487_v18  ;;  %v8890_v40 = vcombine.low %v4501_v7, %v4511_v16  ;;  %v6201_v61 = vcombine.low %v8849_v27, %v8855_v51  ;;  %v4549_v11 = vsel %vm7089_vm8, %v4544_v62, %v8809_v10  ;;  %v9723_v18 = vld [vmem:[#allocation6_spill] sm:$0xff]  ;;  %v9727_v51 = vld [vmem:[#allocation11_spill] sm:$0xff] }
 0x179   : > { %v8907_v50 = vsel %vm7466_vm14, %v6185_v3, %v5104_v13  ;;  %v8919_v10 = vcombine.low %v4525_v1, %v4535_v15  ;;  %v6202_v8 = vcombine.low %v8867_v4, %v8871_v12  ;;  %v4580_v23 = vshll.u32 %v8840_v39, 16  ;;  %v4967_v13 = vld [vmem:[#allocation2 + $0xb4] sm:$0xe]  ;;  %v8935_v39 = vld [vmem:[#allocation2 + $0xbc] sm:$0x1]  ;;  %v9730_v1 = vld [vmem:[#allocation17_spill] sm:$0xff] }
 0x17a   : > { %v6615_v55 = vpop.f32.mrf.mxu1  ;;  %6818 = vmatmul.mubr.msk.bf16.gmra.mxu1 %vm1329_vm6, %v8562_v54  ;;  %v6200_v54 = vcombine.low %v8795_v5, %v8802_v57  ;;  %v8894_v33 = vpop.f32.mrf.mxu0  ;;  %v4559_v5 = vsel %vm7089_vm8, %v4554_v31, %v4558_v20  ;;  %v8911_v57 = vsel %vm7466_vm14, %v5106_v59, %v5107_v48  ;;  %v1708_v7 = vadd.f32 %v1707_v21, %v9725_v24  ;;  %v9728_v31 = vld [vmem:[#allocation9_spill] sm:$0xff]  ;;  %v9729_v59 = vld [vmem:[#allocation15_spill] sm:$0xff] }
 0x17b   : > { %6821 = vmatprep.mubr.msk.bf16.mxu1 %vm1329_vm6, %v8683_v35  ;;  %v9722_v35 = vcombine.low %v8664_v44, %v8668_v9  ;;  %v1716_v44 = vadd.f32 %v8819_v42, %v9723_v18  ;;  %v9724_v9 = vcombine.low %v8723_v22, %v8727_v34  ;;  %v4567_v19 = vor.u32 %v4566_v29, %v4563_v52  ;;  %v9726_v22 = vld [vmem:[#allocation8_spill] sm:$0xff]  ;;  %v4969_v4 = vld [vmem:[#allocation2 + $0xcc] sm:$0xe] }
 0x17c   : > { %v1723_v32 = vpop.f32.mrf.mxu1  ;;  %v8925_v17 = vpop.f32.mrf.mxu0  ;;  %v8927_v42 = vrot.slane %v4570_v14, 5  ;;  %v4576_v16 = vrot.slane %v4574_v49, 4  ;;  %v1719_v34 = vadd.f32 %v6612_v37, %v9726_v22  ;;  %v1711_v20 = vadd.f32 %v1710_v36, %v9727_v51  ;;  %v8942_v14 = vld [vmem:[#allocation2 + $0xb8] sm:$0xf]  ;;  %v4263_v36 = vld [vmem:[#allocation2 + $0xb4] sm:$0xf] }
 0x17d   : > { %6860 = vmatmul.mubr.msk.bf16.gmra.mxu0 %vm1329_vm6, %v9722_v35  ;;  %v8931_v3 = vcombine.low %v4549_v11, %v4559_v5  ;;  %v6203_v62 = vcombine.low %v8907_v50, %v8911_v57  ;;  %v1732_v21 = vadd.f32 %v6615_v55, %v9728_v31  ;;  %v1724_v48 = vadd.f32 %v1723_v32, %v9729_v59  ;;  %v9732_v22 = vld [vmem:[#allocation34_spill] sm:$0xff]  ;;  %v9733_v51 = vld [vmem:[#allocation35_spill] sm:$0xff]  ;;  %v9005_v59 = vld [vmem:[#allocation2 + $0xc8] sm:$0x1] }
 0x17e   : > { %6863 = vmatprep.mubr.msk.bf16.mxu0 %vm1329_vm6, %v9724_v9  ;;  %v6616_v27 = vpop.f32.mrf.mxu1  ;;  %v8940_v29 = vpop.f32.mrf.mxu0  ;;  %v6186_v37 = vrot.slane %v4967_v13, 9  ;;  %v8945_v60 = vrot.slane %v4580_v23, 5  ;;  %v5111_v35 = vrot.slane %v8942_v14, 5  ;;  %v8949_v11 = vadd.f32 %v8691_v45, %v1716_v44  ;;  %v9064_v57 = vld [vmem:[#allocation2 + $0xd4] sm:$0x1] }
 0x17f   : > { %v1735_v15 = vadd.f32 %v6616_v27, %v9730_v1  ;;  %v8955_v5 = vrot.slane %v4567_v19, 4  ;;  %v4577_v18 = vor.u32 %v4576_v16, %v8927_v42  ;;  %v5114_v9 = vrot.slane %v8935_v39, 5  ;;  %v4266_v16 = vld [vmem:[#allocation2 + $0xc0] sm:$0xf] }
 0x180   : > { %v1726_v52 = vpop.f32.mrf.mxu1  ;;  %v8953_v32 = vpop.f32.mrf.mxu0  ;;  %v4585_v45 = vshrl.u32 %v4263_v36, 16  ;;  %v8966_v44 = vadd.f32 %v8735_v58, %v1719_v34  ;;  %v8984_v58 = vadd.f32 %v8779_v46, %v1724_v48  ;;  %v5113_v31 = vrot.slane %v5111_v35, 4  ;;  %v9734_v48 = vld [vmem:[#allocation23_spill] sm:$0xff] }
 0x181   : > { %v1727_v49 = vadd.f32 %v1726_v52, %v8478_v30  ;;  %v8960_v30 = vadd.f32 %v8710_v53, %v1708_v7  ;;  %v8976_v53 = vsel %vm7466_vm14, %v6186_v37, %v5111_v35  ;;  %v9731_v7 = vld [vmem:[#allocation21_spill] sm:$0xff]  ;;  %v4609_v35 = vshrl.u32 %v4266_v16, 16 }
 0x182   : > { %v6619_v55 = vpop.f32.mrf.mxu1  ;;  %6822 = vmatmul.mubr.msk.bf16.gmra.mxu1 %vm1329_vm6, %v8704_v28  ;;  %v8969_v28 = vadd.f32 %v8748_v2, %v1711_v20  ;;  %v8971_v24 = vpop.f32.mrf.mxu0  ;;  %v8987_v2 = vadd.f32 %v8798_v56, %v1735_v15  ;;  %v4573_v56 = vsel %vm7089_vm8, %v8955_v5, %v8927_v42  ;;  %v4578_v15 = vrot.slane %v4577_v18, 4  ;;  %v9735_v5 = vld [vmem:[#allocation25_spill] sm:$0xff] }
 0x183   : > { %v1748_v23 = vadd.f32 %v6619_v55, %v8498_v47  ;;  %6825 = vmatprep.mubr.msk.bf16.mxu1 %vm1329_vm6, %v8731_v43  ;;  %v8978_v47 = vld [vmem:[#allocation2 + $0xc4] sm:$0xf]  ;;  %v8981_v43 = vadd.f32 %v8763_v63, %v1732_v21  ;;  %v8993_v34 = vadd.f32 %v9732_v22, %v1727_v49  ;;  %v4594_v21 = vshll.u32 %v8942_v14, 16 }
 0x184   : > { %v1739_v13 = vpop.f32.mrf.mxu1  ;;  %v5118_v19 = vrot.slane %v8978_v47, 5  ;;  %v8998_v46 = vpop.f32.mrf.mxu0  ;;  %v9008_v52 = vrot.slane %v4585_v45, 4  ;;  %v5121_v22 = vrot.slane %v9005_v59, 5 }
 0x185   : > { %6864 = vmatmul.mubr.msk.bf16.gmra.mxu0 %vm1329_vm6, %v6200_v54  ;;  %v1740_v27 = vadd.f32 %v1739_v13, %v9731_v7  ;;  %v4968_v54 = vld [vmem:[#allocation2 + $0xc0] sm:$0xe]  ;;  %v8996_v63 = vadd.f32 %v9733_v51, %v1748_v23  ;;  %v4598_v23 = vshrl.u32 %v8942_v14, 16  ;;  %v5115_v14 = vsel %vm7466_vm14, %v5113_v31, %v5114_v9 }
 0x186   : > { %6867 = vmatprep.mubr.msk.bf16.mxu0 %vm1329_vm6, %v6201_v61  ;;  %v6620_v20 = vpop.f32.mrf.mxu1  ;;  %v4588_v61 = vshll.u32 %v4263_v36, 16  ;;  %v9013_v55 = vpop.f32.mrf.mxu0  ;;  %v6187_v42 = vrot.slane %v4968_v54, 9  ;;  %v4612_v36 = vshll.u32 %v4266_v16, 16  ;;  %v5120_v7 = vrot.slane %v5118_v19, 4  ;;  %v9736_v51 = vld [vmem:[#allocation12_spill] sm:$0xff] }
 0x187   : > { %v1751_v1 = vadd.f32 %v6620_v20, %v9734_v48  ;;  %v9011_v37 = vadd.f32 %v8842_v38, %v1740_v27  ;;  %v4618_v54 = vshll.u32 %v8978_v47, 16  ;;  %v4622_v16 = vshrl.u32 %v8978_v47, 16  ;;  %v9737_v20 = vld [vmem:[#allocation27_spill] sm:$0xff] }
 0x188   : > { %v1742_v49 = vpop.f32.mrf.mxu1  ;;  %v9023_v38 = vpop.f32.mrf.mxu0  ;;  %v4590_v27 = vrot.slane %v4588_v61, 5  ;;  %v4600_v47 = vrot.slane %v4598_v23, 4  ;;  %v4611_v61 = vrot.slane %v4609_v35, 4  ;;  %v4604_v35 = vshll.u32 %v8935_v39, 16 }
 0x189   : > { %v1743_v13 = vadd.f32 %v1742_v49, %v9735_v5  ;;  %v9019_v18 = vadd.f32 %v8857_v41, %v1751_v1  ;;  %v4583_v41 = vsel %vm7089_vm8, %v4578_v15, %v8945_v60  ;;  %v9035_v1 = vrot.slane %v4594_v21, 5  ;;  %v4270_v60 = vld [vmem:[#allocation2 + $0xd0] sm:$0xf]  ;;  %v9738_v21 = vld [vmem:[#allocation28_spill] sm:$0xff] }
 0x18a   : > { %v6623_v45 = vpop.f32.mrf.mxu1  ;;  %6826 = vmatmul.mubr.msk.bf16.gmra.mxu1 %vm1329_vm6, %v9736_v51  ;;  %v9040_v31 = vpop.f32.mrf.mxu0  ;;  %v4614_v5 = vrot.slane %v4612_v36, 5  ;;  %v5125_v12 = vrot.slane %v4270_v60, 5  ;;  %v9062_v36 = vrot.slane %v4618_v54, 5  ;;  %v4624_v50 = vrot.slane %v4622_v16, 4  ;;  %v9740_v16 = vld [vmem:[#allocation31_spill] sm:$0xff] }
 0x18b   : > { %v1764_v48 = vadd.f32 %v6623_v45, %v9737_v20  ;;  %6829 = vmatprep.mubr.msk.bf16.mxu1 %vm1329_vm6, %v8886_v26  ;;  %v9038_v49 = vadd.f32 %v8875_v0, %v1743_v13  ;;  %v5119_v26 = vsel %vm7466_vm14, %v6187_v42, %v5118_v19  ;;  %v5122_v0 = vsel %vm7466_vm14, %v5120_v7, %v5121_v22  ;;  %v4269_v45 = vld [vmem:[#allocation2 + $0xcc] sm:$0xf] }
 0x18c   : > { %v1755_v9 = vpop.f32.mrf.mxu1  ;;  %v9058_v19 = vpop.f32.mrf.mxu0  ;;  %v6204_v42 = vcombine.low %v8976_v53, %v5115_v14  ;;  %v6152_v7 = vcombine.low %v4573_v56, %v4583_v41  ;;  %v4591_v22 = vor.u32 %v4590_v27, %v9008_v52  ;;  %v4601_v53 = vor.u32 %v4600_v47, %v9035_v1 }
 0x18d   : > { %6868 = vmatmul.mubr.msk.bf16.gmra.mxu0 %vm1329_vm6, %v6202_v8  ;;  %v1756_v15 = vadd.f32 %v1755_v9, %v9738_v21  ;;  %v9056_v8 = vadd.f32 %v8894_v33, %v1764_v48  ;;  %v6205_v39 = vcombine.low %v5119_v26, %v5122_v0  ;;  %v4615_v14 = vor.u32 %v4614_v5, %v4611_v61  ;;  %v9741_v61 = vld [vmem:[#allocation5_spill] sm:$0xff] }
 0x18e   : > { %6871 = vmatprep.mubr.msk.bf16.mxu0 %vm1329_vm6, %v6203_v62  ;;  %v6624_v23 = vpop.f32.mrf.mxu1  ;;  %v9739_v62 = vld [vmem:[#allocation30_spill] sm:$0xff]  ;;  %v9071_v20 = vpop.f32.mrf.mxu0  ;;  %v6188_v54 = vrot.slane %v4969_v4, 9  ;;  %v5127_v9 = vrot.slane %v5125_v12, 4  ;;  %v5128_v21 = vrot.slane %v9064_v57, 5  ;;  %v4625_v27 = vor.u32 %v4624_v50, %v9062_v36 }
 0x18f   : > { %v1767_v13 = vadd.f32 %v6624_v23, %v9739_v62  ;;  %v9069_v33 = vadd.f32 %v8925_v17, %v1756_v15  ;;  %v4628_v41 = vshll.u32 %v9005_v59, 16  ;;  %v4633_v47 = vshrl.u32 %v4269_v45, 16 }
 0x190   : > { %v1758_v51 = vpop.f32.mrf.mxu1  ;;  %v9081_v17 = vpop.f32.mrf.mxu0  ;;  %v4636_v26 = vshll.u32 %v4269_v45, 16  ;;  %v4642_v15 = vshll.u32 %v4270_v60, 16  ;;  %v4592_v23 = vrot.slane %v4591_v22, 4  ;;  %v4602_v50 = vrot.slane %v4601_v53, 4 }
 0x191   : > { %v1759_v48 = vadd.f32 %v1758_v51, %v9740_v16  ;;  %v9077_v56 = vadd.f32 %v8940_v29, %v1767_v13  ;;  %v4646_v29 = vshrl.u32 %v4270_v60, 16  ;;  %v4606_v59 = vrot.slane %v4604_v35, 5  ;;  %v9742_v13 = vld [vmem:[#allocation13_spill] sm:$0xff] }
 0x192   : > { %v6627_v52 = vpop.f32.mrf.mxu1  ;;  %6830 = vmatmul.mubr.msk.bf16.gmra.mxu1 %vm1329_vm6, %v8890_v40  ;;  %v9091_v40 = vpop.f32.mrf.mxu0  ;;  %v4616_v62 = vrot.slane %v4615_v14, 4  ;;  %v4630_v22 = vrot.slane %v4628_v41, 5  ;;  %v4635_v53 = vrot.slane %v4633_v47, 4  ;;  %v4638_v35 = vrot.slane %v4636_v26, 5  ;;  %v9743_v14 = vld [vmem:[#allocation16_spill] sm:$0xff] }
 0x193   : > { %v1780_v5 = vadd.f32 %v6627_v52, %v9741_v61  ;;  %6833 = vmatprep.mubr.msk.bf16.mxu1 %vm1329_vm6, %v8919_v10  ;;  %v9089_v0 = vadd.f32 %v8953_v32, %v1759_v48  ;;  %v5126_v10 = vsel %vm7466_vm14, %v6188_v54, %v5125_v12  ;;  %v5129_v32 = vsel %vm7466_vm14, %v5127_v9, %v5128_v21  ;;  %v9744_v9 = vld [vmem:[#allocation18_spill] sm:$0xff] }
 0x194   : > { %v1771_v4 = vpop.f32.mrf.mxu1  ;;  %v2232_v16 = vpop.f32.mrf.mxu0  ;;  %v4644_v52 = vrot.slane %v4642_v15, 5  ;;  %v4648_v61 = vrot.slane %v4646_v29, 4  ;;  %v6206_v6 = vcombine.low %v5126_v10, %v5129_v32  ;;  %v4621_v26 = vsel %vm7089_vm8, %v4616_v62, %v9062_v36  ;;  %v9745_v15 = vld [vmem:[#allocation19_spill] sm:$0xff] }
 0x195   : > { %6872 = vmatmul.mubr.msk.bf16.gmra.mxu0 %vm1329_vm6, %v6204_v42  ;;  %v1772_v45 = vadd.f32 %v1771_v4, %v9742_v13  ;;  %v9101_v60 = vadd.f32 %v8971_v24, %v1780_v5  ;;  %v4626_v42 = vrot.slane %v4625_v27, 4  ;;  %v4597_v24 = vsel %vm7089_vm8, %v4592_v23, %v9035_v1 }
 0x196   : > { %6875 = vmatprep.mubr.msk.bf16.mxu0 %vm1329_vm6, %v6205_v39  ;;  %v6628_v51 = vpop.f32.mrf.mxu1  ;;  %v6670_v54 = vpop.f32.mrf.mxu0  ;;  %v4652_v1 = vshll.u32 %v9064_v57, 16  ;;  %v4639_v29 = vor.u32 %v4638_v35, %v4635_v53  ;;  %v4649_v4 = vor.u32 %v4648_v61, %v4644_v52 }
 0x197   : > { %v1783_v48 = vadd.f32 %v6628_v51, %v9743_v14  ;;  %v9105_v39 = vadd.f32 %v8998_v46, %v1772_v45  ;;  %v4607_v46 = vsel %vm7089_vm8, %v4602_v50, %v4606_v59  ;;  %v4631_v5 = vsel %vm7089_vm8, %v4626_v42, %v4630_v22  ;;  %v9746_v59 = vld [vmem:[#allocation20_spill] sm:$0xff] }
 0x198   : > { %v1774_v12 = vpop.f32.mrf.mxu1  ;;  %v2235_v47 = vpop.f32.mrf.mxu0  ;;  %v6153_v57 = vcombine.low %v4597_v24, %v4607_v46  ;;  %v6154_v45 = vcombine.low %v4621_v26, %v4631_v5  ;;  %v4654_v10 = vrot.slane %v4652_v1, 5  ;;  %v4640_v42 = vrot.slane %v4639_v29, 4  ;;  %v9748_v14 = vld [vmem:[#allocation24_spill] sm:$0xff]  ;;  %v9750_v46 = vld [vmem:[#allocation29_spill] sm:$0xff] }
 0x199   : > { %v1775_v21 = vadd.f32 %v1774_v12, %v9744_v9  ;;  %v9112_v27 = vadd.f32 %v9013_v55, %v1783_v48  ;;  %v4650_v22 = vrot.slane %v4649_v4, 4  ;;  %v9751_v29 = vld [vmem:[#allocation32_spill] sm:$0xff] }
 0x19a   : > { %v6631_v41 = vpop.f32.mrf.mxu1  ;;  %6834 = vmatmul.mubr.msk.bf16.gmra.mxu1 %vm1329_vm6, %v8931_v3  ;;  %v6673_v50 = vpop.f32.mrf.mxu0 }
 0x19b   : > { %v1796_v55 = vadd.f32 %v6631_v41, %v9745_v15  ;;  %6837 = vmatprep.mubr.msk.bf16.mxu1 %vm1329_vm6, %v6152_v7  ;;  %v9127_v3 = vadd.f32 %v9023_v38, %v1775_v21  ;;  %v9747_v7 = vld [vmem:[#allocation22_spill] sm:$0xff]  ;;  %v4645_v21 = vsel %vm7089_vm8, %v4640_v42, %v4644_v52  ;;  %v9754_v42 = vld [vmem:[#allocation3_spill] sm:$0xff] }
 0x19c   : > { %v1787_v23 = vpop.f32.mrf.mxu1  ;;  %v2248_v32 = vpop.f32.mrf.mxu0 }
 0x19d   : > { %6876 = vmatmul.mubr.msk.bf16.gmra.mxu0 %vm1329_vm6, %v6206_v6  ;;  %v1788_v36 = vadd.f32 %v1787_v23, %v9746_v59  ;;  %v9132_v62 = vadd.f32 %v9040_v31, %v1796_v55  ;;  %v9749_v6 = vld [vmem:[#allocation26_spill] sm:$0xff]  ;;  %v9752_v59 = vld [vmem:[#allocation4_spill] sm:$0xff] }
 0x19e   : > { %v6632_v13 = vpop.f32.mrf.mxu1  ;;  %v6674_v35 = vpop.f32.mrf.mxu0 }
 0x19f   : > { %v1799_v51 = vadd.f32 %v6632_v13, %v9747_v7  ;;  %v9136_v38 = vadd.f32 %v9058_v19, %v1788_v36  ;;  %v4655_v19 = vsel %vm7089_vm8, %v4650_v22, %v4654_v10 }
 0x1a0   : > { %v1790_v53 = vpop.f32.mrf.mxu1  ;;  %v2251_v12 = vpop.f32.mrf.mxu0  ;;  %v6155_v15 = vcombine.low %v4645_v21, %v4655_v19  ;;  %v9756_v21 = vld [vmem:[#allocation33_spill] sm:$0xff] }
 0x1a1   : > { %v1791_v48 = vadd.f32 %v1790_v53, %v9748_v14  ;;  %v9140_v61 = vadd.f32 %v9071_v20, %v1799_v51 }
 0x1a2   : > { %v6635_v31 = vpop.f32.mrf.mxu1  ;;  %6838 = vmatmul.mubr.msk.bf16.gmra.mxu1 %vm1329_vm6, %v6153_v57  ;;  %v6713_v20 = vpop.f32.mrf.mxu0 }
 0x1a3   : > { %v1812_v9 = vadd.f32 %v6635_v31, %v9749_v6  ;;  %6841 = vmatprep.mubr.msk.bf16.mxu1 %vm1329_vm6, %v6154_v45  ;;  %v9150_v24 = vadd.f32 %v9081_v17, %v1791_v48  ;;  %v9753_v45 = vld [vmem:[#allocation14_spill] sm:$0xff]  ;;  %v9755_v48 = vld [vmem:[#allocation7_spill] sm:$0xff] }
 0x1a4   : > { %v1803_v41 = vpop.f32.mrf.mxu1  ;;  %v3228_v55 = vpop.f32.mrf.mxu0 }
 0x1a5   : > { %v1804_v26 = vadd.f32 %v1803_v41, %v9750_v46  ;;  %v9154_v5 = vadd.f32 %v9091_v40, %v1812_v9 }
 0x1a6   : > { %v6636_v1 = vpop.f32.mrf.mxu1  ;;  %v6714_v25 = vpop.f32.mrf.mxu0 }
 0x1a7   : > { %v1815_v4 = vadd.f32 %v6636_v1, %v9751_v29  ;;  %v9157_v23 = vadd.f32 %v2232_v16, %v1804_v26 }
 0x1a8   : > { %v1806_v52 = vpop.f32.mrf.mxu1  ;;  %v3231_v57 = vpop.f32.mrf.mxu0 }
 0x1a9   : > { %v1807_v36 = vadd.f32 %v1806_v52, %v9752_v59  ;;  %v9160_v17 = vadd.f32 %v6670_v54, %v1815_v4 }
 0x1aa   : > { %v6639_v13 = vpop.f32.mrf.mxu1  ;;  %6842 = vmatmul.mubr.msk.bf16.gmra.mxu1 %vm1329_vm6, %v6155_v15  ;;  %v6717_v51 = vpop.f32.mrf.mxu0 }
 0x1ab   : > { %v1828_v40 = vadd.f32 %v6639_v13, %v9753_v45  ;;  %v9164_v10 = vadd.f32 %v2235_v47, %v1807_v36 }
 0x1ac   : > { %v1819_v7 = vpop.f32.mrf.mxu1  ;;  %v3244_v14 = vpop.f32.mrf.mxu0 }
 0x1ad   : > { %v1820_v22 = vadd.f32 %v1819_v7, %v9754_v42  ;;  %v9167_v16 = vadd.f32 %v6673_v50, %v1828_v40 }
 0x1ae   : > { %v6640_v53 = vpop.f32.mrf.mxu1  ;;  %v6718_v9 = vpop.f32.mrf.mxu0 }
 0x1af   : > { %v1831_v31 = vadd.f32 %v6640_v53, %v9755_v48  ;;  %v9170_v54 = vadd.f32 %v2248_v32, %v1820_v22 }
 0x1b0   : > { %v1822_v6 = vpop.f32.mrf.mxu1  ;;  %v3247_v46 = vpop.f32.mrf.mxu0 }
 0x1b1   : > { %v1823_v19 = vadd.f32 %v1822_v6, %v9756_v21  ;;  %v9173_v41 = vadd.f32 %v6674_v35, %v1831_v31 }
 0x1b2   : > { %v6679_v47 = vpop.f32.mrf.mxu1  ;;  %v6721_v15 = vpop.f32.mrf.mxu0 }
 0x1b3   : > { %v2627_v26 = vadd.f32 %v6679_v47, %v8949_v11  ;;  %v9176_v1 = vadd.f32 %v2251_v12, %v1823_v19 }
 0x1b4   : > { %v2498_v50 = vpop.f32.mrf.mxu1  ;;  %v3260_v52 = vpop.f32.mrf.mxu0 }
 0x1b5   : > { %v2625_v29 = vadd.f32 %v2498_v50, %v8960_v30  ;;  %v9179_v4 = vadd.f32 %v6713_v20, %v2627_v26 }
 0x1b6   : > { %v6680_v32 = vpop.f32.mrf.mxu1  ;;  %v6722_v13 = vpop.f32.mrf.mxu0 }
 0x1b7   : > { %v2628_v59 = vadd.f32 %v6680_v32, %v8966_v44  ;;  %v9182_v36 = vadd.f32 %v3228_v55, %v2625_v29 }
 0x1b8   : > { %v2501_v35 = vpop.f32.mrf.mxu1  ;;  %v3263_v12 = vpop.f32.mrf.mxu0 }
 0x1b9   : > { %v2626_v45 = vadd.f32 %v2501_v35, %v8969_v28  ;;  %v9185_v40 = vadd.f32 %v6714_v25, %v2628_v59 }
 0x1ba   : > { %v6683_v11 = vpop.f32.mrf.mxu1  ;;  %v6725_v20 = vpop.f32.mrf.mxu0 }
 0x1bb   : > { %v2631_v7 = vadd.f32 %v6683_v11, %v8981_v43  ;;  %v9188_v42 = vadd.f32 %v3231_v57, %v2626_v45 }
 0x1bc   : > { %v2514_v30 = vpop.f32.mrf.mxu1  ;;  %v3276_v55 = vpop.f32.mrf.mxu0 }
 0x1bd   : > { %v2629_v22 = vadd.f32 %v2514_v30, %v8984_v58  ;;  %v9191_v53 = vadd.f32 %v6717_v51, %v2631_v7 }
 0x1be   : > { %v6684_v44 = vpop.f32.mrf.mxu1  ;;  %v6726_v25 = vpop.f32.mrf.mxu0 }
 0x1bf   : > { %v2632_v48 = vadd.f32 %v6684_v44, %v8987_v2  ;;  %v9194_v31 = vadd.f32 %v3244_v14, %v2629_v22 }
 0x1c0   : > { %v2517_v28 = vpop.f32.mrf.mxu1  ;;  %v3279_v57 = vpop.f32.mrf.mxu0 }
 0x1c1   : > { %v2630_v6 = vadd.f32 %v2517_v28, %v8993_v34  ;;  %v9197_v21 = vadd.f32 %v6718_v9, %v2632_v48 }
 0x1c2   : > { %v6687_v43 = vpop.f32.mrf.mxu1  ;;  %v6729_v51 = vpop.f32.mrf.mxu0 }
 0x1c3   : > { %v2635_v19 = vadd.f32 %v6687_v43, %v8996_v63  ;;  %v9200_v47 = vadd.f32 %v3247_v46, %v2630_v6 }
 0x1c4   : > { %v2530_v58 = vpop.f32.mrf.mxu1  ;;  %v3292_v14 = vpop.f32.mrf.mxu0 }
 0x1c5   : > { %v2633_v26 = vadd.f32 %v2530_v58, %v9011_v37  ;;  %v9203_v50 = vadd.f32 %v6721_v15, %v2635_v19 }
 0x1c6   : > { %v6688_v2 = vpop.f32.mrf.mxu1  ;;  %v6730_v9 = vpop.f32.mrf.mxu0 }
 0x1c7   : > { %v2636_v29 = vadd.f32 %v6688_v2, %v9019_v18  ;;  %v9206_v32 = vadd.f32 %v3260_v52, %v2633_v26 }
 0x1c8   : > { %v2533_v34 = vpop.f32.mrf.mxu1  ;;  %v3295_v46 = vpop.f32.mrf.mxu0 }
 0x1c9   : > { %v2634_v59 = vadd.f32 %v2533_v34, %v9038_v49  ;;  %v9209_v35 = vadd.f32 %v6722_v13, %v2636_v29 }
 0x1ca   : > { %v6691_v63 = vpop.f32.mrf.mxu1  ;;  %v6733_v15 = vpop.f32.mrf.mxu0 }
 0x1cb   : > { %v2639_v45 = vadd.f32 %v6691_v63, %v9056_v8  ;;  %v9212_v11 = vadd.f32 %v3263_v12, %v2634_v59 }
 0x1cc   : > { %v2546_v37 = vpop.f32.mrf.mxu1  ;;  %v3308_v52 = vpop.f32.mrf.mxu0 }
 0x1cd   : > { %v2637_v7 = vadd.f32 %v2546_v37, %v9069_v33  ;;  %v9215_v30 = vadd.f32 %v6725_v20, %v2639_v45 }
 0x1ce   : > { %v6692_v18 = vpop.f32.mrf.mxu1  ;;  %v6734_v13 = vpop.f32.mrf.mxu0 }
 0x1cf   : > { %v2640_v22 = vadd.f32 %v6692_v18, %v9077_v56  ;;  %v9218_v44 = vadd.f32 %v3276_v55, %v2637_v7 }
 0x1d0   : > { %v2549_v49 = vpop.f32.mrf.mxu1  ;;  %v3311_v12 = vpop.f32.mrf.mxu0 }
 0x1d1   : > { %v2638_v48 = vadd.f32 %v2549_v49, %v9089_v0  ;;  %v9221_v28 = vadd.f32 %v6726_v25, %v2640_v22 }
 0x1d2   : > { %v6695_v8 = vpop.f32.mrf.mxu1  ;;  %v6737_v20 = vpop.f32.mrf.mxu0 }
 0x1d3   : > { %v2643_v6 = vadd.f32 %v6695_v8, %v9101_v60  ;;  %v9224_v43 = vadd.f32 %v3279_v57, %v2638_v48 }
 0x1d4   : > { %v2562_v33 = vpop.f32.mrf.mxu1  ;;  %v3324_v55 = vpop.f32.mrf.mxu0 }
 0x1d5   : > { %v2641_v19 = vadd.f32 %v2562_v33, %v9105_v39  ;;  %v9227_v58 = vadd.f32 %v6729_v51, %v2643_v6 }
 0x1d6   : > { %v6696_v56 = vpop.f32.mrf.mxu1  ;;  %v6738_v25 = vpop.f32.mrf.mxu0 }
 0x1d7   : > { %v2644_v26 = vadd.f32 %v6696_v56, %v9112_v27  ;;  %v9230_v2 = vadd.f32 %v3292_v14, %v2641_v19 }
 0x1d8   : > { %v2565_v0 = vpop.f32.mrf.mxu1  ;;  %v3327_v57 = vpop.f32.mrf.mxu0 }
 0x1d9   : > { %v2642_v29 = vadd.f32 %v2565_v0, %v9127_v3  ;;  %v9233_v34 = vadd.f32 %v6730_v9, %v2644_v26 }
 0x1da   : > { %v6699_v60 = vpop.f32.mrf.mxu1  ;;  %v6741_v51 = vpop.f32.mrf.mxu0 }
 0x1db   : > { %v2647_v59 = vadd.f32 %v6699_v60, %v9132_v62  ;;  %v9236_v63 = vadd.f32 %v3295_v46, %v2642_v29 }
 0x1dc   : > { %v2578_v39 = vpop.f32.mrf.mxu1  ;;  %v3340_v14 = vpop.f32.mrf.mxu0 }
 0x1dd   : > { %v2645_v45 = vadd.f32 %v2578_v39, %v9136_v38  ;;  %v9239_v37 = vadd.f32 %v6733_v15, %v2647_v59 }
 0x1de   : > { %v6700_v27 = vpop.f32.mrf.mxu1  ;;  %v6742_v9 = vpop.f32.mrf.mxu0 }
 0x1df   : > { %v2648_v7 = vadd.f32 %v6700_v27, %v9140_v61  ;;  %v9242_v18 = vadd.f32 %v3308_v52, %v2645_v45 }
 0x1e0   : > { %v2581_v3 = vpop.f32.mrf.mxu1  ;;  %v3343_v46 = vpop.f32.mrf.mxu0 }
 0x1e1   : > { %9757 = vst [vmem:[#allocation6_spill] sm:$0xff] %v9242_v18  ;;  %v2646_v22 = vadd.f32 %v2581_v3, %v9150_v24  ;;  %v9245_v49 = vadd.f32 %v6734_v13, %v2648_v7 }
 0x1e2   : > { %v6703_v62 = vpop.f32.mrf.mxu1  ;;  %v6781_v15 = vpop.f32.mrf.mxu0 }
 0x1e3   : > { %9758 = vst [vmem:[#allocation10_spill] sm:$0xff] %v9245_v49  ;;  %v2651_v48 = vadd.f32 %v6703_v62, %v9154_v5  ;;  %v9248_v8 = vadd.f32 %v3311_v12, %v2646_v22 }
 0x1e4   : > { %v2594_v38 = vpop.f32.mrf.mxu1  ;;  %v4065_v52 = vpop.f32.mrf.mxu0 }
 0x1e5   : > { %9759 = vst [vmem:[#allocation8_spill] sm:$0xff] %v9248_v8  ;;  %v2649_v6 = vadd.f32 %v2594_v38, %v9157_v23  ;;  %v9251_v33 = vadd.f32 %v6737_v20, %v2651_v48 }
 0x1e6   : > { %v6704_v61 = vpop.f32.mrf.mxu1  ;;  %v9256_v13 = vpop.f32.mrf.mxu0 }
 0x1e7   : > { %v2652_v19 = vadd.f32 %v6704_v61, %v9160_v17  ;;  %v9254_v56 = vadd.f32 %v3324_v55, %v2649_v6 }
 0x1e8   : > { %v2597_v24 = vpop.f32.mrf.mxu1  ;;  %v9261_v0 = vpop.f32.mrf.mxu0 }
 0x1e9   : > { %9760 = vst [vmem:[#allocation11_spill] sm:$0xff] %v9254_v56  ;;  %v2650_v26 = vadd.f32 %v2597_v24, %v9164_v10  ;;  %v9259_v5 = vadd.f32 %v6738_v25, %v2652_v19 }
 0x1ea   : > { %v6707_v12 = vpop.f32.mrf.mxu1  ;;  %v6785_v60 = vpop.f32.mrf.mxu0 }
 0x1eb   : > { %9761 = vst [vmem:[#allocation9_spill] sm:$0xff] %v9259_v5  ;;  %v2655_v23 = vadd.f32 %v6707_v12, %v9167_v16  ;;  %v9264_v20 = vadd.f32 %v3327_v57, %v2650_v26 }
 0x1ec   : > { %v2610_v29 = vpop.f32.mrf.mxu1  ;;  %v9269_v39 = vpop.f32.mrf.mxu0 }
 0x1ed   : > { %9762 = vst [vmem:[#allocation15_spill] sm:$0xff] %v9264_v20  ;;  %v2653_v17 = vadd.f32 %v2610_v29, %v9170_v54  ;;  %v9267_v55 = vadd.f32 %v6741_v51, %v2655_v23 }
 0x1ee   : > { %v6708_v59 = vpop.f32.mrf.mxu1  ;;  %v9274_v27 = vpop.f32.mrf.mxu0 }
 0x1ef   : > { %v2656_v10 = vadd.f32 %v6708_v59, %v9173_v41  ;;  %v9272_v25 = vadd.f32 %v3340_v14, %v2653_v17 }
 0x1f0   : > { %v2613_v45 = vpop.f32.mrf.mxu1  ;;  %v9279_v3 = vpop.f32.mrf.mxu0 }
 0x1f1   : > { %9763 = vst [vmem:[#allocation17_spill] sm:$0xff] %v9272_v25  ;;  %v2654_v16 = vadd.f32 %v2613_v45, %v9176_v1  ;;  %v9277_v57 = vadd.f32 %v6742_v9, %v2656_v10 }
 0x1f2   : > { %v6747_v7 = vpop.f32.mrf.mxu1  ;;  %v6789_v62 = vpop.f32.mrf.mxu0 }
 0x1f3   : > { %9764 = vst [vmem:[#allocation21_spill] sm:$0xff] %v9277_v57  ;;  %v3831_v54 = vadd.f32 %v6747_v7, %v9179_v4  ;;  %v9282_v51 = vadd.f32 %v3343_v46, %v2654_v16 }
 0x1f4   : > { %v3702_v22 = vpop.f32.mrf.mxu1  ;;  %v9289_v38 = vpop.f32.mrf.mxu0 }
 0x1f5   : > { %9765 = vst [vmem:[#allocation34_spill] sm:$0xff] %v9282_v51  ;;  %v3829_v41 = vadd.f32 %v3702_v22, %v9182_v36  ;;  %v9285_v14 = vadd.f32 %v6781_v15, %v3831_v54 }
 0x1f6   : > { %v9287_v48 = vpop.f32.mrf.mxu1  ;;  %v9295_v6 = vpop.f32.mrf.mxu0 }
 0x1f7   : > { %v9291_v1 = vadd.f32 %v4065_v52, %v3829_v41 }
 0x1f8   : > { %v9293_v9 = vpop.f32.mrf.mxu1  ;;  %v9297_v4 = vpop.f32.mrf.mxu0 }
 0x1fa   : > { %v6751_v61 = vpop.f32.mrf.mxu1  ;;  %v6793_v36 = vpop.f32.mrf.mxu0 }
 0x1fb   : > { %v3835_v46 = vadd.f32 %v6751_v61, %v9191_v53 }
 0x1fc   : > { %v9300_v19 = vpop.f32.mrf.mxu1  ;;  %v9306_v26 = vpop.f32.mrf.mxu0 }
 0x1fd   : > { %v9302_v15 = vadd.f32 %v6785_v60, %v3835_v46 }
 0x1fe   : > { %v9304_v24 = vpop.f32.mrf.mxu1  ;;  %v9310_v12 = vpop.f32.mrf.mxu0 }
 0x200   : > { %v9308_v52 = vpop.f32.mrf.mxu1  ;;  %v9312_v29 = vpop.f32.mrf.mxu0 }
 0x202   : > { %v6755_v23 = vpop.f32.mrf.mxu1  ;;  %v6797_v53 = vpop.f32.mrf.mxu0 }
 0x203   : > { %v3839_v17 = vadd.f32 %v6755_v23, %v9203_v50 }
 0x204   : > { %v9315_v59 = vpop.f32.mrf.mxu1  ;;  %v9321_v45 = vpop.f32.mrf.mxu0 }
 0x205   : > { %v9317_v10 = vadd.f32 %v6789_v62, %v3839_v17  ;;  %9766 = vst [vmem:[#allocation35_spill] sm:$0xff] %v9321_v45 }
 0x206   : > { %v9319_v60 = vpop.f32.mrf.mxu1  ;;  %v9325_v7 = vpop.f32.mrf.mxu0 }
 0x207   : > { %9767 = vst [vmem:[#allocation23_spill] sm:$0xff] %v9325_v7 }
 0x208   : > { %v9323_v16 = vpop.f32.mrf.mxu1  ;;  %v9327_v22 = vpop.f32.mrf.mxu0 }
 0x209   : > { %9768 = vst [vmem:[#allocation25_spill] sm:$0xff] %v9327_v22 }
 0x20a   : > { %v6759_v54 = vpop.f32.mrf.mxu1  ;;  %v6801_v50 = vpop.f32.mrf.mxu0 }
 0x20b   : > { %v3843_v41 = vadd.f32 %v6759_v54, %v9215_v30 }
 0x20c   : > { %v9330_v61 = vpop.f32.mrf.mxu1  ;;  %v9336_v23 = vpop.f32.mrf.mxu0 }
 0x20d   : > { %v9332_v46 = vadd.f32 %v6793_v36, %v3843_v41  ;;  %9769 = vst [vmem:[#allocation12_spill] sm:$0xff] %v9336_v23 }
 0x20e   : > { %v9334_v62 = vpop.f32.mrf.mxu1  ;;  %v9340_v51 = vpop.f32.mrf.mxu0 }
 0x20f   : > { %9770 = vst [vmem:[#allocation27_spill] sm:$0xff] %v9340_v51 }
 0x210   : > { %v9338_v17 = vpop.f32.mrf.mxu1  ;;  %v9342_v25 = vpop.f32.mrf.mxu0 }
 0x211   : > { %9771 = vst [vmem:[#allocation28_spill] sm:$0xff] %v9342_v25 }
 0x212   : > { %v6763_v57 = vpop.f32.mrf.mxu1  ;;  %v6805_v30 = vpop.f32.mrf.mxu0 }
 0x213   : > { %v3847_v20 = vadd.f32 %v6763_v57, %v9227_v58 }
 0x214   : > { %v9345_v5 = vpop.f32.mrf.mxu1  ;;  %v9351_v41 = vpop.f32.mrf.mxu0 }
 0x215   : > { %v9347_v54 = vadd.f32 %v6797_v53, %v3847_v20  ;;  %9773 = vst [vmem:[#allocation31_spill] sm:$0xff] %v9351_v41 }
 0x216   : > { %v9349_v36 = vpop.f32.mrf.mxu1  ;;  %v9355_v23 = vpop.f32.mrf.mxu0 }
 0x217   : > { %9772 = vst [vmem:[#allocation30_spill] sm:$0xff] %v9347_v54  ;;  %9774 = vst [vmem:[#allocation5_spill] sm:$0xff] %v9355_v23 }
 0x218   : > { %v9353_v56 = vpop.f32.mrf.mxu1  ;;  %v9357_v51 = vpop.f32.mrf.mxu0 }
 0x219   : > { %9775 = vst [vmem:[#allocation13_spill] sm:$0xff] %v9357_v51 }
 0x21a   : > { %v6767_v8 = vpop.f32.mrf.mxu1  ;;  %v6809_v58 = vpop.f32.mrf.mxu0 }
 0x21b   : > { %v3851_v25 = vadd.f32 %v6767_v8, %v9239_v37 }
 0x21c   : > { %v9360_v49 = vpop.f32.mrf.mxu1  ;;  %v9366_v53 = vpop.f32.mrf.mxu0 }
 0x21d   : > { %9776 = vst [vmem:[#allocation16_spill] sm:$0xff] %v9360_v49  ;;  %v9362_v57 = vadd.f32 %v6801_v50, %v3851_v25  ;;  %9779 = vst [vmem:[#allocation20_spill] sm:$0xff] %v9366_v53 }
 0x21e   : > { %v9364_v20 = vpop.f32.mrf.mxu1  ;;  %v9370_v41 = vpop.f32.mrf.mxu0 }
 0x21f   : > { %9777 = vst [vmem:[#allocation18_spill] sm:$0xff] %v9362_v57  ;;  %9778 = vst [vmem:[#allocation19_spill] sm:$0xff] %v9364_v20 }
 0x220   : > { %v9368_v18 = vpop.f32.mrf.mxu1  ;;  %9781 = vst [vmem:[#allocation24_spill] sm:$0xff] %v9370_v41  ;;  %v9372_v23 = vpop.f32.mrf.mxu0 }
 0x221   : > { %9780 = vst [vmem:[#allocation22_spill] sm:$0xff] %v9368_v18  ;;  %9782 = vst [vmem:[#allocation26_spill] sm:$0xff] %v9372_v23 }
 0x222   : > { %v6771_v22 = vpop.f32.mrf.mxu1  ;;  %v6849_v37 = vpop.f32.mrf.mxu0 }
 0x223   : > { %v3855_v51 = vadd.f32 %v6771_v22, %v9251_v33 }
 0x224   : > { %v9375_v7 = vpop.f32.mrf.mxu1  ;;  %v5269_v50 = vpop.f32.mrf.mxu0 }
 0x225   : > { %9783 = vst [vmem:[#allocation29_spill] sm:$0xff] %v9375_v7  ;;  %v9377_v8 = vadd.f32 %v6805_v30, %v3855_v51 }
 0x226   : > { %v9379_v25 = vpop.f32.mrf.mxu1  ;;  %v6850_v53 = vpop.f32.mrf.mxu0 }
 0x227   : > { %9784 = vst [vmem:[#allocation32_spill] sm:$0xff] %v9377_v8  ;;  %9785 = vst [vmem:[#allocation4_spill] sm:$0xff] %v9379_v25  ;;  %v3832_v8 = vadd.f32 %v9287_v48, %v9185_v40 }
 0x228   : > { %v9381_v57 = vpop.f32.mrf.mxu1  ;;  %v5272_v18 = vpop.f32.mrf.mxu0 }
 0x229   : > { %9786 = vst [vmem:[#allocation14_spill] sm:$0xff] %v9381_v57 }
 0x22a   : > { %v6775_v20 = vpop.f32.mrf.mxu1 }
 0x22b   : > { %v3859_v41 = vadd.f32 %v6775_v20, %v9267_v55  ;;  %v3830_v55 = vadd.f32 %v9293_v9, %v9188_v42  ;;  %v3833_v42 = vadd.f32 %v9300_v19, %v9194_v31 }
 0x22c   : > { %v9384_v49 = vpop.f32.mrf.mxu1  ;;  %v6853_v23 = vpop.f32.mrf.mxu0 }
 0x22d   : > { %9787 = vst [vmem:[#allocation3_spill] sm:$0xff] %v9384_v49  ;;  %v9386_v45 = vadd.f32 %v6809_v58, %v3859_v41  ;;  %v4193_v54 = vadd.f32 %v9261_v0, %v3830_v55  ;;  %v3834_v0 = vadd.f32 %v9308_v52, %v9200_v47  ;;  %v4196_v47 = vadd.f32 %v9269_v39, %v3833_v42 }
 0x22e   : > { %v9388_v33 = vpop.f32.mrf.mxu1  ;;  %v5285_v22 = vpop.f32.mrf.mxu0 }
 0x22f   : > { %9788 = vst [vmem:[#allocation7_spill] sm:$0xff] %v9386_v45  ;;  %9789 = vst [vmem:[#allocation33_spill] sm:$0xff] %v9388_v33  ;;  %v4197_v55 = vadd.f32 %v9279_v3, %v3834_v0 }
 0x230   : > { %v9390_v51 = vpop.f32.mrf.mxu1  ;;  %v6854_v30 = vpop.f32.mrf.mxu0 }
 0x231   : > { %9790 = vst [vmem:[#allocation36_spill] sm:$0xff] %v9390_v51  ;;  %v4195_v51 = vadd.f32 %v9256_v13, %v3832_v8 }
 0x232   : > { %v6815_v57 = vpop.f32.mrf.mxu1  ;;  %v9394_v25 = vpop.f32.mrf.mxu0 }
 0x233   : > { %v4924_v20 = vadd.f32 %v6815_v57, %v9285_v14  ;;  %v9411_v14 = vld [vmem:[%s9595_s2] ss:$0 sm:$0xff] }
 0x234   : > { %v4795_v41 = vpop.f32.mrf.mxu1  ;;  %v9399_v58 = vpop.f32.mrf.mxu0 }
 0x235   : > { %v4922_v45 = vadd.f32 %v4795_v41, %v9291_v1  ;;  %v5398_v40 = vadd.f32 %v6849_v37, %v4924_v20 }
 0x236   : > { %v6816_v33 = vpop.f32.mrf.mxu1  ;;  %v9403_v49 = vpop.f32.mrf.mxu0 }
 0x237   : > { %v5396_v48 = vadd.f32 %v5269_v50, %v4922_v45  ;;  %v4925_v7 = vadd.f32 %v6816_v33, %v4195_v51  ;;  %v3836_v45 = vadd.f32 %v9304_v24, %v9197_v21  ;;  %v5437_v31 = vadd.f32 %v9411_v14, %v5398_v40 }
 0x238   : > { %v4798_v9 = vpop.f32.mrf.mxu1  ;;  %v9413_v1 = vpop.f32.mrf.mxu0 }
 0x239   : > { %v5399_v13 = vadd.f32 %v6850_v53, %v4925_v7  ;;  %v4923_v57 = vadd.f32 %v4798_v9, %v4193_v54  ;;  %v5435_v19 = vadd.f32 %v9411_v14, %v5396_v48  ;;  %v4199_v51 = vadd.f32 %v9274_v27, %v3836_v45 }
 0x23a   : > { %v6819_v37 = vpop.f32.mrf.mxu1  ;;  %v9420_v8 = vpop.f32.mrf.mxu0  ;;  %v3837_v48 = vadd.f32 %v9315_v59, %v9206_v32  ;;  %v5667_v27 = vmul.f32 %v5437_v31, %v5437_v31 }
 0x23b   : > { %v5438_v50 = vadd.f32 %v9411_v14, %v5399_v13  ;;  %v5397_v33 = vadd.f32 %v5272_v18, %v4923_v57  ;;  %v4928_v21 = vadd.f32 %v6819_v37, %v9302_v15  ;;  %v5665_v41 = vmul.f32 %v5435_v19, %v5435_v19 }
 0x23c   : > { %v4811_v24 = vpop.f32.mrf.mxu1 }
 0x23d   : > { %v9432_v52 = vpop.f32.mrf.mxu0  ;;  %v6333_v7 = vpack.c.bf16 %v5438_v50, %v5437_v31  ;;  %v5436_v54 = vadd.f32 %v9411_v14, %v5397_v33  ;;  %v4926_v53 = vadd.f32 %v4811_v24, %v4196_v47  ;;  %v5402_v42 = vadd.f32 %v6853_v23, %v4928_v21 }
 0x23e   : > { %v6820_v18 = vpop.f32.mrf.mxu1  ;;  %v3840_v33 = vadd.f32 %v9319_v60, %v9209_v35  ;;  %v4200_v60 = vadd.f32 %v9289_v38, %v3837_v48 }
 0x23f   : > { %v9437_v20 = vpop.f32.mrf.mxu0  ;;  %6405 = vst [vmem:[%s9428_s24 + $0x8] sm:$0xff] %v6333_v7   ;;  %v6328_v15 = vpack.c.bf16 %v5436_v54, %v5435_v19  ;;  %v5627_v40 = vadd.f32 %v5436_v54, %v5435_v19  ;;  %v5666_v39 = vmul.f32 %v5436_v54, %v5436_v54  ;;  %v5400_v9 = vadd.f32 %v5285_v22, %v4926_v53 }
 0x240   : > { %v4929_v13 = vadd.f32 %v6820_v18, %v4199_v51  ;;  %v4814_v57 = vpop.f32.mrf.mxu1  ;;  %v3838_v19 = vadd.f32 %v9323_v16, %v9212_v11  ;;  %v5668_v22 = vmul.f32 %v5438_v50, %v5438_v50 }
 0x241   : > { %v9442_v37 = vpop.f32.mrf.mxu0  ;;  %6329 = vst [vmem:[%s9428_s24] sm:$0xff] %v6328_v15   ;;  %v5628_v45 = vadd.f32 %v5627_v40, %v5437_v31  ;;  %v5697_v3 = vadd.f32 %v5666_v39, %v5665_v41  ;;  %v4927_v0 = vadd.f32 %v4814_v57, %v4197_v55  ;;  %v5439_v47 = vadd.f32 %v9411_v14, %v5400_v9 }
 0x242   : > { %v5403_v32 = vadd.f32 %v6854_v30, %v4929_v13  ;;  %v6823_v59 = vpop.f32.mrf.mxu1  ;;  %v5441_v31 = vadd.f32 %v9411_v14, %v5402_v42  ;;  %v4201_v15 = vadd.f32 %v9297_v4, %v3838_v19  ;;  %v3841_v42 = vadd.f32 %v9330_v61, %v9218_v44 }
 0x243   : > { %v9450_v23 = vpop.f32.mrf.mxu0  ;;  %v5698_v21 = vadd.f32 %v5697_v3, %v5667_v27  ;;  %v5629_v24 = vadd.f32 %v5628_v45, %v5438_v50  ;;  %v5401_v7 = vadd.f32 %v9394_v25, %v4927_v0  ;;  %v4932_v35 = vadd.f32 %v6823_v59, %v9317_v10 }
 0x244   : > { %v5442_v54 = vadd.f32 %v9411_v14, %v5403_v32  ;;  %v4827_v11 = vpop.f32.mrf.mxu1  ;;  %v5669_v53 = vmul.f32 %v5439_v47, %v5439_v47  ;;  %v4203_v25 = vadd.f32 %v9295_v6, %v3840_v33  ;;  %v5671_v45 = vmul.f32 %v5441_v31, %v5441_v31 }
 0x245   : > { %v9457_v16 = vpop.f32.mrf.mxu0  ;;  %v5630_v30 = vadd.f32 %v5629_v24, %v5439_v47  ;;  %v5699_v51 = vadd.f32 %v5698_v21, %v5668_v22  ;;  %v5440_v18 = vadd.f32 %v9411_v14, %v5401_v7  ;;  %v4930_v55 = vadd.f32 %v4827_v11, %v4200_v60 }
 0x246   : > { %v6343_v50 = vpack.c.bf16 %v5442_v54, %v5441_v31  ;;  %v6824_v41 = vpop.f32.mrf.mxu1  ;;  %v5406_v9 = vadd.f32 %v9399_v58, %v4932_v35  ;;  %v3844_v33 = vadd.f32 %v9334_v62, %v9221_v28  ;;  %v3842_v44 = vadd.f32 %v9338_v17, %v9224_v43 }
 0x247   : > { %v9462_v10 = vpop.f32.mrf.mxu0  ;;  %v5700_v38 = vadd.f32 %v5699_v51, %v5669_v53  ;;  %v6338_v40 = vpack.c.bf16 %v5440_v18, %v5439_v47  ;;  %v5631_v39 = vadd.f32 %v5630_v30, %v5440_v18  ;;  %v5670_v48 = vmul.f32 %v5440_v18, %v5440_v18 }
 0x248   : > { %6407 = vst [vmem:[%s9428_s24 + $0x18] sm:$0xff] %v6343_v50   ;;  %v5404_v13 = vadd.f32 %v9403_v49, %v4930_v55  ;;  %v4933_v57 = vadd.f32 %v6824_v41, %v4203_v25  ;;  %v4830_v6 = vpop.f32.mrf.mxu1  ;;  %v5672_v47 = vmul.f32 %v5442_v54, %v5442_v54  ;;  %v5445_v21 = vadd.f32 %v9411_v14, %v5406_v9 }
 0x249   : > { %v9469_v27 = vpop.f32.mrf.mxu0  ;;  %6406 = vst [vmem:[%s9428_s24 + $0x10] sm:$0xff] %v6338_v40   ;;  %v5632_v4 = vadd.f32 %v5631_v39, %v5441_v31  ;;  %v5701_v3 = vadd.f32 %v5700_v38, %v5670_v48  ;;  %v4931_v0 = vadd.f32 %v4830_v6, %v4201_v15  ;;  %v4204_v43 = vadd.f32 %v9306_v26, %v3841_v42 }
 0x24a   : > { %v5443_v61 = vadd.f32 %v9411_v14, %v5404_v13  ;;  %v5407_v58 = vadd.f32 %v9413_v1, %v4933_v57  ;;  %v6827_v49 = vpop.f32.mrf.mxu1  ;;  %v4205_v30 = vadd.f32 %v9312_v29, %v3842_v44  ;;  %v3845_v50 = vadd.f32 %v9345_v5, %v9230_v2 }
 0x24b   : > { %v9478_v19 = vpop.f32.mrf.mxu0  ;;  %v5702_v32 = vadd.f32 %v5701_v3, %v5671_v45  ;;  %v5633_v59 = vadd.f32 %v5632_v4, %v5442_v54  ;;  %v5405_v22 = vadd.f32 %v9420_v8, %v4931_v0  ;;  %v4936_v28 = vadd.f32 %v6827_v49, %v9332_v46  ;;  %v9792_v3 = vld [vmem:[#allocation35_spill] sm:$0xff] }
 0x24c   : > { %v5446_v24 = vadd.f32 %v9411_v14, %v5407_v58  ;;  %v4843_v62 = vpop.f32.mrf.mxu1  ;;  %v5673_v7 = vmul.f32 %v5443_v61, %v5443_v61  ;;  %v4207_v8 = vadd.f32 %v9310_v12, %v3844_v33  ;;  %v5675_v38 = vmul.f32 %v5445_v21, %v5445_v21  ;;  %v9793_v49 = vld [vmem:[#allocation23_spill] sm:$0xff] }
 0x24d   : > { %v9485_v17 = vpop.f32.mrf.mxu0  ;;  %v5634_v1 = vadd.f32 %v5633_v59, %v5443_v61  ;;  %v5703_v31 = vadd.f32 %v5702_v32, %v5672_v47  ;;  %v5444_v35 = vadd.f32 %v9411_v14, %v5405_v22  ;;  %v4934_v60 = vadd.f32 %v4843_v62, %v4204_v43  ;;  %v9794_v32 = vld [vmem:[#allocation25_spill] sm:$0xff]  ;;  %v9795_v62 = vld [vmem:[#allocation6_spill] sm:$0xff] }
 0x24e   : > { %v6353_v54 = vpack.c.bf16 %v5446_v24, %v5445_v21  ;;  %v6828_v11 = vpop.f32.mrf.mxu1  ;;  %v5410_v55 = vadd.f32 %v9432_v52, %v4936_v28  ;;  %v3848_v48 = vadd.f32 %v9349_v36, %v9233_v34  ;;  %v3846_v2 = vadd.f32 %v9353_v56, %v9236_v63  ;;  %v9791_v34 = vld [vmem:[#allocation30_spill] sm:$0xff] }
 0x24f   : > { %v9490_v46 = vpop.f32.mrf.mxu0  ;;  %v5704_v26 = vadd.f32 %v5703_v31, %v5673_v7  ;;  %v6348_v53 = vpack.c.bf16 %v5444_v35, %v5443_v61  ;;  %v5635_v51 = vadd.f32 %v5634_v1, %v5444_v35  ;;  %v5674_v18 = vmul.f32 %v5444_v35, %v5444_v35  ;;  %v9796_v1 = vld [vmem:[#allocation16_spill] sm:$0xff] }
 0x250   : > { %6409 = vst [vmem:[%s9428_s24 + $0x28] sm:$0xff] %v6353_v54   ;;  %v5408_v25 = vadd.f32 %v9437_v20, %v4934_v60  ;;  %v4937_v41 = vadd.f32 %v6828_v11, %v4207_v8  ;;  %v4846_v12 = vpop.f32.mrf.mxu1  ;;  %v5676_v9 = vmul.f32 %v5446_v24, %v5446_v24  ;;  %v5449_v45 = vadd.f32 %v9411_v14, %v5410_v55  ;;  %v9800_v55 = vld [vmem:[#allocation22_spill] sm:$0xff] }
 0x251   : > { %v9497_v15 = vpop.f32.mrf.mxu0  ;;  %6408 = vst [vmem:[%s9428_s24 + $0x20] sm:$0xff] %v6348_v53   ;;  %v5636_v29 = vadd.f32 %v5635_v51, %v5445_v21  ;;  %v5705_v40 = vadd.f32 %v5704_v26, %v5674_v18  ;;  %v4935_v39 = vadd.f32 %v4846_v12, %v4205_v30  ;;  %v4208_v63 = vadd.f32 %v9792_v3, %v3845_v50  ;;  %v9797_v53 = vld [vmem:[#allocation10_spill] sm:$0xff]  ;;  %v9798_v51 = vld [vmem:[#allocation19_spill] sm:$0xff]  ;;  %v9799_v50 = vld [vmem:[#allocation8_spill] sm:$0xff] }
 0x252   : > { %v5447_v5 = vadd.f32 %v9411_v14, %v5408_v25  ;;  %v5411_v52 = vadd.f32 %v9442_v37, %v4937_v41  ;;  %v6831_v20 = vpop.f32.mrf.mxu1  ;;  %v4209_v59 = vadd.f32 %v9794_v32, %v3846_v2  ;;  %v3849_v7 = vadd.f32 %v9796_v1, %v9795_v62  ;;  %v9807_v1 = vld [vmem:[#allocation9_spill] sm:$0xff] }
 0x253   : > { %v9506_v42 = vpop.f32.mrf.mxu0  ;;  %v5706_v13 = vadd.f32 %v5705_v40, %v5675_v38  ;;  %v5637_v57 = vadd.f32 %v5636_v29, %v5446_v24  ;;  %v5409_v6 = vadd.f32 %v9450_v23, %v4935_v39  ;;  %v4940_v36 = vadd.f32 %v6831_v20, %v9791_v34  ;;  %v9802_v20 = vld [vmem:[#allocation12_spill] sm:$0xff] }
 0x254   : > { %v5450_v4 = vadd.f32 %v9411_v14, %v5411_v52  ;;  %v4859_v56 = vpop.f32.mrf.mxu1  ;;  %v5677_v37 = vmul.f32 %v5447_v5, %v5447_v5  ;;  %v4211_v23 = vadd.f32 %v9793_v49, %v3848_v48  ;;  %v5679_v8 = vmul.f32 %v5449_v45, %v5449_v45  ;;  %v9806_v49 = vld [vmem:[#allocation29_spill] sm:$0xff] }
 0x255   : > { %v5638_v0 = vadd.f32 %v5637_v57, %v5447_v5  ;;  %v5707_v33 = vadd.f32 %v5706_v13, %v5676_v9  ;;  %v5448_v44 = vadd.f32 %v9411_v14, %v5409_v6  ;;  %v4938_v58 = vadd.f32 %v4859_v56, %v4208_v63  ;;  %v9516_v22 = vpop.f32.mrf.mxu0  ;;  %v9804_v63 = vld [vmem:[#allocation28_spill] sm:$0xff] }
 0x256   : > { %v6363_v61 = vpack.c.bf16 %v5450_v4, %v5449_v45  ;;  %v6832_v47 = vpop.f32.mrf.mxu1  ;;  %v5414_v31 = vadd.f32 %v9457_v16, %v4940_v36  ;;  %v3852_v18 = vadd.f32 %v9798_v51, %v9797_v53  ;;  %v3850_v25 = vadd.f32 %v9800_v55, %v9799_v50  ;;  %v9811_v55 = vld [vmem:[#allocation32_spill] sm:$0xff] }
 0x257   : > { %v5708_v21 = vadd.f32 %v5707_v33, %v5677_v37  ;;  %v6358_v24 = vpack.c.bf16 %v5448_v44, %v5447_v5  ;;  %v5639_v28 = vadd.f32 %v5638_v0, %v5448_v44  ;;  %v5678_v43 = vmul.f32 %v5448_v44, %v5448_v44  ;;  %v9530_v38 = vpop.f32.mrf.mxu0  ;;  %v9801_v5 = vld [vmem:[#allocation18_spill] sm:$0xff] }
 0x258   : > { %6411 = vst [vmem:[%s9428_s24 + $0x38] sm:$0xff] %v6363_v61   ;;  %v5412_v35 = vadd.f32 %v9462_v10, %v4938_v58  ;;  %v4941_v54 = vadd.f32 %v6832_v47, %v4211_v23  ;;  %v4862_v60 = vpop.f32.mrf.mxu1  ;;  %v5680_v10 = vmul.f32 %v5450_v4, %v5450_v4  ;;  %v5453_v48 = vadd.f32 %v9411_v14, %v5414_v31  ;;  %v9805_v58 = vld [vmem:[#allocation11_spill] sm:$0xff] }
 0x259   : > { %6410 = vst [vmem:[%s9428_s24 + $0x30] sm:$0xff] %v6358_v24   ;;  %v5640_v11 = vadd.f32 %v5639_v28, %v5449_v45  ;;  %v5709_v30 = vadd.f32 %v5708_v21, %v5678_v43  ;;  %v4939_v26 = vadd.f32 %v4862_v60, %v4209_v59  ;;  %v4212_v9 = vadd.f32 %v9802_v20, %v3849_v7  ;;  %v6874_v0 = vpop.f32.mrf.mxu0  ;;  %v9808_v7 = vld [vmem:[#allocation4_spill] sm:$0xff] }
 0x25a   : > { %v5451_v41 = vadd.f32 %v9411_v14, %v5412_v35  ;;  %v5415_v12 = vadd.f32 %v9469_v27, %v4941_v54  ;;  %v6835_v16 = vpop.f32.mrf.mxu1  ;;  %v4213_v56 = vadd.f32 %v9804_v63, %v3850_v25  ;;  %v3853_v23 = vadd.f32 %v9806_v49, %v9805_v58  ;;  %v9809_v35 = vld [vmem:[#allocation15_spill] sm:$0xff]  ;;  %v9810_v54 = vld [vmem:[#allocation14_spill] sm:$0xff]  ;;  %v9818_v58 = vld [vmem:[#allocation33_spill] sm:$0xff] }
 0x25b   : > { %v5710_v29 = vadd.f32 %v5709_v30, %v5679_v8  ;;  %v5641_v40 = vadd.f32 %v5640_v11, %v5450_v4  ;;  %v5413_v39 = vadd.f32 %v9478_v19, %v4939_v26  ;;  %v4944_v52 = vadd.f32 %v6835_v16, %v9801_v5  ;;  %v9803_v4 = vld [vmem:[#allocation27_spill] sm:$0xff]  ;;  %v5368_v30 = vpop.f32.mrf.mxu0 }
 0x25c   : > { %v5454_v2 = vadd.f32 %v9411_v14, %v5415_v12  ;;  %v4875_v13 = vpop.f32.mrf.mxu1  ;;  %v5681_v27 = vmul.f32 %v5451_v41, %v5451_v41  ;;  %v4215_v19 = vadd.f32 %v9803_v4, %v3852_v18  ;;  %v5683_v24 = vmul.f32 %v5453_v48, %v5453_v48 }
 0x25d   : > { %v5642_v57 = vadd.f32 %v5641_v40, %v5451_v41  ;;  %v5711_v6 = vadd.f32 %v5710_v29, %v5680_v10  ;;  %v5452_v45 = vadd.f32 %v9411_v14, %v5413_v39  ;;  %v4942_v36 = vadd.f32 %v4875_v13, %v4212_v9  ;;  %v6877_v9 = vpop.f32.mrf.mxu0 }
 0x25e   : > { %v6373_v34 = vpack.c.bf16 %v5454_v2, %v5453_v48  ;;  %v6836_v3 = vpop.f32.mrf.mxu1  ;;  %v5418_v47 = vadd.f32 %v9485_v17, %v4944_v52  ;;  %v3856_v31 = vadd.f32 %v9808_v7, %v9807_v1  ;;  %v3854_v60 = vadd.f32 %v9810_v54, %v9809_v35  ;;  %v9814_v52 = vld [vmem:[#allocation13_spill] sm:$0xff]  ;;  %v9822_v54 = vld [vmem:[#allocation20_spill] sm:$0xff] }
 0x25f   : > { %v5712_v37 = vadd.f32 %v5711_v6, %v5681_v27  ;;  %v6368_v33 = vpack.c.bf16 %v5452_v45, %v5451_v41  ;;  %v5643_v44 = vadd.f32 %v5642_v57, %v5452_v45  ;;  %v5682_v61 = vmul.f32 %v5452_v45, %v5452_v45  ;;  %v9812_v41 = vld [vmem:[#allocation31_spill] sm:$0xff]  ;;  %v9815_v45 = vld [vmem:[#allocation17_spill] sm:$0xff] }
 0x260   : > { %6413 = vst [vmem:[%s9428_s24 + $0x48] sm:$0xff] %v6373_v34   ;;  %v5416_v32 = vadd.f32 %v9490_v46, %v4942_v36  ;;  %v4945_v59 = vadd.f32 %v6836_v3, %v4215_v19  ;;  %v4878_v21 = vpop.f32.mrf.mxu1  ;;  %v5684_v46 = vmul.f32 %v5454_v2, %v5454_v2  ;;  %v5457_v18 = vadd.f32 %v9411_v14, %v5418_v47  ;;  %v9816_v34 = vld [vmem:[#allocation3_spill] sm:$0xff]  ;;  %v9820_v47 = vld [vmem:[#allocation36_spill] sm:$0xff] }
 0x261   : > { %6412 = vst [vmem:[%s9428_s24 + $0x40] sm:$0xff] %v6368_v33   ;;  %v5644_v28 = vadd.f32 %v5643_v44, %v5453_v48  ;;  %v5713_v43 = vadd.f32 %v5712_v37, %v5682_v61  ;;  %v4943_v62 = vadd.f32 %v4878_v21, %v4213_v56  ;;  %v4216_v12 = vadd.f32 %v9812_v41, %v3853_v23  ;;  %v9817_v61 = vld [vmem:[#allocation21_spill] sm:$0xff]  ;;  %v9819_v23 = vld [vmem:[#allocation34_spill] sm:$0xff] }
 0x262   : > { %v5455_v8 = vadd.f32 %v9411_v14, %v5416_v32  ;;  %v5419_v11 = vadd.f32 %v9497_v15, %v4945_v59  ;;  %v6839_v17 = vpop.f32.mrf.mxu1  ;;  %v4217_v20 = vadd.f32 %v9814_v52, %v3854_v60  ;;  %v3857_v36 = vadd.f32 %v9816_v34, %v9815_v45 }
 0x263   : > { %v5714_v26 = vadd.f32 %v5713_v43, %v5683_v24  ;;  %v5645_v53 = vadd.f32 %v5644_v28, %v5454_v2  ;;  %v5417_v51 = vadd.f32 %v9506_v42, %v4943_v62  ;;  %v4948_v25 = vadd.f32 %v6839_v17, %v9811_v55  ;;  %v9813_v2 = vld [vmem:[#allocation5_spill] sm:$0xff]  ;;  %v9824_v55 = vld [vmem:[#allocation26_spill] sm:$0xff] }
 0x264   : > { %v5458_v50 = vadd.f32 %v9411_v14, %v5419_v11  ;;  %v4891_v16 = vpop.f32.mrf.mxu1  ;;  %v5685_v29 = vmul.f32 %v5455_v8, %v5455_v8  ;;  %v4219_v42 = vadd.f32 %v9813_v2, %v3856_v31  ;;  %v5687_v56 = vmul.f32 %v5457_v18, %v5457_v18  ;;  %v9821_v31 = vld [vmem:[#allocation7_spill] sm:$0xff] }
 0x265   : > { %v5646_v10 = vadd.f32 %v5645_v53, %v5455_v8  ;;  %v5715_v15 = vadd.f32 %v5714_v26, %v5684_v46  ;;  %v5456_v40 = vadd.f32 %v9411_v14, %v5417_v51  ;;  %v4946_v48 = vadd.f32 %v4891_v16, %v4216_v12 }
 0x266   : > { %v6383_v39 = vpack.c.bf16 %v5458_v50, %v5457_v18  ;;  %v6840_v5 = vpop.f32.mrf.mxu1  ;;  %v5422_v4 = vadd.f32 %v9516_v22, %v4948_v25  ;;  %v3860_v49 = vadd.f32 %v9818_v58, %v9817_v61  ;;  %v3858_v32 = vadd.f32 %v9820_v47, %v9819_v23  ;;  %v5381_v22 = vpop.f32.mrf.mxu0 }
 0x267   : > { %v5716_v13 = vadd.f32 %v5715_v15, %v5685_v29  ;;  %v6378_v57 = vpack.c.bf16 %v5456_v40, %v5455_v8  ;;  %v5647_v27 = vadd.f32 %v5646_v10, %v5456_v40  ;;  %v5686_v6 = vmul.f32 %v5456_v40, %v5456_v40 }
 0x268   : > { %6415 = vst [vmem:[%s9428_s24 + $0x58] sm:$0xff] %v6383_v39   ;;  %v5420_v19 = vadd.f32 %v9530_v38, %v4946_v48  ;;  %v4949_v3 = vadd.f32 %v6840_v5, %v4219_v42  ;;  %v4894_v63 = vpop.f32.mrf.mxu1  ;;  %v5688_v28 = vmul.f32 %v5458_v50, %v5458_v50  ;;  %v5461_v1 = vadd.f32 %v9411_v14, %v5422_v4  ;;  %v6878_v51 = vpop.f32.mrf.mxu0 }
 0x269   : > { %6414 = vst [vmem:[%s9428_s24 + $0x50] sm:$0xff] %v6378_v57   ;;  %v5648_v37 = vadd.f32 %v5647_v27, %v5457_v18  ;;  %v5717_v33 = vadd.f32 %v5716_v13, %v5686_v6  ;;  %v4947_v44 = vadd.f32 %v4894_v63, %v4217_v20  ;;  %v4220_v60 = vadd.f32 %v9822_v54, %v3857_v36 }
 0x26a   : > { %v5459_v59 = vadd.f32 %v9411_v14, %v5420_v19  ;;  %v5423_v21 = vadd.f32 %v6874_v0, %v4949_v3  ;;  %v6843_v24 = vpop.f32.mrf.mxu1  ;;  %v4221_v25 = vadd.f32 %v9824_v55, %v3858_v32  ;;  %v5691_v48 = vmul.f32 %v5461_v1, %v5461_v1  ;;  %v5384_v13 = vpop.f32.mrf.mxu0 }
 0x26b   : > { %v5718_v38 = vadd.f32 %v5717_v33, %v5687_v56  ;;  %v5649_v43 = vadd.f32 %v5648_v37, %v5458_v50  ;;  %v5421_v62 = vadd.f32 %v5368_v30, %v4947_v44  ;;  %v4952_v35 = vadd.f32 %v6843_v24, %v9821_v31  ;;  %v9823_v30 = vld [vmem:[#allocation24_spill] sm:$0xff] }
 0x26c   : > { %v5462_v7 = vadd.f32 %v9411_v14, %v5423_v21  ;;  %v4907_v8 = vpop.f32.mrf.mxu1  ;;  %v5689_v17 = vmul.f32 %v5459_v59, %v5459_v59  ;;  %v4223_v18 = vadd.f32 %v9823_v30, %v3860_v49 }
 0x26d   : > { %v5650_v11 = vadd.f32 %v5649_v43, %v5459_v59  ;;  %v5719_v46 = vadd.f32 %v5718_v38, %v5688_v28  ;;  %v5460_v0 = vadd.f32 %v9411_v14, %v5421_v62  ;;  %v4950_v53 = vadd.f32 %v4907_v8, %v4220_v60 }
 0x26e   : > { %v6393_v26 = vpack.c.bf16 %v5462_v7, %v5461_v1  ;;  %v6844_v50 = vpop.f32.mrf.mxu1  ;;  %v5426_v29 = vadd.f32 %v6877_v9, %v4952_v35  ;;  %v5692_v57 = vmul.f32 %v5462_v7, %v5462_v7 }
 0x26f   : > { %v5720_v41 = vadd.f32 %v5719_v46, %v5689_v17  ;;  %v6388_v12 = vpack.c.bf16 %v5460_v0, %v5459_v59  ;;  %v5651_v16 = vadd.f32 %v5650_v11, %v5460_v0  ;;  %v5690_v10 = vmul.f32 %v5460_v0, %v5460_v0 }
 0x270   : > { %6417 = vst [vmem:[%s9428_s24 + $0x68] sm:$0xff] %v6393_v26   ;;  %v5424_v15 = vadd.f32 %v5381_v22, %v4950_v53  ;;  %v4953_v40 = vadd.f32 %v6844_v50, %v4223_v18  ;;  %v4910_v39 = vpop.f32.mrf.mxu1  ;;  %v5465_v9 = vadd.f32 %v9411_v14, %v5426_v29 }
 0x271   : > { %6416 = vst [vmem:[%s9428_s24 + $0x60] sm:$0xff] %v6388_v12   ;;  %v5652_v2 = vadd.f32 %v5651_v16, %v5461_v1  ;;  %v5721_v42 = vadd.f32 %v5720_v41, %v5690_v10  ;;  %v4951_v5 = vadd.f32 %v4910_v39, %v4221_v25 }
 0x272   : > { %v5463_v52 = vadd.f32 %v9411_v14, %v5424_v15  ;;  %v5427_v20 = vadd.f32 %v6878_v51, %v4953_v40  ;;  %v5695_v61 = vmul.f32 %v5465_v9, %v5465_v9 }
 0x273   : > { %v5722_v27 = vadd.f32 %v5721_v42, %v5691_v48  ;;  %v5653_v6 = vadd.f32 %v5652_v2, %v5462_v7  ;;  %v5425_v45 = vadd.f32 %v5384_v13, %v4951_v5 }
 0x274   : > { %v5466_v34 = vadd.f32 %v9411_v14, %v5427_v20  ;;  %v5693_v4 = vmul.f32 %v5463_v52, %v5463_v52 }
 0x275   : > { %v5654_v36 = vadd.f32 %v5653_v6, %v5463_v52  ;;  %v5723_v19 = vadd.f32 %v5722_v27, %v5692_v57  ;;  %v5464_v3 = vadd.f32 %v9411_v14, %v5425_v45 }
 0x276   : > { %v6403_v63 = vpack.c.bf16 %v5466_v34, %v5465_v9  ;;  %v5696_v23 = vmul.f32 %v5466_v34, %v5466_v34 }
 0x277   : > { %v5724_v56 = vadd.f32 %v5723_v19, %v5693_v4  ;;  %v6398_v37 = vpack.c.bf16 %v5464_v3, %v5463_v52  ;;  %v5655_v33 = vadd.f32 %v5654_v36, %v5464_v3  ;;  %v5694_v44 = vmul.f32 %v5464_v3, %v5464_v3 }
 0x278   : > { %6419 = vst [vmem:[%s9428_s24 + $0x78] sm:$0xff] %v6403_v63  }
 0x279   : > { %6418 = vst [vmem:[%s9428_s24 + $0x70] sm:$0xff] %v6398_v37   ;;  %v5656_v58 = vadd.f32 %v5655_v33, %v5465_v9  ;;  %v5725_v49 = vadd.f32 %v5724_v56, %v5694_v44 }
 0x27b   : > { %v5657_v47 = vadd.f32 %v5656_v58, %v5466_v34  ;;  %v5726_v32 = vadd.f32 %v5725_v49, %v5695_v61 }
 0x27d   : > { %v5658_v59 = vrot.slane %v5657_v47, 4  ;;  %v5727_v21 = vadd.f32 %v5726_v32, %v5696_v23 }
 0x27f   : > { %v5659_v24 = vadd.f32 %v5658_v59, %v5657_v47  ;;  %v5728_v22 = vrot.slane %v5727_v21, 4 }
 0x281   : > { %v5660_v28 = vrot.slane %v5659_v24, 2  ;;  %v5729_v14 = vadd.f32 %v5728_v22, %v5727_v21 }
 0x283   : > { %v5661_v38 = vadd.f32 %v5660_v28, %v5659_v24  ;;  %v5730_v43 = vrot.slane %v5729_v14, 2 }
 0x285   : > { %v5662_v62 = vrot.slane %v5661_v38, 1  ;;  %v5731_v1 = vadd.f32 %v5730_v43, %v5729_v14 }
 0x287   : > { %v5663_v7 = vadd.f32 %v5662_v62, %v5661_v38  ;;  %v5732_v31 = vrot.slane %v5731_v1, 1 }
 0x289   : > { %5664 = vst [vmem:[%s208_s28] sm:$0x1] %v5663_v7  ;;  %v5733_v35 = vadd.f32 %v5732_v31, %v5731_v1 }
 0x28b   : > { %5734 = vst [vmem:[%s208_s28 + $0x1] sm:$0x1] %v5733_v35 }
 0x28c PF: > { %s15_s15 = sadd.s32 1, %s6963_s15  }
 0x28d   : > { %p12_p4 = scmp.ge.s32.totalorder %s15_s15, 4  }
 0x28f   :  { %14 = sbr.rel (!%p12_p4) target bundleno = 1 (0x1), region = 84 }

// kernel: residual_block.4
= control target key start
LH: loop header
LB: loop body
LE: loop exit
PB: predicated region body
PF: predicated region fallthrough
CT: control target
= control target key end

     0   :  { %s7475_s18 = smov 0   ;;  %s10078_s0 = inlined_call_operand.vmem [shape: bf16[2,16,16,128], index: 0, kind: input, shape index: {}]   ;;  %s10079_s1 = inlined_call_operand.vmem [shape: f32[2,128], index: 1, kind: input, shape index: {}]   ;;  %s10080_s2 = inlined_call_operand.vmem [shape: bf16[9,128,128], index: 2, kind: input, shape index: {}]   ;;  %s10081_s3 = inlined_call_operand.vmem [shape: f32[1,128], index: 3, kind: input, shape index: {}]   ;;  %s10082_s4 = inlined_call_operand.vmem [shape: f32[2,16,16,128], index: 4, kind: output, shape index: {0}]   ;;  %s10083_s5 = inlined_call_operand.vmem [shape: f32[2,2,128], index: 5, kind: output, shape index: {1}]  }
   0x1 LB: > { %s6070_s19 = sadd.s32 4294967295, %s7442_s18   ;;  %p6074_p0 = scmp.ge.s32.totalorder %s7442_s18, 1  ;;  %s7442_s18 = sphi %s7475_s18, %s16_s18  }
   0x2   : > { %p190_p1 = scmp.lt.s32.totalorder %s7442_s18, 3 }
   0x4   : > { %p191_p2 = pnand %p6074_p0, %p190_p1 }
   0x6   : > { %194 = sbr.rel (%p191_p2) target bundleno = 686 (0x2ae), region = 36 }
   0xb   : > { %v7293_v0 = vld [vmem:[%s10080_s2 + $0x78] sm:$0xff]   ;;  %v302_v1 = vlaneseq  ;;  %v7489_v2 = vld [vmem:[%s10080_s2 + $0x70] sm:$0xff]   ;;  %v7444_v3 = vmov 0   ;;  %p222_p3 = scmp.lt.s32.totalorder %s6070_s19, 1  ;;  %v7295_v5 = vld [vmem:[%s10080_s2 + $0x68] sm:$0xff]   ;;  %vm880_vm5 = vcmask 1043456  }
   0xc   : > { %406 = vst [vmem:[#allocation2] sm:$0xf] %v7444_v3  ;;  %407 = vst [vmem:[#allocation2 + $0x4] sm:$0xf] %v7444_v3  ;;  %6836 = vmatprep.subr.bf16.mxu0 %v7293_v0  ;;  %7268 = vmatprep.subr.bf16.mxu1 %v7293_v0  ;;  %v7296_v6 = vld [vmem:[%s10080_s2 + $0x60] sm:$0xff]   ;;  %v7297_v23 = vld [vmem:[%s10080_s2 + $0x58] sm:$0xff]  }
   0xd   : > { %408 = vst [vmem:[#allocation2 + $0x8] sm:$0x1] %v7444_v3  ;;  %409 = vst [vmem:[#allocation2 + $0xc] sm:$0xf] %v7444_v3  ;;  %6837 = vmatpush3.bf16.msra.mxu0 %v7293_v0  ;;  %7276 = vmatpush3.bf16.msra.mxu1 %v7293_v0  ;;  %s10350_s19 = smov (!%p222_p3, %s6070_s19), 1  ;;  %v303_v4 = vshrl.u32 %v302_v1, 7 }
   0xe   : > { %410 = vst [vmem:[#allocation2 + $0x10] sm:$0xf] %v7444_v3  ;;  %411 = vst [vmem:[#allocation2 + $0x14] sm:$0x1] %v7444_v3  ;;  %6838 = vmatprep.subr.bf16.mxu0 %v7489_v2  ;;  %7269 = vmatprep.subr.bf16.mxu1 %v7489_v2  ;;  %s6507_s26 = sshll.u32 %s10350_s19, 7  ;;  %v7298_v38 = vld [vmem:[%s10080_s2 + $0x50] sm:$0xff]  }
   0xf   : > { %412 = vst [vmem:[#allocation2 + $0x18] sm:$0xf] %v7444_v3  ;;  %413 = vst [vmem:[#allocation2 + $0x1c] sm:$0xf] %v7444_v3  ;;  %s7511_s6 = scalar_lea.vmem %s10078_s0, %s6507_s26  ;;  %v304_v7 = vsub.s32 0, %v303_v4  ;;  %v340_v13 = vsub.s32 1, %v303_v4 }
  0x10   : > { %414 = vst [vmem:[#allocation2 + $0x20] sm:$0x1] %v7444_v3  ;;  %415 = vst [vmem:[#allocation2 + $0x24] sm:$0xf] %v7444_v3  ;;  %vm1061_vm0 = vsmask.f32 3328 }
  0x11   : > { %416 = vst [vmem:[#allocation2 + $0x28] sm:$0xf] %v7444_v3  ;;  %417 = vst [vmem:[#allocation2 + $0x2c] sm:$0x1] %v7444_v3  ;;  %6839 = vmatpush3.bf16.msra.mxu0 %v7489_v2  ;;  %7277 = vmatpush3.bf16.msra.mxu1 %v7489_v2  ;;  %vm1062_vm1 = vsmask.f32 7440 }
  0x12   : > { %418 = vst [vmem:[#allocation2 + $0x30] sm:$0xf] %v7444_v3  ;;  %419 = vst [vmem:[#allocation2 + $0x34] sm:$0xf] %v7444_v3  ;;  %6840 = vmatprep.subr.bf16.mxu0 %v7295_v5  ;;  %7270 = vmatprep.subr.bf16.mxu1 %v7295_v5  ;;  %v6542_v17 = vld [vmem:[%s7511_s6] sm:$0xff]   ;;  %v6611_v27 = vld [vmem:[%s7511_s6 + $0x38] sm:$0xff]  }
  0x13   : > { %420 = vst [vmem:[#allocation2 + $0x38] sm:$0x1] %v7444_v3  ;;  %421 = vst [vmem:[#allocation2 + $0x3c] sm:$0xf] %v7444_v3  ;;  %v997_v8 = vld [vmem:[#allocation2] sm:$0xf]  ;;  %v6543_v20 = vunpack.c.l.bf16 %v6542_v17  ;;  %v6544_v21 = vunpack.c.h.bf16 %v6542_v17  ;;  %v6571_v37 = vunpack.c.l.bf16 %v6611_v27  ;;  %v6572_v42 = vunpack.c.h.bf16 %v6611_v27 }
  0x14   : > { %422 = vst [vmem:[#allocation2 + $0x40] sm:$0xf] %v7444_v3  ;;  %423 = vst [vmem:[#allocation2 + $0x44] sm:$0x1] %v7444_v3  ;;  %v998_v9 = vld [vmem:[#allocation2 + $0x4] sm:$0xf] }
  0x15   : > { %424 = vst [vmem:[#allocation2 + $0x48] sm:$0xf] %v7444_v3  ;;  %425 = vst [vmem:[#allocation2 + $0x4c] sm:$0xf] %v7444_v3  ;;  %v7513_v10 = vld [vmem:[#allocation2 + $0x8] sm:$0x1]  ;;  %6841 = vmatpush3.bf16.msra.mxu0 %v7295_v5  ;;  %7278 = vmatpush3.bf16.msra.mxu1 %v7295_v5 }
  0x16   : > { %426 = vst [vmem:[#allocation2 + $0x50] sm:$0x1] %v7444_v3  ;;  %427 = vst [vmem:[#allocation2 + $0x54] sm:$0xf] %v7444_v3  ;;  %v1065_v11 = vshrl.u32 %v997_v8, 16  ;;  %v1068_v12 = vshll.u32 %v997_v8, 16  ;;  %6842 = vmatprep.subr.bf16.mxu0 %v7296_v6  ;;  %7271 = vmatprep.subr.bf16.mxu1 %v7296_v6 }
  0x17   : > { %428 = vst [vmem:[#allocation2 + $0x58] sm:$0xf] %v7444_v3  ;;  %429 = vst [vmem:[#allocation2 + $0x5c] sm:$0x1] %v7444_v3  ;;  %v1074_v14 = vshll.u32 %v998_v9, 16  ;;  %v1078_v15 = vshrl.u32 %v998_v9, 16 }
  0x18   : > { %430 = vst [vmem:[#allocation2 + $0x60] sm:$0xf] %v7444_v3  ;;  %431 = vst [vmem:[#allocation2 + $0x64] sm:$0xf] %v7444_v3  ;;  %v1084_v16 = vshll.u32 %v7513_v10, 16  ;;  %v1067_v18 = vrot.slane %v1065_v11, 4 }
  0x19   : > { %432 = vst [vmem:[#allocation2 + $0x68] sm:$0x1] %v7444_v3  ;;  %433 = vst [vmem:[#allocation2 + $0x6c] sm:$0xf] %v7444_v3  ;;  %v1070_v19 = vrot.slane %v1068_v12, 5  ;;  %v1076_v24 = vrot.slane %v1074_v14, 5  ;;  %6843 = vmatpush3.bf16.msra.mxu0 %v7296_v6  ;;  %7279 = vmatpush3.bf16.msra.mxu1 %v7296_v6 }
  0x1a   : > { %434 = vst [vmem:[#allocation2 + $0x70] sm:$0xf] %v7444_v3  ;;  %435 = vst [vmem:[#allocation2 + $0x74] sm:$0x1] %v7444_v3  ;;  %v301_v22 = vld [vmem:[%s10079_s1] sm:$0x3]  ;;  %6844 = vmatprep.subr.bf16.mxu0 %v7297_v23  ;;  %7272 = vmatprep.subr.bf16.mxu1 %v7297_v23 }
  0x1b   : > { %436 = vst [vmem:[#allocation2 + $0x78] sm:$0xf] %v7444_v3  ;;  %437 = vst [vmem:[#allocation2 + $0x7c] sm:$0xf] %v7444_v3  ;;  %v1080_v25 = vrot.slane %v1078_v15, 4  ;;  %v7523_v26 = vrot.slane %v301_v22, %v304_v7  ;;  %v1071_v28 = vor.u32 %v1070_v19, %v1067_v18  ;;  %v7526_v29 = vrot.slane %v301_v22, %v340_v13  ;;  %v6612_v45 = vld [vmem:[%s7511_s6 + $0x40] sm:$0xff]  }
  0x1c   : > { %438 = vst [vmem:[#allocation2 + $0x80] sm:$0x1] %v7444_v3  ;;  %439 = vst [vmem:[#allocation2 + $0x84] sm:$0xf] %v7444_v3  ;;  %v1086_v32 = vrot.slane %v1084_v16, 5  ;;  %v2099_v36 = vrot.slane %v7513_v10, 5  ;;  %v6575_v53 = vunpack.c.l.bf16 %v6612_v45  ;;  %v6576_v54 = vunpack.c.h.bf16 %v6612_v45 }
  0x1d   : > { %440 = vst [vmem:[#allocation2 + $0x88] sm:$0xf] %v7444_v3  ;;  %441 = vst [vmem:[#allocation2 + $0x8c] sm:$0x1] %v7444_v3  ;;  %v1081_v31 = vor.u32 %v1080_v25, %v1076_v24  ;;  %v306_v33 = vmul.f32 %v6543_v20, %v7523_v26  ;;  %v307_v34 = vmul.f32 %v6544_v21, %v7523_v26  ;;  %v1072_v35 = vrot.slane %v1071_v28, 4  ;;  %v7299_v50 = vld [vmem:[%s10080_s2 + $0x48] sm:$0xff]  }
  0x1e   : > { %442 = vst [vmem:[#allocation2 + $0x90] sm:$0xf] %v7444_v3  ;;  %443 = vst [vmem:[#allocation2 + $0x94] sm:$0xf] %v7444_v3  ;;  %vm556_vm3 = vsmask.f32 256  ;;  %v320_v44 = vmul.f32 %v6571_v37, %v7523_v26  ;;  %v321_v49 = vmul.f32 %v6572_v42, %v7523_v26  ;;  %6845 = vmatpush3.bf16.msra.mxu0 %v7297_v23  ;;  %7280 = vmatpush3.bf16.msra.mxu1 %v7297_v23 }
  0x1f   : > { %444 = vst [vmem:[#allocation2 + $0x98] sm:$0x1] %v7444_v3  ;;  %445 = vst [vmem:[#allocation2 + $0x9c] sm:$0xf] %v7444_v3  ;;  %v1082_v39 = vrot.slane %v1081_v31, 4  ;;  %v342_v40 = vadd.f32 %v7526_v29, %v306_v33  ;;  %v343_v41 = vadd.f32 %v7526_v29, %v307_v34  ;;  %6846 = vmatprep.subr.bf16.mxu0 %v7298_v38  ;;  %7273 = vmatprep.subr.bf16.mxu1 %v7298_v38  ;;  %vm887_vm7 = vcmask 1040384  }
  0x20   : > { %446 = vst [vmem:[#allocation2 + $0xa0] sm:$0xf] %v7444_v3  ;;  %447 = vst [vmem:[#allocation2 + $0xa4] sm:$0x1] %v7444_v3  ;;  %vm557_vm4 = vsmask.f32 4368  ;;  %v356_v52 = vadd.f32 %v7526_v29, %v320_v44  ;;  %v357_v57 = vadd.f32 %v7526_v29, %v321_v49  ;;  %v322_v59 = vmul.f32 %v6575_v53, %v7523_v26 }
  0x21   : > { %448 = vst [vmem:[#allocation2 + $0xa8] sm:$0xf] %v7444_v3  ;;  %449 = vst [vmem:[#allocation2 + $0xac] sm:$0xf] %v7444_v3  ;;  %v374_v47 = vmax.f32 %v342_v40, 0.0  ;;  %v375_v48 = vmax.f32 %v343_v41, 0.0  ;;  %v323_v60 = vmul.f32 %v6576_v54, %v7523_v26 }
  0x22   : > { %450 = vst [vmem:[#allocation2 + $0xb0] sm:$0x1] %v7444_v3  ;;  %451 = vst [vmem:[#allocation2 + $0xb4] sm:$0xf] %v7444_v3  ;;  %vm881_vm6 = vsmask.f32 7938  ;;  %6847 = vmatpush3.bf16.msra.mxu0 %v7298_v38  ;;  %7281 = vmatpush3.bf16.msra.mxu1 %v7298_v38  ;;  %v358_v6 = vadd.f32 %v7526_v29, %v322_v59 }
  0x23   : > { %452 = vst [vmem:[#allocation2 + $0xb8] sm:$0xf] %v7444_v3  ;;  %453 = vst [vmem:[#allocation2 + $0xbc] sm:$0x1] %v7444_v3  ;;  %v6509_v55 = vpack.c.bf16 %v374_v47, %v374_v47  ;;  %v6510_v56 = vpack.c.bf16 %v375_v48, %v375_v48  ;;  %v388_v58 = vmax.f32 %v356_v52, 0.0  ;;  %v6605_v61 = vld [vmem:[%s7511_s6 + $0x8] sm:$0xff]   ;;  %v359_v7 = vadd.f32 %v7526_v29, %v323_v60 }
  0x24   : > { %454 = vst [vmem:[#allocation2 + $0xc0] sm:$0xf] %v7444_v3  ;;  %455 = vst [vmem:[#allocation2 + $0xc4] sm:$0xf] %v7444_v3  ;;  %v7300_v2 = vld [vmem:[%s10080_s2 + $0x40] sm:$0xff]   ;;  %v389_v4 = vmax.f32 %v357_v57, 0.0  ;;  %6848 = vmatprep.subr.bf16.mxu0 %v7299_v50  ;;  %7274 = vmatprep.subr.bf16.mxu1 %v7299_v50  ;;  %v6547_v14 = vunpack.c.l.bf16 %v6605_v61  ;;  %v6548_v15 = vunpack.c.h.bf16 %v6605_v61 }
  0x25   : > { %456 = vst [vmem:[#allocation2 + $0xc8] sm:$0x1] %v7444_v3  ;;  %457 = vst [vmem:[#allocation2 + $0xcc] sm:$0xf] %v7444_v3  ;;  %v560_v62 = vshrl.u32 %v6509_v55, 16  ;;  %v563_v63 = vshll.u32 %v6509_v55, 16  ;;  %v6523_v5 = vpack.c.bf16 %v388_v58, %v388_v58 }
  0x26   : > { %458 = vst [vmem:[#allocation2 + $0xd0] sm:$0xf] %v7444_v3  ;;  %459 = vst [vmem:[#allocation2 + $0xd4] sm:$0x1] %v7444_v3  ;;  %v568_v0 = vshrl.u32 %v6510_v56, 16  ;;  %v571_v1 = vshll.u32 %v6510_v56, 16  ;;  %v6524_v17 = vpack.c.bf16 %v389_v4, %v389_v4  ;;  %6849 = vmatpush3.bf16.msra.mxu0 %v7299_v50  ;;  %7282 = vmatpush3.bf16.msra.mxu1 %v7299_v50 }
  0x27   : > { %10100 = vst [vmem:[#allocation3_spill] sm:$0xff] %v7523_v26  ;;  %10101 = vst [vmem:[#allocation4_spill] sm:$0xff] %v7526_v29  ;;  %v10104_v3 = vmov 0  ;;  %v562_v8 = vrot.slane %v560_v62, 7  ;;  %v10107_v11 = vmov 0  ;;  %v10110_v16 = vmov 0  ;;  %6850 = vmatprep.subr.bf16.mxu0 %v7300_v2  ;;  %7275 = vmatprep.subr.bf16.mxu1 %v7300_v2 }
  0x28   : > { %vm7530_vm2 = vmor %vm1061_vm0, %vm1062_vm1  ;;  %v570_v9 = vrot.slane %v568_v0, 7  ;;  %v883_v12 = vld [vmem:[#allocation2 + $0xc] sm:$0xf]  ;;  %v889_v13 = vld [vmem:[#allocation2 + $0x14] sm:$0x1]  ;;  %v679_v18 = vshrl.u32 %v6523_v5, 16  ;;  %v308_v47 = vmul.f32 %v6547_v14, %v7523_v26  ;;  %v309_v48 = vmul.f32 %v6548_v15, %v7523_v26 }
  0x29   : > { %v1077_v43 = vsel %vm7530_vm2, %v1072_v35, %v1076_v24  ;;  %v1087_v46 = vsel %vm7530_vm2, %v1082_v39, %v1086_v32  ;;  %vm7562_vm8 = vmor %vm556_vm3, %vm557_vm4  ;;  %v682_v19 = vshll.u32 %v6523_v5, 16  ;;  %v390_v20 = vmax.f32 %v358_v6, 0.0  ;;  %v6606_v21 = vld [vmem:[%s7511_s6 + $0x10] sm:$0xff]   ;;  %v934_v37 = vld [vmem:[#allocation2 + $0x60] sm:$0xf]  ;;  %s6508_s15 = sshll.u32 %s10350_s19, 8 }
  0x2a   : > { %v6128_v51 = vcombine.low %v1077_v43, %v1087_v46  ;;  %v10105_v3 = vsel %vm7562_vm8, 4294967295, %v10104_v3  ;;  %vm7570_vm9 = vmand %vm880_vm5, %vm881_vm6  ;;  %v565_v22 = vor.u32 %v563_v63, %v562_v8  ;;  %v566_v23 = vrot.slane %v562_v8, 4  ;;  %v7590_v38 = vld [vmem:[%s10080_s2 + $0x38] sm:$0xff]   ;;  %v938_v45 = vld [vmem:[#allocation2 + $0x68] sm:$0x1]  ;;  %6851 = vmatpush3.bf16.msra.mxu0 %v7300_v2  ;;  %7283 = vmatpush3.bf16.msra.mxu1 %v7300_v2  ;;  %s9868_s21 = scalar_lea.vmem %s10082_s4, %s6508_s15  ;;  %s6079_s22 = sshll.u32 %s10350_s19, 1 }
  0x2b   : > { %10106 = vst [vmem:[#allocation5_spill] sm:$0xff] %v10105_v3  ;;  %v10108_v11 = vsel %vm7570_vm9, 4294967295, %v10107_v11  ;;  %vm7576_vm10 = vmand %vm887_vm7, %vm556_vm3  ;;  %v573_v24 = vor.u32 %v571_v1, %v570_v9  ;;  %v575_v25 = vrot.slane %v570_v9, 4  ;;  %v681_v27 = vrot.slane %v679_v18, 7  ;;  %v7595_v39 = vld [vmem:[%s10080_s2 + $0xb8] sm:$0xff]   ;;  %6884 = vmatprep.subr.bf16.mxu1 %v7590_v38  ;;  %v7605_v58 = vld [vmem:[%s7511_s6 + $0x48] sm:$0xff]   ;;  %s235_s25 = scalar_lea.vmem %s10083_s5, %s6079_s22 }
  0x2c   : > { %6852 = vmatprep.mubr.bf16.mxu0 %v6128_v51  ;;  %10109 = vst [vmem:[#allocation6_spill] sm:$0xff] %v10108_v11  ;;  %v10111_v16 = vsel %vm7576_vm10, 4294967295, %v10110_v16  ;;  %v687_v28 = vshrl.u32 %v6524_v17, 16  ;;  %v690_v31 = vshll.u32 %v6524_v17, 16  ;;  %v391_v32 = vmax.f32 %v359_v7, 0.0  ;;  %6932 = vmatprep.subr.bf16.mxu0 %v7595_v39 }
  0x2d   : > { %10112 = vst [vmem:[#allocation7_spill] sm:$0xff] %v10111_v16  ;;  %v574_v33 = vsel %vm7562_vm8, %v566_v23, %v573_v24  ;;  %v884_v34 = vsel %vm7570_vm9, %v565_v22, %v883_v12  ;;  %v890_v35 = vsel %vm7576_vm10, %v575_v25, %v889_v13  ;;  %v6551_v40 = vunpack.c.l.bf16 %v6606_v21  ;;  %v941_v6 = vld [vmem:[#allocation2 + $0x6c] sm:$0xf]  ;;  %v945_v23 = vld [vmem:[#allocation2 + $0x74] sm:$0x1] }
  0x2e   : > { %885 = vst [vmem:[#allocation2 + $0xc] sm:$0xf] %v884_v34  ;;  %886 = vst [vmem:[#allocation2 + $0x10] sm:$0xf] %v574_v33  ;;  %v684_v41 = vor.u32 %v682_v19, %v681_v27  ;;  %v685_v42 = vrot.slane %v681_v27, 4  ;;  %v689_v43 = vrot.slane %v687_v28, 7  ;;  %v6525_v44 = vpack.c.bf16 %v390_v20, %v390_v20 }
  0x2f   : > { %891 = vst [vmem:[#allocation2 + $0x14] sm:$0x1] %v890_v35  ;;  %v6526_v46 = vpack.c.bf16 %v391_v32, %v391_v32  ;;  %v6552_v49 = vunpack.c.h.bf16 %v6606_v21  ;;  %v344_v57 = vadd.f32 %v7526_v29, %v308_v47  ;;  %v345_v62 = vadd.f32 %v7526_v29, %v309_v48 }
  0x30   : > { %v692_v50 = vor.u32 %v690_v31, %v689_v43  ;;  %v694_v51 = vrot.slane %v689_v43, 4  ;;  %v935_v52 = vsel %vm7570_vm9, %v684_v41, %v934_v37  ;;  %v696_v53 = vshrl.u32 %v6525_v44, 16 }
  0x31   : > { %936 = vst [vmem:[#allocation2 + $0x60] sm:$0xf] %v935_v52  ;;  %v699_v54 = vshll.u32 %v6525_v44, 16  ;;  %v704_v55 = vshrl.u32 %v6526_v46, 16  ;;  %v707_v56 = vshll.u32 %v6526_v46, 16  ;;  %v376_v0 = vmax.f32 %v344_v57, 0.0 }
  0x32   : > { %v693_v59 = vsel %vm7562_vm8, %v685_v42, %v692_v50  ;;  %v939_v60 = vsel %vm7576_vm10, %v694_v51, %v938_v45  ;;  %v698_v61 = vrot.slane %v696_v53, 7  ;;  %v310_v1 = vmul.f32 %v6551_v40, %v7523_v26 }
  0x33   : > { %937 = vst [vmem:[#allocation2 + $0x64] sm:$0xf] %v693_v59  ;;  %940 = vst [vmem:[#allocation2 + $0x68] sm:$0x1] %v939_v60  ;;  %v706_v63 = vrot.slane %v704_v55, 7  ;;  %v311_v2 = vmul.f32 %v6552_v49, %v7523_v26  ;;  %v377_v7 = vmax.f32 %v345_v62, 0.0  ;;  %v6579_v8 = vunpack.c.l.bf16 %v7605_v58 }
  0x34   : > { %v701_v4 = vor.u32 %v699_v54, %v698_v61  ;;  %v702_v5 = vrot.slane %v698_v61, 4  ;;  %v6511_v15 = vpack.c.bf16 %v376_v0, %v376_v0  ;;  %v7618_v17 = vadd.f32 %v7526_v29, %v310_v1 }
  0x35   : > { %v999_v9 = vld [vmem:[#allocation2 + $0xc] sm:$0xf]  ;;  %v1000_v12 = vld [vmem:[#allocation2 + $0x10] sm:$0xf]  ;;  %v709_v14 = vor.u32 %v707_v56, %v706_v63  ;;  %v7621_v18 = vadd.f32 %v7526_v29, %v311_v2  ;;  %v711_v28 = vrot.slane %v706_v63, 4  ;;  %v6512_v48 = vpack.c.bf16 %v377_v7, %v377_v7 }
  0x36   : > { %v7615_v13 = vld [vmem:[#allocation2 + $0x14] sm:$0x1]  ;;  %v1089_v19 = vshrl.u32 %v999_v9, 16  ;;  %v1092_v20 = vshll.u32 %v999_v9, 16  ;;  %v1098_v21 = vshll.u32 %v1000_v12, 16  ;;  %v1102_v22 = vshrl.u32 %v1000_v12, 16 }
  0x37   : > { %v1108_v24 = vshll.u32 %v7615_v13, 16  ;;  %v2106_v25 = vrot.slane %v7615_v13, 5  ;;  %v710_v27 = vsel %vm7562_vm8, %v702_v5, %v709_v14  ;;  %v942_v42 = vsel %vm7570_vm9, %v701_v4, %v941_v6  ;;  %v7304_v7 = vld [vmem:[%s10080_s2 + $0xb0] sm:$0xff]  }
  0x38   : > { %v1091_v31 = vrot.slane %v1089_v19, 4  ;;  %v1094_v32 = vrot.slane %v1092_v20, 5  ;;  %v1100_v33 = vrot.slane %v1098_v21, 5  ;;  %v1104_v34 = vrot.slane %v1102_v22, 4  ;;  %v1013_v35 = vld [vmem:[#allocation2 + $0x60] sm:$0xf] }
  0x39   : > { %944 = vst [vmem:[#allocation2 + $0x70] sm:$0xf] %v710_v27  ;;  %v1110_v37 = vrot.slane %v1108_v24, 5  ;;  %v1257_v40 = vshrl.u32 %v1013_v35, 16  ;;  %v1260_v41 = vshll.u32 %v1013_v35, 16  ;;  %v946_v47 = vsel %vm7576_vm10, %v711_v28, %v945_v23 }
  0x3a   : > { %v1095_v43 = vor.u32 %v1094_v32, %v1091_v31  ;;  %v1105_v44 = vor.u32 %v1104_v34, %v1100_v33  ;;  %v1014_v45 = vld [vmem:[#allocation2 + $0x64] sm:$0xf]  ;;  %v7629_v46 = vld [vmem:[#allocation2 + $0x68] sm:$0x1]  ;;  %943 = vst [vmem:[#allocation2 + $0x6c] sm:$0xf] %v942_v42 }
  0x3b   : > { %v1259_v49 = vrot.slane %v1257_v40, 4  ;;  %v1262_v50 = vrot.slane %v1260_v41, 5  ;;  %v1266_v51 = vshll.u32 %v1014_v45, 16  ;;  %v1270_v52 = vshrl.u32 %v1014_v45, 16  ;;  %947 = vst [vmem:[#allocation2 + $0x74] sm:$0x1] %v946_v47 }
  0x3c   : > { %v1096_v53 = vrot.slane %v1095_v43, 4  ;;  %v1106_v54 = vrot.slane %v1105_v44, 4  ;;  %v1276_v55 = vshll.u32 %v7629_v46, 16  ;;  %v577_v61 = vshrl.u32 %v6511_v15, 16  ;;  %v892_v21 = vld [vmem:[#allocation2 + $0x18] sm:$0xf] }
  0x3d   : > { %v1263_v57 = vor.u32 %v1262_v50, %v1259_v49  ;;  %v1268_v59 = vrot.slane %v1266_v51, 5  ;;  %v1272_v60 = vrot.slane %v1270_v52, 4  ;;  %v580_v1 = vshll.u32 %v6511_v15, 16  ;;  %v7306_v42 = vld [vmem:[%s10080_s2 + $0xa8] sm:$0xff]   ;;  %v7654_v52 = vld [vmem:[%s7511_s6 + $0x50] sm:$0xff]  }
  0x3e   : > { %v1101_v62 = vsel %vm7530_vm2, %v1096_v53, %v1100_v33  ;;  %v1111_v63 = vsel %vm7530_vm2, %v1106_v54, %v1110_v37  ;;  %v1278_v0 = vrot.slane %v1276_v55, 5  ;;  %v579_v9 = vrot.slane %v577_v61, 7  ;;  %v8225_v3 = vld [vmem:[#allocation2 + $0x14] sm:$0x1] }
  0x3f   : > { %v6129_v2 = vcombine.low %v1101_v62, %v1111_v63  ;;  %v1264_v4 = vrot.slane %v1263_v57, 4  ;;  %v1273_v5 = vor.u32 %v1272_v60, %v1268_v59  ;;  %v585_v19 = vshrl.u32 %v6512_v48, 16  ;;  %v7308_v62 = vld [vmem:[%s10080_s2 + $0xa0] sm:$0xff]   ;;  %10121 = vst [vmem:[#allocation11_spill] sm:$0xff] %v8225_v3 }
  0x40   : > { %v1016_v6 = vld [vmem:[#allocation2 + $0x70] sm:$0xf]  ;;  %v588_v20 = vshll.u32 %v6512_v48, 16  ;;  %v582_v24 = vor.u32 %v580_v1, %v579_v9  ;;  %v583_v27 = vrot.slane %v579_v9, 4  ;;  %v378_v51 = vmax.f32 %v7618_v17, 0.0 }
  0x41   : > { %v1290_v12 = vshll.u32 %v1016_v6, 16  ;;  %v1294_v14 = vshrl.u32 %v1016_v6, 16  ;;  %6853 = vmatmul.mubr.bf16.vlgmr.msra.gmra.mxu0 %v6129_v2  ;;  %v1269_v22 = vsel %vm7530_vm2, %v1264_v4, %v1268_v59  ;;  %v1274_v23 = vrot.slane %v1273_v5, 4  ;;  %v1015_v15 = vld [vmem:[#allocation2 + $0x6c] sm:$0xf] }
  0x42   : > { %v1054_v28 = vld [vmem:[#allocation2 + $0x74] sm:$0x1]  ;;  %v1281_v31 = vshrl.u32 %v1015_v15, 16  ;;  %v1284_v32 = vshll.u32 %v1015_v15, 16  ;;  %6933 = vmatpush3.bf16.msra.mxu0 %v7595_v39  ;;  %v587_v40 = vrot.slane %v585_v19, 7  ;;  %v893_v41 = vsel %vm7570_vm9, %v582_v24, %v892_v21 }
  0x43   : > { %v1292_v33 = vrot.slane %v1290_v12, 5  ;;  %v1296_v34 = vrot.slane %v1294_v14, 4  ;;  %v1279_v35 = vsel %vm7530_vm2, %v1274_v23, %v1278_v0  ;;  %v1300_v37 = vshll.u32 %v1054_v28, 16  ;;  %6934 = vmatprep.subr.bf16.mxu0 %v7304_v7  ;;  %894 = vst [vmem:[#allocation2 + $0x18] sm:$0xf] %v893_v41  ;;  %v7303_v14 = vld [vmem:[%s10080_s2 + $0x30] sm:$0xff]  }
  0x44   : > { %v6136_v43 = vcombine.low %v1269_v22, %v1279_v35  ;;  %v1283_v44 = vrot.slane %v1281_v31, 4  ;;  %v1286_v45 = vrot.slane %v1284_v32, 5  ;;  %v896_v39 = vld [vmem:[#allocation2 + $0x20] sm:$0x1]  ;;  %v590_v49 = vor.u32 %v588_v20, %v587_v40  ;;  %v7310_v23 = vld [vmem:[%s10080_s2 + $0x98] sm:$0xff]  }
  0x45   : > { %v1297_v47 = vor.u32 %v1296_v34, %v1292_v33  ;;  %v1302_v48 = vrot.slane %v1300_v37, 5  ;;  %v592_v50 = vrot.slane %v587_v40, 4  ;;  %v379_v55 = vmax.f32 %v7621_v18, 0.0  ;;  %v899_v28 = vld [vmem:[#allocation2 + $0x24] sm:$0xf]  ;;  %v7305_v37 = vld [vmem:[%s10080_s2 + $0x28] sm:$0xff]  }
  0x46   : > { %6868 = vmatprep.mubr.bf16.mxu1 %v6136_v43  ;;  %v1287_v53 = vor.u32 %v1286_v45, %v1283_v44  ;;  %6935 = vmatpush3.bf16.msra.mxu0 %v7304_v7  ;;  %v6580_v57 = vunpack.c.h.bf16 %v7605_v58  ;;  %v591_v59 = vsel %vm7562_vm8, %v583_v27, %v590_v49  ;;  %v6513_v61 = vpack.c.bf16 %v378_v51, %v378_v51  ;;  %v903_v34 = vld [vmem:[#allocation2 + $0x2c] sm:$0x1]  ;;  %v7312_v45 = vld [vmem:[%s10080_s2 + $0x90] sm:$0xff]  }
  0x47   : > { %v1298_v54 = vrot.slane %v1297_v47, 4  ;;  %v897_v60 = vsel %vm7576_vm10, %v592_v50, %v896_v39  ;;  %v324_v17 = vmul.f32 %v6579_v8, %v7523_v26  ;;  %6936 = vmatprep.subr.bf16.mxu0 %v7306_v42  ;;  %895 = vst [vmem:[#allocation2 + $0x1c] sm:$0xf] %v591_v59  ;;  %v6514_v0 = vpack.c.bf16 %v379_v55, %v379_v55  ;;  %v948_v55 = vld [vmem:[#allocation2 + $0x78] sm:$0xf] }
  0x48   : > { %v1288_v63 = vrot.slane %v1287_v53, 4  ;;  %898 = vst [vmem:[#allocation2 + $0x20] sm:$0x1] %v897_v60  ;;  %v325_v1 = vmul.f32 %v6580_v57, %v7523_v26  ;;  %v594_v2 = vshrl.u32 %v6513_v61, 16  ;;  %v597_v4 = vshll.u32 %v6513_v61, 16 }
  0x49   : > { %v1303_v18 = vsel %vm7530_vm2, %v1298_v54, %v1302_v48  ;;  %v360_v5 = vadd.f32 %v7526_v29, %v324_v17  ;;  %v6583_v58 = vunpack.c.l.bf16 %v7654_v52  ;;  %v602_v6 = vshrl.u32 %v6514_v0, 16  ;;  %v7307_v17 = vld [vmem:[%s10080_s2 + $0x20] sm:$0xff]  }
  0x4a   : > { %v1293_v8 = vsel %vm7530_vm2, %v1288_v63, %v1292_v33  ;;  %v605_v7 = vshll.u32 %v6514_v0, 16  ;;  %v361_v9 = vadd.f32 %v7526_v29, %v325_v1  ;;  %6937 = vmatpush3.bf16.msra.mxu0 %v7306_v42  ;;  %v1001_v19 = vld [vmem:[#allocation2 + $0x18] sm:$0xf]  ;;  %v596_v20 = vrot.slane %v594_v2, 7  ;;  %v952_v2 = vld [vmem:[#allocation2 + $0x80] sm:$0x1] }
  0x4b   : > { %v6137_v12 = vcombine.low %v1293_v8, %v1303_v18  ;;  %v392_v21 = vmax.f32 %v360_v5, 0.0  ;;  %v6584_v22 = vunpack.c.h.bf16 %v7654_v52  ;;  %6938 = vmatprep.subr.bf16.mxu0 %v7308_v62  ;;  %v1113_v15 = vshrl.u32 %v1001_v19, 16 }
  0x4c   : > { %v1116_v24 = vshll.u32 %v1001_v19, 16  ;;  %v604_v27 = vrot.slane %v602_v6, 7  ;;  %v393_v31 = vmax.f32 %v361_v9, 0.0  ;;  %v599_v32 = vor.u32 %v597_v4, %v596_v20  ;;  %v7702_v4 = vld [vmem:[%s7511_s6 + $0x20] sm:$0xff]  }
  0x4d   : > { %6869 = vmatmul.mubr.bf16.vlgmr.msra.gmra.mxu1 %v6137_v12  ;;  %v600_v33 = vrot.slane %v596_v20, 4  ;;  %v6527_v35 = vpack.c.bf16 %v392_v21, %v392_v21  ;;  %v326_v40 = vmul.f32 %v6583_v58, %v7523_v26  ;;  %v1115_v41 = vrot.slane %v1113_v15, 4 }
  0x4e   : > { %6885 = vmatpush3.bf16.msra.mxu1 %v7590_v38  ;;  %v1118_v42 = vrot.slane %v1116_v24, 5  ;;  %v607_v43 = vor.u32 %v605_v7, %v604_v27  ;;  %v609_v44 = vrot.slane %v604_v27, 4  ;;  %6939 = vmatpush3.bf16.msra.mxu0 %v7308_v62  ;;  %v1002_v47 = vld [vmem:[#allocation2 + $0x1c] sm:$0xf]  ;;  %v900_v48 = vsel %vm7570_vm9, %v599_v32, %v899_v28  ;;  %v7314_v7 = vld [vmem:[%s10080_s2 + $0x88] sm:$0xff]  }
  0x4f   : > { %6886 = vmatprep.subr.bf16.mxu1 %v7303_v14  ;;  %v1047_v39 = vld [vmem:[#allocation2 + $0x20] sm:$0x1]  ;;  %v6528_v49 = vpack.c.bf16 %v393_v31, %v393_v31  ;;  %v713_v50 = vshrl.u32 %v6527_v35, 16  ;;  %v716_v51 = vshll.u32 %v6527_v35, 16  ;;  %6940 = vmatprep.subr.bf16.mxu0 %v7310_v23  ;;  %v1122_v52 = vshll.u32 %v1002_v47, 16  ;;  %v6607_v62 = vld [vmem:[%s7511_s6 + $0x18] sm:$0xff]  }
  0x50   : > { %v1119_v38 = vor.u32 %v1118_v42, %v1115_v41  ;;  %v1126_v53 = vshrl.u32 %v1002_v47, 16  ;;  %v1132_v54 = vshll.u32 %v1047_v39, 16  ;;  %901 = vst [vmem:[#allocation2 + $0x24] sm:$0xf] %v900_v48  ;;  %v608_v57 = vsel %vm7562_vm8, %v600_v33, %v607_v43  ;;  %v7418_v10 = vld [vmem:[#allocation2 + $0x20] sm:$0x1] }
  0x51   : > { %v904_v59 = vsel %vm7576_vm10, %v609_v44, %v903_v34  ;;  %v715_v60 = vrot.slane %v713_v50, 7  ;;  %v721_v61 = vshrl.u32 %v6528_v49, 16  ;;  %v1124_v18 = vrot.slane %v1122_v52, 5  ;;  %902 = vst [vmem:[#allocation2 + $0x28] sm:$0xf] %v608_v57  ;;  %v7316_v44 = vld [vmem:[%s10080_s2 + $0x80] sm:$0xff]  }
  0x52   : > { %6887 = vmatpush3.bf16.msra.mxu1 %v7303_v14  ;;  %v1120_v63 = vrot.slane %v1119_v38, 4  ;;  %v1128_v0 = vrot.slane %v1126_v53, 4  ;;  %v1134_v1 = vrot.slane %v1132_v54, 5  ;;  %905 = vst [vmem:[#allocation2 + $0x2c] sm:$0x1] %v904_v59  ;;  %6941 = vmatpush3.bf16.msra.mxu0 %v7310_v23  ;;  %v724_v6 = vshll.u32 %v6528_v49, 16 }
  0x53   : > { %v718_v5 = vor.u32 %v716_v51, %v715_v60  ;;  %v719_v58 = vrot.slane %v715_v60, 4  ;;  %v723_v8 = vrot.slane %v721_v61, 7  ;;  %6888 = vmatprep.subr.bf16.mxu1 %v7305_v37  ;;  %6942 = vmatprep.subr.bf16.mxu0 %v7312_v45  ;;  %v327_v14 = vmul.f32 %v6584_v22, %v7523_v26  ;;  %v7311_v51 = vld [vmem:[%s10080_s2 + $0x10] sm:$0xff]   ;;  %v7320_v61 = vld [vmem:[%s10080_s2 + $0x138] sm:$0xff]  }
  0x54   : > { %v1125_v9 = vsel %vm7530_vm2, %v1120_v63, %v1124_v18  ;;  %v1129_v12 = vor.u32 %v1128_v0, %v1124_v18  ;;  %v362_v19 = vadd.f32 %v7526_v29, %v326_v40  ;;  %v6555_v15 = vunpack.c.l.bf16 %v6607_v62  ;;  %v7309_v40 = vld [vmem:[%s10080_s2 + $0x18] sm:$0xff]  }
  0x55   : > { %v726_v20 = vor.u32 %v724_v6, %v723_v8  ;;  %v728_v21 = vrot.slane %v723_v8, 4  ;;  %v949_v23 = vsel %vm7570_vm9, %v718_v5, %v948_v55  ;;  %v363_v27 = vadd.f32 %v7526_v29, %v327_v14  ;;  %v955_v8 = vld [vmem:[#allocation2 + $0x84] sm:$0xf]  ;;  %v7313_v14 = vld [vmem:[%s10080_s2 + $0x8] sm:$0xff]  }
  0x56   : > { %v1130_v24 = vrot.slane %v1129_v12, 4  ;;  %950 = vst [vmem:[#allocation2 + $0x78] sm:$0xf] %v949_v23  ;;  %v394_v28 = vmax.f32 %v362_v19, 0.0  ;;  %6889 = vmatpush3.bf16.msra.mxu1 %v7305_v37  ;;  %v6556_v31 = vunpack.c.h.bf16 %v6607_v62  ;;  %6943 = vmatpush3.bf16.msra.mxu0 %v7312_v45  ;;  %v312_v34 = vmul.f32 %v6555_v15, %v7523_v26 }
  0x57   : > { %v1003_v32 = vld [vmem:[#allocation2 + $0x24] sm:$0xf]  ;;  %v727_v22 = vsel %vm7562_vm8, %v719_v58, %v726_v20  ;;  %v953_v33 = vsel %vm7576_vm10, %v728_v21, %v952_v2  ;;  %6890 = vmatprep.subr.bf16.mxu1 %v7307_v17  ;;  %v6559_v35 = vunpack.c.l.bf16 %v7702_v4  ;;  %6944 = vmatprep.subr.bf16.mxu0 %v7314_v7  ;;  %v395_v43 = vmax.f32 %v363_v27, 0.0 }
  0x58   : > { %v1135_v37 = vsel %vm7530_vm2, %v1130_v24, %v1134_v1  ;;  %v1137_v41 = vshrl.u32 %v1003_v32, 16  ;;  %v1140_v42 = vshll.u32 %v1003_v32, 16  ;;  %951 = vst [vmem:[#allocation2 + $0x7c] sm:$0xf] %v727_v22  ;;  %954 = vst [vmem:[#allocation2 + $0x80] sm:$0x1] %v953_v33  ;;  %v6529_v48 = vpack.c.bf16 %v394_v28, %v394_v28 }
  0x59   : > { %v6130_v45 = vcombine.low %v1125_v9, %v1135_v37  ;;  %v1004_v47 = vld [vmem:[#allocation2 + $0x28] sm:$0xf]  ;;  %v1048_v39 = vld [vmem:[#allocation2 + $0x2c] sm:$0x1]  ;;  %v313_v49 = vmul.f32 %v6556_v31, %v7523_v26  ;;  %v7730_v50 = vadd.f32 %v7526_v29, %v312_v34  ;;  %v6530_v57 = vpack.c.bf16 %v395_v43, %v395_v43 }
  0x5a   : > { %v1139_v38 = vrot.slane %v1137_v41, 4  ;;  %v1142_v52 = vrot.slane %v1140_v42, 5  ;;  %v1146_v53 = vshll.u32 %v1004_v47, 16  ;;  %v1150_v54 = vshrl.u32 %v1004_v47, 16  ;;  %6891 = vmatpush3.bf16.msra.mxu1 %v7307_v17  ;;  %6945 = vmatpush3.bf16.msra.mxu0 %v7314_v7  ;;  %v959_v22 = vld [vmem:[#allocation2 + $0x8c] sm:$0x1] }
  0x5b   : > { %6856 = vmatprep.mubr.bf16.mxu0 %v6130_v45  ;;  %v1156_v55 = vshll.u32 %v1048_v39, 16  ;;  %v730_v59 = vshrl.u32 %v6529_v48, 16  ;;  %v733_v60 = vshll.u32 %v6529_v48, 16  ;;  %6892 = vmatprep.subr.bf16.mxu1 %v7309_v40  ;;  %v7739_v0 = vadd.f32 %v7526_v29, %v313_v49  ;;  %v6615_v45 = vld [vmem:[%s7511_s6 + $0x58] sm:$0xff]  }
  0x5c   : > { %v1143_v62 = vor.u32 %v1142_v52, %v1139_v38  ;;  %v1148_v63 = vrot.slane %v1146_v53, 5  ;;  %v1152_v18 = vrot.slane %v1150_v54, 4  ;;  %6946 = vmatprep.subr.bf16.mxu0 %v7316_v44  ;;  %v738_v5 = vshrl.u32 %v6530_v57, 16  ;;  %v7315_v38 = vld [vmem:[%s10080_s2] sm:$0xff]  }
  0x5d   : > { %v1158_v1 = vrot.slane %v1156_v55, 5  ;;  %v1017_v17 = vld [vmem:[#allocation2 + $0x78] sm:$0xf]  ;;  %v732_v2 = vrot.slane %v730_v59, 7  ;;  %v741_v58 = vshll.u32 %v6530_v57, 16  ;;  %v6560_v24 = vunpack.c.h.bf16 %v7702_v4 }
  0x5e   : > { %v1144_v6 = vrot.slane %v1143_v62, 4  ;;  %v1153_v7 = vor.u32 %v1152_v18, %v1148_v63  ;;  %v1305_v9 = vshrl.u32 %v1017_v17, 16  ;;  %v1308_v12 = vshll.u32 %v1017_v17, 16  ;;  %6893 = vmatpush3.bf16.msra.mxu1 %v7309_v40  ;;  %6947 = vmatpush3.bf16.msra.mxu0 %v7316_v44  ;;  %v7318_v4 = vld [vmem:[%s10080_s2 + $0xf8] sm:$0xff]  }
  0x5f   : > { %v1018_v19 = vld [vmem:[#allocation2 + $0x7c] sm:$0xf]  ;;  %v1055_v20 = vld [vmem:[#allocation2 + $0x80] sm:$0x1]  ;;  %v735_v21 = vor.u32 %v733_v60, %v732_v2  ;;  %v736_v23 = vrot.slane %v732_v2, 4  ;;  %v740_v15 = vrot.slane %v738_v5, 7  ;;  %6894 = vmatprep.subr.bf16.mxu1 %v7311_v51  ;;  %7028 = vmatprep.subr.bf16.mxu0 %v7320_v61  ;;  %v314_v59 = vmul.f32 %v6559_v35, %v7523_v26 }
  0x60   : > { %v1149_v27 = vsel %vm7530_vm2, %v1144_v6, %v1148_v63  ;;  %v1154_v28 = vrot.slane %v1153_v7, 4  ;;  %v1307_v31 = vrot.slane %v1305_v9, 4  ;;  %v1310_v32 = vrot.slane %v1308_v12, 5  ;;  %v906_v9 = vld [vmem:[#allocation2 + $0x30] sm:$0xf] }
  0x61   : > { %v1314_v33 = vshll.u32 %v1018_v19, 16  ;;  %v1318_v34 = vshrl.u32 %v1018_v19, 16  ;;  %v1324_v40 = vshll.u32 %v1055_v20, 16  ;;  %v743_v37 = vor.u32 %v741_v58, %v740_v15 }
  0x62   : > { %v1159_v41 = vsel %vm7530_vm2, %v1154_v28, %v1158_v1  ;;  %v1311_v42 = vor.u32 %v1310_v32, %v1307_v31  ;;  %v745_v43 = vrot.slane %v740_v15, 4  ;;  %v956_v44 = vsel %vm7570_vm9, %v735_v21, %v955_v8  ;;  %6895 = vmatpush3.bf16.msra.mxu1 %v7311_v51  ;;  %v910_v28 = vld [vmem:[#allocation2 + $0x38] sm:$0x1] }
  0x63   : > { %v6131_v47 = vcombine.low %v1149_v27, %v1159_v41  ;;  %v1316_v39 = vrot.slane %v1314_v33, 5  ;;  %v1320_v48 = vrot.slane %v1318_v34, 4  ;;  %v1326_v49 = vrot.slane %v1324_v40, 5  ;;  %957 = vst [vmem:[#allocation2 + $0x84] sm:$0xf] %v956_v44  ;;  %6896 = vmatprep.subr.bf16.mxu1 %v7313_v14 }
  0x64   : > { %v1312_v52 = vrot.slane %v1311_v42, 4  ;;  %v744_v53 = vsel %vm7562_vm8, %v736_v23, %v743_v37  ;;  %v960_v54 = vsel %vm7576_vm10, %v745_v43, %v959_v22  ;;  %v380_v55 = vmax.f32 %v7730_v50, 0.0 }
  0x65   : > { %6857 = vmatmul.mubr.bf16.gmra.mxu0 %v6131_v47  ;;  %v1321_v51 = vor.u32 %v1320_v48, %v1316_v39  ;;  %958 = vst [vmem:[#allocation2 + $0x88] sm:$0xf] %v744_v53  ;;  %961 = vst [vmem:[#allocation2 + $0x8c] sm:$0x1] %v960_v54  ;;  %v381_v57 = vmax.f32 %v7739_v0, 0.0  ;;  %v315_v60 = vmul.f32 %v6560_v24, %v7523_v26  ;;  %v6587_v63 = vunpack.c.l.bf16 %v6615_v45  ;;  %v7781_v54 = vld [vmem:[%s7511_s6 + $0x60] sm:$0xff]  }
  0x66   : > { %v1317_v61 = vsel %vm7530_vm2, %v1312_v52, %v1316_v39  ;;  %v6515_v62 = vpack.c.bf16 %v380_v55, %v380_v55  ;;  %v6588_v18 = vunpack.c.h.bf16 %v6615_v45  ;;  %6897 = vmatpush3.bf16.msra.mxu1 %v7313_v14  ;;  %v350_v17 = vadd.f32 %v7526_v29, %v314_v59 }
  0x67   : > { %v1322_v50 = vrot.slane %v1321_v51, 4  ;;  %v6516_v1 = vpack.c.bf16 %v381_v57, %v381_v57  ;;  %v351_v2 = vadd.f32 %v7526_v29, %v315_v60  ;;  %6898 = vmatprep.subr.bf16.mxu1 %v7315_v38  ;;  %v328_v5 = vmul.f32 %v6587_v63, %v7523_v26  ;;  %v913_v60 = vld [vmem:[#allocation2 + $0x3c] sm:$0xf] }
  0x68   : > { %v611_v35 = vshrl.u32 %v6515_v62, 16  ;;  %v614_v0 = vshll.u32 %v6515_v62, 16  ;;  %v329_v58 = vmul.f32 %v6588_v18, %v7523_v26  ;;  %v382_v12 = vmax.f32 %v350_v17, 0.0 }
  0x69   : > { %v1327_v8 = vsel %vm7530_vm2, %v1322_v50, %v1326_v49  ;;  %v619_v6 = vshrl.u32 %v6516_v1, 16  ;;  %v622_v7 = vshll.u32 %v6516_v1, 16  ;;  %v383_v21 = vmax.f32 %v351_v2, 0.0 }
  0x6a   : > { %v6138_v14 = vcombine.low %v1317_v61, %v1327_v8  ;;  %v1019_v19 = vld [vmem:[#allocation2 + $0x84] sm:$0xf]  ;;  %v613_v20 = vrot.slane %v611_v35, 7  ;;  %v364_v23 = vadd.f32 %v7526_v29, %v328_v5  ;;  %6899 = vmatpush3.bf16.msra.mxu1 %v7315_v38  ;;  %v6517_v31 = vpack.c.bf16 %v382_v12, %v382_v12 }
  0x6b   : > { %v1329_v15 = vshrl.u32 %v1019_v19, 16  ;;  %v1332_v24 = vshll.u32 %v1019_v19, 16  ;;  %v621_v27 = vrot.slane %v619_v6, 7  ;;  %6980 = vmatprep.subr.bf16.mxu1 %v7318_v4  ;;  %v6518_v40 = vpack.c.bf16 %v383_v21, %v383_v21  ;;  %v7789_v4 = vld [vmem:[%s7511_s6 + $0x28] sm:$0xff]   ;;  %v917_v8 = vld [vmem:[#allocation2 + $0x44] sm:$0x1] }
  0x6c   : > { %6872 = vmatprep.mubr.bf16.mxu1 %v6138_v14  ;;  %v1020_v32 = vld [vmem:[#allocation2 + $0x88] sm:$0xf]  ;;  %v1056_v22 = vld [vmem:[#allocation2 + $0x8c] sm:$0x1]  ;;  %v616_v33 = vor.u32 %v614_v0, %v613_v20  ;;  %v617_v34 = vrot.slane %v613_v20, 4  ;;  %v365_v37 = vadd.f32 %v7526_v29, %v329_v58  ;;  %v628_v53 = vshrl.u32 %v6517_v31, 16 }
  0x6d   : > { %v1331_v41 = vrot.slane %v1329_v15, 4  ;;  %v1334_v42 = vrot.slane %v1332_v24, 5  ;;  %v1338_v43 = vshll.u32 %v1020_v32, 16  ;;  %v1342_v44 = vshrl.u32 %v1020_v32, 16 }
  0x6e   : > { %v1348_v45 = vshll.u32 %v1056_v22, 16  ;;  %v624_v47 = vor.u32 %v622_v7, %v621_v27  ;;  %v626_v39 = vrot.slane %v621_v27, 4  ;;  %v907_v48 = vsel %vm7570_vm9, %v616_v33, %v906_v9 }
  0x6f   : > { %v1335_v49 = vor.u32 %v1334_v42, %v1331_v41  ;;  %v1340_v38 = vrot.slane %v1338_v43, 5  ;;  %v1344_v52 = vrot.slane %v1342_v44, 4  ;;  %908 = vst [vmem:[#allocation2 + $0x30] sm:$0xf] %v907_v48  ;;  %v631_v59 = vshll.u32 %v6517_v31, 16 }
  0x70   : > { %v1350_v55 = vrot.slane %v1348_v45, 5  ;;  %v625_v51 = vsel %vm7562_vm8, %v617_v34, %v624_v47  ;;  %v911_v57 = vsel %vm7576_vm10, %v626_v39, %v910_v28  ;;  %v630_v63 = vrot.slane %v628_v53, 7  ;;  %v962_v34 = vld [vmem:[#allocation2 + $0x90] sm:$0xf] }
  0x71   : > { %v1336_v61 = vrot.slane %v1335_v49, 4  ;;  %v1345_v62 = vor.u32 %v1344_v52, %v1340_v38  ;;  %909 = vst [vmem:[#allocation2 + $0x34] sm:$0xf] %v625_v51  ;;  %912 = vst [vmem:[#allocation2 + $0x38] sm:$0x1] %v911_v57  ;;  %v636_v18 = vshrl.u32 %v6518_v40, 16  ;;  %v6591_v2 = vunpack.c.l.bf16 %v7781_v54 }
  0x72   : > { %v639_v50 = vshll.u32 %v6518_v40, 16  ;;  %v396_v1 = vmax.f32 %v364_v23, 0.0  ;;  %v397_v17 = vmax.f32 %v365_v37, 0.0  ;;  %v633_v5 = vor.u32 %v631_v59, %v630_v63  ;;  %v966_v49 = vld [vmem:[#allocation2 + $0x98] sm:$0x1] }
  0x73   : > { %v1341_v35 = vsel %vm7530_vm2, %v1336_v61, %v1340_v38  ;;  %v1346_v0 = vrot.slane %v1345_v62, 4  ;;  %v634_v58 = vrot.slane %v630_v63, 4  ;;  %v638_v6 = vrot.slane %v636_v18, 7 }
  0x74   : > { %v6531_v7 = vpack.c.bf16 %v396_v1, %v396_v1  ;;  %v6532_v9 = vpack.c.bf16 %v397_v17, %v397_v17  ;;  %v6592_v12 = vunpack.c.h.bf16 %v7781_v54  ;;  %v914_v19 = vsel %vm7570_vm9, %v633_v5, %v913_v60 }
  0x75   : > { %v1351_v14 = vsel %vm7530_vm2, %v1346_v0, %v1350_v55  ;;  %v330_v20 = vmul.f32 %v6591_v2, %v7523_v26  ;;  %v6563_v21 = vunpack.c.l.bf16 %v7789_v4  ;;  %v641_v24 = vor.u32 %v639_v50, %v638_v6  ;;  %915 = vst [vmem:[#allocation2 + $0x3c] sm:$0xf] %v914_v19 }
  0x76   : > { %v6139_v23 = vcombine.low %v1341_v35, %v1351_v14  ;;  %v7800_v15 = vld [vmem:[#allocation2 + $0x30] sm:$0xf]  ;;  %v643_v27 = vrot.slane %v638_v6, 4  ;;  %v747_v28 = vshrl.u32 %v6531_v7, 16  ;;  %v750_v22 = vshll.u32 %v6531_v7, 16 }
  0x77   : > { %v1161_v31 = vshrl.u32 %v7800_v15, 16  ;;  %v1164_v32 = vshll.u32 %v7800_v15, 16  ;;  %v755_v33 = vshrl.u32 %v6532_v9, 16  ;;  %v642_v41 = vsel %vm7562_vm8, %v634_v58, %v641_v24 }
  0x78   : > { %6873 = vmatmul.mubr.bf16.gmra.mxu1 %v6139_v23  ;;  %v7804_v40 = vld [vmem:[#allocation2 + $0x34] sm:$0xf]  ;;  %v7806_v37 = vld [vmem:[#allocation2 + $0x38] sm:$0x1]  ;;  %v918_v42 = vsel %vm7576_vm10, %v643_v27, %v917_v8  ;;  %v749_v43 = vrot.slane %v747_v28, 7  ;;  %v758_v44 = vshll.u32 %v6532_v9, 16  ;;  %v331_v59 = vmul.f32 %v6592_v12, %v7523_v26 }
  0x79   : > { %v1163_v45 = vrot.slane %v1161_v31, 4  ;;  %v1166_v47 = vrot.slane %v1164_v32, 5  ;;  %v1170_v39 = vshll.u32 %v7804_v40, 16  ;;  %v1174_v48 = vshrl.u32 %v7804_v40, 16  ;;  %916 = vst [vmem:[#allocation2 + $0x40] sm:$0xf] %v642_v41 }
  0x7a   : > { %919 = vst [vmem:[#allocation2 + $0x44] sm:$0x1] %v918_v42  ;;  %v1180_v38 = vshll.u32 %v7806_v37, 16  ;;  %v752_v52 = vor.u32 %v750_v22, %v749_v43  ;;  %v753_v53 = vrot.slane %v749_v43, 4  ;;  %v757_v54 = vrot.slane %v755_v33, 7 }
  0x7b   : > { %v1167_v55 = vor.u32 %v1166_v47, %v1163_v45  ;;  %v1172_v51 = vrot.slane %v1170_v39, 5  ;;  %v1176_v57 = vrot.slane %v1174_v48, 4  ;;  %v366_v17 = vadd.f32 %v7526_v29, %v330_v20 }
  0x7c   : > { %v1182_v60 = vrot.slane %v1180_v38, 5  ;;  %v760_v61 = vor.u32 %v758_v44, %v757_v54  ;;  %v762_v62 = vrot.slane %v757_v54, 4  ;;  %v963_v63 = vsel %vm7570_vm9, %v752_v52, %v962_v34  ;;  %v7818_v1 = vld [vmem:[#allocation2 + $0x3c] sm:$0xf] }
  0x7d   : > { %v1168_v18 = vrot.slane %v1167_v55, 4  ;;  %v1177_v50 = vor.u32 %v1176_v57, %v1172_v51  ;;  %964 = vst [vmem:[#allocation2 + $0x90] sm:$0xf] %v963_v63  ;;  %v367_v2 = vadd.f32 %v7526_v29, %v331_v59  ;;  %v1185_v35 = vshrl.u32 %v7818_v1, 16 }
  0x7e   : > { %v1188_v0 = vshll.u32 %v7818_v1, 16  ;;  %v761_v5 = vsel %vm7562_vm8, %v753_v53, %v760_v61  ;;  %v967_v58 = vsel %vm7576_vm10, %v762_v62, %v966_v49  ;;  %v398_v7 = vmax.f32 %v366_v17, 0.0 }
  0x7f   : > { %v1173_v8 = vsel %vm7530_vm2, %v1168_v18, %v1172_v51  ;;  %v1178_v6 = vrot.slane %v1177_v50, 4  ;;  %965 = vst [vmem:[#allocation2 + $0x94] sm:$0xf] %v761_v5  ;;  %968 = vst [vmem:[#allocation2 + $0x98] sm:$0x1] %v967_v58  ;;  %v399_v9 = vmax.f32 %v367_v2, 0.0  ;;  %v6564_v23 = vunpack.c.h.bf16 %v7789_v4 }
  0x80   : > { %v7830_v12 = vld [vmem:[#allocation2 + $0x40] sm:$0xf]  ;;  %v1187_v19 = vrot.slane %v1185_v35, 4  ;;  %v1190_v20 = vrot.slane %v1188_v0, 5  ;;  %v316_v24 = vmul.f32 %v6563_v21, %v7523_v26  ;;  %v6533_v34 = vpack.c.bf16 %v398_v7, %v398_v7  ;;  %v969_v0 = vld [vmem:[#allocation2 + $0x9c] sm:$0xf] }
  0x81   : > { %v7832_v14 = vld [vmem:[#allocation2 + $0x44] sm:$0x1]  ;;  %v1183_v27 = vsel %vm7530_vm2, %v1178_v6, %v1182_v60  ;;  %v1194_v28 = vshll.u32 %v7830_v12, 16  ;;  %v1198_v31 = vshrl.u32 %v7830_v12, 16  ;;  %v6534_v41 = vpack.c.bf16 %v399_v9, %v399_v9  ;;  %v6610_v9 = vld [vmem:[%s7511_s6 + $0x30] sm:$0xff]  }
  0x82   : > { %v1204_v32 = vshll.u32 %v7832_v14, 16  ;;  %v6132_v22 = vcombine.low %v1173_v8, %v1183_v27  ;;  %v1191_v33 = vor.u32 %v1190_v20, %v1187_v19  ;;  %v317_v4 = vmul.f32 %v6564_v23, %v7523_v26  ;;  %v973_v7 = vld [vmem:[#allocation2 + $0xa4] sm:$0x1]  ;;  %v6617_v27 = vld [vmem:[%s7511_s6 + $0x68] sm:$0xff]  }
  0x83   : > { %v1196_v42 = vrot.slane %v1194_v28, 5  ;;  %v1200_v43 = vrot.slane %v1198_v31, 4  ;;  %v764_v47 = vshrl.u32 %v6533_v34, 16  ;;  %v767_v39 = vshll.u32 %v6533_v34, 16 }
  0x84   : > { %v1206_v44 = vrot.slane %v1204_v32, 5  ;;  %6860 = vmatprep.mubr.bf16.mxu0 %v6132_v22  ;;  %v1192_v21 = vrot.slane %v1191_v33, 4  ;;  %v7842_v45 = vld [vmem:[#allocation2 + $0x90] sm:$0xf]  ;;  %v772_v48 = vshrl.u32 %v6534_v41, 16  ;;  %v775_v53 = vshll.u32 %v6534_v41, 16 }
  0x85   : > { %v1201_v49 = vor.u32 %v1200_v43, %v1196_v42  ;;  %v1353_v38 = vshrl.u32 %v7842_v45, 16  ;;  %v1356_v52 = vshll.u32 %v7842_v45, 16  ;;  %v766_v57 = vrot.slane %v764_v47, 7  ;;  %v6618_v43 = vld [vmem:[%s7511_s6 + $0x70] sm:$0xff]  }
  0x86   : > { %v1197_v54 = vsel %vm7530_vm2, %v1192_v21, %v1196_v42  ;;  %v7848_v55 = vld [vmem:[#allocation2 + $0x94] sm:$0xf]  ;;  %v7850_v51 = vld [vmem:[#allocation2 + $0x98] sm:$0x1]  ;;  %v774_v59 = vrot.slane %v772_v48, 7  ;;  %v352_v60 = vadd.f32 %v7526_v29, %v316_v24  ;;  %v353_v22 = vadd.f32 %v7526_v29, %v317_v4 }
  0x87   : > { %v1202_v61 = vrot.slane %v1201_v49, 4  ;;  %v1355_v62 = vrot.slane %v1353_v38, 4  ;;  %v1358_v63 = vrot.slane %v1356_v52, 5  ;;  %v1362_v18 = vshll.u32 %v7848_v55, 16 }
  0x88   : > { %v1366_v50 = vshrl.u32 %v7848_v55, 16  ;;  %v1372_v17 = vshll.u32 %v7850_v51, 16  ;;  %v769_v2 = vor.u32 %v767_v39, %v766_v57  ;;  %v770_v35 = vrot.slane %v766_v57, 4 }
  0x89   : > { %v1207_v5 = vsel %vm7530_vm2, %v1202_v61, %v1206_v44  ;;  %v1359_v58 = vor.u32 %v1358_v63, %v1355_v62  ;;  %v1364_v8 = vrot.slane %v1362_v18, 5  ;;  %v777_v6 = vor.u32 %v775_v53, %v774_v59 }
  0x8a   : > { %v6133_v19 = vcombine.low %v1197_v54, %v1207_v5  ;;  %v1368_v20 = vrot.slane %v1366_v50, 4  ;;  %v1374_v23 = vrot.slane %v1372_v17, 5  ;;  %v779_v24 = vrot.slane %v774_v59, 4 }
  0x8b   : > { %v1360_v28 = vrot.slane %v1359_v58, 4  ;;  %v778_v31 = vsel %vm7562_vm8, %v770_v35, %v777_v6  ;;  %v970_v32 = vsel %vm7570_vm9, %v769_v2, %v969_v0  ;;  %v384_v41 = vmax.f32 %v352_v60, 0.0  ;;  %v920_v35 = vld [vmem:[#allocation2 + $0x48] sm:$0xf] }
  0x8c   : > { %6861 = vmatmul.mubr.bf16.gmra.mxu0 %v6133_v19  ;;  %v1369_v33 = vor.u32 %v1368_v20, %v1364_v8  ;;  %971 = vst [vmem:[#allocation2 + $0x9c] sm:$0xf] %v970_v32  ;;  %972 = vst [vmem:[#allocation2 + $0xa0] sm:$0xf] %v778_v31  ;;  %v974_v34 = vsel %vm7576_vm10, %v779_v24, %v973_v7  ;;  %v6567_v42 = vunpack.c.l.bf16 %v6610_v9  ;;  %v385_v21 = vmax.f32 %v353_v22, 0.0 }
  0x8d   : > { %v1365_v44 = vsel %vm7530_vm2, %v1360_v28, %v1364_v8  ;;  %975 = vst [vmem:[#allocation2 + $0xa4] sm:$0x1] %v974_v34  ;;  %v6568_v47 = vunpack.c.h.bf16 %v6610_v9  ;;  %v6595_v39 = vunpack.c.l.bf16 %v6617_v27  ;;  %v6519_v49 = vpack.c.bf16 %v384_v41, %v384_v41  ;;  %v924_v41 = vld [vmem:[#allocation2 + $0x50] sm:$0x1] }
  0x8e   : > { %v1370_v48 = vrot.slane %v1369_v33, 4  ;;  %v318_v4 = vmul.f32 %v6567_v42, %v7523_v26  ;;  %v6596_v38 = vunpack.c.h.bf16 %v6617_v27  ;;  %v6520_v52 = vpack.c.bf16 %v385_v21, %v385_v21 }
  0x8f   : > { %v319_v53 = vmul.f32 %v6568_v47, %v7523_v26  ;;  %v332_v54 = vmul.f32 %v6595_v39, %v7523_v26  ;;  %v6599_v57 = vunpack.c.l.bf16 %v6618_v43  ;;  %v645_v60 = vshrl.u32 %v6519_v49, 16 }
  0x90   : > { %v1375_v59 = vsel %vm7530_vm2, %v1370_v48, %v1374_v23  ;;  %v648_v61 = vshll.u32 %v6519_v49, 16  ;;  %v354_v62 = vadd.f32 %v7526_v29, %v318_v4  ;;  %v653_v18 = vshrl.u32 %v6520_v52, 16 }
  0x91   : > { %v6140_v63 = vcombine.low %v1365_v44, %v1375_v59  ;;  %v656_v50 = vshll.u32 %v6520_v52, 16  ;;  %v355_v17 = vadd.f32 %v7526_v29, %v319_v53  ;;  %v647_v2 = vrot.slane %v645_v60, 7 }
  0x92   : > { %v386_v0 = vmax.f32 %v354_v62, 0.0  ;;  %v333_v5 = vmul.f32 %v6596_v38, %v7523_v26  ;;  %v368_v58 = vadd.f32 %v7526_v29, %v332_v54  ;;  %v655_v7 = vrot.slane %v653_v18, 7 }
  0x93   : > { %6876 = vmatprep.mubr.bf16.mxu1 %v6140_v63  ;;  %v7879_v8 = vld [vmem:[#allocation2 + $0x9c] sm:$0xf]  ;;  %v7881_v6 = vld [vmem:[#allocation2 + $0xa0] sm:$0xf]  ;;  %v387_v9 = vmax.f32 %v355_v17, 0.0  ;;  %v6600_v19 = vunpack.c.h.bf16 %v6618_v43  ;;  %v334_v20 = vmul.f32 %v6599_v57, %v7523_v26  ;;  %v650_v22 = vor.u32 %v648_v61, %v647_v2 }
  0x94   : > { %v7884_v23 = vld [vmem:[#allocation2 + $0xa4] sm:$0x1]  ;;  %v1377_v24 = vshrl.u32 %v7879_v8, 16  ;;  %v1380_v27 = vshll.u32 %v7879_v8, 16  ;;  %v1386_v28 = vshll.u32 %v7881_v6, 16  ;;  %v1390_v31 = vshrl.u32 %v7881_v6, 16 }
  0x95   : > { %v1396_v32 = vshll.u32 %v7884_v23, 16  ;;  %v651_v33 = vrot.slane %v647_v2, 4  ;;  %v658_v34 = vor.u32 %v656_v50, %v655_v7  ;;  %v660_v48 = vrot.slane %v655_v7, 4 }
  0x96   : > { %v1379_v42 = vrot.slane %v1377_v24, 4  ;;  %v1382_v43 = vrot.slane %v1380_v27, 5  ;;  %v1388_v44 = vrot.slane %v1386_v28, 5  ;;  %v1392_v21 = vrot.slane %v1390_v31, 4 }
  0x97   : > { %v1398_v47 = vrot.slane %v1396_v32, 5  ;;  %v659_v39 = vsel %vm7562_vm8, %v651_v33, %v658_v34  ;;  %v921_v49 = vsel %vm7570_vm9, %v650_v22, %v920_v35  ;;  %v6521_v52 = vpack.c.bf16 %v386_v0, %v386_v0  ;;  %v931_v22 = vld [vmem:[#allocation2 + $0x5c] sm:$0x1] }
  0x98   : > { %v1383_v4 = vor.u32 %v1382_v43, %v1379_v42  ;;  %v1393_v38 = vor.u32 %v1392_v21, %v1388_v44  ;;  %922 = vst [vmem:[#allocation2 + $0x48] sm:$0xf] %v921_v49  ;;  %923 = vst [vmem:[#allocation2 + $0x4c] sm:$0xf] %v659_v39  ;;  %v6522_v53 = vpack.c.bf16 %v387_v9, %v387_v9  ;;  %v400_v59 = vmax.f32 %v368_v58, 0.0 }
  0x99   : > { %v925_v54 = vsel %vm7576_vm10, %v660_v48, %v924_v41  ;;  %v369_v57 = vadd.f32 %v7526_v29, %v333_v5  ;;  %v335_v60 = vmul.f32 %v6600_v19, %v7523_v26  ;;  %v662_v63 = vshrl.u32 %v6521_v52, 16  ;;  %v927_v5 = vld [vmem:[#allocation2 + $0x54] sm:$0xf] }
  0x9a   : > { %v1384_v61 = vrot.slane %v1383_v4, 4  ;;  %v1394_v62 = vrot.slane %v1393_v38, 4  ;;  %926 = vst [vmem:[#allocation2 + $0x50] sm:$0x1] %v925_v54  ;;  %v665_v18 = vshll.u32 %v6521_v52, 16  ;;  %v670_v50 = vshrl.u32 %v6522_v53, 16 }
  0x9b   : > { %v673_v17 = vshll.u32 %v6522_v53, 16  ;;  %v401_v2 = vmax.f32 %v369_v57, 0.0  ;;  %v6535_v35 = vpack.c.bf16 %v400_v59, %v400_v59  ;;  %v664_v9 = vrot.slane %v662_v63, 7 }
  0x9c   : > { %v1389_v0 = vsel %vm7530_vm2, %v1384_v61, %v1388_v44  ;;  %v1399_v7 = vsel %vm7530_vm2, %v1394_v62, %v1398_v47  ;;  %v370_v58 = vadd.f32 %v7526_v29, %v334_v20  ;;  %v672_v24 = vrot.slane %v670_v50, 7  ;;  %v7909_v47 = vld [vmem:[#allocation2] sm:$0xf]  ;;  %v7911_v20 = vld [vmem:[#allocation2 + $0x4] sm:$0xf] }
  0x9d   : > { %v6141_v19 = vcombine.low %v1389_v0, %v1399_v7  ;;  %v6536_v27 = vpack.c.bf16 %v401_v2, %v401_v2  ;;  %v781_v28 = vshrl.u32 %v6535_v35, 16  ;;  %v667_v31 = vor.u32 %v665_v18, %v664_v9 }
  0x9e   : > { %v668_v32 = vrot.slane %v664_v9, 4  ;;  %v784_v33 = vshll.u32 %v6535_v35, 16  ;;  %v371_v34 = vadd.f32 %v7526_v29, %v335_v60  ;;  %v675_v43 = vor.u32 %v673_v17, %v672_v24  ;;  %v976_v60 = vld [vmem:[#allocation2 + $0xa8] sm:$0xf] }
  0x9f   : > { %6877 = vmatmul.mubr.bf16.gmra.mxu1 %v6141_v19  ;;  %v7905_v41 = vld [vmem:[#allocation2 + $0x48] sm:$0xf]  ;;  %v7907_v42 = vld [vmem:[#allocation2 + $0x4c] sm:$0xf]  ;;  %v677_v44 = vrot.slane %v672_v24, 4  ;;  %v783_v21 = vrot.slane %v781_v28, 7  ;;  %v6152_v39 = vcombine.low %v7909_v47, %v7911_v20  ;;  %v928_v54 = vsel %vm7570_vm9, %v667_v31, %v927_v5 }
  0xa0   : > { %v1209_v48 = vshrl.u32 %v7905_v41, 16  ;;  %v1212_v49 = vshll.u32 %v7905_v41, 16  ;;  %v1218_v4 = vshll.u32 %v7907_v42, 16  ;;  %v1222_v38 = vshrl.u32 %v7907_v42, 16  ;;  %929 = vst [vmem:[#allocation2 + $0x54] sm:$0xf] %v928_v54 }
  0xa1   : > { %v7919_v52 = vld [vmem:[#allocation2 + $0x50] sm:$0x1]  ;;  %v676_v53 = vsel %vm7562_vm8, %v668_v32, %v675_v43  ;;  %v932_v57 = vsel %vm7576_vm10, %v677_v44, %v931_v22  ;;  %v786_v59 = vor.u32 %v784_v33, %v783_v21  ;;  %v787_v17 = vrot.slane %v783_v21, 4  ;;  %v7930_v19 = vld [vmem:[#allocation2] sm:$0xe] }
  0xa2   : > { %v1211_v61 = vrot.slane %v1209_v48, 4  ;;  %v1214_v62 = vrot.slane %v1212_v49, 5  ;;  %v1220_v63 = vrot.slane %v1218_v4, 5  ;;  %v1224_v18 = vrot.slane %v1222_v38, 4  ;;  %930 = vst [vmem:[#allocation2 + $0x58] sm:$0xf] %v676_v53 }
  0xa3   : > { %933 = vst [vmem:[#allocation2 + $0x5c] sm:$0x1] %v932_v57  ;;  %v1228_v50 = vshll.u32 %v7919_v52, 16  ;;  %v789_v2 = vshrl.u32 %v6536_v27, 16  ;;  %v792_v35 = vshll.u32 %v6536_v27, 16  ;;  %v977_v9 = vsel %vm7570_vm9, %v786_v59, %v976_v60 }
  0xa4   : > { %v1215_v0 = vor.u32 %v1214_v62, %v1211_v61  ;;  %v1225_v7 = vor.u32 %v1224_v18, %v1220_v63  ;;  %v402_v5 = vmax.f32 %v370_v58, 0.0  ;;  %978 = vst [vmem:[#allocation2 + $0xa8] sm:$0xf] %v977_v9  ;;  %v403_v31 = vmax.f32 %v371_v34, 0.0  ;;  %v980_v33 = vld [vmem:[#allocation2 + $0xb0] sm:$0x1] }
  0xa5   : > { %v1230_v24 = vrot.slane %v1228_v50, 5  ;;  %v791_v28 = vrot.slane %v789_v2, 7  ;;  %vm2091_vm11 = vcmask 1042432   ;;  %vm2092_vm12 = vcmask 1046532   ;;  %v7947_v61 = vld [vmem:[#allocation2 + $0xc] sm:$0xf] }
  0xa6   : > { %v1216_v32 = vrot.slane %v1215_v0, 4  ;;  %v1226_v22 = vrot.slane %v1225_v7, 4  ;;  %v6537_v43 = vpack.c.bf16 %v402_v5, %v402_v5  ;;  %v6538_v21 = vpack.c.bf16 %v403_v31, %v403_v31  ;;  %v7949_v62 = vld [vmem:[#allocation2 + $0x10] sm:$0xf]  ;;  %v983_v5 = vld [vmem:[#allocation2 + $0xb4] sm:$0xf]  ;;  %vm7964_vm13 = vmor %vm2091_vm11, %vm2092_vm12 }
  0xa7   : > { %v794_v44 = vor.u32 %v792_v35, %v791_v28  ;;  %v796_v27 = vrot.slane %v791_v28, 4  ;;  %v6176_v48 = vrot.slane %v7930_v19, 9  ;;  %v7937_v53 = vld [vmem:[#allocation2 + $0x54] sm:$0xf]  ;;  %v10118_v11 = vcombine.low %v7947_v61, %v7949_v62 }
  0xa8   : > { %v1221_v58 = vsel %vm7530_vm2, %v1216_v32, %v1220_v63  ;;  %v1231_v49 = vsel %vm7530_vm2, %v1226_v22, %v1230_v24  ;;  %v798_v4 = vshrl.u32 %v6537_v43, 16  ;;  %v801_v38 = vshll.u32 %v6537_v43, 16 }
  0xa9   : > { %v6134_v34 = vcombine.low %v1221_v58, %v1231_v49  ;;  %v7939_v54 = vld [vmem:[#allocation2 + $0x58] sm:$0xf]  ;;  %v795_v59 = vsel %vm7562_vm8, %v787_v17, %v794_v44  ;;  %v981_v60 = vsel %vm7576_vm10, %v796_v27, %v980_v33  ;;  %v1233_v18 = vshrl.u32 %v7937_v53, 16 }
  0xaa   : > { %v7941_v57 = vld [vmem:[#allocation2 + $0x5c] sm:$0x1]  ;;  %v1236_v50 = vshll.u32 %v7937_v53, 16  ;;  %v1242_v2 = vshll.u32 %v7939_v54, 16  ;;  %v1246_v35 = vshrl.u32 %v7939_v54, 16  ;;  %v800_v0 = vrot.slane %v798_v4, 7 }
  0xab   : > { %979 = vst [vmem:[#allocation2 + $0xac] sm:$0xf] %v795_v59  ;;  %982 = vst [vmem:[#allocation2 + $0xb0] sm:$0x1] %v981_v60  ;;  %6864 = vmatprep.mubr.bf16.mxu0 %v6134_v34  ;;  %v1252_v17 = vshll.u32 %v7941_v57, 16  ;;  %v806_v7 = vshrl.u32 %v6538_v21, 16 }
  0xac   : > { %v809_v9 = vshll.u32 %v6538_v21, 16  ;;  %v1235_v19 = vrot.slane %v1233_v18, 4  ;;  %v1238_v24 = vrot.slane %v1236_v50, 5  ;;  %v1244_v28 = vrot.slane %v1242_v2, 5  ;;  %v7958_v32 = vld [vmem:[#allocation2 + $0xa8] sm:$0xf] }
  0xad   : > { %v1248_v31 = vrot.slane %v1246_v35, 4  ;;  %v1254_v22 = vrot.slane %v1252_v17, 5  ;;  %v1401_v33 = vshrl.u32 %v7958_v32, 16  ;;  %v1404_v43 = vshll.u32 %v7958_v32, 16  ;;  %v2044_v4 = vld [vmem:[#allocation2 + $0xc] sm:$0xe] }
  0xae   : > { %v803_v44 = vor.u32 %v801_v38, %v800_v0  ;;  %v1239_v27 = vor.u32 %v1238_v24, %v1235_v19  ;;  %v804_v49 = vrot.slane %v800_v0, 4  ;;  %v808_v34 = vrot.slane %v806_v7, 7  ;;  %v987_v50 = vld [vmem:[#allocation2 + $0xbc] sm:$0x1] }
  0xaf   : > { %v1249_v58 = vor.u32 %v1248_v31, %v1244_v28  ;;  %v10113_v21 = vmov 0  ;;  %v1403_v59 = vrot.slane %v1401_v33, 4  ;;  %v1406_v60 = vrot.slane %v1404_v43, 5 }
  0xb0   : > { %v10114_v21 = vsel %vm7964_vm13, 4294967295, %v10113_v21  ;;  %v984_v18 = vsel %vm7570_vm9, %v803_v44, %v983_v5  ;;  %v2096_v2 = vrot.slane %v7911_v20, 5  ;;  %v1240_v38 = vrot.slane %v1239_v27, 4  ;;  %v7340_v20 = vld [vmem:[%s10080_s2 + $0x110] sm:$0xff]  }
  0xb1   : > { %10115 = vst [vmem:[#allocation8_spill] sm:$0xff] %v10114_v21  ;;  %v1250_v35 = vrot.slane %v1249_v58, 4  ;;  %v811_v17 = vor.u32 %v809_v9, %v808_v34  ;;  %v813_v0 = vrot.slane %v808_v34, 4  ;;  %985 = vst [vmem:[#allocation2 + $0xb4] sm:$0xf] %v984_v18  ;;  %v1407_v24 = vor.u32 %v1406_v60, %v1403_v59 }
  0xb2   : > { %v7971_v7 = vld [vmem:[#allocation2 + $0xac] sm:$0xf]  ;;  %v7973_v19 = vld [vmem:[#allocation2 + $0xb0] sm:$0x1]  ;;  %v2097_v31 = vsel %vm7964_vm13, %v6176_v48, %v2096_v2  ;;  %v2098_v33 = vrot.slane %v2096_v2, 4  ;;  %v6177_v43 = vrot.slane %v2044_v4, 9  ;;  %v1245_v5 = vsel %vm7530_vm2, %v1240_v38, %v1244_v28 }
  0xb3   : > { %v1255_v44 = vsel %vm7530_vm2, %v1250_v35, %v1254_v22  ;;  %v1410_v9 = vshll.u32 %v7971_v7, 16  ;;  %v1414_v27 = vshrl.u32 %v7971_v7, 16  ;;  %v2045_v58 = vld [vmem:[#allocation2 + $0x18] sm:$0xe]  ;;  %v1408_v18 = vrot.slane %v1407_v24, 4 }
  0xb4   : > { %v6135_v34 = vcombine.low %v1245_v5, %v1255_v44  ;;  %v1420_v59 = vshll.u32 %v7973_v19, 16  ;;  %v812_v48 = vsel %vm7562_vm8, %v804_v49, %v811_v17  ;;  %v988_v28 = vsel %vm7576_vm10, %v813_v0, %v987_v50  ;;  %v2046_v2 = vld [vmem:[#allocation2 + $0x24] sm:$0xe]  ;;  %v7995_v44 = vld [vmem:[#allocation2 + $0x1c] sm:$0xf] }
  0xb5   : > { %v1412_v60 = vrot.slane %v1410_v9, 5  ;;  %v1416_v4 = vrot.slane %v1414_v27, 4  ;;  %986 = vst [vmem:[#allocation2 + $0xb8] sm:$0xf] %v812_v48  ;;  %v2100_v22 = vsel %vm7964_vm13, %v2098_v33, %v2099_v36  ;;  %989 = vst [vmem:[#allocation2 + $0xbc] sm:$0x1] %v988_v28 }
  0xb6   : > { %6865 = vmatmul.mubr.bf16.gmra.mxu0 %v6135_v34  ;;  %v1422_v38 = vrot.slane %v1420_v59, 5  ;;  %v6208_v35 = vcombine.low %v2097_v31, %v2100_v22  ;;  %v2103_v24 = vrot.slane %v7949_v62, 5  ;;  %v6178_v5 = vrot.slane %v2045_v58, 9  ;;  %v8002_v33 = vld [vmem:[#allocation2 + $0x18] sm:$0xf] }
  0xb7   : > { %v1413_v49 = vsel %vm7530_vm2, %v1408_v18, %v1412_v60  ;;  %v1417_v17 = vor.u32 %v1416_v4, %v1412_v60  ;;  %v2110_v50 = vrot.slane %v7995_v44, 5  ;;  %v2113_v0 = vrot.slane %v7418_v10, 5  ;;  %v8014_v4 = vld [vmem:[#allocation2 + $0x28] sm:$0xf]  ;;  %v7421_v22 = vld [vmem:[#allocation2 + $0x2c] sm:$0x1] }
  0xb8   : > { %v7998_v9 = vld [vmem:[#allocation2 + $0xb4] sm:$0xf]  ;;  %6948 = vmatprep.mubr.bf16.mxu0 %v6208_v35  ;;  %v2104_v36 = vsel %vm7964_vm13, %v6177_v43, %v2103_v24  ;;  %v2105_v31 = vrot.slane %v2103_v24, 4  ;;  %v6179_v58 = vrot.slane %v2046_v2, 9  ;;  %v2117_v28 = vrot.slane %v8014_v4, 5 }
  0xb9   : > { %v1418_v34 = vrot.slane %v1417_v17, 4  ;;  %v1425_v18 = vshrl.u32 %v7998_v9, 16  ;;  %v1428_v59 = vshll.u32 %v7998_v9, 16  ;;  %v2111_v48 = vsel %vm7964_vm13, %v6178_v5, %v2110_v50  ;;  %v2047_v27 = vld [vmem:[#allocation2 + $0x30] sm:$0xe] }
  0xba   : > { %v2107_v43 = vsel %vm7964_vm13, %v2105_v31, %v2106_v25  ;;  %v2112_v60 = vrot.slane %v2110_v50, 4  ;;  %v2120_v2 = vrot.slane %v7421_v22, 5  ;;  %v2118_v25 = vsel %vm7964_vm13, %v6179_v58, %v2117_v28  ;;  %v7324_v31 = vld [vmem:[%s10080_s2 + $0x130] sm:$0xff]   ;;  %v8035_v58 = vld [vmem:[#allocation2 + $0x24] sm:$0xf] }
  0xbb   : > { %v1423_v35 = vsel %vm7530_vm2, %v1418_v34, %v1422_v38  ;;  %v1427_v24 = vrot.slane %v1425_v18, 4  ;;  %v1430_v17 = vrot.slane %v1428_v59, 5  ;;  %v6209_v10 = vcombine.low %v2104_v36, %v2107_v43 }
  0xbc   : > { %v6142_v5 = vcombine.low %v1413_v49, %v1423_v35  ;;  %v8019_v63 = vld [vmem:[#allocation2 + $0xb8] sm:$0xf]  ;;  %v2114_v13 = vsel %vm7964_vm13, %v2112_v60, %v2113_v0  ;;  %v2119_v50 = vrot.slane %v2117_v28, 4  ;;  %v8028_v22 = vld [vmem:[#allocation2 + $0xbc] sm:$0x1]  ;;  %v6180_v43 = vrot.slane %v2047_v27, 9 }
  0xbd   : > { %10116 = vst [vmem:[#allocation9_spill] sm:$0xff] %v8019_v63  ;;  %v1431_v38 = vor.u32 %v1430_v17, %v1427_v24  ;;  %v1434_v36 = vshll.u32 %v8019_v63, 16  ;;  %v1438_v49 = vshrl.u32 %v8019_v63, 16  ;;  %v6210_v34 = vcombine.low %v2111_v48, %v2114_v13  ;;  %v2048_v60 = vld [vmem:[#allocation2 + $0x3c] sm:$0xe] }
  0xbe   : > { %6880 = vmatprep.mubr.bf16.mxu1 %v6142_v5  ;;  %v1444_v18 = vshll.u32 %v8028_v22, 16  ;;  %6949 = vmatmul.mubr.bf16.vlgmr.msra.gmra.mxu0 %v6209_v10  ;;  %v2121_v0 = vsel %vm7964_vm13, %v2119_v50, %v2120_v2  ;;  %v7423_v48 = vld [vmem:[%s10080_s2 + $0x138] sm:$0xff]   ;;  %v2049_v10 = vld [vmem:[#allocation2 + $0x48] sm:$0xe]  ;;  %v2124_v2 = vrot.slane %v7804_v40, 5  ;;  %v2127_v13 = vrot.slane %v7806_v37, 5 }
  0xbf   : > { %v1432_v28 = vrot.slane %v1431_v38, 4  ;;  %v1436_v35 = vrot.slane %v1434_v36, 5  ;;  %v1440_v24 = vrot.slane %v1438_v49, 4  ;;  %7029 = vmatpush3.bf16.msra.mxu0 %v7423_v48  ;;  %6952 = vmatprep.mubr.bf16.mxu0 %v6210_v34  ;;  %v6211_v17 = vcombine.low %v2118_v25, %v2121_v0  ;;  %v7328_v50 = vld [vmem:[%s10080_s2 + $0x128] sm:$0xff]   ;;  %v2050_v38 = vld [vmem:[#allocation2 + $0x54] sm:$0xe] }
  0xc0   : > { %v1446_v5 = vrot.slane %v1444_v18, 5  ;;  %7030 = vmatprep.subr.bf16.mxu0 %v7324_v31  ;;  %v6181_v25 = vrot.slane %v2048_v60, 9  ;;  %v2131_v34 = vrot.slane %v7830_v12, 5  ;;  %v2125_v18 = vsel %vm7964_vm13, %v6180_v43, %v2124_v2  ;;  %v7332_v60 = vld [vmem:[%s10080_s2 + $0x120] sm:$0xff]   ;;  %v2052_v48 = vld [vmem:[#allocation2 + $0x6c] sm:$0xe] }
  0xc1   : > { %v1437_v36 = vsel %vm7530_vm2, %v1432_v28, %v1436_v35  ;;  %v1441_v49 = vor.u32 %v1440_v24, %v1436_v35  ;;  %v2126_v0 = vrot.slane %v2124_v2, 4  ;;  %v2134_v37 = vrot.slane %v7832_v14, 5  ;;  %v2051_v2 = vld [vmem:[#allocation2 + $0x60] sm:$0xe] }
  0xc2   : > { %v8059_v59 = vsel %vm7964_vm13, %v6181_v25, %v2131_v34  ;;  %v2133_v28 = vrot.slane %v2131_v34, 4  ;;  %v6182_v35 = vrot.slane %v2049_v10, 9  ;;  %v2138_v14 = vrot.slane %v7907_v42, 5 }
  0xc3   : > { %v1442_v27 = vrot.slane %v1441_v49, 4  ;;  %7031 = vmatpush3.bf16.msra.mxu0 %v7324_v31  ;;  %v2128_v43 = vsel %vm7964_vm13, %v2126_v0, %v2127_v13  ;;  %v2141_v24 = vrot.slane %v7919_v52, 5  ;;  %v6183_v34 = vrot.slane %v2050_v38, 9  ;;  %v2053_v38 = vld [vmem:[#allocation2 + $0x78] sm:$0xe] }
  0xc4   : > { %7032 = vmatprep.subr.bf16.mxu0 %v7328_v50  ;;  %v6212_v10 = vcombine.low %v2125_v18, %v2128_v43  ;;  %v2135_v25 = vsel %vm7964_vm13, %v2133_v28, %v2134_v37  ;;  %v2139_v52 = vsel %vm7964_vm13, %v6182_v35, %v2138_v14  ;;  %v2140_v0 = vrot.slane %v2138_v14, 4  ;;  %v8089_v37 = vld [vmem:[#allocation2 + $0x60] sm:$0xf]  ;;  %v2054_v35 = vld [vmem:[#allocation2 + $0x84] sm:$0xe] }
  0xc5   : > { %v1447_v49 = vsel %vm7530_vm2, %v1442_v27, %v1446_v5  ;;  %v6213_v13 = vcombine.low %v8059_v59, %v2135_v25  ;;  %v2145_v31 = vrot.slane %v7939_v54, 5  ;;  %v2148_v5 = vrot.slane %v7941_v57, 5 }
  0xc6   : > { %v6143_v56 = vcombine.low %v1437_v36, %v1447_v49  ;;  %6953 = vmatmul.mubr.bf16.gmra.mxu0 %v6211_v17  ;;  %v6184_v18 = vrot.slane %v2051_v2, 9  ;;  %v7336_v17 = vld [vmem:[%s10080_s2 + $0x118] sm:$0xff]   ;;  %v2142_v59 = vsel %vm7964_vm13, %v2140_v0, %v2141_v24  ;;  %v8086_v36 = vld [vmem:[#allocation2 + $0x64] sm:$0xf]  ;;  %v6185_v28 = vrot.slane %v2052_v48, 9 }
  0xc7   : > { %6956 = vmatprep.mubr.bf16.mxu0 %v6212_v10  ;;  %7033 = vmatpush3.bf16.msra.mxu0 %v7328_v50  ;;  %v2152_v50 = vrot.slane %v8086_v36, 5  ;;  %v8098_v43 = vsel %vm7964_vm13, %v6183_v34, %v2145_v31  ;;  %v2147_v14 = vrot.slane %v2145_v31, 4  ;;  %v8100_v24 = vld [vmem:[#allocation2 + $0x70] sm:$0xf]  ;;  %v7427_v10 = vld [vmem:[#allocation2 + $0x74] sm:$0x1] }
  0xc8   : > { %6881 = vmatmul.mubr.bf16.gmra.mxu1 %v6143_v56  ;;  %7034 = vmatprep.subr.bf16.mxu0 %v7332_v60  ;;  %v6214_v56 = vcombine.low %v2139_v52, %v2142_v59  ;;  %v2159_v2 = vrot.slane %v8100_v24, 5  ;;  %v2162_v25 = vrot.slane %v7427_v10, 5  ;;  %v8107_v0 = vld [vmem:[#allocation2 + $0x6c] sm:$0xf]  ;;  %v6186_v52 = vrot.slane %v2053_v38, 9  ;;  %v7322_v38 = vld [vmem:[%s10080_s2 + $0xf0] sm:$0xff]  }
  0xc9   : > { %6900 = vmatprep.mubr.bf16.mxu1 %v6152_v39  ;;  %v8105_v49 = vsel %vm7964_vm13, %v6184_v18, %v2152_v50  ;;  %v2154_v48 = vrot.slane %v2152_v50, 4  ;;  %v8116_v39 = vsel %vm7964_vm13, %v2147_v14, %v2148_v5  ;;  %v10117_v59 = vrot.slane %v7629_v46, 5  ;;  %v8130_v10 = vld [vmem:[#allocation2 + $0x7c] sm:$0xf]  ;;  %v7430_v5 = vld [vmem:[#allocation2 + $0x80] sm:$0x1] }
  0xca   : > { %v8120_v31 = vsel %vm7964_vm13, %v6185_v28, %v2159_v2  ;;  %v2161_v34 = vrot.slane %v2159_v2, 4  ;;  %v2169_v14 = vrot.slane %v7430_v5, 5  ;;  %v2055_v28 = vld [vmem:[#allocation2 + $0x90] sm:$0xe]  ;;  %v6187_v47 = vrot.slane %v2054_v35, 9 }
  0xcb   : > { %7035 = vmatpush3.bf16.msra.mxu0 %v7332_v60  ;;  %v8128_v50 = vsel %vm7964_vm13, %v2154_v48, %v10117_v59  ;;  %v2166_v60 = vrot.slane %v8130_v10, 5  ;;  %v8142_v48 = vld [vmem:[#allocation2 + $0x78] sm:$0xf]  ;;  %v8152_v2 = vld [vmem:[#allocation2 + $0x88] sm:$0xf]  ;;  %v6188_v35 = vrot.slane %v2055_v28, 9 }
  0xcc   : > { %7036 = vmatprep.subr.bf16.mxu0 %v7336_v17  ;;  %v8140_v46 = vsel %vm7964_vm13, %v2161_v34, %v2162_v25  ;;  %v2173_v25 = vrot.slane %v8152_v2, 5  ;;  %v2056_v34 = vld [vmem:[#allocation2 + $0x9c] sm:$0xe]  ;;  %v7433_v18 = vld [vmem:[#allocation2 + $0x8c] sm:$0x1]  ;;  %v2180_v5 = vrot.slane %v7848_v55, 5  ;;  %v10123_v29 = vcombine.low %v8105_v49, %v8128_v50 }
  0xcd   : > { %v8150_v57 = vsel %vm7964_vm13, %v6186_v52, %v2166_v60  ;;  %v2168_v27 = vrot.slane %v2166_v60, 4  ;;  %v2176_v16 = vrot.slane %v7433_v18, 5  ;;  %v8155_v59 = vld [vmem:[#allocation2 + $0x84] sm:$0xf]  ;;  %v7344_v52 = vld [vmem:[%s10080_s2 + $0x108] sm:$0xff]   ;;  %v2183_v28 = vrot.slane %v7850_v51, 5 }
  0xce   : > { %6957 = vmatmul.mubr.bf16.gmra.mxu0 %v6213_v13  ;;  %v2057_v60 = vld [vmem:[#allocation2 + $0xa8] sm:$0xe]  ;;  %v2175_v18 = vrot.slane %v2173_v25, 4  ;;  %v7435_v13 = vld [vmem:[%s10080_s2 + $0xf8] sm:$0xff]   ;;  %v8185_v62 = vsel %vm7964_vm13, %v6188_v35, %v2180_v5 }
  0xcf   : > { %6960 = vmatprep.mubr.bf16.mxu0 %v6214_v56  ;;  %7037 = vmatpush3.bf16.msra.mxu0 %v7336_v17  ;;  %v8168_v17 = vsel %vm7964_vm13, %v2168_v27, %v2169_v14  ;;  %v8172_v56 = vsel %vm7964_vm13, %v6187_v47, %v2173_v25  ;;  %v2182_v27 = vrot.slane %v2180_v5, 4  ;;  %v7326_v47 = vld [vmem:[%s10080_s2 + $0xe8] sm:$0xff]   ;;  %v2187_v14 = vrot.slane %v7881_v6, 5  ;;  %v2917_v5 = vld [vmem:[#allocation2 + $0x18] sm:$0xf] }
  0xd0   : > { %6901 = vmatmul.mubr.bf16.vlgmr.msra.gmra.mxu1 %v10118_v11  ;;  %7038 = vmatprep.subr.bf16.mxu0 %v7340_v20  ;;  %v10119_v11 = vcombine.low %v8002_v33, %v7995_v44  ;;  %v8194_v44 = vsel %vm7964_vm13, %v2175_v18, %v2176_v16  ;;  %v6189_v33 = vrot.slane %v2056_v34, 9  ;;  %v2190_v25 = vrot.slane %v7884_v23, 5  ;;  %v7348_v16 = vld [vmem:[%s10080_s2 + $0x100] sm:$0xff]   ;;  %v2914_v34 = vld [vmem:[#allocation2 + $0xc] sm:$0xf] }
  0xd1   : > { %6981 = vmatpush3.bf16.msra.mxu1 %v7435_v13  ;;  %v2058_v13 = vld [vmem:[#allocation2 + $0xb4] sm:$0xe]  ;;  %v8202_v35 = vsel %vm7964_vm13, %v2182_v27, %v2183_v28  ;;  %v6190_v51 = vrot.slane %v2057_v60, 9  ;;  %v8209_v18 = vld [vmem:[#allocation2 + $0x10] sm:$0xf]  ;;  %v2189_v28 = vrot.slane %v2187_v14, 4 }
  0xd2   : > { %6904 = vmatprep.mubr.bf16.mxu1 %v10119_v11  ;;  %6982 = vmatprep.subr.bf16.mxu1 %v7322_v38  ;;  %10120 = vst [vmem:[#allocation10_spill] sm:$0xff] %v8209_v18  ;;  %v2194_v27 = vrot.slane %v7971_v7, 5  ;;  %v7330_v60 = vld [vmem:[%s10080_s2 + $0xe0] sm:$0xff]   ;;  %v2197_v11 = vrot.slane %v7973_v19, 5  ;;  %v6191_v61 = vrot.slane %v2058_v13, 9  ;;  %v2201_v23 = vrot.slane %v8019_v63, 5 }
  0xd3   : > { %7039 = vmatpush3.bf16.msra.mxu0 %v7340_v20  ;;  %v8215_v20 = vsel %vm7964_vm13, %v6189_v33, %v2187_v14  ;;  %v10122_v33 = vcombine.low %v8098_v43, %v8116_v39  ;;  %v2204_v13 = vrot.slane %v8028_v22, 5  ;;  %v10125_v22 = vcombine.low %v8035_v58, %v8014_v4  ;;  %v8283_v58 = vld [vmem:[#allocation2 + $0x28] sm:$0xf] }
  0xd4   : > { %7040 = vmatprep.subr.bf16.mxu0 %v7344_v52  ;;  %v8236_v19 = vsel %vm7964_vm13, %v6190_v51, %v2194_v27  ;;  %v2196_v14 = vrot.slane %v2194_v27, 4  ;;  %v8246_v39 = vsel %vm7964_vm13, %v6191_v61, %v2201_v23  ;;  %v2963_v49 = vshrl.u32 %v2914_v34, 16  ;;  %v8260_v61 = vld [vmem:[#allocation2 + $0x20] sm:$0x1] }
  0xd5   : > { %6983 = vmatpush3.bf16.msra.mxu1 %v7322_v38  ;;  %v8232_v38 = vsel %vm7964_vm13, %v2189_v28, %v2190_v25  ;;  %v2203_v25 = vrot.slane %v2201_v23, 4  ;;  %v8250_v28 = vld [vmem:[#allocation2 + $0x1c] sm:$0xf]  ;;  %v2966_v50 = vshll.u32 %v2914_v34, 16  ;;  %10126 = vst [vmem:[#allocation13_spill] sm:$0xff] %v8260_v61  ;;  %v10127_v4 = vcombine.low %v7800_v15, %v7804_v40 }
  0xd6   : > { %6984 = vmatprep.subr.bf16.mxu1 %v7326_v47  ;;  %6961 = vmatmul.mubr.bf16.gmra.mxu0 %v10122_v33  ;;  %10124 = vst [vmem:[#allocation12_spill] sm:$0xff] %v8250_v28  ;;  %v8265_v23 = vld [vmem:[%s10080_s2 + $0x1b8] sm:$0xff]   ;;  %v2976_v34 = vshrl.u32 %v8209_v18, 16  ;;  %v2982_v27 = vshll.u32 %v8225_v3, 16  ;;  %v2920_v33 = vld [vmem:[#allocation2 + $0x24] sm:$0xf]  ;;  %v10130_v63 = vcombine.low %v7818_v1, %v7830_v12 }
  0xd7   : > { %6964 = vmatprep.mubr.bf16.mxu0 %v10123_v29  ;;  %7041 = vmatpush3.bf16.msra.mxu0 %v7344_v52  ;;  %v8257_v29 = vsel %vm7964_vm13, %v2196_v14, %v2197_v11  ;;  %v2972_v52 = vshll.u32 %v8209_v18, 16  ;;  %v8274_v11 = vsel %vm7964_vm13, %v2203_v25, %v2204_v13  ;;  %v7334_v14 = vld [vmem:[%s10080_s2 + $0xd8] sm:$0xff]   ;;  %v2965_v40 = vrot.slane %v2963_v49, 4 }
  0xd8   : > { %6905 = vmatmul.mubr.bf16.gmra.mxu1 %v10125_v22  ;;  %7042 = vmatprep.subr.bf16.mxu0 %v7348_v16  ;;  %v2984_v13 = vrot.slane %v2982_v27, 5  ;;  %v2987_v25 = vshrl.u32 %v2917_v5, 16  ;;  %v2990_v51 = vshll.u32 %v2917_v5, 16  ;;  %v2996_v21 = vshll.u32 %v8250_v28, 16  ;;  %v8292_v5 = vld [vmem:[#allocation2 + $0x2c] sm:$0x1] }
  0xd9   : > { %6908 = vmatprep.mubr.bf16.mxu1 %v10127_v4  ;;  %6985 = vmatpush3.bf16.msra.mxu1 %v7326_v47  ;;  %v2968_v47 = vrot.slane %v2966_v50, 5  ;;  %v2974_v22 = vrot.slane %v2972_v52, 5  ;;  %v2978_v4 = vrot.slane %v2976_v34, 4  ;;  %v3000_v3 = vshrl.u32 %v8250_v28, 16 }
  0xda   : > { %6986 = vmatprep.subr.bf16.mxu1 %v7330_v60  ;;  %v3006_v18 = vshll.u32 %v8260_v61, 16  ;;  %v2989_v50 = vrot.slane %v2987_v25, 4  ;;  %v2992_v52 = vrot.slane %v2990_v51, 5  ;;  %v3011_v34 = vshrl.u32 %v2920_v33, 16 }
  0xdb   : > { %7043 = vmatpush3.bf16.msra.mxu0 %v7348_v16  ;;  %v2969_v43 = vor.u32 %v2968_v47, %v2965_v40  ;;  %v7338_v16 = vld [vmem:[%s10080_s2 + $0xd0] sm:$0xff]   ;;  %v2979_v49 = vor.u32 %v2978_v4, %v2974_v22  ;;  %v10128_v27 = vcombine.low %v8120_v31, %v8140_v46  ;;  %v2998_v47 = vrot.slane %v2996_v21, 5 }
  0xdc   : > { %7124 = vmatprep.subr.bf16.mxu0 %v8265_v23  ;;  %v3002_v15 = vrot.slane %v3000_v3, 4  ;;  %v3008_v61 = vrot.slane %v3006_v18, 5  ;;  %v10129_v28 = vcombine.low %v8150_v57, %v8168_v17  ;;  %v2993_v25 = vor.u32 %v2992_v52, %v2989_v50  ;;  %v8307_v18 = vld [vmem:[#allocation2 + $0x34] sm:$0xf]  ;;  %v8324_v50 = vld [vmem:[#allocation2 + $0x40] sm:$0xf] }
  0xdd   : > { %6987 = vmatpush3.bf16.msra.mxu1 %v7330_v60  ;;  %v2970_v40 = vrot.slane %v2969_v43, 4  ;;  %v2923_v60 = vld [vmem:[#allocation2 + $0x30] sm:$0xf]  ;;  %v2980_v4 = vrot.slane %v2979_v49, 4  ;;  %v3013_v51 = vrot.slane %v3011_v34, 4  ;;  %v3014_v26 = vshll.u32 %v2920_v33, 16 }
  0xde   : > { %6965 = vmatmul.mubr.bf16.gmra.mxu0 %v10128_v27  ;;  %6988 = vmatprep.subr.bf16.mxu1 %v7334_v14  ;;  %v3003_v46 = vor.u32 %v3002_v15, %v2998_v47  ;;  %v3020_v3 = vshll.u32 %v8283_v58, 16  ;;  %v3024_v21 = vshrl.u32 %v8283_v58, 16  ;;  %v10131_v57 = vcombine.low %v7905_v41, %v7907_v42  ;;  %v8315_v43 = vld [vmem:[#allocation2 + $0x38] sm:$0x1] }
  0xdf   : > { %6968 = vmatprep.mubr.bf16.mxu0 %v10129_v28  ;;  %v2975_v31 = vsel %vm7530_vm2, %v2970_v40, %v2974_v22  ;;  %v2985_v17 = vsel %vm7530_vm2, %v2980_v4, %v2984_v13  ;;  %v2994_v1 = vrot.slane %v2993_v25, 4  ;;  %v3016_v12 = vrot.slane %v3014_v26, 5  ;;  %v7342_v28 = vld [vmem:[%s10080_s2 + $0xc8] sm:$0xff]   ;;  %v7346_v4 = vld [vmem:[%s10080_s2 + $0xc0] sm:$0xff]  }
  0xe0   : > { %6909 = vmatmul.mubr.bf16.gmra.mxu1 %v10130_v63  ;;  %v3030_v63 = vshll.u32 %v8292_v5, 16  ;;  %v8320_v33 = vcombine.low %v2975_v31, %v2985_v17  ;;  %v3004_v15 = vrot.slane %v3003_v46, 4  ;;  %v3022_v41 = vrot.slane %v3020_v3, 5  ;;  %v8335_v46 = vld [vmem:[#allocation2 + $0x44] sm:$0x1] }
  0xe1   : > { %6912 = vmatprep.mubr.bf16.mxu1 %v10131_v57  ;;  %6989 = vmatpush3.bf16.msra.mxu1 %v7334_v14  ;;  %v3026_v42 = vrot.slane %v3024_v21, 4  ;;  %v2926_v14 = vld [vmem:[#allocation2 + $0x3c] sm:$0xf]  ;;  %v2999_v22 = vsel %vm7530_vm2, %v2994_v1, %v2998_v47  ;;  %v3017_v13 = vor.u32 %v3016_v12, %v3013_v51  ;;  %v3035_v49 = vshrl.u32 %v2923_v60, 16 }
  0xe2   : > { %6990 = vmatprep.subr.bf16.mxu1 %v7338_v16  ;;  %v3032_v26 = vrot.slane %v3030_v63, 5  ;;  %v3009_v52 = vsel %vm7530_vm2, %v3004_v15, %v3008_v61  ;;  %v3038_v27 = vshll.u32 %v2923_v60, 16  ;;  %v3044_v40 = vshll.u32 %v8307_v18, 16 }
  0xe3   : > { %v3027_v34 = vor.u32 %v3026_v42, %v3022_v41  ;;  %v8332_v25 = vcombine.low %v2999_v22, %v3009_v52  ;;  %v3018_v47 = vrot.slane %v3017_v13, 4  ;;  %v3037_v51 = vrot.slane %v3035_v49, 4  ;;  %v8362_v49 = vld [vmem:[#allocation2 + $0x4c] sm:$0xf] }
  0xe4   : > { %v3048_v31 = vshrl.u32 %v8307_v18, 16  ;;  %v10132_v61 = vcombine.low %v8172_v56, %v8194_v44  ;;  %v3040_v3 = vrot.slane %v3038_v27, 5  ;;  %v3054_v21 = vshll.u32 %v8315_v43, 16  ;;  %v8352_v44 = vld [vmem:[%s10080_s2 + $0x178] sm:$0xff]  }
  0xe5   : > { %6991 = vmatpush3.bf16.msra.mxu1 %v7338_v16  ;;  %v3028_v60 = vrot.slane %v3027_v34, 4  ;;  %v3046_v16 = vrot.slane %v3044_v40, 5  ;;  %v10133_v57 = vcombine.low %v8185_v62, %v8202_v35  ;;  %v3023_v17 = vsel %vm7530_vm2, %v3018_v47, %v3022_v41  ;;  %v2929_v41 = vld [vmem:[#allocation2 + $0x48] sm:$0xf]  ;;  %v8366_v40 = vld [vmem:[#allocation2 + $0x50] sm:$0x1] }
  0xe6   : > { %6969 = vmatmul.mubr.bf16.gmra.mxu0 %v10132_v61  ;;  %6992 = vmatprep.subr.bf16.mxu1 %v7342_v28  ;;  %v3050_v1 = vrot.slane %v3048_v31, 4  ;;  %v3059_v12 = vshrl.u32 %v2926_v14, 16  ;;  %v3062_v63 = vshll.u32 %v2926_v14, 16  ;;  %v10134_v56 = vcombine.low %v7937_v53, %v7939_v54  ;;  %v2932_v47 = vld [vmem:[#allocation2 + $0x54] sm:$0xf] }
  0xe7   : > { %6972 = vmatprep.mubr.bf16.mxu0 %v10133_v57  ;;  %v3033_v15 = vsel %vm7530_vm2, %v3028_v60, %v3032_v26  ;;  %v3041_v62 = vor.u32 %v3040_v3, %v3037_v51  ;;  %v3056_v35 = vrot.slane %v3054_v21, 5  ;;  %v3068_v42 = vshll.u32 %v8324_v50, 16  ;;  %v8368_v31 = vld [vmem:[#allocation2 + $0x58] sm:$0xf] }
  0xe8   : > { %6913 = vmatmul.mubr.bf16.gmra.mxu1 %v10134_v56  ;;  %v10135_v14 = vcombine.low %v8089_v37, %v8086_v36  ;;  %v8360_v53 = vcombine.low %v3023_v17, %v3033_v15  ;;  %v3051_v54 = vor.u32 %v3050_v1, %v3046_v16  ;;  %v3061_v22 = vrot.slane %v3059_v12, 4 }
  0xe9   : > { %6993 = vmatpush3.bf16.msra.mxu1 %v7342_v28  ;;  %v3064_v13 = vrot.slane %v3062_v63, 5  ;;  %v3042_v52 = vrot.slane %v3041_v62, 4  ;;  %v3070_v26 = vrot.slane %v3068_v42, 5  ;;  %v3072_v34 = vshrl.u32 %v8324_v50, 16 }
  0xea   : > { %6916 = vmatprep.mubr.bf16.mxu1 %v10135_v14  ;;  %6994 = vmatprep.subr.bf16.mxu1 %v7346_v4  ;;  %v3078_v27 = vshll.u32 %v8335_v46, 16  ;;  %v3052_v36 = vrot.slane %v3051_v54, 4  ;;  %v3083_v28 = vshrl.u32 %v2929_v41, 16  ;;  %v3086_v51 = vshll.u32 %v2929_v41, 16 }
  0xeb   : > { %v3065_v37 = vor.u32 %v3064_v13, %v3061_v22  ;;  %v3047_v61 = vsel %vm7530_vm2, %v3042_v52, %v3046_v16  ;;  %v3074_v60 = vrot.slane %v3072_v34, 4  ;;  %v3092_v21 = vshll.u32 %v8362_v49, 16  ;;  %v8391_v13 = vld [vmem:[#allocation2 + $0x5c] sm:$0x1] }
  0xec   : > { %v3080_v3 = vrot.slane %v3078_v27, 5  ;;  %v3057_v57 = vsel %vm7530_vm2, %v3052_v36, %v3056_v35  ;;  %v3085_v1 = vrot.slane %v3083_v28, 4  ;;  %v3088_v12 = vrot.slane %v3086_v51, 5  ;;  %v8400_v51 = vld [vmem:[#allocation2 + $0x64] sm:$0xf] }
  0xed   : > { %6995 = vmatpush3.bf16.msra.mxu1 %v7346_v4  ;;  %v3066_v17 = vrot.slane %v3065_v37, 4  ;;  %v10136_v63 = vcombine.low %v8215_v20, %v8232_v38  ;;  %v8379_v56 = vcombine.low %v3047_v61, %v3057_v57  ;;  %v3075_v16 = vor.u32 %v3074_v60, %v3070_v26  ;;  %v2935_v38 = vld [vmem:[#allocation2 + $0x60] sm:$0xf]  ;;  %v8407_v60 = vld [vmem:[#allocation2 + $0x68] sm:$0x1] }
  0xee   : > { %7076 = vmatprep.subr.bf16.mxu1 %v8352_v44  ;;  %v3094_v15 = vrot.slane %v3092_v21, 5  ;;  %v3096_v62 = vshrl.u32 %v8362_v49, 16  ;;  %v10137_v4 = vcombine.low %v8236_v19, %v8257_v29  ;;  %v3089_v42 = vor.u32 %v3088_v12, %v3085_v1  ;;  %v2938_v21 = vld [vmem:[#allocation2 + $0x6c] sm:$0xf] }
  0xef   : > { %6973 = vmatmul.mubr.bf16.gmra.mxu0 %v10136_v63  ;;  %v3071_v35 = vsel %vm7530_vm2, %v3066_v17, %v3070_v26  ;;  %v3102_v41 = vshll.u32 %v8366_v40, 16  ;;  %v3107_v20 = vshrl.u32 %v2932_v47, 16  ;;  %v10138_v14 = vcombine.low %v8107_v0, %v8100_v24 }
  0xf0   : > { %6976 = vmatprep.mubr.bf16.mxu0 %v10137_v4  ;;  %v3076_v54 = vrot.slane %v3075_v16, 4  ;;  %v3098_v22 = vrot.slane %v3096_v62, 4  ;;  %v3110_v52 = vshll.u32 %v2932_v47, 16  ;;  %v3116_v19 = vshll.u32 %v8368_v31, 16 }
  0xf1   : > { %6917 = vmatmul.mubr.bf16.gmra.mxu1 %v10138_v14  ;;  %v10139_v29 = vcombine.low %v8142_v48, %v8130_v10  ;;  %v3090_v26 = vrot.slane %v3089_v42, 4  ;;  %v3104_v34 = vrot.slane %v3102_v41, 5  ;;  %v3109_v27 = vrot.slane %v3107_v20, 4  ;;  %v8416_v20 = vld [vmem:[#allocation2 + $0x70] sm:$0xf] }
  0xf2   : > { %v3120_v36 = vshrl.u32 %v8368_v31, 16  ;;  %v3081_v24 = vsel %vm7530_vm2, %v3076_v54, %v3080_v3  ;;  %v3099_v0 = vor.u32 %v3098_v22, %v3094_v15  ;;  %v3112_v37 = vrot.slane %v3110_v52, 5  ;;  %v8421_v52 = vld [vmem:[#allocation2 + $0x74] sm:$0x1] }
  0xf3   : > { %6920 = vmatprep.mubr.bf16.mxu1 %v10139_v29  ;;  %v3118_v28 = vrot.slane %v3116_v19, 5  ;;  %v8402_v47 = vcombine.low %v3071_v35, %v3081_v24  ;;  %v3095_v61 = vsel %vm7530_vm2, %v3090_v26, %v3094_v15  ;;  %v3126_v48 = vshll.u32 %v8391_v13, 16 }
  0xf4   : > { %v3122_v10 = vrot.slane %v3120_v36, 4  ;;  %v3100_v57 = vrot.slane %v3099_v0, 4  ;;  %v3113_v17 = vor.u32 %v3112_v37, %v3109_v27  ;;  %v3131_v1 = vshrl.u32 %v2935_v38, 16 }
  0xf5   : > { %v3134_v3 = vshll.u32 %v2935_v38, 16  ;;  %v3128_v63 = vrot.slane %v3126_v48, 5  ;;  %v3140_v16 = vshll.u32 %v8400_v51, 16  ;;  %v3144_v62 = vshrl.u32 %v8400_v51, 16 }
  0xf6   : > { %v3123_v12 = vor.u32 %v3122_v10, %v3118_v28  ;;  %v10140_v4 = vcombine.low %v8246_v39, %v8274_v11  ;;  %v3105_v15 = vsel %vm7530_vm2, %v3100_v57, %v3104_v34  ;;  %v3114_v35 = vrot.slane %v3113_v17, 4  ;;  %v2941_v34 = vld [vmem:[#allocation2 + $0x78] sm:$0xf]  ;;  %v2944_v17 = vld [vmem:[#allocation2 + $0x84] sm:$0xf] }
  0xf7   : > { %v3133_v42 = vrot.slane %v3131_v1, 4  ;;  %v3136_v41 = vrot.slane %v3134_v3, 5  ;;  %v8419_v38 = vcombine.low %v3095_v61, %v3105_v15  ;;  %v3142_v54 = vrot.slane %v3140_v16, 5  ;;  %v8437_v61 = vld [vmem:[#allocation2 + $0x7c] sm:$0xf] }
  0xf8   : > { %6977 = vmatmul.mubr.bf16.gmra.mxu0 %v10140_v4  ;;  %v3124_v14 = vrot.slane %v3123_v12, 4  ;;  %v3146_v22 = vrot.slane %v3144_v62, 4  ;;  %v10141_v39 = vcombine.low %v8155_v59, %v8152_v2  ;;  %v3119_v11 = vsel %vm7530_vm2, %v3114_v35, %v3118_v28 }
  0xf9   : > { %7044 = vmatprep.mubr.bf16.mxu0 %v8320_v33  ;;  %v3137_v19 = vor.u32 %v3136_v41, %v3133_v42  ;;  %v3150_v29 = vshll.u32 %v8407_v60, 16  ;;  %v3155_v26 = vshrl.u32 %v2938_v21, 16  ;;  %v10142_v33 = vcombine.low %v7842_v45, %v7848_v55  ;;  %v8440_v55 = vld [vmem:[#allocation2 + $0x80] sm:$0x1] }
  0xfa   : > { %6921 = vmatmul.mubr.bf16.gmra.mxu1 %v10141_v39  ;;  %v3129_v27 = vsel %vm7530_vm2, %v3124_v14, %v3128_v63  ;;  %v3147_v36 = vor.u32 %v3146_v22, %v3142_v54  ;;  %v3158_v24 = vshll.u32 %v2938_v21, 16  ;;  %v3164_v2 = vshll.u32 %v8416_v20, 16  ;;  %v7356_v21 = vld [vmem:[%s10080_s2 + $0x1b0] sm:$0xff]   ;;  %v8454_v22 = vld [vmem:[#allocation2 + $0x88] sm:$0xf] }
  0xfb   : > { %6924 = vmatprep.mubr.bf16.mxu1 %v10142_v33  ;;  %v8435_v59 = vcombine.low %v3119_v11, %v3129_v27  ;;  %v3138_v0 = vrot.slane %v3137_v19, 4  ;;  %v3152_v37 = vrot.slane %v3150_v29, 5  ;;  %v3157_v28 = vrot.slane %v3155_v26, 4  ;;  %v8459_v29 = vld [vmem:[#allocation2 + $0x8c] sm:$0x1] }
  0xfc   : > { %v3148_v10 = vrot.slane %v3147_v36, 4  ;;  %v3160_v48 = vrot.slane %v3158_v24, 5  ;;  %v3166_v57 = vrot.slane %v3164_v2, 5  ;;  %v3168_v45 = vshrl.u32 %v8416_v20, 16  ;;  %v7360_v26 = vld [vmem:[%s10080_s2 + $0x1a8] sm:$0xff]  }
  0xfd   : > { %v3143_v1 = vsel %vm7530_vm2, %v3138_v0, %v3142_v54  ;;  %v3174_v3 = vshll.u32 %v8421_v52, 16  ;;  %v3179_v12 = vshrl.u32 %v2941_v34, 16  ;;  %v3182_v63 = vshll.u32 %v2941_v34, 16  ;;  %v2947_v27 = vld [vmem:[#allocation2 + $0x90] sm:$0xf] }
  0xfe   : > { %v3153_v16 = vsel %vm7530_vm2, %v3148_v10, %v3152_v37  ;;  %v3161_v62 = vor.u32 %v3160_v48, %v3157_v28  ;;  %v3170_v4 = vrot.slane %v3168_v45, 4  ;;  %v3188_v15 = vshll.u32 %v8437_v61, 16  ;;  %v8474_v0 = vld [vmem:[#allocation2 + $0x94] sm:$0xf]  ;;  %v7349_v45 = vld [vmem:[#allocation2 + $0xc] sm:$0xff]  }
  0xff   : > { %v8452_v35 = vcombine.low %v3143_v1, %v3153_v16  ;;  %v3176_v42 = vrot.slane %v3174_v3, 5  ;;  %v3181_v41 = vrot.slane %v3179_v12, 4  ;;  %v3184_v14 = vrot.slane %v3182_v63, 5  ;;  %v8487_v16 = vld [vmem:[#allocation2 + $0x98] sm:$0x1] }
 0x100   : > { %7045 = vmatmul.mubr.bf16.vlgmr.msra.gmra.mxu0 %v8332_v25  ;;  %v3162_v54 = vrot.slane %v3161_v62, 4  ;;  %v3171_v39 = vor.u32 %v3170_v4, %v3166_v57  ;;  %v3190_v11 = vrot.slane %v3188_v15, 5  ;;  %v3192_v19 = vshrl.u32 %v8437_v61, 16 }
 0x101   : > { %7125 = vmatpush3.bf16.msra.mxu0 %v8265_v23  ;;  %7048 = vmatprep.mubr.bf16.mxu0 %v8360_v53  ;;  %v10143_v25 = vcombine.low %v7879_v8, %v7881_v6  ;;  %v3185_v34 = vor.u32 %v3184_v14, %v3181_v41  ;;  %v3198_v23 = vshll.u32 %v8440_v55, 16  ;;  %v3203_v53 = vshrl.u32 %v2944_v17, 16 }
 0x102   : > { %7126 = vmatprep.subr.bf16.mxu0 %v7356_v21  ;;  %v3206_v33 = vshll.u32 %v2944_v17, 16  ;;  %v10144_v36 = vcombine.low %v7958_v32, %v7971_v7  ;;  %v3167_v24 = vsel %vm7530_vm2, %v3162_v54, %v3166_v57  ;;  %v3172_v8 = vrot.slane %v3171_v39, 4  ;;  %v7364_v57 = vld [vmem:[%s10080_s2 + $0x1a0] sm:$0xff]  }
 0x103   : > { %6925 = vmatmul.mubr.bf16.gmra.mxu1 %v10143_v25  ;;  %v3194_v6 = vrot.slane %v3192_v19, 4  ;;  %v3212_v2 = vshll.u32 %v8454_v22, 16  ;;  %v3186_v37 = vrot.slane %v3185_v34, 4  ;;  %v3200_v28 = vrot.slane %v3198_v23, 5  ;;  %v2950_v19 = vld [vmem:[#allocation2 + $0x9c] sm:$0xf] }
 0x104   : > { %6928 = vmatprep.mubr.bf16.mxu1 %v10144_v36  ;;  %v3205_v10 = vrot.slane %v3203_v53, 4  ;;  %v3208_v48 = vrot.slane %v3206_v33, 5  ;;  %v3177_v17 = vsel %vm7530_vm2, %v3172_v8, %v3176_v42  ;;  %v3216_v1 = vshrl.u32 %v8454_v22, 16  ;;  %v8495_v53 = vld [vmem:[#allocation2 + $0xa0] sm:$0xf] }
 0x105   : > { %7127 = vmatpush3.bf16.msra.mxu0 %v7356_v21  ;;  %v3195_v32 = vor.u32 %v3194_v6, %v3190_v11  ;;  %v3214_v7 = vrot.slane %v3212_v2, 5  ;;  %v8482_v3 = vcombine.low %v3167_v24, %v3177_v17  ;;  %v3191_v12 = vsel %vm7530_vm2, %v3186_v37, %v3190_v11  ;;  %v8508_v37 = vld [vmem:[#allocation2 + $0xa4] sm:$0x1] }
 0x106   : > { %7128 = vmatprep.subr.bf16.mxu0 %v7360_v26  ;;  %v3209_v63 = vor.u32 %v3208_v48, %v3205_v10  ;;  %v3222_v21 = vshll.u32 %v8459_v29, 16  ;;  %v3218_v4 = vrot.slane %v3216_v1, 4  ;;  %v3227_v15 = vshrl.u32 %v2947_v27, 16 }
 0x107   : > { %v3196_v62 = vrot.slane %v3195_v32, 4  ;;  %v3230_v42 = vshll.u32 %v2947_v27, 16  ;;  %v3236_v54 = vshll.u32 %v8474_v0, 16  ;;  %v3240_v39 = vshrl.u32 %v8474_v0, 16  ;;  %v2953_v32 = vld [vmem:[#allocation2 + $0xa8] sm:$0xf] }
 0x108   : > { %7049 = vmatmul.mubr.bf16.gmra.mxu0 %v8379_v56  ;;  %v3210_v41 = vrot.slane %v3209_v63, 4  ;;  %v3224_v14 = vrot.slane %v3222_v21, 5  ;;  %v3219_v25 = vor.u32 %v3218_v4, %v3214_v7  ;;  %v3229_v34 = vrot.slane %v3227_v15, 4  ;;  %v10145_v56 = vld [vmem:[#allocation9_spill] sm:$0xff]  ;;  %v7351_v21 = vld [vmem:[#allocation2 + $0x18] sm:$0xff]   ;;  %v7372_v15 = vld [vmem:[%s10080_s2 + $0x190] sm:$0xff]  }
 0x109   : > { %7052 = vmatprep.mubr.bf16.mxu0 %v8402_v47  ;;  %7129 = vmatpush3.bf16.msra.mxu0 %v7360_v26  ;;  %v3201_v11 = vsel %vm7530_vm2, %v3196_v62, %v3200_v28  ;;  %v3232_v23 = vrot.slane %v3230_v42, 5  ;;  %v10146_v33 = vcombine.low %v7998_v9, %v10145_v56  ;;  %v7368_v47 = vld [vmem:[%s10080_s2 + $0x198] sm:$0xff]   ;;  %v3238_v36 = vrot.slane %v3236_v54, 5  ;;  %v8514_v63 = vld [vmem:[#allocation2 + $0xac] sm:$0xf] }
 0x10a   : > { %7130 = vmatprep.subr.bf16.mxu0 %v7364_v57  ;;  %v8500_v27 = vcombine.low %v3191_v12, %v3201_v11  ;;  %v3215_v26 = vsel %vm7530_vm2, %v3210_v41, %v3214_v7  ;;  %v3242_v24 = vrot.slane %v3240_v39, 4  ;;  %v3220_v8 = vrot.slane %v3219_v25, 4 }
 0x10b   : > { %6929 = vmatmul.mubr.bf16.gmra.mxu1 %v10146_v33  ;;  %v3233_v6 = vor.u32 %v3232_v23, %v3229_v34  ;;  %v3246_v2 = vshll.u32 %v8487_v16, 16  ;;  %v3251_v9 = vshrl.u32 %v2950_v19, 16  ;;  %v3254_v10 = vshll.u32 %v2950_v19, 16  ;;  %v8530_v23 = vld [vmem:[#allocation2 + $0xb0] sm:$0x1] }
 0x10c   : > { %6996 = vmatprep.mubr.bf16.mxu1 %v7349_v45  ;;  %v3243_v28 = vor.u32 %v3242_v24, %v3238_v36  ;;  %v3260_v48 = vshll.u32 %v8495_v53, 16  ;;  %v3264_v17 = vshrl.u32 %v8495_v53, 16  ;;  %v3225_v7 = vsel %vm7530_vm2, %v3220_v8, %v3224_v14  ;;  %v7354_v14 = vld [vmem:[%s10080_s2 + $0x170] sm:$0xff]  }
 0x10d   : > { %7131 = vmatpush3.bf16.msra.mxu0 %v7364_v57  ;;  %v3234_v1 = vrot.slane %v3233_v6, 4  ;;  %v3248_v45 = vrot.slane %v3246_v2, 5  ;;  %v3253_v12 = vrot.slane %v3251_v9, 4  ;;  %v8516_v62 = vcombine.low %v3215_v26, %v3225_v7  ;;  %v7353_v57 = vld [vmem:[#allocation2 + $0x24] sm:$0xff]   ;;  %v2956_v26 = vld [vmem:[#allocation2 + $0xb4] sm:$0xf] }
 0x10e   : > { %7132 = vmatprep.subr.bf16.mxu0 %v7368_v47  ;;  %v3244_v4 = vrot.slane %v3243_v28, 4  ;;  %v3256_v42 = vrot.slane %v3254_v10, 5  ;;  %v3262_v41 = vrot.slane %v3260_v48, 5  ;;  %v3266_v39 = vrot.slane %v3264_v17, 4  ;;  %v8536_v2 = vld [vmem:[#allocation2 + $0xb8] sm:$0xf] }
 0x10f   : > { %v3239_v54 = vsel %vm7530_vm2, %v3234_v1, %v3238_v36  ;;  %v3270_v19 = vshll.u32 %v8508_v37, 16  ;;  %v3275_v11 = vshrl.u32 %v2953_v32, 16  ;;  %v3278_v56 = vshll.u32 %v2953_v32, 16  ;;  %v7358_v7 = vld [vmem:[%s10080_s2 + $0x168] sm:$0xff]  }
 0x110   : > { %7053 = vmatmul.mubr.bf16.gmra.mxu0 %v8419_v38  ;;  %v3249_v25 = vsel %vm7530_vm2, %v3244_v4, %v3248_v45  ;;  %v3257_v34 = vor.u32 %v3256_v42, %v3253_v12  ;;  %v3284_v33 = vshll.u32 %v8514_v63, 16  ;;  %v3267_v24 = vor.u32 %v3266_v39, %v3262_v41  ;;  %v6619_v4 = vld [vmem:[%s7511_s6 + $0x78] sm:$0xff]  }
 0x111   : > { %7056 = vmatprep.mubr.bf16.mxu0 %v8435_v59  ;;  %7133 = vmatpush3.bf16.msra.mxu0 %v7368_v47  ;;  %v8534_v36 = vcombine.low %v3239_v54, %v3249_v25  ;;  %v3272_v8 = vrot.slane %v3270_v19, 5  ;;  %v3277_v6 = vrot.slane %v3275_v11, 4  ;;  %v3280_v9 = vrot.slane %v3278_v56, 5  ;;  %v7376_v59 = vld [vmem:[%s10080_s2 + $0x188] sm:$0xff]   ;;  %v7355_v11 = vld [vmem:[#allocation2 + $0x30] sm:$0xff]  }
 0x112   : > { %7134 = vmatprep.subr.bf16.mxu0 %v7372_v15  ;;  %v3258_v38 = vrot.slane %v3257_v34, 4  ;;  %v3286_v28 = vrot.slane %v3284_v33, 5  ;;  %v3288_v10 = vshrl.u32 %v8514_v63, 16  ;;  %v3268_v47 = vrot.slane %v3267_v24, 4  ;;  %v3668_v19 = vld [vmem:[#allocation2 + $0xc] sm:$0xe] }
 0x113   : > { %6997 = vmatmul.mubr.bf16.vlgmr.msra.gmra.mxu1 %v7351_v21  ;;  %v3294_v48 = vshll.u32 %v8530_v23, 16  ;;  %v3299_v17 = vshrl.u32 %v2956_v26, 16  ;;  %v3302_v32 = vshll.u32 %v2956_v26, 16  ;;  %v3281_v45 = vor.u32 %v3280_v9, %v3277_v6  ;;  %v8549_v21 = vld [vmem:[#allocation2 + $0xbc] sm:$0x1]  ;;  %v7380_v33 = vld [vmem:[%s10080_s2 + $0x180] sm:$0xff]  }
 0x114   : > { %7077 = vmatpush3.bf16.msra.mxu1 %v8352_v44  ;;  %7000 = vmatprep.mubr.bf16.mxu1 %v7353_v57  ;;  %v3263_v1 = vsel %vm7530_vm2, %v3258_v38, %v3262_v41  ;;  %v3290_v12 = vrot.slane %v3288_v10, 4  ;;  %v3308_v44 = vshll.u32 %v8536_v2, 16  ;;  %v3273_v42 = vsel %vm7530_vm2, %v3268_v47, %v3272_v8  ;;  %v7362_v38 = vld [vmem:[%s10080_s2 + $0x160] sm:$0xff]  }
 0x115   : > { %7078 = vmatprep.subr.bf16.mxu1 %v7354_v14  ;;  %7135 = vmatpush3.bf16.msra.mxu0 %v7372_v15  ;;  %v3296_v57 = vrot.slane %v3294_v48, 5  ;;  %v3301_v54 = vrot.slane %v3299_v17, 4  ;;  %v3304_v39 = vrot.slane %v3302_v32, 5  ;;  %v8555_v25 = vcombine.low %v3263_v1, %v3273_v42  ;;  %v7357_v15 = vld [vmem:[#allocation2 + $0x3c] sm:$0xff]   ;;  %v3669_v48 = vld [vmem:[#allocation2 + $0x18] sm:$0xe] }
 0x116   : > { %v3282_v34 = vrot.slane %v3281_v45, 4  ;;  %v3291_v41 = vor.u32 %v3290_v12, %v3286_v28  ;;  %7136 = vmatprep.subr.bf16.mxu0 %v7376_v59  ;;  %v8557_v56 = vrot.slane %v3308_v44, 5  ;;  %v3312_v24 = vshrl.u32 %v8536_v2, 16  ;;  %v10147_v45 = vld [vmem:[#allocation3_spill] sm:$0xff] }
 0x117   : > { %v3305_v26 = vor.u32 %v3304_v39, %v3301_v54  ;;  %v3318_v8 = vshll.u32 %v8549_v21, 16  ;;  %v6603_v6 = vunpack.c.l.bf16 %v6619_v4  ;;  %v6604_v47 = vunpack.c.h.bf16 %v6619_v4  ;;  %v10149_v4 = vld [vmem:[#allocation11_spill] sm:$0xff] }
 0x118   : > { %7079 = vmatpush3.bf16.msra.mxu1 %v7354_v14  ;;  %7057 = vmatmul.mubr.bf16.gmra.mxu0 %v8452_v35  ;;  %v3287_v9 = vsel %vm7530_vm2, %v3282_v34, %v3286_v28  ;;  %v3292_v10 = vrot.slane %v3291_v41, 4  ;;  %v6312_v14 = vrot.slane %v3668_v19, 9  ;;  %v3314_v32 = vrot.slane %v3312_v24, 4  ;;  %v10148_v28 = vld [vmem:[#allocation10_spill] sm:$0xff]  ;;  %v7366_v34 = vld [vmem:[%s10080_s2 + $0x158] sm:$0xff]   ;;  %v10150_v41 = vld [vmem:[#allocation4_spill] sm:$0xff] }
 0x119   : > { %7080 = vmatprep.subr.bf16.mxu1 %v7358_v7  ;;  %7060 = vmatprep.mubr.bf16.mxu0 %v8482_v3  ;;  %v3306_v17 = vrot.slane %v3305_v26, 4  ;;  %v3320_v1 = vrot.slane %v3318_v8, 5  ;;  %v336_v12 = vmul.f32 %v6603_v6, %v10147_v45  ;;  %v337_v44 = vmul.f32 %v6604_v47, %v10147_v45  ;;  %v8580_v3 = vld [vmem:[%s10080_s2 + $0x238] sm:$0xff]  }
 0x11a   : > { %7137 = vmatpush3.bf16.msra.mxu0 %v7376_v59  ;;  %v3297_v35 = vsel %vm7530_vm2, %v3292_v10, %v3296_v57  ;;  %v3734_v42 = vrot.slane %v10148_v28, 5  ;;  %v3737_v54 = vrot.slane %v10149_v4, 5  ;;  %v3670_v59 = vld [vmem:[#allocation2 + $0x24] sm:$0xe]  ;;  %v3315_v19 = vor.u32 %v3314_v32, %v8557_v56 }
 0x11b   : > { %7001 = vmatmul.mubr.bf16.gmra.mxu1 %v7355_v11  ;;  %7138 = vmatprep.subr.bf16.mxu0 %v7380_v33  ;;  %v8582_v39 = vcombine.low %v3287_v9, %v3297_v35  ;;  %v3311_v57 = vsel %vm7530_vm2, %v3306_v17, %v8557_v56  ;;  %v6313_v11 = vrot.slane %v3669_v48, 9  ;;  %v372_v26 = vadd.f32 %v10150_v41, %v336_v12  ;;  %v10152_v9 = vld [vmem:[#allocation12_spill] sm:$0xff]  ;;  %v10153_v56 = vld [vmem:[#allocation13_spill] sm:$0xff]  ;;  %v3671_v35 = vld [vmem:[#allocation2 + $0x30] sm:$0xe] }
 0x11c   : > { %7004 = vmatprep.mubr.bf16.mxu1 %v7357_v15  ;;  %7081 = vmatpush3.bf16.msra.mxu1 %v7358_v7  ;;  %v373_v24 = vadd.f32 %v10150_v41, %v337_v44  ;;  %v8595_v7 = vsel %vm7964_vm13, %v6312_v14, %v3734_v42  ;;  %v3736_v8 = vrot.slane %v3734_v42, 4  ;;  %v3316_v6 = vrot.slane %v3315_v19, 4  ;;  %v7359_v17 = vld [vmem:[#allocation2 + $0x48] sm:$0xff]   ;;  %v7361_v44 = vld [vmem:[#allocation2 + $0x54] sm:$0xff]  }
 0x11d   : > { %7082 = vmatprep.subr.bf16.mxu1 %v7362_v38  ;;  %v3741_v10 = vrot.slane %v10152_v9, 5  ;;  %v3744_v47 = vrot.slane %v10153_v56, 5  ;;  %v6314_v48 = vrot.slane %v3670_v59, 9  ;;  %v404_v32 = vmax.f32 %v372_v26, 0.0  ;;  %v3672_v26 = vld [vmem:[#allocation2 + $0x3c] sm:$0xe] }
 0x11e   : > { %7139 = vmatpush3.bf16.msra.mxu0 %v7380_v33  ;;  %v405_v45 = vmax.f32 %v373_v24, 0.0  ;;  %v8601_v12 = vsel %vm7964_vm13, %v3736_v8, %v3737_v54  ;;  %v3748_v14 = vrot.slane %v8283_v58, 5  ;;  %v3321_v33 = vsel %vm7530_vm2, %v3316_v6, %v3320_v1  ;;  %v7370_v58 = vld [vmem:[%s10080_s2 + $0x150] sm:$0xff]  }
 0x11f   : > { %7220 = vmatprep.subr.bf16.mxu0 %v8580_v3  ;;  %v6344_v28 = vcombine.low %v8595_v7, %v8601_v12  ;;  %v8611_v42 = vsel %vm7964_vm13, %v6313_v11, %v3741_v10  ;;  %v3743_v4 = vrot.slane %v3741_v10, 4  ;;  %v8617_v54 = vcombine.low %v3311_v57, %v3321_v33  ;;  %v7363_v33 = vld [vmem:[#allocation2 + $0x60] sm:$0xff]   ;;  %v7387_v7 = vld [vmem:[%s10080_s2 + $0x1f0] sm:$0xff]  }
 0x120   : > { %7083 = vmatpush3.bf16.msra.mxu1 %v7362_v38  ;;  %7061 = vmatmul.mubr.bf16.gmra.mxu0 %v8500_v27  ;;  %v6539_v38 = vpack.c.bf16 %v404_v32, %v404_v32  ;;  %v6540_v59 = vpack.c.bf16 %v405_v45, %v405_v45  ;;  %v3750_v1 = vrot.slane %v3748_v14, 4  ;;  %v8626_v11 = vsel %vm7964_vm13, %v6314_v48, %v3748_v14  ;;  %v3673_v45 = vld [vmem:[#allocation2 + $0x48] sm:$0xe]  ;;  %v994_v14 = vld [vmem:[#allocation2 + $0xc8] sm:$0x1]  ;;  %v7390_v12 = vld [vmem:[#allocation2 + $0x54] sm:$0xff]  }
 0x121   : > { %7084 = vmatprep.subr.bf16.mxu1 %v7366_v34  ;;  %7064 = vmatprep.mubr.bf16.mxu0 %v8516_v62  ;;  %v8622_v19 = vsel %vm7964_vm13, %v3743_v4, %v3744_v47  ;;  %v3751_v27 = vrot.slane %v8292_v5, 5  ;;  %v6315_v41 = vrot.slane %v3671_v35, 9  ;;  %v990_v62 = vld [vmem:[#allocation2 + $0xc0] sm:$0xf]  ;;  %v3755_v56 = vrot.slane %v8307_v18, 5  ;;  %v7374_v47 = vld [vmem:[%s10080_s2 + $0x148] sm:$0xff]  }
 0x122   : > { %v815_v57 = vshrl.u32 %v6539_v38, 16  ;;  %v818_v24 = vshll.u32 %v6539_v38, 16  ;;  %v823_v8 = vshrl.u32 %v6540_v59, 16  ;;  %v826_v6 = vshll.u32 %v6540_v59, 16 }
 0x123   : > { %7005 = vmatmul.mubr.bf16.gmra.mxu1 %v7359_v17  ;;  %v6345_v9 = vcombine.low %v8611_v42, %v8622_v19  ;;  %v8633_v10 = vsel %vm7964_vm13, %v3750_v1, %v3751_v27  ;;  %v3758_v5 = vrot.slane %v8315_v43, 5  ;;  %v6316_v32 = vrot.slane %v3672_v26, 9  ;;  %v3674_v27 = vld [vmem:[#allocation2 + $0x54] sm:$0xe]  ;;  %v7391_v42 = vld [vmem:[%s10080_s2 + $0x1e8] sm:$0xff]  }
 0x124   : > { %7008 = vmatprep.mubr.bf16.mxu1 %v7361_v44  ;;  %7085 = vmatpush3.bf16.msra.mxu1 %v7366_v34  ;;  %v817_v48 = vrot.slane %v815_v57, 7  ;;  %v825_v17 = vrot.slane %v823_v8, 7  ;;  %v6346_v34 = vcombine.low %v8626_v11, %v8633_v10  ;;  %v8644_v35 = vsel %vm7964_vm13, %v6315_v41, %v3755_v56  ;;  %v7365_v57 = vld [vmem:[#allocation2 + $0x6c] sm:$0xff]  }
 0x125   : > { %7086 = vmatprep.subr.bf16.mxu1 %v7370_v58  ;;  %v3757_v18 = vrot.slane %v3755_v56, 4  ;;  %v3762_v43 = vrot.slane %v8324_v50, 5  ;;  %v3765_v44 = vrot.slane %v8335_v46, 5  ;;  %v6317_v50 = vrot.slane %v3673_v45, 9 }
 0x126   : > { %v820_v4 = vor.u32 %v818_v24, %v817_v48  ;;  %v821_v38 = vrot.slane %v817_v48, 4  ;;  %v828_v59 = vor.u32 %v826_v6, %v825_v17  ;;  %v830_v1 = vrot.slane %v825_v17, 4 }
 0x127   : > { %v8650_v26 = vsel %vm7964_vm13, %v3757_v18, %v3758_v5  ;;  %v8654_v41 = vsel %vm7964_vm13, %v6316_v32, %v3762_v43  ;;  %v3764_v8 = vrot.slane %v3762_v43, 4  ;;  %v7378_v5 = vld [vmem:[%s10080_s2 + $0x140] sm:$0xff]   ;;  %v3769_v17 = vrot.slane %v8362_v49, 5  ;;  %v3676_v18 = vld [vmem:[#allocation2 + $0x6c] sm:$0xe] }
 0x128   : > { %7087 = vmatpush3.bf16.msra.mxu1 %v7370_v58  ;;  %7065 = vmatmul.mubr.bf16.gmra.mxu0 %v8534_v36  ;;  %v829_v24 = vsel %vm7562_vm8, %v821_v38, %v828_v59  ;;  %v991_v56 = vsel %vm7570_vm9, %v820_v4, %v990_v62  ;;  %v995_v48 = vsel %vm7576_vm10, %v830_v1, %v994_v14  ;;  %v3675_v32 = vld [vmem:[#allocation2 + $0x60] sm:$0xe]  ;;  %v3772_v45 = vrot.slane %v8366_v40, 5  ;;  %v8688_v1 = vld [vmem:[%s10080_s2 + $0x1f8] sm:$0xff]   ;;  %v7369_v58 = vld [vmem:[#allocation2 + $0x84] sm:$0xff]  }
 0x129   : > { %7088 = vmatprep.subr.bf16.mxu1 %v7374_v47  ;;  %7068 = vmatprep.mubr.bf16.mxu0 %v8555_v25  ;;  %992 = vst [vmem:[#allocation2 + $0xc0] sm:$0xf] %v991_v56  ;;  %993 = vst [vmem:[#allocation2 + $0xc4] sm:$0xf] %v829_v24  ;;  %v8672_v62 = vsel %vm7964_vm13, %v3764_v8, %v3765_v44  ;;  %v6318_v14 = vrot.slane %v3674_v27, 9  ;;  %v8679_v25 = vsel %vm7964_vm13, %v6317_v50, %v3769_v17  ;;  %v7367_v50 = vld [vmem:[#allocation2 + $0x78] sm:$0xff]  }
 0x12a   : > { %996 = vst [vmem:[#allocation2 + $0xc8] sm:$0x1] %v995_v48  ;;  %v3771_v43 = vrot.slane %v3769_v17, 4  ;;  %v3776_v4 = vrot.slane %v8368_v31, 5  ;;  %v3779_v44 = vrot.slane %v8391_v13, 5  ;;  %v6319_v38 = vrot.slane %v3675_v32, 9 }
 0x12b   : > { %7009 = vmatmul.mubr.bf16.gmra.mxu1 %v7363_v33  ;;  %v3783_v40 = vrot.slane %v8400_v51, 5  ;;  %v3786_v59 = vrot.slane %v8407_v60, 5  ;;  %v3677_v33 = vld [vmem:[#allocation2 + $0x78] sm:$0xe]  ;;  %v3790_v8 = vrot.slane %v8416_v20, 5  ;;  %v3793_v24 = vrot.slane %v8421_v52, 5 }
 0x12c   : > { %7012 = vmatprep.mubr.bf16.mxu1 %v7365_v57  ;;  %7089 = vmatpush3.bf16.msra.mxu1 %v7374_v47  ;;  %v8692_v27 = vsel %vm7964_vm13, %v3771_v43, %v3772_v45  ;;  %v8696_v31 = vsel %vm7964_vm13, %v6318_v14, %v3776_v4  ;;  %v3778_v13 = vrot.slane %v3776_v4, 4  ;;  %v6320_v47 = vrot.slane %v3676_v18, 9  ;;  %v3678_v32 = vld [vmem:[#allocation2 + $0x84] sm:$0xe] }
 0x12d   : > { %7090 = vmatprep.subr.bf16.mxu1 %v7378_v5  ;;  %v8702_v60 = vsel %vm7964_vm13, %v6319_v38, %v3783_v40  ;;  %v3785_v57 = vrot.slane %v3783_v40, 4  ;;  %v6321_v6 = vrot.slane %v3677_v33, 9  ;;  %v3797_v56 = vrot.slane %v8437_v61, 5  ;;  %v3679_v38 = vld [vmem:[#allocation2 + $0x90] sm:$0xe] }
 0x12e   : > { %v8707_v46 = vsel %vm7964_vm13, %v3778_v13, %v3779_v44  ;;  %v3792_v20 = vrot.slane %v3790_v8, 4  ;;  %v3800_v13 = vrot.slane %v8440_v55, 5  ;;  %v6322_v61 = vrot.slane %v3678_v32, 9 }
 0x12f   : > { %v8715_v17 = vsel %vm7964_vm13, %v3785_v57, %v3786_v59  ;;  %v8731_v18 = vsel %vm7964_vm13, %v6321_v6, %v3797_v56  ;;  %v3799_v33 = vrot.slane %v3797_v56, 4  ;;  %v3804_v55 = vrot.slane %v8454_v22, 5 }
 0x130   : > { %7091 = vmatpush3.bf16.msra.mxu1 %v7378_v5  ;;  %7069 = vmatmul.mubr.bf16.gmra.mxu0 %v8582_v39  ;;  %v2959_v45 = vld [vmem:[#allocation2 + $0xc0] sm:$0xf]  ;;  %v8718_v14 = vld [vmem:[#allocation2 + $0xc4] sm:$0xf]  ;;  %v8727_v5 = vsel %vm7964_vm13, %v6320_v47, %v3790_v8  ;;  %v8739_v59 = vsel %vm7964_vm13, %v3792_v20, %v3793_v24  ;;  %v7371_v20 = vld [vmem:[#allocation2 + $0x90] sm:$0xff]  }
 0x131   : > { %v8720_v52 = vld [vmem:[#allocation2 + $0xc8] sm:$0x1]  ;;  %7172 = vmatprep.subr.bf16.mxu1 %v8688_v1  ;;  %7072 = vmatprep.mubr.bf16.mxu0 %v8617_v54  ;;  %v3323_v39 = vshrl.u32 %v2959_v45, 16  ;;  %v3326_v43 = vshll.u32 %v2959_v45, 16  ;;  %v3332_v4 = vshll.u32 %v8718_v14, 16  ;;  %v3336_v44 = vshrl.u32 %v8718_v14, 16 }
 0x132   : > { %v3342_v40 = vshll.u32 %v8720_v52, 16  ;;  %v8756_v32 = vsel %vm7964_vm13, %v6322_v61, %v3804_v55  ;;  %v7397_v45 = vld [vmem:[#allocation2 + $0x78] sm:$0xff]  }
 0x133   : > { %7013 = vmatmul.mubr.bf16.gmra.mxu1 %v7367_v50  ;;  %v3325_v47 = vrot.slane %v3323_v39, 4  ;;  %v3328_v54 = vrot.slane %v3326_v43, 5  ;;  %v3334_v57 = vrot.slane %v3332_v4, 5  ;;  %v3338_v8 = vrot.slane %v3336_v44, 4 }
 0x134   : > { %7016 = vmatprep.mubr.bf16.mxu1 %v7369_v58  ;;  %v3344_v6 = vrot.slane %v3342_v40, 5  ;;  %v8746_v50 = vsel %vm7964_vm13, %v3799_v33, %v3800_v13  ;;  %v3680_v58 = vld [vmem:[#allocation2 + $0x9c] sm:$0xe]  ;;  %v3807_v39 = vrot.slane %v8459_v29, 5  ;;  %v6323_v43 = vrot.slane %v3679_v38, 9 }
 0x135   : > { %v3329_v48 = vor.u32 %v3328_v54, %v3325_v47  ;;  %v3339_v24 = vor.u32 %v3338_v8, %v3334_v57  ;;  %v3811_v4 = vrot.slane %v8474_v0, 5  ;;  %v3814_v44 = vrot.slane %v8487_v16, 5  ;;  %v7373_v40 = vld [vmem:[#allocation2 + $0x9c] sm:$0xff]   ;;  %v3681_v38 = vld [vmem:[#allocation2 + $0xa8] sm:$0xe] }
 0x136   : > { %v3806_v47 = vrot.slane %v3804_v55, 4  ;;  %v6324_v8 = vrot.slane %v3680_v58, 9  ;;  %v3818_v29 = vrot.slane %v8495_v53, 5  ;;  %v3682_v55 = vld [vmem:[#allocation2 + $0xb4] sm:$0xe] }
 0x137   : > { %v3330_v33 = vrot.slane %v3329_v48, 4  ;;  %v3340_v13 = vrot.slane %v3339_v24, 4  ;;  %v8760_v22 = vsel %vm7964_vm13, %v6323_v43, %v3811_v4  ;;  %v3813_v54 = vrot.slane %v3811_v4, 4  ;;  %v7381_v48 = vld [vmem:[#allocation2 + $0x18] sm:$0xff]  }
 0x138   : > { %v8769_v61 = vsel %vm7964_vm13, %v3806_v47, %v3807_v39  ;;  %v3821_v24 = vrot.slane %v8508_v37, 5  ;;  %v3820_v37 = vrot.slane %v3818_v29, 4  ;;  %v6325_v4 = vrot.slane %v3681_v38, 9  ;;  %v8859_v39 = vld [vmem:[#allocation2 + $0x28] sm:$0xf] }
 0x139   : > { %v3335_v0 = vsel %vm7530_vm2, %v3330_v33, %v3334_v57  ;;  %v3345_v16 = vsel %vm7530_vm2, %v3340_v13, %v3344_v6  ;;  %v8776_v58 = vsel %vm7964_vm13, %v3813_v54, %v3814_v44  ;;  %v8780_v57 = vsel %vm7964_vm13, %v6324_v8, %v3818_v29  ;;  %v3683_v6 = vld [vmem:[#allocation2 + $0xc0] sm:$0xe] }
 0x13a   : > { %v6303_v43 = vcombine.low %v3335_v0, %v3345_v16  ;;  %v3828_v33 = vrot.slane %v8530_v23, 5  ;;  %v6326_v13 = vrot.slane %v3682_v55, 9  ;;  %v3832_v44 = vrot.slane %v8536_v2, 5  ;;  %v7377_v0 = vld [vmem:[#allocation2 + $0xb4] sm:$0xff]  }
 0x13b   : > { %7017 = vmatmul.mubr.bf16.gmra.mxu1 %v7371_v20  ;;  %v3825_v20 = vrot.slane %v8514_v63, 5  ;;  %v3835_v47 = vrot.slane %v8549_v21, 5  ;;  %v8790_v54 = vsel %vm7964_vm13, %v3820_v37, %v3821_v24  ;;  %v6327_v29 = vrot.slane %v3683_v6, 9  ;;  %v7375_v63 = vld [vmem:[#allocation2 + $0xa8] sm:$0xff]   ;;  %v7385_v37 = vld [vmem:[#allocation2 + $0x30] sm:$0xff]  }
 0x13c   : > { %7020 = vmatprep.mubr.bf16.mxu1 %v7373_v40  ;;  %7073 = vmatmul.mubr.bf16.gmra.mxu0 %v6303_v43  ;;  %v8800_v2 = vsel %vm7964_vm13, %v6326_v13, %v3832_v44  ;;  %v3834_v21 = vrot.slane %v3832_v44, 4  ;;  %v3839_v38 = vrot.slane %v8718_v14, 5  ;;  %v7382_v24 = vld [vmem:[#allocation2 + $0x24] sm:$0xff]  }
 0x13d   : > { %7140 = vmatprep.mubr.bf16.mxu0 %v7381_v48  ;;  %v8794_v40 = vsel %vm7964_vm13, %v6325_v4, %v3825_v20  ;;  %v3827_v8 = vrot.slane %v3825_v20, 4  ;;  %v3842_v48 = vrot.slane %v8720_v52, 5  ;;  %v7388_v52 = vld [vmem:[%s10080_s2 + $0x230] sm:$0xff]   ;;  %v7379_v13 = vld [vmem:[#allocation2 + $0xc0] sm:$0xff]   ;;  %v7392_v44 = vld [vmem:[%s10080_s2 + $0x228] sm:$0xff]  }
 0x13e   : > { %v8812_v43 = vsel %vm7964_vm13, %v3834_v21, %v3835_v47  ;;  %v8816_v6 = vsel %vm7964_vm13, %v6327_v29, %v3839_v38  ;;  %v3841_v14 = vrot.slane %v3839_v38, 4  ;;  %v7386_v47 = vld [vmem:[#allocation2 + $0x3c] sm:$0xff]   ;;  %v7389_v29 = vld [vmem:[#allocation2 + $0x48] sm:$0xff]   ;;  %v4553_v21 = vld [vmem:[#allocation2 + $0x18] sm:$0xf] }
 0x13f   : > { %v8805_v16 = vsel %vm7964_vm13, %v3827_v8, %v3828_v33  ;;  %10157 = vst [vmem:[#allocation9_spill] sm:$0xff] %v8816_v6  ;;  %v8833_v8 = vpop.f32.mrf.mxu0  ;;  %v4556_v33 = vld [vmem:[#allocation2 + $0x24] sm:$0xf]  ;;  %v4555_v4 = vld [vmem:[#allocation2 + $0x20] sm:$0x1]  ;;  %v7405_v6 = vld [vmem:[#allocation2 + $0xa8] sm:$0xff]  }
 0x140   : > { %v8825_v20 = vsel %vm7964_vm13, %v3841_v14, %v3842_v48  ;;  %10159 = vst [vmem:[#allocation10_spill] sm:$0xff] %v8833_v8  ;;  %v4605_v48 = vshll.u32 %v4553_v21, 16  ;;  %v5376_v10 = vrot.slane %v4555_v4, 5  ;;  %v5311_v8 = vld [vmem:[#allocation2 + $0x48] sm:$0xe] }
 0x141   : > { %10158 = vst [vmem:[#allocation3_spill] sm:$0xff] %v8825_v20  ;;  %v8841_v38 = vpop.f32.mrf.mxu0 }
 0x142   : > { %10160 = vst [vmem:[#allocation11_spill] sm:$0xff] %v8841_v38 }
 0x143   : > { %7021 = vmatmul.mubr.bf16.gmra.mxu1 %v7375_v63  ;;  %v7396_v63 = vld [vmem:[%s10080_s2 + $0x220] sm:$0xff]  }
 0x144   : > { %7024 = vmatprep.mubr.bf16.mxu1 %v7377_v0  ;;  %7141 = vmatmul.mubr.bf16.vlgmr.msra.gmra.mxu0 %v7382_v24  ;;  %v4602_v0 = vshrl.u32 %v4553_v21, 16  ;;  %v7400_v24 = vld [vmem:[%s10080_s2 + $0x218] sm:$0xff]   ;;  %v4607_v21 = vrot.slane %v4605_v48, 5  ;;  %v4626_v48 = vshrl.u32 %v4556_v33, 16 }
 0x145   : > { %7221 = vmatpush3.bf16.msra.mxu0 %v8580_v3  ;;  %7144 = vmatprep.mubr.bf16.mxu0 %v7385_v37  ;;  %v4554_v3 = vld [vmem:[#allocation2 + $0x1c] sm:$0xf] }
 0x146   : > { %7222 = vmatprep.subr.bf16.mxu0 %v7388_v52  ;;  %v4611_v14 = vshll.u32 %v4554_v3, 16  ;;  %v4615_v37 = vshrl.u32 %v4554_v3, 16 }
 0x148   : > { %v8857_v55 = vrot.slane %v4611_v14, 5  ;;  %v4617_v23 = vrot.slane %v4615_v37, 4  ;;  %v4621_v14 = vshll.u32 %v4555_v4, 16  ;;  %v7408_v37 = vld [vmem:[%s10080_s2 + $0x208] sm:$0xff]   ;;  %v7395_v4 = vld [vmem:[%s10080_s2 + $0x1e0] sm:$0xff]  }
 0x149   : > { %7223 = vmatpush3.bf16.msra.mxu0 %v7388_v52  ;;  %v8849_v52 = vpop.f32.mrf.mxu0 }
 0x14a   : > { %7224 = vmatprep.subr.bf16.mxu0 %v7392_v44  ;;  %10161 = vst [vmem:[#allocation4_spill] sm:$0xff] %v8849_v52  ;;  %v4623_v36 = vrot.slane %v4621_v14, 5  ;;  %v4562_v52 = vld [vmem:[#allocation2 + $0x3c] sm:$0xf] }
 0x14b   : > { %7025 = vmatmul.mubr.bf16.gmra.mxu1 %v7379_v13  ;;  %v5307_v13 = vld [vmem:[#allocation2 + $0x18] sm:$0xe]  ;;  %v8869_v19 = vpop.f32.mrf.mxu0 }
 0x14c   : > { %7092 = vmatprep.mubr.bf16.mxu1 %v6344_v28  ;;  %7145 = vmatmul.mubr.bf16.gmra.mxu0 %v7386_v47  ;;  %v7393_v28 = vld [vmem:[#allocation2 + $0x60] sm:$0xff]   ;;  %v5373_v47 = vrot.slane %v4554_v3, 5  ;;  %v5380_v3 = vrot.slane %v8859_v39, 5  ;;  %10162 = vst [vmem:[#allocation8_spill] sm:$0xff] %v8869_v19  ;;  %v4639_v19 = vshrl.u32 %v8859_v39, 16 }
 0x14d   : > { %7148 = vmatprep.mubr.bf16.mxu0 %v7389_v29  ;;  %7225 = vmatpush3.bf16.msra.mxu0 %v7392_v44  ;;  %v7404_v44 = vld [vmem:[%s10080_s2 + $0x210] sm:$0xff]   ;;  %v4604_v29 = vrot.slane %v4602_v0, 4  ;;  %v8871_v0 = vld [vmem:[#allocation2 + $0x2c] sm:$0x1] }
 0x14e   : > { %7226 = vmatprep.subr.bf16.mxu0 %v7396_v63  ;;  %v5375_v11 = vrot.slane %v5373_v47, 4  ;;  %v5383_v56 = vrot.slane %v8871_v0, 5 }
 0x150   : > { %v8892_v51 = vsel %vm7964_vm13, %v5375_v11, %v5376_v10 }
 0x151   : > { %7227 = vmatpush3.bf16.msra.mxu0 %v7396_v63  ;;  %v5308_v63 = vld [vmem:[#allocation2 + $0x24] sm:$0xe] }
 0x152   : > { %7228 = vmatprep.subr.bf16.mxu0 %v7400_v24  ;;  %v6449_v53 = vrot.slane %v5308_v63, 9  ;;  %v8888_v63 = vld [vmem:[#allocation2 + $0x34] sm:$0xf] }
 0x153   : > { %7093 = vmatmul.mubr.bf16.vlgmr.msra.gmra.mxu1 %v6345_v9  ;;  %v6448_v9 = vrot.slane %v5307_v13, 9  ;;  %v5382_v13 = vrot.slane %v5380_v3, 4 }
 0x154   : > { %7173 = vmatpush3.bf16.msra.mxu1 %v8688_v1  ;;  %7096 = vmatprep.mubr.bf16.mxu1 %v6346_v34  ;;  %v4629_v1 = vshll.u32 %v4556_v33, 16  ;;  %v4608_v34 = vor.u32 %v4607_v21, %v4604_v29  ;;  %v4635_v33 = vshll.u32 %v8859_v39, 16  ;;  %v8882_v29 = vpop.f32.mrf.mxu0  ;;  %v8907_v39 = vld [vmem:[#allocation2 + $0x40] sm:$0xf] }
 0x155   : > { %7174 = vmatprep.subr.bf16.mxu1 %v7387_v7  ;;  %7149 = vmatmul.mubr.bf16.gmra.mxu0 %v7390_v12  ;;  %v4618_v12 = vor.u32 %v4617_v23, %v8857_v55  ;;  %10163 = vst [vmem:[#allocation12_spill] sm:$0xff] %v8882_v29  ;;  %v8886_v21 = vsel %vm7964_vm13, %v6448_v9, %v5373_v47  ;;  %v4628_v23 = vrot.slane %v4626_v48, 4  ;;  %v8898_v47 = vpop.f32.mrf.mxu1 }
 0x156   : > { %7152 = vmatprep.mubr.bf16.mxu0 %v7393_v28  ;;  %7229 = vmatpush3.bf16.msra.mxu0 %v7400_v24  ;;  %v4559_v28 = vld [vmem:[#allocation2 + $0x30] sm:$0xf]  ;;  %v4609_v49 = vrot.slane %v4608_v34, 4  ;;  %v10164_v29 = vcombine.low %v8644_v35, %v8650_v26  ;;  %10165 = vst [vmem:[#allocation13_spill] sm:$0xff] %v8898_v47  ;;  %v8905_v48 = vsel %vm7964_vm13, %v6449_v53, %v5380_v3  ;;  %v8916_v10 = vrot.slane %v4635_v33, 5  ;;  %v7399_v3 = vld [vmem:[%s10080_s2 + $0x1d8] sm:$0xff]   ;;  %v8923_v14 = vpop.f32.mrf.mxu0 }
 0x157   : > { %7230 = vmatprep.subr.bf16.mxu0 %v7404_v44  ;;  %v7394_v24 = vld [vmem:[#allocation2 + $0x6c] sm:$0xff]   ;;  %v4619_v9 = vrot.slane %v4618_v12, 4  ;;  %v4653_v11 = vshll.u32 %v4559_v28, 16  ;;  %v10166_v35 = vcombine.low %v8654_v41, %v8672_v62  ;;  %v8914_v26 = vsel %vm7964_vm13, %v5382_v13, %v5383_v56  ;;  %10167 = vst [vmem:[#allocation5_spill] sm:$0xff] %v8923_v14  ;;  %v4565_v47 = vld [vmem:[#allocation2 + $0x48] sm:$0xf] }
 0x158   : > { %7175 = vmatpush3.bf16.msra.mxu1 %v7387_v7  ;;  %v4631_v7 = vrot.slane %v4629_v1, 5  ;;  %v4650_v1 = vshrl.u32 %v4559_v28, 16  ;;  %v4659_v34 = vshll.u32 %v8888_v63, 16  ;;  %v4663_v53 = vshrl.u32 %v8888_v63, 16 }
 0x159   : > { %7176 = vmatprep.subr.bf16.mxu1 %v7391_v42  ;;  %v4645_v62 = vshll.u32 %v8871_v0, 16  ;;  %v4674_v56 = vshrl.u32 %v4562_v52, 16  ;;  %v4677_v12 = vshll.u32 %v4562_v52, 16  ;;  %v4614_v13 = vsel %vm7530_vm2, %v4609_v49, %v8857_v55  ;;  %v4561_v49 = vld [vmem:[#allocation2 + $0x38] sm:$0x1] }
 0x15a   : > { %7231 = vmatpush3.bf16.msra.mxu0 %v7404_v44  ;;  %v7412_v44 = vld [vmem:[%s10080_s2 + $0x200] sm:$0xff]   ;;  %v4632_v41 = vor.u32 %v4631_v7, %v4628_v23  ;;  %v4641_v33 = vrot.slane %v4639_v19, 4  ;;  %v4683_v28 = vshll.u32 %v8907_v39, 16  ;;  %v4624_v0 = vsel %vm7530_vm2, %v4619_v9, %v4623_v36  ;;  %v8943_v36 = vpop.f32.mrf.mxu0 }
 0x15b   : > { %7097 = vmatmul.mubr.bf16.gmra.mxu1 %v10164_v29  ;;  %7232 = vmatprep.subr.bf16.mxu0 %v7408_v37  ;;  %v8931_v29 = vpop.f32.mrf.mxu1  ;;  %v5387_v23 = vrot.slane %v8888_v63, 5  ;;  %v4652_v52 = vrot.slane %v4650_v1, 4  ;;  %v8938_v19 = vrot.slane %v4659_v34, 5  ;;  %v4665_v7 = vrot.slane %v4663_v53, 4  ;;  %10169 = vst [vmem:[#allocation7_spill] sm:$0xff] %v8943_v36 }
 0x15c   : > { %7100 = vmatprep.mubr.bf16.mxu1 %v10166_v35  ;;  %7177 = vmatpush3.bf16.msra.mxu1 %v7391_v42  ;;  %v5309_v42 = vld [vmem:[#allocation2 + $0x30] sm:$0xe]  ;;  %10168 = vst [vmem:[#allocation6_spill] sm:$0xff] %v8931_v29  ;;  %v7398_v35 = vld [vmem:[#allocation2 + $0x84] sm:$0xff]   ;;  %v4676_v9 = vrot.slane %v4674_v56, 4  ;;  %v4679_v1 = vrot.slane %v4677_v12, 5  ;;  %v8949_v34 = vcombine.low %v4614_v13, %v4624_v0  ;;  %v10171_v36 = vcombine.low %v8679_v25, %v8692_v27  ;;  %v8972_v0 = vpop.f32.mrf.mxu0 }
 0x15d   : > { %7153 = vmatmul.mubr.bf16.gmra.mxu0 %v7394_v24  ;;  %7178 = vmatprep.subr.bf16.mxu1 %v7395_v4  ;;  %v4687_v24 = vshrl.u32 %v8907_v39, 16  ;;  %v6450_v55 = vrot.slane %v5309_v42, 9  ;;  %v7403_v29 = vld [vmem:[%s10080_s2 + $0x1d0] sm:$0xff]   ;;  %v8951_v53 = vrot.slane %v4645_v62, 5  ;;  %v8953_v42 = vrot.slane %v4683_v28, 5  ;;  %v8958_v14 = vpop.f32.mrf.mxu1  ;;  %10174 = vst [vmem:[#allocation16_spill] sm:$0xff] %v8972_v0 }
 0x15e   : > { %7156 = vmatprep.mubr.bf16.mxu0 %v7397_v45  ;;  %7233 = vmatpush3.bf16.msra.mxu0 %v7408_v37  ;;  %v4655_v45 = vrot.slane %v4653_v11, 5  ;;  %v7401_v11 = vld [vmem:[#allocation2 + $0x90] sm:$0xff]   ;;  %10170 = vst [vmem:[#allocation14_spill] sm:$0xff] %v8949_v34  ;;  %10172 = vst [vmem:[#allocation15_spill] sm:$0xff] %v8958_v14  ;;  %v5389_v56 = vrot.slane %v5387_v23, 4  ;;  %v5390_v12 = vrot.slane %v4561_v49, 5  ;;  %v10173_v62 = vcombine.low %v8696_v31, %v8707_v46  ;;  %v8993_v38 = vpop.f32.mrf.mxu0 }
 0x15f   : > { %7234 = vmatprep.subr.bf16.mxu0 %v7412_v44  ;;  %v4689_v37 = vrot.slane %v4687_v24, 4  ;;  %v8961_v13 = vld [vmem:[#allocation2 + $0x4c] sm:$0xf]  ;;  %v8968_v28 = vsel %vm7964_vm13, %v6450_v55, %v5387_v23  ;;  %v4666_v25 = vor.u32 %v4665_v7, %v8938_v19  ;;  %v4669_v27 = vshll.u32 %v4561_v49, 16  ;;  %v5310_v24 = vld [vmem:[#allocation2 + $0x3c] sm:$0xe]  ;;  %v8984_v7 = vpop.f32.mrf.mxu1 }
 0x160   : > { %7179 = vmatpush3.bf16.msra.mxu1 %v7395_v4  ;;  %v8947_v4 = vrot.slane %v4632_v41, 4  ;;  %v4642_v41 = vor.u32 %v4641_v33, %v8916_v10  ;;  %v4656_v63 = vor.u32 %v4655_v45, %v4652_v52  ;;  %v5394_v33 = vrot.slane %v8907_v39, 5  ;;  %v7407_v31 = vld [vmem:[%s10080_s2 + $0x1c8] sm:$0xff]   ;;  %10175 = vst [vmem:[#allocation17_spill] sm:$0xff] %v8984_v7  ;;  %v4567_v0 = vld [vmem:[#allocation2 + $0x50] sm:$0x1] }
 0x161   : > { %7180 = vmatprep.subr.bf16.mxu1 %v7399_v3  ;;  %v4698_v23 = vshrl.u32 %v4565_v47, 16  ;;  %v4701_v52 = vshll.u32 %v4565_v47, 16  ;;  %v4690_v45 = vor.u32 %v4689_v37, %v8953_v42  ;;  %v4707_v49 = vshll.u32 %v8961_v13, 16 }
 0x162   : > { %7235 = vmatpush3.bf16.msra.mxu0 %v7412_v44  ;;  %v4564_v44 = vld [vmem:[#allocation2 + $0x44] sm:$0x1]  ;;  %v4711_v55 = vshrl.u32 %v8961_v13, 16  ;;  %v4657_v47 = vrot.slane %v4656_v63, 4  ;;  %v4667_v37 = vrot.slane %v4666_v25, 4  ;;  %v5396_v46 = vrot.slane %v5394_v33, 4 }
 0x163   : > { %7101 = vmatmul.mubr.bf16.gmra.mxu1 %v10171_v36  ;;  %v4693_v39 = vshll.u32 %v4564_v44, 16  ;;  %v7411_v36 = vld [vmem:[%s10080_s2 + $0x1c0] sm:$0xff]   ;;  %v5397_v14 = vrot.slane %v4564_v44, 5  ;;  %v5401_v34 = vrot.slane %v8961_v13, 5  ;;  %v4703_v20 = vrot.slane %v4701_v52, 5  ;;  %v9001_v44 = vpop.f32.mrf.mxu1 }
 0x164   : > { %7104 = vmatprep.mubr.bf16.mxu1 %v10173_v62  ;;  %7181 = vmatpush3.bf16.msra.mxu1 %v7399_v3  ;;  %v4680_v3 = vor.u32 %v4679_v1, %v4676_v9  ;;  %v4643_v62 = vrot.slane %v4642_v41, 4  ;;  %v8991_v9 = vsel %vm7964_vm13, %v5389_v56, %v5390_v12  ;;  %v6451_v1 = vrot.slane %v5310_v24, 9  ;;  %10177 = vst [vmem:[#allocation18_spill] sm:$0xff] %v9001_v44  ;;  %v4577_v13 = vld [vmem:[#allocation2 + $0x78] sm:$0xf] }
 0x165   : > { %7157 = vmatmul.mubr.bf16.gmra.mxu0 %v7398_v35  ;;  %7182 = vmatprep.subr.bf16.mxu1 %v7403_v29  ;;  %v7402_v35 = vld [vmem:[#allocation2 + $0x9c] sm:$0xff]   ;;  %v4700_v41 = vrot.slane %v4698_v23, 4  ;;  %v4691_v56 = vrot.slane %v4690_v45, 4  ;;  %v4695_v12 = vrot.slane %v4693_v39, 5  ;;  %v8996_v63 = vrot.slane %v4707_v49, 5 }
 0x166   : > { %7160 = vmatprep.mubr.bf16.mxu0 %v7401_v11  ;;  %v4671_v11 = vrot.slane %v4669_v27, 5  ;;  %v4681_v7 = vrot.slane %v4680_v3, 4  ;;  %v10176_v25 = vcombine.low %v8702_v60, %v8715_v17  ;;  %v4648_v27 = vsel %vm7530_vm2, %v4643_v62, %v8951_v53  ;;  %v5312_v23 = vld [vmem:[#allocation2 + $0x54] sm:$0xe]  ;;  %v9034_v62 = vpop.f32.mrf.mxu1 }
 0x167   : > { %v4662_v24 = vsel %vm7530_vm2, %v4657_v47, %v8938_v19  ;;  %v9013_v3 = vsel %vm7964_vm13, %v6451_v1, %v5394_v33  ;;  %v10178_v60 = vcombine.low %v8727_v5, %v8739_v59  ;;  %v9022_v53 = vsel %vm7964_vm13, %v5396_v46, %v5397_v14  ;;  %v4569_v19 = vld [vmem:[#allocation2 + $0x58] sm:$0xf]  ;;  %v4568_v39 = vld [vmem:[#allocation2 + $0x54] sm:$0xf]  ;;  %v9024_v33 = vpop.f32.mrf.mxu0  ;;  %10179 = vst [vmem:[#allocation19_spill] sm:$0xff] %v9034_v62 }
 0x168   : > { %7183 = vmatpush3.bf16.msra.mxu1 %v7403_v29  ;;  %v4713_v29 = vrot.slane %v4711_v55, 4  ;;  %v4672_v17 = vsel %vm7530_vm2, %v4667_v37, %v4671_v11  ;;  %v6452_v52 = vrot.slane %v5311_v8, 9  ;;  %v5404_v45 = vrot.slane %v4567_v0, 5  ;;  %v9032_v55 = vld [vmem:[#allocation2 + $0x5c] sm:$0x1] }
 0x169   : > { %7184 = vmatprep.subr.bf16.mxu1 %v7407_v31  ;;  %v4686_v5 = vsel %vm7530_vm2, %v4681_v7, %v8953_v42  ;;  %v5403_v59 = vrot.slane %v5401_v34, 4  ;;  %v5408_v49 = vrot.slane %v4569_v19, 5  ;;  %v4696_v14 = vsel %vm7530_vm2, %v4691_v56, %v4695_v12  ;;  %v7406_v56 = vld [vmem:[#allocation2 + $0xb4] sm:$0xff]   ;;  %v9051_v12 = vpop.f32.mrf.mxu0 }
 0x16a   : > { %v4714_v8 = vor.u32 %v4713_v29, %v8996_v63  ;;  %v4717_v46 = vshll.u32 %v4567_v0, 16  ;;  %v10180_v42 = vsel %vm7530_vm2, %v8947_v4, %v8916_v10  ;;  %v4725_v47 = vshll.u32 %v4568_v39, 16 }
 0x16b   : > { %7105 = vmatmul.mubr.bf16.gmra.mxu1 %v10176_v25  ;;  %v9041_v7 = vcombine.low %v10180_v42, %v4648_v27  ;;  %v9049_v1 = vsel %vm7964_vm13, %v6452_v52, %v5401_v34  ;;  %v4731_v37 = vshll.u32 %v4569_v19, 16  ;;  %v4735_v11 = vshrl.u32 %v4569_v19, 16  ;;  %v7409_v27 = vld [vmem:[#allocation2 + $0xc0] sm:$0xff]   ;;  %v9069_v19 = vpop.f32.mrf.mxu1  ;;  %v9071_v42 = vld [vmem:[#allocation2 + $0x70] sm:$0xf] }
 0x16c   : > { %7108 = vmatprep.mubr.bf16.mxu1 %v10178_v60  ;;  %7185 = vmatpush3.bf16.msra.mxu1 %v7407_v31  ;;  %v4704_v31 = vor.u32 %v4703_v20, %v4700_v41  ;;  %v9043_v20 = vcombine.low %v4662_v24, %v4672_v17  ;;  %v4571_v41 = vld [vmem:[#allocation2 + $0x60] sm:$0xf]  ;;  %v9053_v10 = vcombine.low %v4686_v5, %v4696_v14  ;;  %v5410_v29 = vrot.slane %v5408_v49, 4  ;;  %v4574_v17 = vld [vmem:[#allocation2 + $0x6c] sm:$0xf] }
 0x16d   : > { %7161 = vmatmul.mubr.bf16.gmra.mxu0 %v7402_v35  ;;  %7186 = vmatprep.subr.bf16.mxu1 %v7411_v36  ;;  %v6453_v35 = vrot.slane %v5312_v23, 9  ;;  %v5411_v25 = vrot.slane %v9032_v55, 5  ;;  %v9060_v24 = vsel %vm7964_vm13, %v5403_v59, %v5404_v45  ;;  %v4715_v34 = vrot.slane %v4714_v8, 4  ;;  %10182 = vst [vmem:[#allocation20_spill] sm:$0xff] %v9069_v19  ;;  %v4578_v19 = vld [vmem:[#allocation2 + $0x7c] sm:$0xf] }
 0x16e   : > { %7164 = vmatprep.mubr.bf16.mxu0 %v7405_v6  ;;  %v4722_v6 = vshrl.u32 %v4568_v39, 16  ;;  %v4705_v4 = vrot.slane %v4704_v31, 4  ;;  %v4719_v23 = vrot.slane %v4717_v46, 5  ;;  %v10181_v52 = vcombine.low %v8731_v18, %v8746_v50  ;;  %v9080_v50 = vpop.f32.mrf.mxu0 }
 0x16f   : > { %v9064_v60 = vsel %vm7964_vm13, %v6453_v35, %v5408_v49  ;;  %v4727_v5 = vrot.slane %v4725_v47, 5  ;;  %v4746_v31 = vshrl.u32 %v4571_v41, 16  ;;  %v4749_v14 = vshll.u32 %v4571_v41, 16  ;;  %10184 = vst [vmem:[#allocation21_spill] sm:$0xff] %v9080_v50  ;;  %v9094_v41 = vpop.f32.mrf.mxu1 }
 0x170   : > { %7187 = vmatpush3.bf16.msra.mxu1 %v7411_v36  ;;  %v9056_v36 = vld [vmem:[#allocation2 + $0x64] sm:$0xf]  ;;  %v4724_v39 = vrot.slane %v4722_v6, 4  ;;  %v10183_v45 = vcombine.low %v8756_v32, %v8769_v61  ;;  %v9076_v59 = vrot.slane %v4731_v37, 5  ;;  %v4737_v49 = vrot.slane %v4735_v11, 4  ;;  %10185 = vst [vmem:[#allocation22_spill] sm:$0xff] %v9094_v41 }
 0x171   : > { %v4755_v8 = vshll.u32 %v9056_v36, 16  ;;  %v4759_v18 = vshrl.u32 %v9056_v36, 16  ;;  %v4710_v46 = vsel %vm7530_vm2, %v4705_v4, %v8996_v63  ;;  %v9087_v35 = vsel %vm7964_vm13, %v5410_v29, %v5411_v25  ;;  %v9098_v4 = vld [vmem:[#allocation2 + $0x68] sm:$0x1] }
 0x172   : > { %v4770_v32 = vshrl.u32 %v4574_v17, 16  ;;  %v4773_v61 = vshll.u32 %v4574_v17, 16  ;;  %v4720_v6 = vsel %vm7530_vm2, %v4715_v34, %v4719_v23  ;;  %v4741_v47 = vshll.u32 %v9032_v55, 16  ;;  %v5313_v34 = vld [vmem:[#allocation2 + $0x60] sm:$0xe] }
 0x173   : > { %7109 = vmatmul.mubr.bf16.gmra.mxu1 %v10181_v52  ;;  %v4779_v37 = vshll.u32 %v9071_v42, 16  ;;  %v4783_v11 = vshrl.u32 %v9071_v42, 16  ;;  %v4748_v29 = vrot.slane %v4746_v31, 4  ;;  %v4751_v25 = vrot.slane %v4749_v14, 5  ;;  %v9112_v31 = vld [vmem:[#allocation2 + $0x6c] sm:$0xe] }
 0x174   : > { %7112 = vmatprep.mubr.bf16.mxu1 %v10183_v45  ;;  %v4738_v17 = vor.u32 %v4737_v49, %v9076_v59  ;;  %v5415_v55 = vrot.slane %v9056_v36, 5  ;;  %v9102_v23 = vrot.slane %v4755_v8, 5  ;;  %v4761_v52 = vrot.slane %v4759_v18, 4 }
 0x175   : > { %7165 = vmatmul.mubr.bf16.gmra.mxu0 %v7406_v56  ;;  %v4728_v56 = vor.u32 %v4727_v5, %v4724_v39  ;;  %v9106_v0 = vcombine.low %v4710_v46, %v4720_v6  ;;  %v9110_v5 = vld [vmem:[#allocation2 + $0x74] sm:$0x1]  ;;  %v4772_v14 = vrot.slane %v4770_v32, 4  ;;  %v4775_v63 = vrot.slane %v4773_v61, 5  ;;  %v9122_v6 = vpop.f32.mrf.mxu1 }
 0x176   : > { %7168 = vmatprep.mubr.bf16.mxu0 %v7409_v27  ;;  %v7410_v27 = vld [vmem:[#allocation2 + $0xcc] sm:$0xff]   ;;  %v9104_v45 = vpop.f32.mrf.mxu0  ;;  %v9114_v49 = vrot.slane %v4741_v47, 5  ;;  %v4765_v36 = vshll.u32 %v9098_v4, 16  ;;  %v9117_v8 = vrot.slane %v4779_v37, 5  ;;  %v4785_v18 = vrot.slane %v4783_v11, 4  ;;  %10188 = vst [vmem:[#allocation24_spill] sm:$0xff] %v9122_v6 }
 0x177   : > { %10186 = vst [vmem:[#allocation23_spill] sm:$0xff] %v9104_v45  ;;  %v10187_v46 = vcombine.low %v8760_v22, %v8776_v58  ;;  %v9126_v41 = vrot.slane %v4728_v56, 4  ;;  %v6454_v32 = vrot.slane %v5313_v34, 9  ;;  %v5418_v61 = vrot.slane %v9098_v4, 5  ;;  %v5315_v4 = vld [vmem:[#allocation2 + $0x78] sm:$0xe] }
 0x178   : > { %v9124_v39 = vpop.f32.mrf.mxu0  ;;  %v4752_v47 = vor.u32 %v4751_v25, %v4748_v29  ;;  %v10190_v37 = vcombine.low %v8780_v57, %v8790_v54  ;;  %v9132_v11 = vrot.slane %v4738_v17, 4  ;;  %v5417_v62 = vrot.slane %v5415_v55, 4 }
 0x179   : > { %10189 = vst [vmem:[#allocation25_spill] sm:$0xff] %v9124_v39  ;;  %v4762_v22 = vor.u32 %v4761_v52, %v9102_v23  ;;  %v5422_v58 = vrot.slane %v9071_v42, 5  ;;  %v4776_v34 = vor.u32 %v4775_v63, %v4772_v14  ;;  %v5429_v29 = vrot.slane %v4578_v19, 5 }
 0x17a   : > { %v9138_v56 = vpop.f32.mrf.mxu0  ;;  %v4794_v25 = vshrl.u32 %v4577_v13, 16  ;;  %v4797_v6 = vshll.u32 %v4577_v13, 16  ;;  %v10192_v57 = vcombine.low %v8886_v21, %v8892_v51  ;;  %v4767_v54 = vrot.slane %v4765_v36, 5 }
 0x17b   : > { %7113 = vmatmul.mubr.bf16.gmra.mxu1 %v10187_v46  ;;  %v9136_v46 = vld [vmem:[#allocation2 + $0x80] sm:$0x1]  ;;  %10191 = vst [vmem:[#allocation26_spill] sm:$0xff] %v9138_v56  ;;  %v6455_v17 = vrot.slane %v9112_v31, 9  ;;  %v4786_v52 = vor.u32 %v4785_v18, %v9117_v8  ;;  %v4789_v42 = vshll.u32 %v9110_v5, 16  ;;  %v4753_v63 = vrot.slane %v4752_v47, 4 }
 0x17c   : > { %7116 = vmatprep.mubr.bf16.mxu1 %v10190_v37  ;;  %v9146_v37 = vpop.f32.mrf.mxu1  ;;  %v5425_v14 = vrot.slane %v9110_v5, 5  ;;  %v4803_v44 = vshll.u32 %v4578_v19, 16  ;;  %v4807_v13 = vshrl.u32 %v4578_v19, 16  ;;  %v4763_v56 = vrot.slane %v4762_v22, 4 }
 0x17d   : > { %7169 = vmatmul.mubr.bf16.gmra.mxu0 %v7410_v27  ;;  %10193 = vst [vmem:[#allocation27_spill] sm:$0xff] %v9146_v37  ;;  %v9148_v27 = vpop.f32.mrf.mxu0  ;;  %v5424_v39 = vrot.slane %v5422_v58, 4  ;;  %v6456_v51 = vrot.slane %v5315_v4, 9  ;;  %v5432_v21 = vrot.slane %v9136_v46, 5  ;;  %v4777_v31 = vrot.slane %v4776_v34, 4 }
 0x17e   : > { %7236 = vmatprep.mubr.bf16.mxu0 %v10192_v57  ;;  %10194 = vst [vmem:[#allocation28_spill] sm:$0xff] %v9148_v27  ;;  %v5431_v18 = vrot.slane %v5429_v29, 4  ;;  %v4796_v57 = vrot.slane %v4794_v25, 4  ;;  %v4799_v45 = vrot.slane %v4797_v6, 5  ;;  %v4734_v47 = vsel %vm7530_vm2, %v9126_v41, %v9076_v59  ;;  %v9165_v37 = vpop.f32.mrf.mxu1  ;;  %v4588_v27 = vld [vmem:[#allocation2 + $0xa4] sm:$0x1] }
 0x17f   : > { %v9152_v36 = vpop.f32.mrf.mxu0  ;;  %v9160_v5 = vsel %vm7964_vm13, %v6454_v32, %v5415_v55  ;;  %v4787_v19 = vrot.slane %v4786_v52, 4  ;;  %v4791_v22 = vrot.slane %v4789_v42, 5  ;;  %v10195_v4 = vcombine.low %v8794_v40, %v8805_v16  ;;  %10196 = vst [vmem:[#allocation29_spill] sm:$0xff] %v9165_v37  ;;  %v4580_v32 = vld [vmem:[#allocation2 + $0x84] sm:$0xf] }
 0x180   : > { %v4744_v6 = vsel %vm7530_vm2, %v9132_v11, %v9114_v49  ;;  %v9175_v59 = vsel %vm7964_vm13, %v5417_v62, %v5418_v61  ;;  %v9177_v41 = vrot.slane %v4803_v44, 5  ;;  %v4809_v55 = vrot.slane %v4807_v13, 4  ;;  %v4581_v62 = vld [vmem:[#allocation2 + $0x88] sm:$0xf]  ;;  %v9222_v42 = vld [vmem:[#allocation2 + $0x8c] sm:$0x1] }
 0x181   : > { %v9167_v34 = vpop.f32.mrf.mxu0  ;;  %v10197_v40 = vcombine.low %v8800_v2, %v8812_v43  ;;  %v4758_v16 = vsel %vm7530_vm2, %v4753_v63, %v9102_v23  ;;  %v4768_v25 = vsel %vm7530_vm2, %v4763_v56, %v4767_v54  ;;  %v9189_v49 = vsel %vm7964_vm13, %v6455_v17, %v5422_v58  ;;  %v5316_v56 = vld [vmem:[#allocation2 + $0x84] sm:$0xe]  ;;  %v9217_v17 = vpop.f32.mrf.mxu1 }
 0x182   : > { %v9193_v44 = vsel %vm7964_vm13, %v5424_v39, %v5425_v14  ;;  %v10198_v2 = vcombine.low %v8905_v48, %v8914_v26  ;;  %v4782_v23 = vsel %vm7530_vm2, %v4777_v31, %v9117_v8  ;;  %v9205_v61 = vsel %vm7964_vm13, %v6456_v51, %v5429_v29  ;;  %10200 = vst [vmem:[#allocation30_spill] sm:$0xff] %v9217_v17 }
 0x183   : > { %7117 = vmatmul.mubr.bf16.gmra.mxu1 %v10195_v4  ;;  %v9198_v43 = vpop.f32.mrf.mxu0  ;;  %v9209_v11 = vsel %vm7964_vm13, %v5431_v18, %v5432_v21  ;;  %v4800_v39 = vor.u32 %v4799_v45, %v4796_v57  ;;  %v10199_v58 = vcombine.low %v8968_v28, %v8991_v9  ;;  %v4792_v48 = vsel %vm7530_vm2, %v4787_v19, %v4791_v22  ;;  %v4583_v19 = vld [vmem:[#allocation2 + $0x90] sm:$0xf] }
 0x184   : > { %7120 = vmatprep.mubr.bf16.mxu1 %v10197_v40  ;;  %v4813_v26 = vshll.u32 %v9136_v46, 16  ;;  %v4818_v8 = vshrl.u32 %v4580_v32, 16  ;;  %v4821_v54 = vshll.u32 %v4580_v32, 16  ;;  %v4810_v52 = vor.u32 %v4809_v55, %v9177_v41  ;;  %v4586_v32 = vld [vmem:[#allocation2 + $0x9c] sm:$0xf] }
 0x185   : > { %7237 = vmatmul.mubr.bf16.vlgmr.msra.gmra.mxu0 %v10198_v2  ;;  %v9219_v29 = vpop.f32.mrf.mxu0  ;;  %v5436_v45 = vrot.slane %v4581_v62, 5  ;;  %v4827_v63 = vshll.u32 %v4581_v62, 16  ;;  %v4831_v28 = vshrl.u32 %v4581_v62, 16  ;;  %v9224_v9 = vcombine.low %v4734_v47, %v4744_v6  ;;  %v9240_v47 = vld [vmem:[#allocation2 + $0x94] sm:$0xf] }
 0x186   : > { %7240 = vmatprep.mubr.bf16.mxu0 %v10199_v58  ;;  %v9228_v46 = vcombine.low %v4758_v16, %v4768_v25  ;;  %v9234_v21 = vcombine.low %v4782_v23, %v4792_v48  ;;  %v9238_v18 = vrot.slane %v4800_v39, 4  ;;  %v6457_v57 = vrot.slane %v5316_v56, 9  ;;  %v10203_v16 = vld [vmem:[#allocation9_spill] sm:$0xff]  ;;  %v10204_v25 = vld [vmem:[#allocation3_spill] sm:$0xff]  ;;  %v10206_v56 = vld [vmem:[#allocation14_spill] sm:$0xff] }
 0x187   : > { %v9232_v51 = vpop.f32.mrf.mxu0  ;;  %v9242_v22 = vrot.slane %v4813_v26, 5  ;;  %v5439_v4 = vrot.slane %v9222_v42, 5  ;;  %v4820_v6 = vrot.slane %v4818_v8, 4  ;;  %v4823_v55 = vrot.slane %v4821_v54, 5  ;;  %v9254_v26 = vld [vmem:[#allocation2 + $0xa0] sm:$0xf] }
 0x188   : > { %10201 = vst [vmem:[#allocation31_spill] sm:$0xff] %v9234_v21  ;;  %v9245_v40 = vpop.f32.mrf.mxu1  ;;  %v10205_v62 = vcombine.low %v10203_v16, %v10204_v25  ;;  %v4811_v23 = vrot.slane %v4810_v52, 4  ;;  %v5438_v39 = vrot.slane %v5436_v45, 4  ;;  %v9252_v58 = vrot.slane %v4827_v63, 5 }
 0x189   : > { %10202 = vst [vmem:[#allocation32_spill] sm:$0xff] %v9245_v40  ;;  %v9250_v2 = vpop.f32.mrf.mxu0  ;;  %v4833_v48 = vrot.slane %v4831_v28, 4  ;;  %v4842_v8 = vshrl.u32 %v4583_v19, 16  ;;  %v4845_v54 = vshll.u32 %v4583_v19, 16  ;;  %v4851_v31 = vshll.u32 %v9240_v47, 16 }
 0x18a   : > { %v4855_v13 = vshrl.u32 %v9240_v47, 16  ;;  %v9259_v14 = vpop.f32.mrf.mxu1  ;;  %v10208_v16 = vcombine.low %v9013_v3, %v9022_v53  ;;  %v4806_v63 = vsel %vm7530_vm2, %v9238_v18, %v9177_v41  ;;  %v9272_v28 = vsel %vm7964_vm13, %v6457_v57, %v5436_v45  ;;  %v5317_v53 = vld [vmem:[#allocation2 + $0x90] sm:$0xe]  ;;  %v4585_v18 = vld [vmem:[#allocation2 + $0x98] sm:$0x1] }
 0x18b   : > { %7121 = vmatmul.mubr.bf16.gmra.mxu1 %v10205_v62  ;;  %10207 = vst [vmem:[#allocation9_spill] sm:$0xff] %v9259_v14  ;;  %v9264_v52 = vpop.f32.mrf.mxu0  ;;  %v4866_v19 = vshrl.u32 %v4586_v32, 16  ;;  %v4869_v25 = vshll.u32 %v4586_v32, 16  ;;  %v10209_v62 = vcombine.low %v9049_v1, %v9060_v24  ;;  %v4837_v3 = vshll.u32 %v9222_v42, 16 }
 0x18c   : > { %7188 = vmatprep.mubr.bf16.mxu1 %v10206_v56  ;;  %v4824_v56 = vor.u32 %v4823_v55, %v4820_v6  ;;  %v4879_v14 = vshrl.u32 %v9254_v26, 16  ;;  %v9280_v40 = vpop.f32.mrf.mxu1  ;;  %v4816_v45 = vsel %vm7530_vm2, %v4811_v23, %v9242_v22  ;;  %v9289_v1 = vsel %vm7964_vm13, %v5438_v39, %v5439_v4  ;;  %v5318_v22 = vld [vmem:[#allocation2 + $0x9c] sm:$0xe] }
 0x18d   : > { %7241 = vmatmul.mubr.bf16.gmra.mxu0 %v10208_v16  ;;  %v4875_v16 = vshll.u32 %v9254_v26, 16  ;;  %10210 = vst [vmem:[#allocation3_spill] sm:$0xff] %v9280_v40  ;;  %v9282_v41 = vpop.f32.mrf.mxu0  ;;  %v4834_v24 = vor.u32 %v4833_v48, %v9252_v58  ;;  %v5443_v42 = vrot.slane %v9240_v47, 5  ;;  %v4844_v57 = vrot.slane %v4842_v8, 4 }
 0x18e   : > { %7244 = vmatprep.mubr.bf16.mxu0 %v10209_v62  ;;  %v4847_v6 = vrot.slane %v4845_v54, 5  ;;  %v9293_v55 = vrot.slane %v4851_v31, 5  ;;  %v4857_v32 = vrot.slane %v4855_v13, 4  ;;  %v9295_v62 = vpop.f32.mrf.mxu1  ;;  %v6458_v17 = vrot.slane %v5317_v53, 9 }
 0x18f   : > { %10211 = vst [vmem:[#allocation14_spill] sm:$0xff] %v9295_v62  ;;  %v9297_v40 = vpop.f32.mrf.mxu0  ;;  %v5450_v23 = vrot.slane %v9254_v26, 5  ;;  %v4868_v4 = vrot.slane %v4866_v19, 4  ;;  %v4871_v39 = vrot.slane %v4869_v25, 5  ;;  %v4825_v37 = vrot.slane %v4824_v56, 4 }
 0x190   : > { %v4839_v48 = vrot.slane %v4837_v3, 5  ;;  %v9300_v47 = vrot.slane %v4875_v16, 5  ;;  %v4881_v8 = vrot.slane %v4879_v14, 4  ;;  %v6902_v54 = vpop.f32.mrf.mxu1  ;;  %v4835_v31 = vrot.slane %v4834_v24, 4 }
 0x191   : > { %v9303_v13 = vpop.f32.mrf.mxu0  ;;  %v5445_v62 = vrot.slane %v5443_v42, 4  ;;  %v5446_v21 = vrot.slane %v4585_v18, 5  ;;  %v4861_v53 = vshll.u32 %v4585_v18, 16  ;;  %v9306_v26 = vcombine.low %v4806_v63, %v4816_v45 }
 0x192   : > { %v4848_v19 = vor.u32 %v4847_v6, %v4844_v57  ;;  %v4858_v25 = vor.u32 %v4857_v32, %v9293_v55  ;;  %v6459_v56 = vrot.slane %v5318_v22, 9  ;;  %v1916_v3 = vpop.f32.mrf.mxu1  ;;  %v10212_v14 = vcombine.low %v9064_v60, %v9087_v35  ;;  %v4590_v6 = vld [vmem:[#allocation2 + $0xac] sm:$0xf]  ;;  %v4589_v32 = vld [vmem:[#allocation2 + $0xa8] sm:$0xf] }
 0x193   : > { %7189 = vmatmul.mubr.bf16.vlgmr.msra.gmra.mxu1 %v9041_v7  ;;  %v9312_v7 = vpop.f32.mrf.mxu0  ;;  %v5452_v24 = vrot.slane %v5450_v23, 4  ;;  %v5453_v18 = vrot.slane %v4588_v27, 5  ;;  %v4872_v50 = vor.u32 %v4871_v39, %v4868_v4  ;;  %v10213_v63 = vcombine.low %v9160_v5, %v9175_v59 }
 0x194   : > { %7192 = vmatprep.mubr.bf16.mxu1 %v9043_v20  ;;  %v5319_v20 = vld [vmem:[#allocation2 + $0xa8] sm:$0xe]  ;;  %v4830_v45 = vsel %vm7530_vm2, %v4825_v37, %v9252_v58  ;;  %v9324_v60 = vsel %vm7964_vm13, %v6458_v17, %v5443_v42  ;;  %v4882_v35 = vor.u32 %v4881_v8, %v9300_v47  ;;  %v4885_v57 = vshll.u32 %v4588_v27, 16  ;;  %v6903_v22 = vpop.f32.mrf.mxu1  ;;  %v4591_v27 = vld [vmem:[#allocation2 + $0xb0] sm:$0x1] }
 0x195   : > { %7245 = vmatmul.mubr.bf16.gmra.mxu0 %v10212_v14  ;;  %v9327_v4 = vpop.f32.mrf.mxu0  ;;  %v4840_v5 = vsel %vm7530_vm2, %v4835_v31, %v4839_v48  ;;  %v9333_v59 = vsel %vm7964_vm13, %v5445_v62, %v5446_v21  ;;  %v4863_v37 = vrot.slane %v4861_v53, 5  ;;  %v5457_v58 = vrot.slane %v4590_v6, 5 }
 0x196   : > { %7248 = vmatprep.mubr.bf16.mxu0 %v10213_v63  ;;  %10214 = vst [vmem:[#allocation33_spill] sm:$0xff] %v9327_v4  ;;  %v4849_v39 = vrot.slane %v4848_v19, 4  ;;  %v4859_v17 = vrot.slane %v4858_v25, 4  ;;  %v9337_v42 = vsel %vm7964_vm13, %v6459_v56, %v5450_v23  ;;  %v6460_v8 = vrot.slane %v5319_v20, 9  ;;  %v1919_v14 = vpop.f32.mrf.mxu1  ;;  %v10221_v20 = vld [vmem:[#allocation8_spill] sm:$0xff] }
 0x197   : > { %v9339_v63 = vpop.f32.mrf.mxu0  ;;  %v9343_v48 = vsel %vm7964_vm13, %v5452_v24, %v5453_v18  ;;  %v4873_v31 = vrot.slane %v4872_v50, 4  ;;  %v4890_v21 = vshrl.u32 %v4589_v32, 16  ;;  %v4893_v62 = vshll.u32 %v4589_v32, 16 }
 0x198   : > { %10215 = vst [vmem:[#allocation34_spill] sm:$0xff] %v9339_v63  ;;  %v4883_v53 = vrot.slane %v4882_v35, 4  ;;  %v4887_v16 = vrot.slane %v4885_v57, 5  ;;  %v4899_v19 = vshll.u32 %v4590_v6, 16  ;;  %v4903_v25 = vshrl.u32 %v4590_v6, 16  ;;  %v6906_v4 = vpop.f32.mrf.mxu1  ;;  %v10216_v35 = vld [vmem:[#allocation10_spill] sm:$0xff] }
 0x199   : > { %v9346_v23 = vpop.f32.mrf.mxu0  ;;  %v9348_v56 = vcombine.low %v4830_v45, %v4840_v5  ;;  %v5459_v63 = vrot.slane %v5457_v58, 4  ;;  %v5460_v24 = vrot.slane %v4591_v27, 5  ;;  %v4854_v50 = vsel %vm7530_vm2, %v4849_v39, %v9293_v55  ;;  %v5320_v39 = vld [vmem:[#allocation2 + $0xb4] sm:$0xe] }
 0x19a   : > { %v4864_v18 = vsel %vm7530_vm2, %v4859_v17, %v4863_v37  ;;  %v9362_v45 = vsel %vm7964_vm13, %v6460_v8, %v5457_v58  ;;  %v1925_v57 = vadd.f32 %v6902_v54, %v10216_v35  ;;  %v1932_v6 = vpop.f32.mrf.mxu1  ;;  %v4878_v55 = vsel %vm7530_vm2, %v4873_v31, %v9300_v47  ;;  %v10219_v8 = vld [vmem:[#allocation11_spill] sm:$0xff] }
 0x19b   : > { %7193 = vmatmul.mubr.bf16.gmra.mxu1 %v9053_v10  ;;  %v9368_v32 = vpop.f32.mrf.mxu0  ;;  %v4892_v5 = vrot.slane %v4890_v21, 4  ;;  %v4895_v37 = vrot.slane %v4893_v62, 5  ;;  %v10218_v58 = vcombine.low %v9205_v61, %v9209_v11  ;;  %v4888_v54 = vsel %vm7530_vm2, %v4883_v53, %v4887_v16  ;;  %v10222_v11 = vld [vmem:[#allocation12_spill] sm:$0xff]  ;;  %v10223_v16 = vld [vmem:[#allocation5_spill] sm:$0xff] }
 0x19c   : > { %7196 = vmatprep.mubr.bf16.mxu1 %v9106_v0  ;;  %v10217_v0 = vcombine.low %v9189_v49, %v9193_v44  ;;  %v9378_v17 = vrot.slane %v4899_v19, 5  ;;  %v4905_v49 = vrot.slane %v4903_v25, 4  ;;  %v4909_v44 = vshll.u32 %v4591_v27, 16  ;;  %v6907_v31 = vpop.f32.mrf.mxu1  ;;  %v10224_v25 = vld [vmem:[#allocation7_spill] sm:$0xff] }
 0x19d   : > { %v1917_v35 = vadd.f32 %v1916_v3, %v10219_v8  ;;  %v1920_v47 = vadd.f32 %v1919_v14, %v10221_v20  ;;  %v9383_v21 = vpop.f32.mrf.mxu0  ;;  %v9387_v61 = vsel %vm7964_vm13, %v5459_v63, %v5460_v24  ;;  %v1941_v62 = vadd.f32 %v6906_v4, %v10222_v11  ;;  %v4592_v8 = vld [vmem:[#allocation2 + $0xb4] sm:$0xf]  ;;  %v10225_v63 = vld [vmem:[#allocation16_spill] sm:$0xff] }
 0x19e   : > { %7249 = vmatmul.mubr.bf16.gmra.mxu0 %v10217_v0  ;;  %v10220_v0 = vld [vmem:[#allocation4_spill] sm:$0xff]  ;;  %v1933_v53 = vadd.f32 %v1932_v6, %v10223_v16  ;;  %v9391_v19 = vcombine.low %v4854_v50, %v4864_v18  ;;  %v6461_v27 = vrot.slane %v5320_v39, 9  ;;  %v1944_v3 = vadd.f32 %v6907_v31, %v10224_v25  ;;  %v9407_v6 = vld [vmem:[#allocation2 + $0xb8] sm:$0xf]  ;;  %v9409_v39 = vld [vmem:[#allocation2 + $0xbc] sm:$0x1] }
 0x19f   : > { %7252 = vmatprep.mubr.bf16.mxu0 %v10218_v58  ;;  %v1928_v10 = vadd.f32 %v6903_v22, %v10220_v0  ;;  %v1935_v58 = vpop.f32.mrf.mxu1  ;;  %v9394_v22 = vpop.f32.mrf.mxu0  ;;  %v9396_v14 = vcombine.low %v4878_v55, %v4888_v54  ;;  %v4896_v20 = vor.u32 %v4895_v37, %v4892_v5  ;;  %v9399_v0 = vadd.f32 %v9152_v36, %v1925_v57 }
 0x1a0   : > { %v1936_v24 = vadd.f32 %v1935_v58, %v10225_v63  ;;  %v6492_v4 = vcombine.low %v9362_v45, %v9387_v61  ;;  %v4906_v50 = vor.u32 %v4905_v49, %v9378_v17  ;;  %v9405_v18 = vrot.slane %v4909_v44, 5  ;;  %v9515_v45 = vld [vmem:[#allocation2 + $0xd4] sm:$0x1] }
 0x1a1   : > { %v6910_v55 = vpop.f32.mrf.mxu1  ;;  %v9412_v5 = vpop.f32.mrf.mxu0  ;;  %v5464_v36 = vrot.slane %v9407_v6, 5  ;;  %v9416_v57 = vadd.f32 %v9167_v34, %v1917_v35  ;;  %v9419_v37 = vadd.f32 %v9198_v43, %v1928_v10  ;;  %v9422_v54 = vadd.f32 %v9219_v29, %v1920_v47  ;;  %v10236_v61 = vld [vmem:[#allocation26_spill] sm:$0xff] }
 0x1a2   : > { %v1957_v49 = vadd.f32 %v6910_v55, %v8993_v38  ;;  %v4914_v44 = vshrl.u32 %v4592_v8, 16  ;;  %v9430_v31 = vadd.f32 %v9250_v2, %v1933_v53  ;;  %v10226_v34 = vcombine.low %v9272_v28, %v9289_v1  ;;  %v4596_v38 = vld [vmem:[#allocation2 + $0xc4] sm:$0xf]  ;;  %v5321_v1 = vld [vmem:[#allocation2 + $0xc0] sm:$0xe] }
 0x1a3   : > { %7197 = vmatmul.mubr.bf16.gmra.mxu1 %v9224_v9  ;;  %v9427_v9 = vadd.f32 %v9232_v51, %v1941_v62  ;;  %v1948_v11 = vpop.f32.mrf.mxu1  ;;  %v9435_v43 = vpop.f32.mrf.mxu0  ;;  %v4897_v29 = vrot.slane %v4896_v20, 4  ;;  %v5467_v10 = vrot.slane %v9409_v39, 5  ;;  %v9442_v51 = vadd.f32 %v9282_v41, %v1936_v24  ;;  %v4595_v62 = vld [vmem:[#allocation2 + $0xc0] sm:$0xf] }
 0x1a4   : > { %7200 = vmatprep.mubr.bf16.mxu1 %v9228_v46  ;;  %v9439_v46 = vadd.f32 %v9264_v52, %v1944_v3  ;;  %v1949_v2 = vadd.f32 %v1948_v11, %v9024_v33  ;;  %v10227_v35 = vcombine.low %v9324_v60, %v9333_v59  ;;  %v4907_v28 = vrot.slane %v4906_v50, 4  ;;  %v9458_v60 = vld [vmem:[#allocation2 + $0xc8] sm:$0x1]  ;;  %v10229_v11 = vld [vmem:[#allocation31_spill] sm:$0xff] }
 0x1a5   : > { %v5471_v47 = vrot.slane %v4596_v38, 5  ;;  %v9449_v16 = vadd.f32 %v9297_v40, %v1957_v49  ;;  %v6911_v53 = vpop.f32.mrf.mxu1  ;;  %v9451_v25 = vpop.f32.mrf.mxu0  ;;  %v9455_v52 = vsel %vm7964_vm13, %v6461_v27, %v5464_v36  ;;  %v5466_v41 = vrot.slane %v5464_v36, 4  ;;  %v10228_v36 = vld [vmem:[#allocation21_spill] sm:$0xff] }
 0x1a6   : > { %7253 = vmatmul.mubr.bf16.gmra.mxu0 %v10226_v34  ;;  %v4917_v33 = vshll.u32 %v4592_v8, 16  ;;  %v4923_v3 = vshll.u32 %v9407_v6, 16  ;;  %v1960_v59 = vadd.f32 %v6911_v53, %v9051_v12  ;;  %v9461_v58 = vrot.slane %v4914_v44, 4 }
 0x1a7   : > { %7256 = vmatprep.mubr.bf16.mxu0 %v10227_v35  ;;  %v4927_v40 = vshrl.u32 %v9407_v6, 16  ;;  %v9465_v20 = vadd.f32 %v9303_v13, %v1949_v2  ;;  %v1951_v63 = vpop.f32.mrf.mxu1  ;;  %v9467_v24 = vpop.f32.mrf.mxu0  ;;  %v4902_v27 = vsel %vm7530_vm2, %v4897_v29, %v9378_v17  ;;  %v6462_v8 = vrot.slane %v5321_v1, 9  ;;  %v10230_v1 = vld [vmem:[#allocation23_spill] sm:$0xff] }
 0x1a8   : > { %v4938_v50 = vshrl.u32 %v4595_v62, 16  ;;  %v4941_v55 = vshll.u32 %v4595_v62, 16  ;;  %v1952_v49 = vadd.f32 %v1951_v63, %v10228_v36  ;;  %v5473_v12 = vrot.slane %v5471_v47, 4 }
 0x1a9   : > { %v5474_v44 = vrot.slane %v9458_v60, 5  ;;  %v9475_v6 = vadd.f32 %v9312_v7, %v1960_v59  ;;  %v6914_v13 = vpop.f32.mrf.mxu1  ;;  %v9478_v34 = vpop.f32.mrf.mxu0  ;;  %v4912_v17 = vsel %vm7530_vm2, %v4907_v28, %v9405_v18  ;;  %v4919_v29 = vrot.slane %v4917_v33, 5  ;;  %v10231_v59 = vld [vmem:[#allocation33_spill] sm:$0xff] }
 0x1aa   : > { %v4947_v2 = vshll.u32 %v4596_v38, 16  ;;  %v4951_v35 = vshrl.u32 %v4596_v38, 16  ;;  %v1973_v62 = vadd.f32 %v6914_v13, %v10230_v1  ;;  %v5468_v7 = vsel %vm7964_vm13, %v5466_v41, %v5467_v10  ;;  %v4599_v13 = vld [vmem:[#allocation2 + $0xd0] sm:$0xf]  ;;  %v10233_v10 = vld [vmem:[#allocation25_spill] sm:$0xff] }
 0x1ab   : > { %7201 = vmatmul.mubr.bf16.gmra.mxu1 %v10229_v11  ;;  %v9487_v53 = vrot.slane %v4923_v3, 5  ;;  %v9490_v63 = vadd.f32 %v10231_v59, %v1952_v49  ;;  %v1964_v36 = vpop.f32.mrf.mxu1  ;;  %v10232_v11 = vcombine.low %v9337_v42, %v9343_v48  ;;  %v9495_v18 = vpop.f32.mrf.mxu0  ;;  %v4929_v38 = vrot.slane %v4927_v40, 4  ;;  %v5322_v42 = vld [vmem:[#allocation2 + $0xcc] sm:$0xe]  ;;  %v10234_v49 = vld [vmem:[#allocation34_spill] sm:$0xff] }
 0x1ac   : > { %7204 = vmatprep.mubr.bf16.mxu1 %v9306_v26  ;;  %v5472_v28 = vsel %vm7964_vm13, %v6462_v8, %v5471_v47  ;;  %v4940_v26 = vrot.slane %v4938_v50, 4  ;;  %v4943_v33 = vrot.slane %v4941_v55, 5  ;;  %v1965_v41 = vadd.f32 %v1964_v36, %v10233_v10  ;;  %v10237_v10 = vld [vmem:[#allocation28_spill] sm:$0xff] }
 0x1ad   : > { %v5475_v3 = vsel %vm7964_vm13, %v5473_v12, %v5474_v44  ;;  %v5478_v48 = vrot.slane %v4599_v13, 5  ;;  %v9506_v1 = vadd.f32 %v10234_v49, %v1973_v62  ;;  %v6915_v40 = vpop.f32.mrf.mxu1  ;;  %v9508_v59 = vpop.f32.mrf.mxu0  ;;  %v9510_v47 = vcombine.low %v4902_v27, %v4912_v17  ;;  %v4598_v62 = vld [vmem:[#allocation2 + $0xcc] sm:$0xf] }
 0x1ae   : > { %7257 = vmatmul.mubr.bf16.gmra.mxu0 %v10232_v11  ;;  %v4933_v8 = vshll.u32 %v9409_v39, 16  ;;  %v9513_v50 = vrot.slane %v4947_v2, 5  ;;  %v4953_v55 = vrot.slane %v4951_v35, 4  ;;  %v6493_v12 = vcombine.low %v9455_v52, %v5468_v7 }
 0x1af   : > { %7260 = vmatprep.mubr.bf16.mxu0 %v6492_v4  ;;  %10235 = vst [vmem:[#allocation10_spill] sm:$0xff] %v9506_v1  ;;  %v1976_v4 = vadd.f32 %v6915_v40, %v10236_v61  ;;  %v4920_v44 = vor.u32 %v4919_v29, %v9461_v58  ;;  %v9521_v36 = vadd.f32 %v9346_v23, %v1965_v41  ;;  %v1967_v11 = vpop.f32.mrf.mxu1  ;;  %v9523_v27 = vpop.f32.mrf.mxu0  ;;  %v6463_v35 = vrot.slane %v5322_v42, 9 }
 0x1b0   : > { %v4930_v39 = vor.u32 %v4929_v38, %v9487_v53  ;;  %v6494_v17 = vcombine.low %v5472_v28, %v5475_v3  ;;  %v4944_v2 = vor.u32 %v4943_v33, %v4940_v26  ;;  %v1968_v49 = vadd.f32 %v1967_v11, %v10237_v10  ;;  %v10238_v26 = vld [vmem:[#allocation13_spill] sm:$0xff] }
 0x1b1   : > { %v5480_v1 = vrot.slane %v5478_v48, 4  ;;  %v5481_v40 = vrot.slane %v9515_v45, 5  ;;  %v9529_v52 = vadd.f32 %v9368_v32, %v1976_v4  ;;  %v6918_v58 = vpop.f32.mrf.mxu1  ;;  %v9532_v23 = vpop.f32.mrf.mxu0  ;;  %v4954_v29 = vor.u32 %v4953_v55, %v9513_v50 }
 0x1b2   : > { %v4957_v7 = vshll.u32 %v9458_v60, 16  ;;  %v4962_v38 = vshrl.u32 %v4598_v62, 16  ;;  %v4965_v28 = vshll.u32 %v4598_v62, 16  ;;  %v1989_v33 = vadd.f32 %v6918_v58, %v10238_v26  ;;  %v10239_v60 = vld [vmem:[#allocation6_spill] sm:$0xff] }
 0x1b3   : > { %7205 = vmatmul.mubr.bf16.gmra.mxu1 %v9348_v56  ;;  %v4971_v41 = vshll.u32 %v4599_v13, 16  ;;  %v4975_v3 = vshrl.u32 %v4599_v13, 16  ;;  %v9539_v32 = vadd.f32 %v9383_v21, %v1968_v49  ;;  %v1980_v42 = vpop.f32.mrf.mxu1  ;;  %v4921_v56 = vrot.slane %v4920_v44, 4  ;;  %v9541_v11 = vpop.f32.mrf.mxu0 }
 0x1b4   : > { %7208 = vmatprep.mubr.bf16.mxu1 %v9391_v19  ;;  %v4931_v61 = vrot.slane %v4930_v39, 4  ;;  %v4935_v4 = vrot.slane %v4933_v8, 5  ;;  %v4945_v55 = vrot.slane %v4944_v2, 4  ;;  %v1981_v10 = vadd.f32 %v1980_v42, %v10239_v60  ;;  %v10240_v2 = vld [vmem:[#allocation15_spill] sm:$0xff] }
 0x1b5   : > { %v5479_v62 = vsel %vm7964_vm13, %v6463_v35, %v5478_v48  ;;  %v5482_v19 = vsel %vm7964_vm13, %v5480_v1, %v5481_v40  ;;  %v9549_v21 = vadd.f32 %v9394_v22, %v1989_v33  ;;  %v6919_v13 = vpop.f32.mrf.mxu1  ;;  %v4955_v44 = vrot.slane %v4954_v29, 4  ;;  %v10241_v22 = vld [vmem:[#allocation17_spill] sm:$0xff]  ;;  %v10243_v60 = vld [vmem:[#allocation19_spill] sm:$0xff] }
 0x1b6   : > { %7261 = vmatmul.mubr.bf16.gmra.mxu0 %v6493_v12  ;;  %v9551_v12 = vpop.f32.mrf.mxu0  ;;  %v4959_v8 = vrot.slane %v4957_v7, 5  ;;  %v4964_v39 = vrot.slane %v4962_v38, 4  ;;  %v4967_v49 = vrot.slane %v4965_v28, 5  ;;  %v1992_v58 = vadd.f32 %v6919_v13, %v10240_v2 }
 0x1b7   : > { %7264 = vmatprep.mubr.bf16.mxu0 %v6494_v17  ;;  %v4973_v26 = vrot.slane %v4971_v41, 5  ;;  %v4977_v17 = vrot.slane %v4975_v3, 4  ;;  %v9555_v42 = vadd.f32 %v9412_v5, %v1981_v10  ;;  %v1983_v48 = vpop.f32.mrf.mxu1  ;;  %v6495_v1 = vcombine.low %v5479_v62, %v5482_v19 }
 0x1b8   : > { %v9557_v15 = vpop.f32.mrf.mxu0  ;;  %v1984_v35 = vadd.f32 %v1983_v48, %v10241_v22  ;;  %v4926_v40 = vsel %vm7530_vm2, %v4921_v56, %v9487_v53  ;;  %v9564_v29 = vadd.f32 %v9435_v43, %v1992_v58  ;;  %v4936_v5 = vsel %vm7530_vm2, %v4931_v61, %v4935_v4  ;;  %v10242_v53 = vld [vmem:[#allocation18_spill] sm:$0xff]  ;;  %v10246_v22 = vld [vmem:[#allocation24_spill] sm:$0xff] }
 0x1b9   : > { %v4950_v38 = vsel %vm7530_vm2, %v4945_v55, %v9513_v50  ;;  %v4960_v28 = vsel %vm7530_vm2, %v4955_v44, %v4959_v8  ;;  %v4981_v33 = vshll.u32 %v9515_v45, 16  ;;  %v4968_v43 = vor.u32 %v4967_v49, %v4964_v39  ;;  %v10244_v44 = vld [vmem:[#allocation20_spill] sm:$0xff]  ;;  %v10245_v58 = vld [vmem:[#allocation22_spill] sm:$0xff] }
 0x1ba   : > { %v6922_v7 = vpop.f32.mrf.mxu1  ;;  %v2481_v41 = vpop.f32.mrf.mxu0  ;;  %v4978_v56 = vor.u32 %v4977_v17, %v4973_v26  ;;  %v6437_v45 = vcombine.low %v4926_v40, %v4936_v5  ;;  %v6438_v62 = vcombine.low %v4950_v38, %v4960_v28  ;;  %v10247_v28 = vld [vmem:[#allocation27_spill] sm:$0xff] }
 0x1bb   : > { %7209 = vmatmul.mubr.bf16.gmra.mxu1 %v9396_v14  ;;  %v2005_v3 = vadd.f32 %v6922_v7, %v10242_v53  ;;  %v9578_v14 = vadd.f32 %v9451_v25, %v1984_v35  ;;  %v4983_v19 = vrot.slane %v4981_v33, 5  ;;  %v4969_v8 = vrot.slane %v4968_v43, 4 }
 0x1bc   : > { %7212 = vmatprep.mubr.bf16.mxu1 %v9510_v47  ;;  %v1996_v61 = vpop.f32.mrf.mxu1  ;;  %v6979_v4 = vpop.f32.mrf.mxu0  ;;  %v4979_v39 = vrot.slane %v4978_v56, 4  ;;  %v10248_v56 = vld [vmem:[#allocation29_spill] sm:$0xff] }
 0x1bd   : > { %v1997_v50 = vadd.f32 %v1996_v61, %v10243_v60  ;;  %v9582_v55 = vadd.f32 %v9467_v24, %v2005_v3  ;;  %v4974_v40 = vsel %vm7530_vm2, %v4969_v8, %v4973_v26 }
 0x1be   : > { %7265 = vmatmul.mubr.bf16.gmra.mxu0 %v6495_v1  ;;  %v6923_v10 = vpop.f32.mrf.mxu1  ;;  %v2484_v13 = vpop.f32.mrf.mxu0 }
 0x1bf   : > { %v2008_v47 = vadd.f32 %v6923_v10, %v10244_v44  ;;  %v9586_v25 = vadd.f32 %v9478_v34, %v1997_v50  ;;  %v4984_v34 = vsel %vm7530_vm2, %v4979_v39, %v4983_v19  ;;  %v10249_v50 = vld [vmem:[#allocation30_spill] sm:$0xff]  ;;  %v10251_v39 = vld [vmem:[#allocation9_spill] sm:$0xff] }
 0x1c0   : > { %v1999_v49 = vpop.f32.mrf.mxu1  ;;  %v7046_v2 = vpop.f32.mrf.mxu0  ;;  %v6439_v3 = vcombine.low %v4974_v40, %v4984_v34  ;;  %v10253_v34 = vld [vmem:[#allocation14_spill] sm:$0xff] }
 0x1c1   : > { %v2000_v17 = vadd.f32 %v1999_v49, %v10245_v58  ;;  %v9590_v48 = vadd.f32 %v9495_v18, %v2008_v47 }
 0x1c2   : > { %v3509_v1 = vpop.f32.mrf.mxu0 }
 0x1c3   : > { %v6926_v24 = vpop.f32.mrf.mxu1  ;;  %7213 = vmatmul.mubr.bf16.gmra.mxu1 %v6437_v45  ;;  %v9598_v7 = vadd.f32 %v9508_v59, %v2000_v17 }
 0x1c4   : > { %v2021_v35 = vadd.f32 %v6926_v24, %v10246_v22  ;;  %7216 = vmatprep.mubr.bf16.mxu1 %v6438_v62  ;;  %v7047_v38 = vpop.f32.mrf.mxu0  ;;  %v10252_v24 = vld [vmem:[#allocation3_spill] sm:$0xff] }
 0x1c5   : > { %v2012_v5 = vpop.f32.mrf.mxu1 }
 0x1c6   : > { %v2013_v18 = vadd.f32 %v2012_v5, %v10247_v28  ;;  %v9602_v33 = vadd.f32 %v9523_v27, %v2021_v35  ;;  %v3512_v43 = vpop.f32.mrf.mxu0  ;;  %v10250_v27 = vld [vmem:[#allocation32_spill] sm:$0xff] }
 0x1c7   : > { %v6927_v53 = vpop.f32.mrf.mxu1 }
 0x1c8   : > { %v2024_v61 = vadd.f32 %v6927_v53, %v10248_v56  ;;  %v9606_v26 = vadd.f32 %v9532_v23, %v2013_v18  ;;  %v7050_v60 = vpop.f32.mrf.mxu0 }
 0x1c9   : > { %v2015_v30 = vpop.f32.mrf.mxu1 }
 0x1ca   : > { %v2016_v59 = vadd.f32 %v2015_v30, %v10249_v50  ;;  %v9610_v10 = vadd.f32 %v9541_v11, %v2024_v61  ;;  %v3525_v62 = vpop.f32.mrf.mxu0 }
 0x1cb   : > { %v6930_v45 = vpop.f32.mrf.mxu1  ;;  %7217 = vmatmul.mubr.bf16.gmra.mxu1 %v6439_v3 }
 0x1cc   : > { %v2037_v19 = vadd.f32 %v6930_v45, %v10250_v27  ;;  %v9614_v44 = vadd.f32 %v9551_v12, %v2016_v59  ;;  %v7051_v8 = vpop.f32.mrf.mxu0 }
 0x1cd   : > { %v2028_v47 = vpop.f32.mrf.mxu1 }
 0x1ce   : > { %v2029_v23 = vadd.f32 %v2028_v47, %v10251_v39  ;;  %v9618_v49 = vadd.f32 %v9557_v15, %v2037_v19  ;;  %v3528_v17 = vpop.f32.mrf.mxu0 }
 0x1cf   : > { %v6931_v58 = vpop.f32.mrf.mxu1 }
 0x1d0   : > { %v2040_v11 = vadd.f32 %v6931_v58, %v10252_v24  ;;  %v9621_v22 = vadd.f32 %v2481_v41, %v2029_v23  ;;  %v7054_v40 = vpop.f32.mrf.mxu0 }
 0x1d1   : > { %v2031_v35 = vpop.f32.mrf.mxu1 }
 0x1d2   : > { %v2032_v5 = vadd.f32 %v2031_v35, %v10253_v34  ;;  %v9624_v28 = vadd.f32 %v6979_v4, %v2040_v11  ;;  %v3541_v18 = vpop.f32.mrf.mxu0 }
 0x1d3   : > { %v6998_v12 = vpop.f32.mrf.mxu1 }
 0x1d4   : > { %v2884_v53 = vadd.f32 %v6998_v12, %v9399_v0  ;;  %v9627_v3 = vadd.f32 %v2484_v13, %v2032_v5  ;;  %v7055_v56 = vpop.f32.mrf.mxu0 }
 0x1d5   : > { %v2755_v15 = vpop.f32.mrf.mxu1 }
 0x1d6   : > { %v2882_v61 = vadd.f32 %v2755_v15, %v9416_v57  ;;  %v9630_v30 = vadd.f32 %v7046_v2, %v2884_v53  ;;  %v3544_v50 = vpop.f32.mrf.mxu0 }
 0x1d7   : > { %v6999_v41 = vpop.f32.mrf.mxu1 }
 0x1d8   : > { %v2885_v59 = vadd.f32 %v6999_v41, %v9419_v37  ;;  %v9633_v45 = vadd.f32 %v3509_v1, %v2882_v61  ;;  %v7058_v27 = vpop.f32.mrf.mxu0 }
 0x1d9   : > { %v2758_v4 = vpop.f32.mrf.mxu1 }
 0x1da   : > { %v2883_v19 = vadd.f32 %v2758_v4, %v9422_v54  ;;  %v9636_v47 = vadd.f32 %v7047_v38, %v2885_v59  ;;  %v3557_v13 = vpop.f32.mrf.mxu0 }
 0x1db   : > { %v7002_v0 = vpop.f32.mrf.mxu1 }
 0x1dc   : > { %v2888_v39 = vadd.f32 %v7002_v0, %v9427_v9  ;;  %v9639_v23 = vadd.f32 %v3512_v43, %v2883_v19  ;;  %v7059_v2 = vpop.f32.mrf.mxu0  ;;  %v10254_v0 = vld [vmem:[#allocation10_spill] sm:$0xff] }
 0x1dd   : > { %v2771_v57 = vpop.f32.mrf.mxu1 }
 0x1de   : > { %v2886_v58 = vadd.f32 %v2771_v57, %v9430_v31  ;;  %v9642_v24 = vadd.f32 %v7050_v60, %v2888_v39  ;;  %v3560_v1 = vpop.f32.mrf.mxu0 }
 0x1df   : > { %v7003_v37 = vpop.f32.mrf.mxu1 }
 0x1e0   : > { %v2889_v11 = vadd.f32 %v7003_v37, %v9439_v46  ;;  %v9645_v35 = vadd.f32 %v3525_v62, %v2886_v58  ;;  %v7062_v38 = vpop.f32.mrf.mxu0 }
 0x1e1   : > { %v2774_v54 = vpop.f32.mrf.mxu1 }
 0x1e2   : > { %v2887_v34 = vadd.f32 %v2774_v54, %v9442_v51  ;;  %v9648_v5 = vadd.f32 %v7051_v8, %v2889_v11  ;;  %v3573_v43 = vpop.f32.mrf.mxu0 }
 0x1e3   : > { %v7006_v9 = vpop.f32.mrf.mxu1 }
 0x1e4   : > { %v2892_v12 = vadd.f32 %v7006_v9, %v9449_v16  ;;  %v9651_v53 = vadd.f32 %v3528_v17, %v2887_v34  ;;  %v7063_v60 = vpop.f32.mrf.mxu0 }
 0x1e5   : > { %v2787_v31 = vpop.f32.mrf.mxu1 }
 0x1e6   : > { %v2890_v15 = vadd.f32 %v2787_v31, %v9465_v20  ;;  %v9654_v61 = vadd.f32 %v7054_v40, %v2892_v12  ;;  %v3576_v62 = vpop.f32.mrf.mxu0 }
 0x1e7   : > { %v7007_v46 = vpop.f32.mrf.mxu1 }
 0x1e8   : > { %v2893_v41 = vadd.f32 %v7007_v46, %v9475_v6  ;;  %v9657_v59 = vadd.f32 %v3541_v18, %v2890_v15  ;;  %v7066_v8 = vpop.f32.mrf.mxu0 }
 0x1e9   : > { %v2790_v51 = vpop.f32.mrf.mxu1 }
 0x1ea   : > { %v2891_v4 = vadd.f32 %v2790_v51, %v9490_v63  ;;  %v9660_v19 = vadd.f32 %v7055_v56, %v2893_v41  ;;  %v3589_v17 = vpop.f32.mrf.mxu0 }
 0x1eb   : > { %v7010_v16 = vpop.f32.mrf.mxu1 }
 0x1ec   : > { %v2896_v39 = vadd.f32 %v7010_v16, %v10254_v0  ;;  %v9663_v57 = vadd.f32 %v3544_v50, %v2891_v4  ;;  %v7067_v40 = vpop.f32.mrf.mxu0 }
 0x1ed   : > { %v2803_v20 = vpop.f32.mrf.mxu1 }
 0x1ee   : > { %v2894_v58 = vadd.f32 %v2803_v20, %v9521_v36  ;;  %v9666_v37 = vadd.f32 %v7058_v27, %v2896_v39  ;;  %v3592_v18 = vpop.f32.mrf.mxu0 }
 0x1ef   : > { %v7011_v6 = vpop.f32.mrf.mxu1 }
 0x1f0   : > { %v2897_v11 = vadd.f32 %v7011_v6, %v9529_v52  ;;  %v9669_v54 = vadd.f32 %v3557_v13, %v2894_v58  ;;  %v7070_v56 = vpop.f32.mrf.mxu0 }
 0x1f1   : > { %v2806_v63 = vpop.f32.mrf.mxu1 }
 0x1f2   : > { %v2895_v34 = vadd.f32 %v2806_v63, %v9539_v32  ;;  %v9672_v9 = vadd.f32 %v7059_v2, %v2897_v11  ;;  %v3605_v12 = vpop.f32.mrf.mxu0 }
 0x1f3   : > { %v7014_v50 = vpop.f32.mrf.mxu1 }
 0x1f4   : > { %v2900_v31 = vadd.f32 %v7014_v50, %v9549_v21  ;;  %v9675_v15 = vadd.f32 %v3560_v1, %v2895_v34  ;;  %v7071_v27 = vpop.f32.mrf.mxu0 }
 0x1f5   : > { %v2819_v36 = vpop.f32.mrf.mxu1 }
 0x1f6   : > { %v2898_v46 = vadd.f32 %v2819_v36, %v9555_v42  ;;  %v9678_v41 = vadd.f32 %v7062_v38, %v2900_v31  ;;  %v3608_v2 = vpop.f32.mrf.mxu0 }
 0x1f7   : > { %v7015_v52 = vpop.f32.mrf.mxu1 }
 0x1f8   : > { %v2901_v13 = vadd.f32 %v7015_v52, %v9564_v29  ;;  %v9681_v51 = vadd.f32 %v3573_v43, %v2898_v46 }
 0x1f9   : > { %v2822_v32 = vpop.f32.mrf.mxu1 }
 0x1fa   : > { %10255 = vst [vmem:[#allocation11_spill] sm:$0xff] %v9681_v51  ;;  %v2899_v4 = vadd.f32 %v2822_v32, %v9578_v14  ;;  %v9684_v16 = vadd.f32 %v7063_v60, %v2901_v13 }
 0x1fb   : > { %v7018_v21 = vpop.f32.mrf.mxu1 }
 0x1fc   : > { %10256 = vst [vmem:[#allocation4_spill] sm:$0xff] %v9684_v16  ;;  %v2904_v1 = vadd.f32 %v7018_v21, %v9582_v55  ;;  %v9687_v0 = vadd.f32 %v3576_v62, %v2899_v4  ;;  %v7074_v42 = vpop.f32.mrf.mxu0 }
 0x1fd   : > { %v2835_v39 = vpop.f32.mrf.mxu1 }
 0x1fe   : > { %10257 = vst [vmem:[#allocation8_spill] sm:$0xff] %v9687_v0  ;;  %v2902_v38 = vadd.f32 %v2835_v39, %v9586_v25  ;;  %v9690_v20 = vadd.f32 %v7066_v8, %v2904_v1  ;;  %v3621_v43 = vpop.f32.mrf.mxu0 }
 0x1ff   : > { %v7019_v29 = vpop.f32.mrf.mxu1 }
 0x200   : > { %10258 = vst [vmem:[#allocation12_spill] sm:$0xff] %v9690_v20  ;;  %v2905_v58 = vadd.f32 %v7019_v29, %v9590_v48  ;;  %v9693_v6 = vadd.f32 %v3589_v17, %v2902_v38  ;;  %v7075_v60 = vpop.f32.mrf.mxu0 }
 0x201   : > { %v2838_v14 = vpop.f32.mrf.mxu1 }
 0x202   : > { %10259 = vst [vmem:[#allocation5_spill] sm:$0xff] %v9693_v6  ;;  %v2903_v11 = vadd.f32 %v2838_v14, %v9598_v7  ;;  %v9696_v63 = vadd.f32 %v7067_v40, %v2905_v58  ;;  %v3624_v62 = vpop.f32.mrf.mxu0 }
 0x203   : > { %v7022_v55 = vpop.f32.mrf.mxu1 }
 0x204   : > { %10260 = vst [vmem:[#allocation7_spill] sm:$0xff] %v9696_v63  ;;  %v2908_v34 = vadd.f32 %v7022_v55, %v9602_v33  ;;  %v9699_v50 = vadd.f32 %v3592_v18, %v2903_v11  ;;  %v9701_v8 = vpop.f32.mrf.mxu0 }
 0x205   : > { %v2851_v25 = vpop.f32.mrf.mxu1 }
 0x206   : > { %10261 = vst [vmem:[#allocation16_spill] sm:$0xff] %v9699_v50  ;;  %v2906_v31 = vadd.f32 %v2851_v25, %v9606_v26  ;;  %v9704_v48 = vadd.f32 %v7070_v56, %v2908_v34  ;;  %v9706_v36 = vpop.f32.mrf.mxu0 }
 0x207   : > { %v7023_v17 = vpop.f32.mrf.mxu1 }
 0x208   : > { %10262 = vst [vmem:[#allocation21_spill] sm:$0xff] %v9704_v48  ;;  %v2909_v7 = vadd.f32 %v7023_v17, %v9610_v10  ;;  %v9709_v40 = vadd.f32 %v3605_v12, %v2906_v31  ;;  %v9711_v52 = vpop.f32.mrf.mxu0 }
 0x209   : > { %v2854_v46 = vpop.f32.mrf.mxu1 }
 0x20a   : > { %10263 = vst [vmem:[#allocation31_spill] sm:$0xff] %v9709_v40  ;;  %v2907_v33 = vadd.f32 %v2854_v46, %v9614_v44  ;;  %v9714_v18 = vadd.f32 %v7071_v27, %v2909_v7  ;;  %v9716_v32 = vpop.f32.mrf.mxu0 }
 0x20b   : > { %v7026_v13 = vpop.f32.mrf.mxu1 }
 0x20c   : > { %10264 = vst [vmem:[#allocation23_spill] sm:$0xff] %v9714_v18  ;;  %v2912_v26 = vadd.f32 %v7026_v13, %v9618_v49  ;;  %v9719_v56 = vadd.f32 %v3608_v2, %v2907_v33  ;;  %v9721_v21 = vpop.f32.mrf.mxu0 }
 0x20d   : > { %v2867_v4 = vpop.f32.mrf.mxu1 }
 0x20e   : > { %10265 = vst [vmem:[#allocation33_spill] sm:$0xff] %v9719_v56  ;;  %v2910_v10 = vadd.f32 %v2867_v4, %v9621_v22  ;;  %v9724_v12 = vadd.f32 %v7074_v42, %v2912_v26  ;;  %v9726_v39 = vpop.f32.mrf.mxu0 }
 0x20f   : > { %v7027_v1 = vpop.f32.mrf.mxu1 }
 0x210   : > { %10266 = vst [vmem:[#allocation25_spill] sm:$0xff] %v9724_v12  ;;  %v2913_v44 = vadd.f32 %v7027_v1, %v9624_v28  ;;  %v9729_v27 = vadd.f32 %v3621_v43, %v2910_v10  ;;  %v9731_v29 = vpop.f32.mrf.mxu0 }
 0x211   : > { %v2870_v38 = vpop.f32.mrf.mxu1 }
 0x212   : > { %10267 = vst [vmem:[#allocation34_spill] sm:$0xff] %v9729_v27  ;;  %v2911_v49 = vadd.f32 %v2870_v38, %v9627_v3  ;;  %v9734_v2 = vadd.f32 %v7075_v60, %v2913_v44  ;;  %v9736_v14 = vpop.f32.mrf.mxu0 }
 0x213   : > { %v7094_v58 = vpop.f32.mrf.mxu1 }
 0x214   : > { %10268 = vst [vmem:[#allocation26_spill] sm:$0xff] %v9734_v2  ;;  %v9738_v22 = vadd.f32 %v3624_v62, %v2911_v49 }
 0x215   : > { %v4007_v42 = vpop.f32.mrf.mxu1  ;;  %v9740_v11 = vpop.f32.mrf.mxu0 }
 0x216   : > { %10269 = vst [vmem:[#allocation28_spill] sm:$0xff] %v9738_v22 }
 0x217   : > { %v7095_v55 = vpop.f32.mrf.mxu1  ;;  %v9742_v34 = vpop.f32.mrf.mxu0 }
 0x219   : > { %v4010_v28 = vpop.f32.mrf.mxu1  ;;  %v9744_v43 = vpop.f32.mrf.mxu0 }
 0x21b   : > { %v9746_v25 = vpop.f32.mrf.mxu1  ;;  %v9748_v31 = vpop.f32.mrf.mxu0 }
 0x21d   : > { %v9750_v3 = vpop.f32.mrf.mxu1  ;;  %v9752_v60 = vpop.f32.mrf.mxu0 }
 0x21f   : > { %v9754_v17 = vpop.f32.mrf.mxu1  ;;  %v9756_v62 = vpop.f32.mrf.mxu0 }
 0x221   : > { %v9758_v7 = vpop.f32.mrf.mxu1  ;;  %v9760_v46 = vpop.f32.mrf.mxu0 }
 0x223   : > { %v9762_v33 = vpop.f32.mrf.mxu1  ;;  %v9764_v13 = vpop.f32.mrf.mxu0 }
 0x224   : > { %10270 = vst [vmem:[#allocation13_spill] sm:$0xff] %v9764_v13 }
 0x225   : > { %v9766_v26 = vpop.f32.mrf.mxu1  ;;  %v9768_v4 = vpop.f32.mrf.mxu0 }
 0x226   : > { %10271 = vst [vmem:[#allocation6_spill] sm:$0xff] %v9768_v4 }
 0x227   : > { %v9770_v10 = vpop.f32.mrf.mxu1  ;;  %v9772_v1 = vpop.f32.mrf.mxu0 }
 0x228   : > { %10272 = vst [vmem:[#allocation15_spill] sm:$0xff] %v9772_v1 }
 0x229   : > { %v9774_v44 = vpop.f32.mrf.mxu1  ;;  %v9776_v38 = vpop.f32.mrf.mxu0 }
 0x22a   : > { %10273 = vst [vmem:[#allocation17_spill] sm:$0xff] %v9776_v38 }
 0x22b   : > { %v9778_v49 = vpop.f32.mrf.mxu1  ;;  %v9780_v22 = vpop.f32.mrf.mxu0 }
 0x22c   : > { %10274 = vst [vmem:[#allocation18_spill] sm:$0xff] %v9780_v22 }
 0x22d   : > { %v9782_v2 = vpop.f32.mrf.mxu1  ;;  %v9784_v27 = vpop.f32.mrf.mxu0 }
 0x22e   : > { %10275 = vst [vmem:[#allocation19_spill] sm:$0xff] %v9784_v27 }
 0x22f   : > { %v9786_v12 = vpop.f32.mrf.mxu1  ;;  %v9788_v56 = vpop.f32.mrf.mxu0 }
 0x230   : > { %10276 = vst [vmem:[#allocation20_spill] sm:$0xff] %v9788_v56 }
 0x231   : > { %v9790_v18 = vpop.f32.mrf.mxu1  ;;  %v9792_v40 = vpop.f32.mrf.mxu0 }
 0x232   : > { %10277 = vst [vmem:[#allocation22_spill] sm:$0xff] %v9792_v40 }
 0x233   : > { %v9794_v48 = vpop.f32.mrf.mxu1  ;;  %v9796_v50 = vpop.f32.mrf.mxu0 }
 0x234   : > { %10278 = vst [vmem:[#allocation24_spill] sm:$0xff] %v9794_v48  ;;  %10279 = vst [vmem:[#allocation27_spill] sm:$0xff] %v9796_v50 }
 0x235   : > { %v9798_v63 = vpop.f32.mrf.mxu1  ;;  %v9800_v6 = vpop.f32.mrf.mxu0 }
 0x236   : > { %10280 = vst [vmem:[#allocation29_spill] sm:$0xff] %v9798_v63  ;;  %10281 = vst [vmem:[#allocation30_spill] sm:$0xff] %v9800_v6 }
 0x237   : > { %v9802_v22 = vpop.f32.mrf.mxu1  ;;  %v9804_v20 = vpop.f32.mrf.mxu0 }
 0x238   : > { %10282 = vst [vmem:[#allocation32_spill] sm:$0xff] %v9802_v22  ;;  %10283 = vst [vmem:[#allocation9_spill] sm:$0xff] %v9804_v20 }
 0x239   : > { %v9806_v27 = vpop.f32.mrf.mxu1  ;;  %v9808_v38 = vpop.f32.mrf.mxu0 }
 0x23a   : > { %10284 = vst [vmem:[#allocation3_spill] sm:$0xff] %v9806_v27  ;;  %10285 = vst [vmem:[#allocation14_spill] sm:$0xff] %v9808_v38 }
 0x23b   : > { %v9810_v56 = vpop.f32.mrf.mxu1  ;;  %v9812_v1 = vpop.f32.mrf.mxu0 }
 0x23c   : > { %10286 = vst [vmem:[#allocation10_spill] sm:$0xff] %v9810_v56  ;;  %10287 = vst [vmem:[#allocation35_spill] sm:$0xff] %v9812_v1 }
 0x23d   : > { %v9814_v40 = vpop.f32.mrf.mxu1  ;;  %v9816_v4 = vpop.f32.mrf.mxu0 }
 0x23e   : > { %10288 = vst [vmem:[#allocation36_spill] sm:$0xff] %v9814_v40  ;;  %10289 = vst [vmem:[#allocation37_spill] sm:$0xff] %v9816_v4 }
 0x23f   : > { %v9818_v50 = vpop.f32.mrf.mxu1  ;;  %v9820_v0 = vpop.f32.mrf.mxu0 }
 0x240   : > { %10290 = vst [vmem:[#allocation38_spill] sm:$0xff] %v9818_v50  ;;  %10291 = vst [vmem:[#allocation39_spill] sm:$0xff] %v9820_v0 }
 0x241   : > { %v9822_v6 = vpop.f32.mrf.mxu1  ;;  %v9824_v22 = vpop.f32.mrf.mxu0 }
 0x242   : > { %10292 = vst [vmem:[#allocation40_spill] sm:$0xff] %v9822_v6  ;;  %10293 = vst [vmem:[#allocation41_spill] sm:$0xff] %v9824_v22 }
 0x243   : > { %v9826_v20 = vpop.f32.mrf.mxu1  ;;  %v9828_v27 = vpop.f32.mrf.mxu0 }
 0x244   : > { %10294 = vst [vmem:[#allocation42_spill] sm:$0xff] %v9826_v20  ;;  %10295 = vst [vmem:[#allocation43_spill] sm:$0xff] %v9828_v27  ;;  %v4136_v20 = vadd.f32 %v7094_v58, %v9630_v30 }
 0x245   : > { %v9830_v38 = vpop.f32.mrf.mxu1  ;;  %v7238_v56 = vpop.f32.mrf.mxu0 }
 0x246   : > { %10296 = vst [vmem:[#allocation44_spill] sm:$0xff] %v9830_v38  ;;  %v4134_v38 = vadd.f32 %v4007_v42, %v9633_v45  ;;  %v4523_v13 = vadd.f32 %v9701_v8, %v4136_v20  ;;  %v9858_v45 = vld [vmem:[%s10081_s3] ss:$0 sm:$0xff] }
 0x247   : > { %v9832_v1 = vpop.f32.mrf.mxu1  ;;  %v5646_v40 = vpop.f32.mrf.mxu0 }
 0x248   : > { %10297 = vst [vmem:[#allocation45_spill] sm:$0xff] %v9832_v1  ;;  %v4521_v58 = vadd.f32 %v9706_v36, %v4134_v38 }
 0x249   : > { %v9834_v16 = vpop.f32.mrf.mxu1  ;;  %v7239_v4 = vpop.f32.mrf.mxu0 }
 0x24a   : > { %10298 = vst [vmem:[#allocation46_spill] sm:$0xff] %v9834_v16  ;;  %v4137_v16 = vadd.f32 %v7095_v55, %v9636_v47  ;;  %v4140_v47 = vadd.f32 %v9746_v25, %v9642_v24 }
 0x24b   : > { %v9836_v50 = vpop.f32.mrf.mxu1  ;;  %v5649_v0 = vpop.f32.mrf.mxu0 }
 0x24c   : > { %10299 = vst [vmem:[#allocation47_spill] sm:$0xff] %v9836_v50  ;;  %v4135_v50 = vadd.f32 %v4010_v28, %v9639_v23  ;;  %v4524_v8 = vadd.f32 %v9711_v52, %v4137_v16  ;;  %v4138_v28 = vadd.f32 %v9750_v3, %v9645_v35  ;;  %v4139_v35 = vadd.f32 %v9758_v7, %v9651_v53 }
 0x24d   : > { %v9838_v6 = vpop.f32.mrf.mxu1  ;;  %v7242_v22 = vpop.f32.mrf.mxu0 }
 0x24e   : > { %10300 = vst [vmem:[#allocation48_spill] sm:$0xff] %v9838_v6  ;;  %v4522_v36 = vadd.f32 %v9716_v32, %v4135_v50  ;;  %v4527_v50 = vadd.f32 %v9721_v21, %v4140_v47  ;;  %v4141_v32 = vadd.f32 %v9754_v17, %v9648_v5  ;;  %v4144_v21 = vadd.f32 %v9762_v33, %v9654_v61 }
 0x24f   : > { %v9841_v63 = vpop.f32.mrf.mxu1  ;;  %v5662_v27 = vpop.f32.mrf.mxu0  ;;  %v4142_v5 = vadd.f32 %v9766_v26, %v9657_v59  ;;  %v4526_v61 = vadd.f32 %v9736_v14, %v4139_v35 }
 0x251   : > { %v9844_v51 = vpop.f32.mrf.mxu1  ;;  %v9846_v1 = vpop.f32.mrf.mxu0 }
 0x252   : > { %10301 = vst [vmem:[#allocation49_spill] sm:$0xff] %v9844_v51 }
 0x253   : > { %v7190_v48 = vpop.f32.mrf.mxu1  ;;  %v9851_v6 = vpop.f32.mrf.mxu0 }
 0x254   : > { %v5277_v30 = vadd.f32 %v7190_v48, %v4523_v13 }
 0x255   : > { %v5148_v42 = vpop.f32.mrf.mxu1  ;;  %v9860_v51 = vpop.f32.mrf.mxu0 }
 0x256   : > { %v5775_v20 = vadd.f32 %v7238_v56, %v5277_v30  ;;  %v5275_v23 = vadd.f32 %v5148_v42, %v4521_v58 }
 0x257   : > { %v7191_v48 = vpop.f32.mrf.mxu1  ;;  %v9871_v55 = vpop.f32.mrf.mxu0 }
 0x258   : > { %v5814_v24 = vadd.f32 %v9858_v45, %v5775_v20  ;;  %v5773_v56 = vadd.f32 %v5646_v40, %v5275_v23  ;;  %v5278_v25 = vadd.f32 %v7191_v48, %v4524_v8 }
 0x259   : > { %v5151_v16 = vpop.f32.mrf.mxu1  ;;  %v9876_v52 = vpop.f32.mrf.mxu0 }
 0x25a   : > { %5846 = vst [vmem:[%s9868_s21 + $0x10] sm:$0xff] %v5814_v24  ;;  %v5812_v13 = vadd.f32 %v9858_v45, %v5773_v56  ;;  %v5776_v38 = vadd.f32 %v7239_v4, %v5278_v25  ;;  %v5276_v30 = vadd.f32 %v5151_v16, %v4522_v36  ;;  %v4525_v4 = vadd.f32 %v9726_v39, %v4138_v28 }
 0x25b   : > { %v7194_v3 = vpop.f32.mrf.mxu1  ;;  %v9885_v40 = vpop.f32.mrf.mxu0  ;;  %v4528_v39 = vadd.f32 %v9731_v29, %v4141_v32  ;;  %v4529_v29 = vadd.f32 %v9742_v34, %v4142_v5  ;;  %v5916_v25 = vmul.f32 %v5814_v24, %v5814_v24 }
 0x25c   : > { %5844 = vst [vmem:[%s9868_s21] sm:$0xff] %v5812_v13  ;;  %v5815_v58 = vadd.f32 %v9858_v45, %v5776_v38  ;;  %v5774_v42 = vadd.f32 %v5649_v0, %v5276_v30  ;;  %v5281_v20 = vadd.f32 %v7194_v3, %v4527_v50  ;;  %v4145_v0 = vadd.f32 %v9770_v10, %v9660_v19 }
 0x25d   : > { %v5164_v17 = vpop.f32.mrf.mxu1  ;;  %v5914_v8 = vmul.f32 %v5812_v13, %v5812_v13  ;;  %v4531_v10 = vadd.f32 %v9740_v11, %v4144_v21  ;;  %v4146_v3 = vadd.f32 %v9782_v2, %v9669_v54 }
 0x25e   : > { %v9894_v47 = vpop.f32.mrf.mxu0  ;;  %5847 = vst [vmem:[%s9868_s21 + $0x18] sm:$0xff] %v5815_v58  ;;  %v5813_v53 = vadd.f32 %v9858_v45, %v5774_v42  ;;  %v5779_v7 = vadd.f32 %v7242_v22, %v5281_v20  ;;  %v5279_v23 = vadd.f32 %v5164_v17, %v4525_v4  ;;  %v4143_v22 = vadd.f32 %v9774_v44, %v9663_v57 }
 0x25f   : > { %v7195_v48 = vpop.f32.mrf.mxu1  ;;  %v4532_v11 = vadd.f32 %v9744_v43, %v4145_v0  ;;  %v5917_v34 = vmul.f32 %v5815_v58, %v5815_v58 }
 0x260   : > { %v9902_v33 = vpop.f32.mrf.mxu0  ;;  %5845 = vst [vmem:[%s9868_s21 + $0x8] sm:$0xff] %v5813_v53  ;;  %v5876_v59 = vadd.f32 %v5813_v53, %v5812_v13  ;;  %v5915_v26 = vmul.f32 %v5813_v53, %v5813_v53  ;;  %v5818_v36 = vadd.f32 %v9858_v45, %v5779_v7  ;;  %v5777_v28 = vadd.f32 %v5662_v27, %v5279_v23 }
 0x261   : > { %v5282_v56 = vadd.f32 %v7195_v48, %v4528_v39  ;;  %v5167_v19 = vpop.f32.mrf.mxu1  ;;  %v4148_v27 = vadd.f32 %v9778_v49, %v9666_v37  ;;  %v4530_v17 = vadd.f32 %v9748_v31, %v4143_v22 }
 0x262   : > { %v9910_v14 = vpop.f32.mrf.mxu0  ;;  %v5877_v16 = vadd.f32 %v5876_v59, %v5814_v24  ;;  %v5946_v38 = vadd.f32 %v5915_v26, %v5914_v8  ;;  %5850 = vst [vmem:[%s9868_s21 + $0x30] sm:$0xff] %v5818_v36  ;;  %v5816_v13 = vadd.f32 %v9858_v45, %v5777_v28  ;;  %v5280_v44 = vadd.f32 %v5167_v19, %v4526_v61 }
 0x263   : > { %v5780_v57 = vadd.f32 %v9846_v1, %v5282_v56  ;;  %v7198_v30 = vpop.f32.mrf.mxu1  ;;  %v4535_v39 = vadd.f32 %v9752_v60, %v4148_v27  ;;  %v5920_v26 = vmul.f32 %v5818_v36, %v5818_v36  ;;  %v10302_v60 = vld [vmem:[#allocation24_spill] sm:$0xff] }
 0x264   : > { %v9918_v50 = vpop.f32.mrf.mxu0  ;;  %v5947_v32 = vadd.f32 %v5946_v38, %v5916_v25  ;;  %5848 = vst [vmem:[%s9868_s21 + $0x20] sm:$0xff] %v5816_v13  ;;  %v5878_v24 = vadd.f32 %v5877_v16, %v5815_v58  ;;  %v5285_v35 = vadd.f32 %v7198_v30, %v4531_v10  ;;  %v5918_v42 = vmul.f32 %v5816_v13, %v5816_v13  ;;  %v10303_v38 = vld [vmem:[#allocation13_spill] sm:$0xff] }
 0x265   : > { %v5819_v37 = vadd.f32 %v9858_v45, %v5780_v57  ;;  %v5778_v1 = vadd.f32 %v9851_v6, %v5280_v44  ;;  %v5180_v49 = vpop.f32.mrf.mxu1  ;;  %v4149_v58 = vadd.f32 %v9786_v12, %v9672_v9  ;;  %v4152_v19 = vadd.f32 %v10302_v60, %v9678_v41  ;;  %v10305_v57 = vld [vmem:[#allocation29_spill] sm:$0xff] }
 0x266   : > { %v9925_v20 = vpop.f32.mrf.mxu0  ;;  %v5879_v43 = vadd.f32 %v5878_v24, %v5816_v13  ;;  %v5948_v4 = vadd.f32 %v5947_v32, %v5917_v34  ;;  %v5783_v21 = vadd.f32 %v9860_v51, %v5285_v35  ;;  %v5283_v5 = vadd.f32 %v5180_v49, %v4529_v29  ;;  %v10307_v34 = vld [vmem:[#allocation32_spill] sm:$0xff] }
 0x267   : > { %5851 = vst [vmem:[%s9868_s21 + $0x38] sm:$0xff] %v5819_v37  ;;  %v5817_v54 = vadd.f32 %v9858_v45, %v5778_v1  ;;  %v7199_v2 = vpop.f32.mrf.mxu1  ;;  %v4147_v51 = vadd.f32 %v9790_v18, %v9675_v15  ;;  %v4536_v22 = vadd.f32 %v9760_v46, %v4149_v58  ;;  %v5921_v25 = vmul.f32 %v5819_v37, %v5819_v37  ;;  %v10304_v46 = vld [vmem:[#allocation11_spill] sm:$0xff] }
 0x268   : > { %v9933_v6 = vpop.f32.mrf.mxu0  ;;  %v5949_v53 = vadd.f32 %v5948_v4, %v5918_v42  ;;  %v5822_v7 = vadd.f32 %v9858_v45, %v5783_v21  ;;  %v5781_v23 = vadd.f32 %v9871_v55, %v5283_v5  ;;  %v5286_v0 = vadd.f32 %v7199_v2, %v4532_v11  ;;  %v10308_v21 = vld [vmem:[#allocation8_spill] sm:$0xff] }
 0x269   : > { %5849 = vst [vmem:[%s9868_s21 + $0x28] sm:$0xff] %v5817_v54  ;;  %v5880_v9 = vadd.f32 %v5879_v43, %v5817_v54  ;;  %v5919_v12 = vmul.f32 %v5817_v54, %v5817_v54  ;;  %v5183_v8 = vpop.f32.mrf.mxu1  ;;  %v4533_v55 = vadd.f32 %v9756_v62, %v4146_v3  ;;  %v4534_v13 = vadd.f32 %v10303_v38, %v4147_v51 }
 0x26a   : > { %v9941_v48 = vpop.f32.mrf.mxu0  ;;  %5854 = vst [vmem:[%s9868_s21 + $0x50] sm:$0xff] %v5822_v7  ;;  %v5820_v31 = vadd.f32 %v9858_v45, %v5781_v23  ;;  %v5784_v61 = vadd.f32 %v9876_v52, %v5286_v0  ;;  %v5284_v59 = vadd.f32 %v5183_v8, %v4530_v17  ;;  %v4150_v44 = vadd.f32 %v10305_v57, %v10304_v46  ;;  %v10310_v17 = vld [vmem:[#allocation6_spill] sm:$0xff] }
 0x26b   : > { %v5881_v28 = vadd.f32 %v5880_v9, %v5818_v36  ;;  %v5950_v15 = vadd.f32 %v5949_v53, %v5919_v12  ;;  %v7202_v18 = vpop.f32.mrf.mxu1  ;;  %v4539_v53 = vadd.f32 %v10310_v17, %v4152_v19  ;;  %v10311_v12 = vld [vmem:[#allocation15_spill] sm:$0xff]  ;;  %v5924_v8 = vmul.f32 %v5822_v7, %v5822_v7  ;;  %v10323_v17 = vld [vmem:[#allocation20_spill] sm:$0xff] }
 0x26c   : > { %v9948_v56 = vpop.f32.mrf.mxu0  ;;  %5852 = vst [vmem:[%s9868_s21 + $0x40] sm:$0xff] %v5820_v31  ;;  %v5823_v10 = vadd.f32 %v9858_v45, %v5784_v61  ;;  %v5782_v52 = vadd.f32 %v9885_v40, %v5284_v59  ;;  %v5289_v29 = vadd.f32 %v7202_v18, %v4535_v39  ;;  %v10306_v40 = vld [vmem:[#allocation4_spill] sm:$0xff]  ;;  %v5922_v35 = vmul.f32 %v5820_v31, %v5820_v31  ;;  %v10312_v59 = vld [vmem:[#allocation17_spill] sm:$0xff] }
 0x26d   : > { %v5951_v62 = vadd.f32 %v5950_v15, %v5920_v26  ;;  %v5882_v36 = vadd.f32 %v5881_v28, %v5819_v37  ;;  %v5196_v16 = vpop.f32.mrf.mxu1  ;;  %v4153_v32 = vadd.f32 %v10307_v34, %v10306_v40  ;;  %v10313_v28 = vld [vmem:[#allocation12_spill] sm:$0xff]  ;;  %v10314_v15 = vld [vmem:[#allocation10_spill] sm:$0xff] }
 0x26e   : > { %v9956_v27 = vpop.f32.mrf.mxu0  ;;  %5855 = vst [vmem:[%s9868_s21 + $0x58] sm:$0xff] %v5823_v10  ;;  %v5821_v41 = vadd.f32 %v9858_v45, %v5782_v52  ;;  %v5787_v30 = vadd.f32 %v9894_v47, %v5289_v29  ;;  %v5287_v11 = vadd.f32 %v5196_v16, %v4533_v55  ;;  %v10309_v47 = vld [vmem:[#allocation3_spill] sm:$0xff]  ;;  %v4156_v18 = vadd.f32 %v10314_v15, %v10313_v28  ;;  %v10317_v16 = vld [vmem:[#allocation36_spill] sm:$0xff] }
 0x26f   : > { %v5883_v24 = vadd.f32 %v5882_v36, %v5820_v31  ;;  %v5952_v3 = vadd.f32 %v5951_v62, %v5921_v25  ;;  %v7203_v42 = vpop.f32.mrf.mxu1  ;;  %v4151_v5 = vadd.f32 %v10309_v47, %v10308_v21  ;;  %v4540_v55 = vadd.f32 %v10312_v59, %v4153_v32  ;;  %v10315_v25 = vld [vmem:[#allocation18_spill] sm:$0xff]  ;;  %v10316_v36 = vld [vmem:[#allocation5_spill] sm:$0xff]  ;;  %v10322_v47 = vld [vmem:[#allocation19_spill] sm:$0xff] }
 0x270   : > { %v9965_v37 = vpop.f32.mrf.mxu0  ;;  %5853 = vst [vmem:[%s9868_s21 + $0x48] sm:$0xff] %v5821_v41  ;;  %v5923_v1 = vmul.f32 %v5821_v41, %v5821_v41  ;;  %v5826_v49 = vadd.f32 %v9858_v45, %v5787_v30  ;;  %v5785_v43 = vadd.f32 %v9902_v33, %v5287_v11  ;;  %v5290_v4 = vadd.f32 %v7203_v42, %v4536_v22  ;;  %v10320_v42 = vld [vmem:[#allocation16_spill] sm:$0xff] }
 0x271   : > { %v5953_v58 = vadd.f32 %v5952_v3, %v5922_v35  ;;  %v5884_v54 = vadd.f32 %v5883_v24, %v5821_v41  ;;  %v5199_v2 = vpop.f32.mrf.mxu1  ;;  %v4537_v33 = vadd.f32 %v10311_v12, %v4150_v44  ;;  %v5925_v19 = vmul.f32 %v5823_v10, %v5823_v10  ;;  %v10318_v44 = vld [vmem:[#allocation7_spill] sm:$0xff]  ;;  %v10319_v41 = vld [vmem:[#allocation38_spill] sm:$0xff] }
 0x272   : > { %v9973_v23 = vpop.f32.mrf.mxu0  ;;  %5858 = vst [vmem:[%s9868_s21 + $0x70] sm:$0xff] %v5826_v49  ;;  %v5824_v0 = vadd.f32 %v9858_v45, %v5785_v43  ;;  %v5788_v51 = vadd.f32 %v9910_v14, %v5290_v4  ;;  %v5288_v9 = vadd.f32 %v5199_v2, %v4534_v13  ;;  %v4538_v62 = vadd.f32 %v10315_v25, %v4151_v5  ;;  %v10324_v12 = vld [vmem:[#allocation22_spill] sm:$0xff] }
 0x273   : > { %v5885_v39 = vadd.f32 %v5884_v54, %v5822_v7  ;;  %v5954_v31 = vadd.f32 %v5953_v58, %v5923_v1  ;;  %v7206_v61 = vpop.f32.mrf.mxu1  ;;  %v4154_v38 = vadd.f32 %v10317_v16, %v10316_v36  ;;  %v4543_v5 = vadd.f32 %v10322_v47, %v4156_v18  ;;  %v10330_v36 = vld [vmem:[#allocation23_spill] sm:$0xff]  ;;  %v10331_v16 = vld [vmem:[#allocation45_spill] sm:$0xff] }
 0x274   : > { %v9980_v26 = vpop.f32.mrf.mxu0  ;;  %5856 = vst [vmem:[%s9868_s21 + $0x60] sm:$0xff] %v5824_v0  ;;  %v5827_v22 = vadd.f32 %v9858_v45, %v5788_v51  ;;  %v5786_v14 = vadd.f32 %v9918_v50, %v5288_v9  ;;  %v5293_v60 = vadd.f32 %v7206_v61, %v4539_v53  ;;  %v4157_v50 = vadd.f32 %v10319_v41, %v10318_v44 }
 0x275   : > { %v5955_v52 = vadd.f32 %v5954_v31, %v5924_v8  ;;  %v5886_v7 = vadd.f32 %v5885_v39, %v5823_v10  ;;  %v5212_v29 = vpop.f32.mrf.mxu1  ;;  %v5926_v11 = vmul.f32 %v5824_v0, %v5824_v0  ;;  %v4541_v53 = vadd.f32 %v10323_v17, %v4154_v38  ;;  %v10325_v39 = vld [vmem:[#allocation21_spill] sm:$0xff]  ;;  %v10326_v31 = vld [vmem:[#allocation42_spill] sm:$0xff] }
 0x276   : > { %5859 = vst [vmem:[%s9868_s21 + $0x78] sm:$0xff] %v5827_v22  ;;  %v5825_v13 = vadd.f32 %v9858_v45, %v5786_v14  ;;  %v5791_v46 = vadd.f32 %v9925_v20, %v5293_v60  ;;  %v5291_v57 = vadd.f32 %v5212_v29, %v4537_v33  ;;  %v9995_v34 = vpop.f32.mrf.mxu0  ;;  %v10321_v20 = vld [vmem:[#allocation40_spill] sm:$0xff]  ;;  %v4544_v33 = vadd.f32 %v10324_v12, %v4157_v50  ;;  %v10327_v14 = vld [vmem:[#allocation27_spill] sm:$0xff] }
 0x277   : > { %v5887_v30 = vadd.f32 %v5886_v7, %v5824_v0  ;;  %v5956_v40 = vadd.f32 %v5955_v52, %v5925_v19  ;;  %v7207_v10 = vpop.f32.mrf.mxu1  ;;  %v4155_v1 = vadd.f32 %v10321_v20, %v10320_v42  ;;  %v5928_v0 = vmul.f32 %v5826_v49, %v5826_v49  ;;  %v10328_v19 = vld [vmem:[#allocation31_spill] sm:$0xff]  ;;  %v10329_v52 = vld [vmem:[#allocation44_spill] sm:$0xff] }
 0x278   : > { %5857 = vst [vmem:[%s9868_s21 + $0x68] sm:$0xff] %v5825_v13  ;;  %v5927_v32 = vmul.f32 %v5825_v13, %v5825_v13  ;;  %v5830_v24 = vadd.f32 %v9858_v45, %v5791_v46  ;;  %v5789_v35 = vadd.f32 %v9933_v6, %v5291_v57  ;;  %v5294_v3 = vadd.f32 %v7207_v10, %v4540_v55  ;;  %v10008_v8 = vpop.f32.mrf.mxu0  ;;  %v10332_v10 = vld [vmem:[#allocation30_spill] sm:$0xff] }
 0x279   : > { %v5957_v43 = vadd.f32 %v5956_v40, %v5926_v11  ;;  %v5888_v4 = vadd.f32 %v5887_v30, %v5825_v13  ;;  %v5215_v21 = vpop.f32.mrf.mxu1  ;;  %v4160_v61 = vadd.f32 %v10326_v31, %v10325_v39  ;;  %v5929_v28 = vmul.f32 %v5827_v22, %v5827_v22 }
 0x27a   : > { %5862 = vst [vmem:[%s9868_s21 + $0x90] sm:$0xff] %v5830_v24  ;;  %v5828_v58 = vadd.f32 %v9858_v45, %v5789_v35  ;;  %v5792_v54 = vadd.f32 %v9941_v48, %v5294_v3  ;;  %v5292_v2 = vadd.f32 %v5215_v21, %v4538_v62  ;;  %v4542_v60 = vadd.f32 %v10327_v14, %v4155_v1  ;;  %v7263_v57 = vpop.f32.mrf.mxu0  ;;  %v10333_v35 = vld [vmem:[#allocation33_spill] sm:$0xff]  ;;  %v10334_v3 = vld [vmem:[#allocation46_spill] sm:$0xff] }
 0x27b   : > { %v5889_v6 = vadd.f32 %v5888_v4, %v5826_v49  ;;  %v5958_v51 = vadd.f32 %v5957_v43, %v5927_v32  ;;  %v7210_v9 = vpop.f32.mrf.mxu1  ;;  %v4158_v7 = vadd.f32 %v10329_v52, %v10328_v19  ;;  %v4547_v32 = vadd.f32 %v10332_v10, %v4160_v61 }
 0x27c   : > { %5860 = vst [vmem:[%s9868_s21 + $0x80] sm:$0xff] %v5828_v58  ;;  %v5831_v59 = vadd.f32 %v9858_v45, %v5792_v54  ;;  %v5790_v48 = vadd.f32 %v9948_v56, %v5292_v2  ;;  %v5297_v55 = vadd.f32 %v7210_v9, %v4543_v5  ;;  %v4161_v56 = vadd.f32 %v10331_v16, %v10330_v36  ;;  %v10335_v5 = vld [vmem:[#allocation9_spill] sm:$0xff]  ;;  %v5745_v54 = vpop.f32.mrf.mxu0  ;;  %v10338_v9 = vld [vmem:[#allocation47_spill] sm:$0xff] }
 0x27d   : > { %v5959_v15 = vadd.f32 %v5958_v51, %v5928_v0  ;;  %v5890_v49 = vadd.f32 %v5889_v6, %v5827_v22  ;;  %v5228_v18 = vpop.f32.mrf.mxu1  ;;  %v5930_v13 = vmul.f32 %v5828_v58, %v5828_v58  ;;  %v4159_v42 = vadd.f32 %v10334_v3, %v10333_v35  ;;  %v10336_v0 = vld [vmem:[#allocation14_spill] sm:$0xff]  ;;  %v10337_v51 = vld [vmem:[#allocation25_spill] sm:$0xff] }
 0x27e   : > { %5863 = vst [vmem:[%s9868_s21 + $0x98] sm:$0xff] %v5831_v59  ;;  %v5829_v29 = vadd.f32 %v9858_v45, %v5790_v48  ;;  %v5795_v25 = vadd.f32 %v9956_v27, %v5297_v55  ;;  %v5295_v62 = vadd.f32 %v5228_v18, %v4541_v53  ;;  %v5932_v4 = vmul.f32 %v5830_v24, %v5830_v24  ;;  %v10339_v55 = vld [vmem:[#allocation35_spill] sm:$0xff]  ;;  %v7266_v52 = vpop.f32.mrf.mxu0  ;;  %v10342_v16 = vld [vmem:[#allocation37_spill] sm:$0xff] }
 0x27f   : > { %v5891_v38 = vadd.f32 %v5890_v49, %v5828_v58  ;;  %v5960_v46 = vadd.f32 %v5959_v15, %v5929_v28  ;;  %v7211_v22 = vpop.f32.mrf.mxu1  ;;  %v4545_v58 = vadd.f32 %v10335_v5, %v4158_v7  ;;  %v4548_v6 = vadd.f32 %v10336_v0, %v4161_v56  ;;  %v10341_v15 = vld [vmem:[#allocation48_spill] sm:$0xff] }
 0x280   : > { %5861 = vst [vmem:[%s9868_s21 + $0x88] sm:$0xff] %v5829_v29  ;;  %v5931_v44 = vmul.f32 %v5829_v29, %v5829_v29  ;;  %v5834_v41 = vadd.f32 %v9858_v45, %v5795_v25  ;;  %v5793_v50 = vadd.f32 %v9965_v37, %v5295_v62  ;;  %v5298_v30 = vadd.f32 %v7211_v22, %v4544_v33 }
 0x281   : > { %v5961_v11 = vadd.f32 %v5960_v46, %v5930_v13  ;;  %v5892_v27 = vadd.f32 %v5891_v38, %v5829_v29  ;;  %v5231_v40 = vpop.f32.mrf.mxu1  ;;  %v5933_v12 = vmul.f32 %v5831_v59, %v5831_v59  ;;  %v4546_v28 = vadd.f32 %v10339_v55, %v4159_v42  ;;  %v10343_v38 = vld [vmem:[#allocation26_spill] sm:$0xff] }
 0x282   : > { %5866 = vst [vmem:[%s9868_s21 + $0xb0] sm:$0xff] %v5834_v41  ;;  %v5832_v20 = vadd.f32 %v9858_v45, %v5793_v50  ;;  %v5796_v1 = vadd.f32 %v9973_v23, %v5298_v30  ;;  %v5296_v43 = vadd.f32 %v5231_v40, %v4542_v60  ;;  %v4164_v23 = vadd.f32 %v10338_v9, %v10337_v51  ;;  %v10344_v50 = vld [vmem:[#allocation28_spill] sm:$0xff]  ;;  %v10345_v30 = vld [vmem:[#allocation49_spill] sm:$0xff] }
 0x283   : > { %v5893_v21 = vadd.f32 %v5892_v27, %v5830_v24  ;;  %v5962_v37 = vadd.f32 %v5961_v11, %v5931_v44  ;;  %v7214_v47 = vpop.f32.mrf.mxu1  ;;  %v4165_v13 = vadd.f32 %v9841_v63, %v10343_v38  ;;  %v4163_v11 = vadd.f32 %v10345_v30, %v10344_v50  ;;  %v10346_v63 = vld [vmem:[#allocation39_spill] sm:$0xff] }
 0x284   : > { %5864 = vst [vmem:[%s9868_s21 + $0xa0] sm:$0xff] %v5832_v20  ;;  %v5835_v2 = vadd.f32 %v9858_v45, %v5796_v1  ;;  %v5794_v17 = vadd.f32 %v9980_v26, %v5296_v43  ;;  %v5301_v53 = vadd.f32 %v7214_v47, %v4547_v32  ;;  %v10340_v26 = vld [vmem:[#allocation34_spill] sm:$0xff]  ;;  %v5934_v14 = vmul.f32 %v5832_v20, %v5832_v20  ;;  %v5758_v32 = vpop.f32.mrf.mxu0  ;;  %v10347_v47 = vld [vmem:[#allocation41_spill] sm:$0xff] }
 0x285   : > { %v5963_v33 = vadd.f32 %v5962_v37, %v5932_v4  ;;  %v5894_v24 = vadd.f32 %v5893_v21, %v5831_v59  ;;  %v5244_v39 = vpop.f32.mrf.mxu1  ;;  %v4162_v49 = vadd.f32 %v10341_v15, %v10340_v26  ;;  %v4551_v56 = vadd.f32 %v10342_v16, %v4164_v23 }
 0x286   : > { %5867 = vst [vmem:[%s9868_s21 + $0xb8] sm:$0xff] %v5835_v2  ;;  %v5833_v31 = vadd.f32 %v9858_v45, %v5794_v17  ;;  %v5799_v61 = vadd.f32 %v9995_v34, %v5301_v53  ;;  %v5299_v48 = vadd.f32 %v5244_v39, %v4545_v58  ;;  %v5937_v1 = vmul.f32 %v5835_v2, %v5835_v2 }
 0x287   : > { %v5895_v18 = vadd.f32 %v5894_v24, %v5832_v20  ;;  %v5964_v60 = vadd.f32 %v5963_v33, %v5933_v12  ;;  %v7215_v19 = vpop.f32.mrf.mxu1  ;;  %v4549_v20 = vadd.f32 %v10346_v63, %v4162_v49  ;;  %v4552_v5 = vadd.f32 %v10347_v47, %v4165_v13 }
 0x288   : > { %5865 = vst [vmem:[%s9868_s21 + $0xa8] sm:$0xff] %v5833_v31  ;;  %v5935_v59 = vmul.f32 %v5833_v31, %v5833_v31  ;;  %v5838_v7 = vadd.f32 %v9858_v45, %v5799_v61  ;;  %v5797_v29 = vadd.f32 %v10008_v8, %v5299_v48  ;;  %v5302_v25 = vadd.f32 %v7215_v19, %v4548_v6  ;;  %v10348_v6 = vld [vmem:[#allocation43_spill] sm:$0xff] }
 0x289   : > { %v5965_v34 = vadd.f32 %v5964_v60, %v5934_v14  ;;  %v5896_v62 = vadd.f32 %v5895_v18, %v5833_v31  ;;  %v5247_v36 = vpop.f32.mrf.mxu1  ;;  %v5936_v8 = vmul.f32 %v5834_v41, %v5834_v41  ;;  %v4550_v51 = vadd.f32 %v10348_v6, %v4163_v11 }
 0x28a   : > { %5870 = vst [vmem:[%s9868_s21 + $0xd0] sm:$0xff] %v5838_v7  ;;  %v5836_v46 = vadd.f32 %v9858_v45, %v5797_v29  ;;  %v5800_v22 = vadd.f32 %v7263_v57, %v5302_v25  ;;  %v5300_v44 = vadd.f32 %v5247_v36, %v4546_v28  ;;  %v5940_v55 = vmul.f32 %v5838_v7, %v5838_v7 }
 0x28b   : > { %v5897_v27 = vadd.f32 %v5896_v62, %v5834_v41  ;;  %v5966_v40 = vadd.f32 %v5965_v34, %v5935_v59  ;;  %v7218_v10 = vpop.f32.mrf.mxu1 }
 0x28c   : > { %5868 = vst [vmem:[%s9868_s21 + $0xc0] sm:$0xff] %v5836_v46  ;;  %v5839_v35 = vadd.f32 %v9858_v45, %v5800_v22  ;;  %v5798_v3 = vadd.f32 %v5745_v54, %v5300_v44  ;;  %v5305_v42 = vadd.f32 %v7218_v10, %v4551_v56  ;;  %v5938_v17 = vmul.f32 %v5836_v46, %v5836_v46  ;;  %v7267_v54 = vpop.f32.mrf.mxu0 }
 0x28d   : > { %v5967_v57 = vadd.f32 %v5966_v40, %v5936_v8  ;;  %v5898_v43 = vadd.f32 %v5897_v27, %v5835_v2  ;;  %v5260_v4 = vpop.f32.mrf.mxu1 }
 0x28e   : > { %5871 = vst [vmem:[%s9868_s21 + $0xd8] sm:$0xff] %v5839_v35  ;;  %v5837_v21 = vadd.f32 %v9858_v45, %v5798_v3  ;;  %v5803_v37 = vadd.f32 %v7266_v52, %v5305_v42  ;;  %v5303_v41 = vadd.f32 %v5260_v4, %v4549_v20  ;;  %v5761_v15 = vpop.f32.mrf.mxu0  ;;  %v5941_v14 = vmul.f32 %v5839_v35, %v5839_v35 }
 0x28f   : > { %v5899_v58 = vadd.f32 %v5898_v43, %v5836_v46  ;;  %v5968_v53 = vadd.f32 %v5967_v57, %v5937_v1  ;;  %v7219_v0 = vpop.f32.mrf.mxu1 }
 0x290   : > { %5869 = vst [vmem:[%s9868_s21 + $0xc8] sm:$0xff] %v5837_v21  ;;  %v5939_v9 = vmul.f32 %v5837_v21, %v5837_v21  ;;  %v5842_v2 = vadd.f32 %v9858_v45, %v5803_v37  ;;  %v5801_v23 = vadd.f32 %v5758_v32, %v5303_v41  ;;  %v5306_v12 = vadd.f32 %v7219_v0, %v4552_v5 }
 0x291   : > { %v5969_v33 = vadd.f32 %v5968_v53, %v5938_v17  ;;  %v5900_v24 = vadd.f32 %v5899_v58, %v5837_v21  ;;  %v5263_v39 = vpop.f32.mrf.mxu1 }
 0x292   : > { %5874 = vst [vmem:[%s9868_s21 + $0xf0] sm:$0xff] %v5842_v2  ;;  %v5840_v31 = vadd.f32 %v9858_v45, %v5801_v23  ;;  %v5804_v61 = vadd.f32 %v7267_v54, %v5306_v12  ;;  %v5304_v48 = vadd.f32 %v5263_v39, %v4550_v51  ;;  %v5944_v36 = vmul.f32 %v5842_v2, %v5842_v2 }
 0x293   : > { %v5901_v28 = vadd.f32 %v5900_v24, %v5838_v7  ;;  %v5970_v26 = vadd.f32 %v5969_v33, %v5939_v9 }
 0x294   : > { %5872 = vst [vmem:[%s9868_s21 + $0xe0] sm:$0xff] %v5840_v31  ;;  %v5843_v49 = vadd.f32 %v9858_v45, %v5804_v61  ;;  %v5802_v18 = vadd.f32 %v5761_v15, %v5304_v48  ;;  %v5942_v29 = vmul.f32 %v5840_v31, %v5840_v31 }
 0x295   : > { %v5971_v60 = vadd.f32 %v5970_v26, %v5940_v55  ;;  %v5902_v19 = vadd.f32 %v5901_v28, %v5839_v35 }
 0x296   : > { %5875 = vst [vmem:[%s9868_s21 + $0xf8] sm:$0xff] %v5843_v49  ;;  %v5841_v52 = vadd.f32 %v9858_v45, %v5802_v18  ;;  %v5945_v38 = vmul.f32 %v5843_v49, %v5843_v49 }
 0x297   : > { %v5903_v59 = vadd.f32 %v5902_v19, %v5840_v31  ;;  %v5972_v25 = vadd.f32 %v5971_v60, %v5941_v14 }
 0x298   : > { %5873 = vst [vmem:[%s9868_s21 + $0xe8] sm:$0xff] %v5841_v52  ;;  %v5943_v34 = vmul.f32 %v5841_v52, %v5841_v52 }
 0x299   : > { %v5973_v62 = vadd.f32 %v5972_v25, %v5942_v29  ;;  %v5904_v7 = vadd.f32 %v5903_v59, %v5841_v52 }
 0x29b   : > { %v5905_v16 = vadd.f32 %v5904_v7, %v5842_v2  ;;  %v5974_v56 = vadd.f32 %v5973_v62, %v5943_v34 }
 0x29d   : > { %v5906_v13 = vadd.f32 %v5905_v16, %v5843_v49  ;;  %v5975_v46 = vadd.f32 %v5974_v56, %v5944_v36 }
 0x29f   : > { %v5907_v22 = vrot.slane %v5906_v13, 4  ;;  %v5976_v44 = vadd.f32 %v5975_v46, %v5945_v38 }
 0x2a1   : > { %v5908_v50 = vadd.f32 %v5907_v22, %v5906_v13  ;;  %v5977_v30 = vrot.slane %v5976_v44, 4 }
 0x2a3   : > { %v5909_v11 = vrot.slane %v5908_v50, 2  ;;  %v5978_v45 = vadd.f32 %v5977_v30, %v5976_v44 }
 0x2a5   : > { %v5910_v8 = vadd.f32 %v5909_v11, %v5908_v50  ;;  %v5979_v27 = vrot.slane %v5978_v45, 2 }
 0x2a7   : > { %v5911_v40 = vrot.slane %v5910_v8, 1  ;;  %v5980_v10 = vadd.f32 %v5979_v27, %v5978_v45 }
 0x2a9   : > { %v5912_v32 = vadd.f32 %v5911_v40, %v5910_v8  ;;  %v5981_v35 = vrot.slane %v5980_v10, 1 }
 0x2ab   : > { %5913 = vst [vmem:[%s235_s25] sm:$0x1] %v5912_v32  ;;  %v5982_v3 = vadd.f32 %v5981_v35, %v5980_v10 }
 0x2ad   : > { %5983 = vst [vmem:[%s235_s25 + $0x1] sm:$0x1] %v5982_v3 }
 0x2ae PF: > { %s16_s18 = sadd.s32 1, %s7442_s18  }
 0x2af   : > { %p13_p4 = scmp.ge.s32.totalorder %s16_s18, 4  }
 0x2b1   :  { %15 = sbr.rel (!%p13_p4) target bundleno = 1 (0x1), region = 88 }

</bundles_post_ra>
